<compile_context>
chip_gen: v6e
topology: v6e:2x2x1
jax: 0.10.0
libtpu: 0.0.40
codegen_flags: <defaults>
</compile_context>

<pallas_src>
import jax
import jax.numpy as jnp
from jax.experimental import pallas as pl
from jax.experimental.pallas import tpu as pltpu

CFG_SMALL = [8, 8, "M", 16, "M"]   # scaled-down VGG config
CPAD = 128                         # lane-dense channel padding (vreg lane width)


def _pad_last(x, target):
    pad = target - x.shape[-1]
    if pad == 0:
        return x
    return jnp.pad(x, [(0, 0)] * (x.ndim - 1) + [(0, pad)])


# ----------------------------------------------------------------------------
# Conv3x3 (pad=1, no bias) + folded BatchNorm + ReLU
# im2col: 9 shifted views of a VMEM-padded copy of the input are concatenated
# along lanes into one (H*W, 9*CPAD) patch matrix -> a single MXU matmul.
# ----------------------------------------------------------------------------
def _conv_bn_relu_kernel(x_ref, w_ref, scale_ref, shift_ref, o_ref, xpad_ref):
    _, H, W, C = x_ref.shape
    cout = o_ref.shape[-1]
    # Build the zero halo in VMEM (no HBM-side jnp.pad).  The interior lands at
    # a sublane-aligned column offset (8); halo columns are 7 and 8 + W, halo
    # rows are 0 and H + 1.  Zeroed every step: the scratch is per-core under
    # megacore partitioning, so a "zero once at pid==0" trick would be unsafe.
    xpad_ref[...] = jnp.zeros_like(xpad_ref)
    xpad_ref[pl.ds(1, H), pl.ds(8, W), :] = x_ref[0]
    cols = [xpad_ref[pl.ds(dh, H), pl.ds(7 + dw, W), :]
            for dh in range(3) for dw in range(3)]
    patches = jnp.concatenate(cols, axis=-1).reshape(H * W, 9 * C)   # (H*W, 9*C)
    acc = jnp.dot(patches, w_ref[...], preferred_element_type=jnp.float32)
    y = jnp.maximum(acc * scale_ref[...] + shift_ref[...], 0.0)      # BN + ReLU, f32
    o_ref[0] = y.reshape(H, W, cout).astype(o_ref.dtype)


def conv_bn_relu(x_nhwc, w_mat, scale, shift):
    N, H, W, CP = x_nhwc.shape
    KC, CO = w_mat.shape
    # TODO(synk): for full-resolution VGG, tile the grid over (N, row-strips) so
    # per-step blocks stay within v7x's 64 MiB VMEM and the pipeline has depth.
    return pl.pallas_call(
        _conv_bn_relu_kernel,
        out_shape=jax.ShapeDtypeStruct((N, H, W, CO), jnp.bfloat16),
        grid=(N,),
        in_specs=[
            pl.BlockSpec((1, H, W, CP), lambda n: (n, 0, 0, 0)),
            pl.BlockSpec((KC, CO), lambda n: (0, 0)),
            pl.BlockSpec((1, CO), lambda n: (0, 0)),
            pl.BlockSpec((1, CO), lambda n: (0, 0)),
        ],
        out_specs=pl.BlockSpec((1, H, W, CO), lambda n: (n, 0, 0, 0)),
        scratch_shapes=[pltpu.VMEM((H + 2, W + 16, CP), jnp.bfloat16)],
        compiler_params=pltpu.CompilerParams(dimension_semantics=("parallel",)),
    )(x_nhwc, w_mat, scale, shift)


# ----------------------------------------------------------------------------
# MaxPool 2x2, stride 2 (lane-dense, no wrapper-side 6-D transpose)
# ----------------------------------------------------------------------------
def _maxpool_kernel(x_ref, o_ref):
    # x_ref: (1, H, W, 1, C); o_ref: (1, H//2, W//2, 1, C).  The singleton axis
    # keeps C on the lanes and H, W on untiled leading dims, so the 2x2 window
    # max is plain leading-dim slicing (no sublane shuffles / strided loads).
    _, H, W, _, C = x_ref.shape
    v = x_ref[0]                                    # (H, W, 1, C)
    v = v.reshape(H, W // 2, 2, 1, C)
    v = jnp.maximum(v[:, :, 0], v[:, :, 1])         # pool along W -> (H, W//2, 1, C)
    v = v.reshape(H // 2, 2, W // 2, 1, C)
    o_ref[0] = jnp.maximum(v[:, 0], v[:, 1])        # pool along H -> (H//2, W//2, 1, C)


def maxpool2x2(x_nhwc):
    N, H, W, C = x_nhwc.shape
    Ho, Wo = H // 2, W // 2
    x5 = x_nhwc.reshape(N, H, W, 1, C)              # free in XLA (unit-dim insert)
    y5 = pl.pallas_call(
        _maxpool_kernel,
        out_shape=jax.ShapeDtypeStruct((N, Ho, Wo, 1, C), x_nhwc.dtype),
        grid=(N,),
        in_specs=[pl.BlockSpec((1, H, W, 1, C), lambda n: (n, 0, 0, 0, 0))],
        out_specs=pl.BlockSpec((1, Ho, Wo, 1, C), lambda n: (n, 0, 0, 0, 0)),
        compiler_params=pltpu.CompilerParams(dimension_semantics=("parallel",)),
    )(x5)
    return y5.reshape(N, Ho, Wo, C)


# ----------------------------------------------------------------------------
# Fused classifier: linear -> relu -> (same weights) linear -> relu -> linear_out
# All weights VMEM-resident at demo scale; f32 accumulation; bf16 into the MXU.
# ----------------------------------------------------------------------------
def _classifier_kernel(x_ref, w_ref, b_ref, wo_ref, bo_ref, o_ref):
    x = x_ref[...]                                       # (B, F) bf16
    w = w_ref[...]                                       # (F, F) bf16
    b = b_ref[...]                                       # (1, F) f32
    h = jnp.maximum(jnp.dot(x, w, preferred_element_type=jnp.float32) + b, 0.0)
    h = jnp.maximum(jnp.dot(h.astype(x.dtype), w,
                            preferred_element_type=jnp.float32) + b, 0.0)
    o_ref[...] = (jnp.dot(h.astype(x.dtype), wo_ref[...],
                          preferred_element_type=jnp.float32) + bo_ref[...])


def classifier(x, w, b, w_out, b_out):
    B, F = x.shape
    NO = w_out.shape[1]
    return pl.pallas_call(
        _classifier_kernel,
        out_shape=jax.ShapeDtypeStruct((B, NO), jnp.float32),
        grid=(1,),
        in_specs=[
            pl.BlockSpec((B, F), lambda i: (0, 0)),
            pl.BlockSpec((F, F), lambda i: (0, 0)),
            pl.BlockSpec((1, F), lambda i: (0, 0)),
            pl.BlockSpec((F, NO), lambda i: (0, 0)),
            pl.BlockSpec((1, NO), lambda i: (0, 0)),
        ],
        out_specs=pl.BlockSpec((B, NO), lambda i: (0, 0)),
        compiler_params=pltpu.CompilerParams(dimension_semantics=("arbitrary",)),
    )(x, w, b.reshape(1, F), w_out, b_out.reshape(1, NO))


# ----------------------------------------------------------------------------
# Parameter init (deterministic, synthetic) and forward pass
# ----------------------------------------------------------------------------
def init_params(key, cfg, in_channels=3, spatial=16, num_classes=3):
    params = {"convs": []}
    c_in, h = in_channels, spatial
    eps = 1e-5
    for v in cfg:
        if v == "M":
            h //= 2
            continue
        key, kw, kg, kb, km, kv = jax.random.split(key, 6)
        w = jax.random.normal(kw, (3, 3, c_in, v), jnp.float32) * jnp.sqrt(2.0 / (9 * c_in))
        gamma = 1.0 + 0.1 * jax.random.normal(kg, (v,), jnp.float32)
        beta = 0.1 * jax.random.normal(kb, (v,), jnp.float32)
        mean = 0.1 * jax.random.normal(km, (v,), jnp.float32)
        var = jnp.abs(jax.random.normal(kv, (v,), jnp.float32)) + 0.5
        # TODO(synk): BatchNorm folded in inference mode (running stats); training-mode
        # batch statistics are not computed in-kernel.
        scale = gamma / jnp.sqrt(var + eps)
        shift = beta - mean * scale
        # im2col weight matrix, zero-padded to the 128-lane channel layout; padded
        # output lanes get zero scale/shift so they stay exactly 0 through BN+ReLU.
        wp = jnp.zeros((9, CPAD, CPAD), jnp.float32)
        wp = wp.at[:, :c_in, :v].set(w.reshape(9, c_in, v))
        params["convs"].append((
            wp.reshape(9 * CPAD, CPAD).astype(jnp.bfloat16),
            jnp.zeros((1, CPAD), jnp.float32).at[0, :v].set(scale),
            jnp.zeros((1, CPAD), jnp.float32).at[0, :v].set(shift),
        ))
        c_in = v
    feat = c_in * h * h
    ncp = ((num_classes + 127) // 128) * 128     # lane-dense classifier output
    key, k1, k2, k3, k4 = jax.random.split(key, 5)
    params["linear_w"] = (jax.random.normal(k1, (feat, feat), jnp.float32)
                          / jnp.sqrt(feat)).astype(jnp.bfloat16)
    params["linear_b"] = 0.01 * jax.random.normal(k2, (feat,), jnp.float32)
    w_out = jax.random.normal(k3, (feat, num_classes), jnp.float32) / jnp.sqrt(feat)
    b_out = 0.01 * jax.random.normal(k4, (num_classes,), jnp.float32)
    params["linear_out_w"] = (jnp.zeros((feat, ncp), jnp.float32)
                              .at[:, :num_classes].set(w_out).astype(jnp.bfloat16))
    params["linear_out_b"] = jnp.zeros((ncp,), jnp.float32).at[:num_classes].set(b_out)
    return params


def vgg_forward(params, x_nchw, cfg, num_classes=3):
    x = jnp.transpose(x_nchw, (0, 2, 3, 1))               # NCHW -> NHWC
    x = _pad_last(x, CPAD).astype(jnp.bfloat16)           # lane-dense channels, bf16
    c_real, ci = x_nchw.shape[1], 0
    for v in cfg:
        if v == "M":
            x = maxpool2x2(x)
        else:
            w_mat, scale, shift = params["convs"][ci]
            x = conv_bn_relu(x, w_mat, scale, shift)
            c_real, ci = v, ci + 1
    # flatten with PyTorch (NCHW) ordering over the real (unpadded) channels
    x = jnp.transpose(x[..., :c_real], (0, 3, 1, 2)).reshape(x.shape[0], -1)
    # NOTE: the PyTorch module reuses self.linear (same weights) a second time;
    # the fused classifier kernel applies `linear_w` twice with fused ReLUs.
    logits = classifier(x.astype(jnp.bfloat16),
                        params["linear_w"], params["linear_b"],
                        params["linear_out_w"], params["linear_out_b"])
    return logits[:, :num_classes]


if __name__ == "__main__":
    key = jax.random.PRNGKey(0)
    kx, kp = jax.random.split(key)
    x = jax.random.normal(kx, (2, 3, 16, 16), jnp.float32)   # NCHW, like PyTorch
    params = init_params(kp, CFG_SMALL, in_channels=3, spatial=16, num_classes=3)

    fwd = jax.jit(lambda p, xx: vgg_forward(p, xx, CFG_SMALL, num_classes=3))
    out = fwd(params, x)
    jax.block_until_ready(out)
    assert out.shape == (2, 3) and out.dtype == jnp.float32
    print("KERNEL_OK")
</pallas_src>

<mosaic_0001>
module attributes {stable_mosaic.version = 11 : i64} {
  func.func @_conv_bn_relu_kernel(%arg0: i32, %arg1: memref<1x16x16x128xbf16, #tpu.memory_space<vmem>>, %arg2: memref<1152x128xbf16, #tpu.memory_space<vmem>>, %arg3: memref<1x128xf32, #tpu.memory_space<vmem>>, %arg4: memref<1x128xf32, #tpu.memory_space<vmem>>, %arg5: memref<1x16x16x128xbf16, #tpu.memory_space<vmem>>, %arg6: memref<18x32x128xbf16, #tpu.memory_space<vmem>>) attributes {dimension_semantics = [#tpu.dimension_semantics<parallel>], iteration_bounds = array<i64: 2>, scalar_prefetch = 0 : i64, scratch_operands = 1 : i64, tpu.core_type = #tpu.core_type<tc>, window_params = [{transform_indices = @transform_0, window_bounds = array<i64: 1, 16, 16, 128>}, {pipeline_mode = #tpu.pipeline_mode<synchronous>, transform_indices = @transform_1, window_bounds = array<i64: 1152, 128>}, {pipeline_mode = #tpu.pipeline_mode<synchronous>, transform_indices = @transform_2, window_bounds = array<i64: 1, 128>}, {pipeline_mode = #tpu.pipeline_mode<synchronous>, transform_indices = @transform_3, window_bounds = array<i64: 1, 128>}, {transform_indices = @transform_4, window_bounds = array<i64: 1, 16, 16, 128>}]} {
    %cst = arith.constant 0.000000e+00 : bf16
    %0 = vector.broadcast %cst : bf16 to vector<18x32x128xbf16>
    %c0 = arith.constant 0 : index
    %c0_0 = arith.constant 0 : index
    %c0_1 = arith.constant 0 : index
    %1 = vector.load %arg6[%c0, %c0_0, %c0_1] : memref<18x32x128xbf16, #tpu.memory_space<vmem>>, vector<18x32x128xbf16>
    tpu.vector_store %arg6[%c0, %c0_0, %c0_1], %0 {strides = array<i32>} : memref<18x32x128xbf16, #tpu.memory_space<vmem>>, vector<18x32x128xbf16>,
    %c0_2 = arith.constant 0 : index
    %c0_3 = arith.constant 0 : index
    %c0_4 = arith.constant 0 : index
    %c0_5 = arith.constant 0 : index
    %2 = vector.load %arg1[%c0_2, %c0_3, %c0_4, %c0_5] : memref<1x16x16x128xbf16, #tpu.memory_space<vmem>>, vector<1x16x16x128xbf16>
    %3 = vector.shape_cast %2 : vector<1x16x16x128xbf16> to vector<16x16x128xbf16>
    %c1 = arith.constant 1 : index
    %c8 = arith.constant 8 : index
    %c0_6 = arith.constant 0 : index
    %4 = vector.load %arg6[%c1, %c8, %c0_6] : memref<18x32x128xbf16, #tpu.memory_space<vmem>>, vector<16x16x128xbf16>
    tpu.vector_store %arg6[%c1, %c8, %c0_6], %3 {strides = array<i32>} : memref<18x32x128xbf16, #tpu.memory_space<vmem>>, vector<16x16x128xbf16>,
    %c0_7 = arith.constant 0 : index
    %c7 = arith.constant 7 : index
    %c0_8 = arith.constant 0 : index
    %5 = vector.load %arg6[%c0_7, %c7, %c0_8] : memref<18x32x128xbf16, #tpu.memory_space<vmem>>, vector<16x16x128xbf16>
    %c0_9 = arith.constant 0 : index
    %c8_10 = arith.constant 8 : index
    %c0_11 = arith.constant 0 : index
    %6 = vector.load %arg6[%c0_9, %c8_10, %c0_11] : memref<18x32x128xbf16, #tpu.memory_space<vmem>>, vector<16x16x128xbf16>
    %c0_12 = arith.constant 0 : index
    %c9 = arith.constant 9 : index
    %c0_13 = arith.constant 0 : index
    %7 = vector.load %arg6[%c0_12, %c9, %c0_13] : memref<18x32x128xbf16, #tpu.memory_space<vmem>>, vector<16x16x128xbf16>
    %c1_14 = arith.constant 1 : index
    %c7_15 = arith.constant 7 : index
    %c0_16 = arith.constant 0 : index
    %8 = vector.load %arg6[%c1_14, %c7_15, %c0_16] : memref<18x32x128xbf16, #tpu.memory_space<vmem>>, vector<16x16x128xbf16>
    %c1_17 = arith.constant 1 : index
    %c8_18 = arith.constant 8 : index
    %c0_19 = arith.constant 0 : index
    %9 = vector.load %arg6[%c1_17, %c8_18, %c0_19] : memref<18x32x128xbf16, #tpu.memory_space<vmem>>, vector<16x16x128xbf16>
    %c1_20 = arith.constant 1 : index
    %c9_21 = arith.constant 9 : index
    %c0_22 = arith.constant 0 : index
    %10 = vector.load %arg6[%c1_20, %c9_21, %c0_22] : memref<18x32x128xbf16, #tpu.memory_space<vmem>>, vector<16x16x128xbf16>
    %c2 = arith.constant 2 : index
    %c7_23 = arith.constant 7 : index
    %c0_24 = arith.constant 0 : index
    %11 = vector.load %arg6[%c2, %c7_23, %c0_24] : memref<18x32x128xbf16, #tpu.memory_space<vmem>>, vector<16x16x128xbf16>
    %c2_25 = arith.constant 2 : index
    %c8_26 = arith.constant 8 : index
    %c0_27 = arith.constant 0 : index
    %12 = vector.load %arg6[%c2_25, %c8_26, %c0_27] : memref<18x32x128xbf16, #tpu.memory_space<vmem>>, vector<16x16x128xbf16>
    %c2_28 = arith.constant 2 : index
    %c9_29 = arith.constant 9 : index
    %c0_30 = arith.constant 0 : index
    %13 = vector.load %arg6[%c2_28, %c9_29, %c0_30] : memref<18x32x128xbf16, #tpu.memory_space<vmem>>, vector<16x16x128xbf16>
    %14 = tpu.concatenate %5, %6, %7, %8, %9, %10, %11, %12, %13 in 2 : vector<16x16x128xbf16>, vector<16x16x128xbf16>, vector<16x16x128xbf16>, vector<16x16x128xbf16>, vector<16x16x128xbf16>, vector<16x16x128xbf16>, vector<16x16x128xbf16>, vector<16x16x128xbf16>, vector<16x16x128xbf16> -> vector<16x16x1152xbf16>
    %15 = vector.shape_cast %14 : vector<16x16x1152xbf16> to vector<256x1152xbf16>
    %c0_31 = arith.constant 0 : index
    %c0_32 = arith.constant 0 : index
    %16 = vector.load %arg2[%c0_31, %c0_32] : memref<1152x128xbf16, #tpu.memory_space<vmem>>, vector<1152x128xbf16>
    %cst_33 = arith.constant dense<0.000000e+00> : vector<256x128xf32>
    %17 = tpu.matmul %15, %16, %cst_33 {dimension_numbers = #tpu.dot_dimension_numbers<[1], [0], [0], [1], [0, 0, 1, 1], [], []>} : vector<256x1152xbf16>, vector<1152x128xbf16>, vector<256x128xf32> -> vector<256x128xf32>
    %c0_34 = arith.constant 0 : index
    %c0_35 = arith.constant 0 : index
    %18 = vector.load %arg3[%c0_34, %c0_35] : memref<1x128xf32, #tpu.memory_space<vmem>>, vector<1x128xf32>
    %19 = vector.broadcast %18 : vector<1x128xf32> to vector<256x128xf32>
    %20 = arith.mulf %17, %19 : vector<256x128xf32>
    %c0_36 = arith.constant 0 : index
    %c0_37 = arith.constant 0 : index
    %21 = vector.load %arg4[%c0_36, %c0_37] : memref<1x128xf32, #tpu.memory_space<vmem>>, vector<1x128xf32>
    %22 = vector.broadcast %21 : vector<1x128xf32> to vector<256x128xf32>
    %23 = arith.addf %20, %22 : vector<256x128xf32>
    %cst_38 = arith.constant 0.000000e+00 : f32
    %24 = vector.broadcast %cst_38 : f32 to vector<256x128xf32>
    %25 = arith.maximumf %23, %24 : vector<256x128xf32>
    %26 = vector.shape_cast %25 : vector<256x128xf32> to vector<16x16x128xf32>
    %27 = arith.truncf %26 : vector<16x16x128xf32> to vector<16x16x128xbf16>
    %c0_39 = arith.constant 0 : index
    %c0_40 = arith.constant 0 : index
    %c0_41 = arith.constant 0 : index
    %c0_42 = arith.constant 0 : index
    %28 = vector.load %arg5[%c0_39, %c0_40, %c0_41, %c0_42] : memref<1x16x16x128xbf16, #tpu.memory_space<vmem>>, vector<1x16x16x128xbf16>
    %29 = vector.shape_cast %28 : vector<1x16x16x128xbf16> to vector<16x16x128xbf16>
    %30 = vector.shape_cast %27 : vector<16x16x128xbf16> to vector<1x16x16x128xbf16>
    tpu.vector_store %arg5[%c0_39, %c0_40, %c0_41, %c0_42], %30 {strides = array<i32>} : memref<1x16x16x128xbf16, #tpu.memory_space<vmem>>, vector<1x16x16x128xbf16>,
    return
  }
  func.func @transform_0(%arg0: i32) -> (i32, i32, i32, i32) {
    %c0_i32 = arith.constant 0 : i32
    %c0_i32_0 = arith.constant 0 : i32
    %c0_i32_1 = arith.constant 0 : i32
    %c0_i32_2 = arith.constant 0 : i32
    return %arg0, %c0_i32, %c0_i32_0, %c0_i32_1 : i32, i32, i32, i32
  }
  func.func @transform_1(%arg0: i32) -> (i32, i32) {
    %c0_i32 = arith.constant 0 : i32
    %c0_i32_0 = arith.constant 0 : i32
    %c0_i32_1 = arith.constant 0 : i32
    return %c0_i32, %c0_i32_0 : i32, i32
  }
  func.func @transform_2(%arg0: i32) -> (i32, i32) {
    %c0_i32 = arith.constant 0 : i32
    %c0_i32_0 = arith.constant 0 : i32
    %c0_i32_1 = arith.constant 0 : i32
    return %c0_i32, %c0_i32_0 : i32, i32
  }
  func.func @transform_3(%arg0: i32) -> (i32, i32) {
    %c0_i32 = arith.constant 0 : i32
    %c0_i32_0 = arith.constant 0 : i32
    %c0_i32_1 = arith.constant 0 : i32
    return %c0_i32, %c0_i32_0 : i32, i32
  }
  func.func @transform_4(%arg0: i32) -> (i32, i32, i32, i32) {
    %c0_i32 = arith.constant 0 : i32
    %c0_i32_0 = arith.constant 0 : i32
    %c0_i32_1 = arith.constant 0 : i32
    %c0_i32_2 = arith.constant 0 : i32
    return %arg0, %c0_i32, %c0_i32_0, %c0_i32_1 : i32, i32, i32, i32
  }
}

module attributes {stable_mosaic.version = 11 : i64} {
  func.func @_maxpool_kernel(%arg0: i32, %arg1: memref<1x16x16x1x128xbf16, #tpu.memory_space<vmem>>, %arg2: memref<1x8x8x1x128xbf16, #tpu.memory_space<vmem>>) attributes {dimension_semantics = [#tpu.dimension_semantics<parallel>], iteration_bounds = array<i64: 2>, scalar_prefetch = 0 : i64, scratch_operands = 0 : i64, tpu.core_type = #tpu.core_type<tc>, window_params = [{transform_indices = @transform_0, window_bounds = array<i64: 1, 16, 16, 1, 128>}, {transform_indices = @transform_1, window_bounds = array<i64: 1, 8, 8, 1, 128>}]} {
    %c0 = arith.constant 0 : index
    %c0_0 = arith.constant 0 : index
    %c0_1 = arith.constant 0 : index
    %c0_2 = arith.constant 0 : index
    %c0_3 = arith.constant 0 : index
    %0 = vector.load %arg1[%c0, %c0_0, %c0_1, %c0_2, %c0_3] : memref<1x16x16x1x128xbf16, #tpu.memory_space<vmem>>, vector<1x16x16x1x128xbf16>
    %1 = vector.shape_cast %0 : vector<1x16x16x1x128xbf16> to vector<16x16x1x128xbf16>
    %2 = vector.shape_cast %1 : vector<16x16x1x128xbf16> to vector<16x8x2x1x128xbf16>
    %3 = vector.extract_strided_slice %2 {offsets = [0, 0, 0, 0, 0], sizes = [16, 8, 1, 1, 128], strides = [1, 1, 1, 1, 1]} : vector<16x8x2x1x128xbf16> to vector<16x8x1x1x128xbf16>
    %4 = vector.shape_cast %3 : vector<16x8x1x1x128xbf16> to vector<16x8x1x128xbf16>
    %5 = vector.extract_strided_slice %2 {offsets = [0, 0, 1, 0, 0], sizes = [16, 8, 1, 1, 128], strides = [1, 1, 1, 1, 1]} : vector<16x8x2x1x128xbf16> to vector<16x8x1x1x128xbf16>
    %6 = vector.shape_cast %5 : vector<16x8x1x1x128xbf16> to vector<16x8x1x128xbf16>
    %7 = arith.maximumf %4, %6 : vector<16x8x1x128xbf16>
    %8 = vector.shape_cast %7 : vector<16x8x1x128xbf16> to vector<8x2x8x1x128xbf16>
    %9 = vector.extract_strided_slice %8 {offsets = [0, 0, 0, 0, 0], sizes = [8, 1, 8, 1, 128], strides = [1, 1, 1, 1, 1]} : vector<8x2x8x1x128xbf16> to vector<8x1x8x1x128xbf16>
    %10 = vector.shape_cast %9 : vector<8x1x8x1x128xbf16> to vector<8x8x1x128xbf16>
    %11 = vector.extract_strided_slice %8 {offsets = [0, 1, 0, 0, 0], sizes = [8, 1, 8, 1, 128], strides = [1, 1, 1, 1, 1]} : vector<8x2x8x1x128xbf16> to vector<8x1x8x1x128xbf16>
    %12 = vector.shape_cast %11 : vector<8x1x8x1x128xbf16> to vector<8x8x1x128xbf16>
    %13 = arith.maximumf %10, %12 : vector<8x8x1x128xbf16>
    %c0_4 = arith.constant 0 : index
    %c0_5 = arith.constant 0 : index
    %c0_6 = arith.constant 0 : index
    %c0_7 = arith.constant 0 : index
    %c0_8 = arith.constant 0 : index
    %14 = vector.load %arg2[%c0_4, %c0_5, %c0_6, %c0_7, %c0_8] : memref<1x8x8x1x128xbf16, #tpu.memory_space<vmem>>, vector<1x8x8x1x128xbf16>
    %15 = vector.shape_cast %14 : vector<1x8x8x1x128xbf16> to vector<8x8x1x128xbf16>
    %16 = vector.shape_cast %13 : vector<8x8x1x128xbf16> to vector<1x8x8x1x128xbf16>
    tpu.vector_store %arg2[%c0_4, %c0_5, %c0_6, %c0_7, %c0_8], %16 {strides = array<i32>} : memref<1x8x8x1x128xbf16, #tpu.memory_space<vmem>>, vector<1x8x8x1x128xbf16>,
    return
  }
  func.func @transform_0(%arg0: i32) -> (i32, i32, i32, i32, i32) {
    %c0_i32 = arith.constant 0 : i32
    %c0_i32_0 = arith.constant 0 : i32
    %c0_i32_1 = arith.constant 0 : i32
    %c0_i32_2 = arith.constant 0 : i32
    %c0_i32_3 = arith.constant 0 : i32
    return %arg0, %c0_i32, %c0_i32_0, %c0_i32_1, %c0_i32_2 : i32, i32, i32, i32, i32
  }
  func.func @transform_1(%arg0: i32) -> (i32, i32, i32, i32, i32) {
    %c0_i32 = arith.constant 0 : i32
    %c0_i32_0 = arith.constant 0 : i32
    %c0_i32_1 = arith.constant 0 : i32
    %c0_i32_2 = arith.constant 0 : i32
    %c0_i32_3 = arith.constant 0 : i32
    return %arg0, %c0_i32, %c0_i32_0, %c0_i32_1, %c0_i32_2 : i32, i32, i32, i32, i32
  }
}

module attributes {stable_mosaic.version = 11 : i64} {
  func.func @_conv_bn_relu_kernel(%arg0: i32, %arg1: memref<1x8x8x128xbf16, #tpu.memory_space<vmem>>, %arg2: memref<1152x128xbf16, #tpu.memory_space<vmem>>, %arg3: memref<1x128xf32, #tpu.memory_space<vmem>>, %arg4: memref<1x128xf32, #tpu.memory_space<vmem>>, %arg5: memref<1x8x8x128xbf16, #tpu.memory_space<vmem>>, %arg6: memref<10x24x128xbf16, #tpu.memory_space<vmem>>) attributes {dimension_semantics = [#tpu.dimension_semantics<parallel>], iteration_bounds = array<i64: 2>, scalar_prefetch = 0 : i64, scratch_operands = 1 : i64, tpu.core_type = #tpu.core_type<tc>, window_params = [{transform_indices = @transform_0, window_bounds = array<i64: 1, 8, 8, 128>}, {pipeline_mode = #tpu.pipeline_mode<synchronous>, transform_indices = @transform_1, window_bounds = array<i64: 1152, 128>}, {pipeline_mode = #tpu.pipeline_mode<synchronous>, transform_indices = @transform_2, window_bounds = array<i64: 1, 128>}, {pipeline_mode = #tpu.pipeline_mode<synchronous>, transform_indices = @transform_3, window_bounds = array<i64: 1, 128>}, {transform_indices = @transform_4, window_bounds = array<i64: 1, 8, 8, 128>}]} {
    %cst = arith.constant 0.000000e+00 : bf16
    %0 = vector.broadcast %cst : bf16 to vector<10x24x128xbf16>
    %c0 = arith.constant 0 : index
    %c0_0 = arith.constant 0 : index
    %c0_1 = arith.constant 0 : index
    %1 = vector.load %arg6[%c0, %c0_0, %c0_1] : memref<10x24x128xbf16, #tpu.memory_space<vmem>>, vector<10x24x128xbf16>
    tpu.vector_store %arg6[%c0, %c0_0, %c0_1], %0 {strides = array<i32>} : memref<10x24x128xbf16, #tpu.memory_space<vmem>>, vector<10x24x128xbf16>,
    %c0_2 = arith.constant 0 : index
    %c0_3 = arith.constant 0 : index
    %c0_4 = arith.constant 0 : index
    %c0_5 = arith.constant 0 : index
    %2 = vector.load %arg1[%c0_2, %c0_3, %c0_4, %c0_5] : memref<1x8x8x128xbf16, #tpu.memory_space<vmem>>, vector<1x8x8x128xbf16>
    %3 = vector.shape_cast %2 : vector<1x8x8x128xbf16> to vector<8x8x128xbf16>
    %c1 = arith.constant 1 : index
    %c8 = arith.constant 8 : index
    %c0_6 = arith.constant 0 : index
    %4 = vector.load %arg6[%c1, %c8, %c0_6] : memref<10x24x128xbf16, #tpu.memory_space<vmem>>, vector<8x8x128xbf16>
    tpu.vector_store %arg6[%c1, %c8, %c0_6], %3 {strides = array<i32>} : memref<10x24x128xbf16, #tpu.memory_space<vmem>>, vector<8x8x128xbf16>,
    %c0_7 = arith.constant 0 : index
    %c7 = arith.constant 7 : index
    %c0_8 = arith.constant 0 : index
    %5 = vector.load %arg6[%c0_7, %c7, %c0_8] : memref<10x24x128xbf16, #tpu.memory_space<vmem>>, vector<8x8x128xbf16>
    %c0_9 = arith.constant 0 : index
    %c8_10 = arith.constant 8 : index
    %c0_11 = arith.constant 0 : index
    %6 = vector.load %arg6[%c0_9, %c8_10, %c0_11] : memref<10x24x128xbf16, #tpu.memory_space<vmem>>, vector<8x8x128xbf16>
    %c0_12 = arith.constant 0 : index
    %c9 = arith.constant 9 : index
    %c0_13 = arith.constant 0 : index
    %7 = vector.load %arg6[%c0_12, %c9, %c0_13] : memref<10x24x128xbf16, #tpu.memory_space<vmem>>, vector<8x8x128xbf16>
    %c1_14 = arith.constant 1 : index
    %c7_15 = arith.constant 7 : index
    %c0_16 = arith.constant 0 : index
    %8 = vector.load %arg6[%c1_14, %c7_15, %c0_16] : memref<10x24x128xbf16, #tpu.memory_space<vmem>>, vector<8x8x128xbf16>
    %c1_17 = arith.constant 1 : index
    %c8_18 = arith.constant 8 : index
    %c0_19 = arith.constant 0 : index
    %9 = vector.load %arg6[%c1_17, %c8_18, %c0_19] : memref<10x24x128xbf16, #tpu.memory_space<vmem>>, vector<8x8x128xbf16>
    %c1_20 = arith.constant 1 : index
    %c9_21 = arith.constant 9 : index
    %c0_22 = arith.constant 0 : index
    %10 = vector.load %arg6[%c1_20, %c9_21, %c0_22] : memref<10x24x128xbf16, #tpu.memory_space<vmem>>, vector<8x8x128xbf16>
    %c2 = arith.constant 2 : index
    %c7_23 = arith.constant 7 : index
    %c0_24 = arith.constant 0 : index
    %11 = vector.load %arg6[%c2, %c7_23, %c0_24] : memref<10x24x128xbf16, #tpu.memory_space<vmem>>, vector<8x8x128xbf16>
    %c2_25 = arith.constant 2 : index
    %c8_26 = arith.constant 8 : index
    %c0_27 = arith.constant 0 : index
    %12 = vector.load %arg6[%c2_25, %c8_26, %c0_27] : memref<10x24x128xbf16, #tpu.memory_space<vmem>>, vector<8x8x128xbf16>
    %c2_28 = arith.constant 2 : index
    %c9_29 = arith.constant 9 : index
    %c0_30 = arith.constant 0 : index
    %13 = vector.load %arg6[%c2_28, %c9_29, %c0_30] : memref<10x24x128xbf16, #tpu.memory_space<vmem>>, vector<8x8x128xbf16>
    %14 = tpu.concatenate %5, %6, %7, %8, %9, %10, %11, %12, %13 in 2 : vector<8x8x128xbf16>, vector<8x8x128xbf16>, vector<8x8x128xbf16>, vector<8x8x128xbf16>, vector<8x8x128xbf16>, vector<8x8x128xbf16>, vector<8x8x128xbf16>, vector<8x8x128xbf16>, vector<8x8x128xbf16> -> vector<8x8x1152xbf16>
    %15 = vector.shape_cast %14 : vector<8x8x1152xbf16> to vector<64x1152xbf16>
    %c0_31 = arith.constant 0 : index
    %c0_32 = arith.constant 0 : index
    %16 = vector.load %arg2[%c0_31, %c0_32] : memref<1152x128xbf16, #tpu.memory_space<vmem>>, vector<1152x128xbf16>
    %cst_33 = arith.constant dense<0.000000e+00> : vector<64x128xf32>
    %17 = tpu.matmul %15, %16, %cst_33 {dimension_numbers = #tpu.dot_dimension_numbers<[1], [0], [0], [1], [0, 0, 1, 1], [], []>} : vector<64x1152xbf16>, vector<1152x128xbf16>, vector<64x128xf32> -> vector<64x128xf32>
    %c0_34 = arith.constant 0 : index
    %c0_35 = arith.constant 0 : index
    %18 = vector.load %arg3[%c0_34, %c0_35] : memref<1x128xf32, #tpu.memory_space<vmem>>, vector<1x128xf32>
    %19 = vector.broadcast %18 : vector<1x128xf32> to vector<64x128xf32>
    %20 = arith.mulf %17, %19 : vector<64x128xf32>
    %c0_36 = arith.constant 0 : index
    %c0_37 = arith.constant 0 : index
    %21 = vector.load %arg4[%c0_36, %c0_37] : memref<1x128xf32, #tpu.memory_space<vmem>>, vector<1x128xf32>
    %22 = vector.broadcast %21 : vector<1x128xf32> to vector<64x128xf32>
    %23 = arith.addf %20, %22 : vector<64x128xf32>
    %cst_38 = arith.constant 0.000000e+00 : f32
    %24 = vector.broadcast %cst_38 : f32 to vector<64x128xf32>
    %25 = arith.maximumf %23, %24 : vector<64x128xf32>
    %26 = vector.shape_cast %25 : vector<64x128xf32> to vector<8x8x128xf32>
    %27 = arith.truncf %26 : vector<8x8x128xf32> to vector<8x8x128xbf16>
    %c0_39 = arith.constant 0 : index
    %c0_40 = arith.constant 0 : index
    %c0_41 = arith.constant 0 : index
    %c0_42 = arith.constant 0 : index
    %28 = vector.load %arg5[%c0_39, %c0_40, %c0_41, %c0_42] : memref<1x8x8x128xbf16, #tpu.memory_space<vmem>>, vector<1x8x8x128xbf16>
    %29 = vector.shape_cast %28 : vector<1x8x8x128xbf16> to vector<8x8x128xbf16>
    %30 = vector.shape_cast %27 : vector<8x8x128xbf16> to vector<1x8x8x128xbf16>
    tpu.vector_store %arg5[%c0_39, %c0_40, %c0_41, %c0_42], %30 {strides = array<i32>} : memref<1x8x8x128xbf16, #tpu.memory_space<vmem>>, vector<1x8x8x128xbf16>,
    return
  }
  func.func @transform_0(%arg0: i32) -> (i32, i32, i32, i32) {
    %c0_i32 = arith.constant 0 : i32
    %c0_i32_0 = arith.constant 0 : i32
    %c0_i32_1 = arith.constant 0 : i32
    %c0_i32_2 = arith.constant 0 : i32
    return %arg0, %c0_i32, %c0_i32_0, %c0_i32_1 : i32, i32, i32, i32
  }
  func.func @transform_1(%arg0: i32) -> (i32, i32) {
    %c0_i32 = arith.constant 0 : i32
    %c0_i32_0 = arith.constant 0 : i32
    %c0_i32_1 = arith.constant 0 : i32
    return %c0_i32, %c0_i32_0 : i32, i32
  }
  func.func @transform_2(%arg0: i32) -> (i32, i32) {
    %c0_i32 = arith.constant 0 : i32
    %c0_i32_0 = arith.constant 0 : i32
    %c0_i32_1 = arith.constant 0 : i32
    return %c0_i32, %c0_i32_0 : i32, i32
  }
  func.func @transform_3(%arg0: i32) -> (i32, i32) {
    %c0_i32 = arith.constant 0 : i32
    %c0_i32_0 = arith.constant 0 : i32
    %c0_i32_1 = arith.constant 0 : i32
    return %c0_i32, %c0_i32_0 : i32, i32
  }
  func.func @transform_4(%arg0: i32) -> (i32, i32, i32, i32) {
    %c0_i32 = arith.constant 0 : i32
    %c0_i32_0 = arith.constant 0 : i32
    %c0_i32_1 = arith.constant 0 : i32
    %c0_i32_2 = arith.constant 0 : i32
    return %arg0, %c0_i32, %c0_i32_0, %c0_i32_1 : i32, i32, i32, i32
  }
}

module attributes {stable_mosaic.version = 11 : i64} {
  func.func @_maxpool_kernel(%arg0: i32, %arg1: memref<1x8x8x1x128xbf16, #tpu.memory_space<vmem>>, %arg2: memref<1x4x4x1x128xbf16, #tpu.memory_space<vmem>>) attributes {dimension_semantics = [#tpu.dimension_semantics<parallel>], iteration_bounds = array<i64: 2>, scalar_prefetch = 0 : i64, scratch_operands = 0 : i64, tpu.core_type = #tpu.core_type<tc>, window_params = [{transform_indices = @transform_0, window_bounds = array<i64: 1, 8, 8, 1, 128>}, {transform_indices = @transform_1, window_bounds = array<i64: 1, 4, 4, 1, 128>}]} {
    %c0 = arith.constant 0 : index
    %c0_0 = arith.constant 0 : index
    %c0_1 = arith.constant 0 : index
    %c0_2 = arith.constant 0 : index
    %c0_3 = arith.constant 0 : index
    %0 = vector.load %arg1[%c0, %c0_0, %c0_1, %c0_2, %c0_3] : memref<1x8x8x1x128xbf16, #tpu.memory_space<vmem>>, vector<1x8x8x1x128xbf16>
    %1 = vector.shape_cast %0 : vector<1x8x8x1x128xbf16> to vector<8x8x1x128xbf16>
    %2 = vector.shape_cast %1 : vector<8x8x1x128xbf16> to vector<8x4x2x1x128xbf16>
    %3 = vector.extract_strided_slice %2 {offsets = [0, 0, 0, 0, 0], sizes = [8, 4, 1, 1, 128], strides = [1, 1, 1, 1, 1]} : vector<8x4x2x1x128xbf16> to vector<8x4x1x1x128xbf16>
    %4 = vector.shape_cast %3 : vector<8x4x1x1x128xbf16> to vector<8x4x1x128xbf16>
    %5 = vector.extract_strided_slice %2 {offsets = [0, 0, 1, 0, 0], sizes = [8, 4, 1, 1, 128], strides = [1, 1, 1, 1, 1]} : vector<8x4x2x1x128xbf16> to vector<8x4x1x1x128xbf16>
    %6 = vector.shape_cast %5 : vector<8x4x1x1x128xbf16> to vector<8x4x1x128xbf16>
    %7 = arith.maximumf %4, %6 : vector<8x4x1x128xbf16>
    %8 = vector.shape_cast %7 : vector<8x4x1x128xbf16> to vector<4x2x4x1x128xbf16>
    %9 = vector.extract_strided_slice %8 {offsets = [0, 0, 0, 0, 0], sizes = [4, 1, 4, 1, 128], strides = [1, 1, 1, 1, 1]} : vector<4x2x4x1x128xbf16> to vector<4x1x4x1x128xbf16>
    %10 = vector.shape_cast %9 : vector<4x1x4x1x128xbf16> to vector<4x4x1x128xbf16>
    %11 = vector.extract_strided_slice %8 {offsets = [0, 1, 0, 0, 0], sizes = [4, 1, 4, 1, 128], strides = [1, 1, 1, 1, 1]} : vector<4x2x4x1x128xbf16> to vector<4x1x4x1x128xbf16>
    %12 = vector.shape_cast %11 : vector<4x1x4x1x128xbf16> to vector<4x4x1x128xbf16>
    %13 = arith.maximumf %10, %12 : vector<4x4x1x128xbf16>
    %c0_4 = arith.constant 0 : index
    %c0_5 = arith.constant 0 : index
    %c0_6 = arith.constant 0 : index
    %c0_7 = arith.constant 0 : index
    %c0_8 = arith.constant 0 : index
    %14 = vector.load %arg2[%c0_4, %c0_5, %c0_6, %c0_7, %c0_8] : memref<1x4x4x1x128xbf16, #tpu.memory_space<vmem>>, vector<1x4x4x1x128xbf16>
    %15 = vector.shape_cast %14 : vector<1x4x4x1x128xbf16> to vector<4x4x1x128xbf16>
    %16 = vector.shape_cast %13 : vector<4x4x1x128xbf16> to vector<1x4x4x1x128xbf16>
    tpu.vector_store %arg2[%c0_4, %c0_5, %c0_6, %c0_7, %c0_8], %16 {strides = array<i32>} : memref<1x4x4x1x128xbf16, #tpu.memory_space<vmem>>, vector<1x4x4x1x128xbf16>,
    return
  }
  func.func @transform_0(%arg0: i32) -> (i32, i32, i32, i32, i32) {
    %c0_i32 = arith.constant 0 : i32
    %c0_i32_0 = arith.constant 0 : i32
    %c0_i32_1 = arith.constant 0 : i32
    %c0_i32_2 = arith.constant 0 : i32
    %c0_i32_3 = arith.constant 0 : i32
    return %arg0, %c0_i32, %c0_i32_0, %c0_i32_1, %c0_i32_2 : i32, i32, i32, i32, i32
  }
  func.func @transform_1(%arg0: i32) -> (i32, i32, i32, i32, i32) {
    %c0_i32 = arith.constant 0 : i32
    %c0_i32_0 = arith.constant 0 : i32
    %c0_i32_1 = arith.constant 0 : i32
    %c0_i32_2 = arith.constant 0 : i32
    %c0_i32_3 = arith.constant 0 : i32
    return %arg0, %c0_i32, %c0_i32_0, %c0_i32_1, %c0_i32_2 : i32, i32, i32, i32, i32
  }
}

module attributes {stable_mosaic.version = 11 : i64} {
  func.func @_classifier_kernel(%arg0: i32, %arg1: memref<2x256xbf16, #tpu.memory_space<vmem>>, %arg2: memref<256x256xbf16, #tpu.memory_space<vmem>>, %arg3: memref<1x256xf32, #tpu.memory_space<vmem>>, %arg4: memref<256x128xbf16, #tpu.memory_space<vmem>>, %arg5: memref<1x128xf32, #tpu.memory_space<vmem>>, %arg6: memref<2x128xf32, #tpu.memory_space<vmem>>) attributes {dimension_semantics = [#tpu.dimension_semantics<arbitrary>], iteration_bounds = array<i64: 1>, scalar_prefetch = 0 : i64, scratch_operands = 0 : i64, tpu.core_type = #tpu.core_type<tc>, window_params = [{pipeline_mode = #tpu.pipeline_mode<synchronous>, transform_indices = @transform_0, window_bounds = array<i64: 2, 256>}, {pipeline_mode = #tpu.pipeline_mode<synchronous>, transform_indices = @transform_1, window_bounds = array<i64: 256, 256>}, {pipeline_mode = #tpu.pipeline_mode<synchronous>, transform_indices = @transform_2, window_bounds = array<i64: 1, 256>}, {pipeline_mode = #tpu.pipeline_mode<synchronous>, transform_indices = @transform_3, window_bounds = array<i64: 256, 128>}, {pipeline_mode = #tpu.pipeline_mode<synchronous>, transform_indices = @transform_4, window_bounds = array<i64: 1, 128>}, {pipeline_mode = #tpu.pipeline_mode<synchronous>, transform_indices = @transform_5, window_bounds = array<i64: 2, 128>}]} {
    %c0 = arith.constant 0 : index
    %c0_0 = arith.constant 0 : index
    %0 = vector.load %arg1[%c0, %c0_0] : memref<2x256xbf16, #tpu.memory_space<vmem>>, vector<2x256xbf16>
    %c0_1 = arith.constant 0 : index
    %c0_2 = arith.constant 0 : index
    %1 = vector.load %arg2[%c0_1, %c0_2] : memref<256x256xbf16, #tpu.memory_space<vmem>>, vector<256x256xbf16>
    %c0_3 = arith.constant 0 : index
    %c0_4 = arith.constant 0 : index
    %2 = vector.load %arg3[%c0_3, %c0_4] : memref<1x256xf32, #tpu.memory_space<vmem>>, vector<1x256xf32>
    %cst = arith.constant dense<0.000000e+00> : vector<2x256xf32>
    %3 = tpu.matmul %0, %1, %cst {dimension_numbers = #tpu.dot_dimension_numbers<[1], [0], [0], [1], [0, 0, 1, 1], [], []>} : vector<2x256xbf16>, vector<256x256xbf16>, vector<2x256xf32> -> vector<2x256xf32>
    %4 = vector.broadcast %2 : vector<1x256xf32> to vector<2x256xf32>
    %5 = arith.addf %3, %4 : vector<2x256xf32>
    %cst_5 = arith.constant 0.000000e+00 : f32
    %6 = vector.broadcast %cst_5 : f32 to vector<2x256xf32>
    %7 = arith.maximumf %5, %6 : vector<2x256xf32>
    %8 = arith.truncf %7 : vector<2x256xf32> to vector<2x256xbf16>
    %cst_6 = arith.constant dense<0.000000e+00> : vector<2x256xf32>
    %9 = tpu.matmul %8, %1, %cst_6 {dimension_numbers = #tpu.dot_dimension_numbers<[1], [0], [0], [1], [0, 0, 1, 1], [], []>} : vector<2x256xbf16>, vector<256x256xbf16>, vector<2x256xf32> -> vector<2x256xf32>
    %10 = vector.broadcast %2 : vector<1x256xf32> to vector<2x256xf32>
    %11 = arith.addf %9, %10 : vector<2x256xf32>
    %cst_7 = arith.constant 0.000000e+00 : f32
    %12 = vector.broadcast %cst_7 : f32 to vector<2x256xf32>
    %13 = arith.maximumf %11, %12 : vector<2x256xf32>
    %14 = arith.truncf %13 : vector<2x256xf32> to vector<2x256xbf16>
    %c0_8 = arith.constant 0 : index
    %c0_9 = arith.constant 0 : index
    %15 = vector.load %arg4[%c0_8, %c0_9] : memref<256x128xbf16, #tpu.memory_space<vmem>>, vector<256x128xbf16>
    %cst_10 = arith.constant dense<0.000000e+00> : vector<2x128xf32>
    %16 = tpu.matmul %14, %15, %cst_10 {dimension_numbers = #tpu.dot_dimension_numbers<[1], [0], [0], [1], [0, 0, 1, 1], [], []>} : vector<2x256xbf16>, vector<256x128xbf16>, vector<2x128xf32> -> vector<2x128xf32>
    %c0_11 = arith.constant 0 : index
    %c0_12 = arith.constant 0 : index
    %17 = vector.load %arg5[%c0_11, %c0_12] : memref<1x128xf32, #tpu.memory_space<vmem>>, vector<1x128xf32>
    %18 = vector.broadcast %17 : vector<1x128xf32> to vector<2x128xf32>
    %19 = arith.addf %16, %18 : vector<2x128xf32>
    %c0_13 = arith.constant 0 : index
    %c0_14 = arith.constant 0 : index
    %20 = vector.load %arg6[%c0_13, %c0_14] : memref<2x128xf32, #tpu.memory_space<vmem>>, vector<2x128xf32>
    tpu.vector_store %arg6[%c0_13, %c0_14], %19 {strides = array<i32>} : memref<2x128xf32, #tpu.memory_space<vmem>>, vector<2x128xf32>,
    return
  }
  func.func @transform_0(%arg0: i32) -> (i32, i32) {
    %c0_i32 = arith.constant 0 : i32
    %c0_i32_0 = arith.constant 0 : i32
    %c0_i32_1 = arith.constant 0 : i32
    return %c0_i32, %c0_i32_0 : i32, i32
  }
  func.func @transform_1(%arg0: i32) -> (i32, i32) {
    %c0_i32 = arith.constant 0 : i32
    %c0_i32_0 = arith.constant 0 : i32
    %c0_i32_1 = arith.constant 0 : i32
    return %c0_i32, %c0_i32_0 : i32, i32
  }
  func.func @transform_2(%arg0: i32) -> (i32, i32) {
    %c0_i32 = arith.constant 0 : i32
    %c0_i32_0 = arith.constant 0 : i32
    %c0_i32_1 = arith.constant 0 : i32
    return %c0_i32, %c0_i32_0 : i32, i32
  }
  func.func @transform_3(%arg0: i32) -> (i32, i32) {
    %c0_i32 = arith.constant 0 : i32
    %c0_i32_0 = arith.constant 0 : i32
    %c0_i32_1 = arith.constant 0 : i32
    return %c0_i32, %c0_i32_0 : i32, i32
  }
  func.func @transform_4(%arg0: i32) -> (i32, i32) {
    %c0_i32 = arith.constant 0 : i32
    %c0_i32_0 = arith.constant 0 : i32
    %c0_i32_1 = arith.constant 0 : i32
    return %c0_i32, %c0_i32_0 : i32, i32
  }
  func.func @transform_5(%arg0: i32) -> (i32, i32) {
    %c0_i32 = arith.constant 0 : i32
    %c0_i32_0 = arith.constant 0 : i32
    %c0_i32_1 = arith.constant 0 : i32
    return %c0_i32, %c0_i32_0 : i32, i32
  }
}

</mosaic_0001>

<bundles_post_ra>
// kernel: _lambda_.8
= control target key start
LH: loop header
LB: loop body
LE: loop exit
PB: predicated region body
PF: predicated region fallthrough
CT: control target
= control target key end

     0   :  { %s843_s6 = smov 0   ;;  %s1380_s0 = inlined_call_operand.vmem [shape: bf16[2,16,16,1,128], index: 0, kind: input, shape index: {}]   ;;  %s1381_s1 = inlined_call_operand.vmem [shape: bf16[2,8,8,1,128], index: 1, kind: output, shape index: {}]  }
   0x1 LB: > { %s808_s7 = sadd.s32 4294967295, %s831_s6   ;;  %p812_p0 = scmp.ge.s32.totalorder %s831_s6, 1  ;;  %s831_s6 = sphi %s843_s6, %s11_s6  }
   0x2   : > { %p86_p1 = scmp.lt.s32.totalorder %s831_s6, 3 }
   0x4   : > { %p87_p2 = pnand %p812_p0, %p86_p1 }
   0x5   : > { %p104_p3 = scmp.lt.s32.totalorder (!%p87_p2), %s808_s7, 1 }
   0x6   : > { %90 = sbr.rel (%p87_p2) target bundleno = 146 (0x92), region = 24 }
   0xb   : > { %s1385_s7 = smov (!%p104_p3, %s808_s7), 1  ;;  %vm560_vm0 = vcmask 1040384   ;;  %vm561_vm1 = vsmask.f32 256 }
   0xc   : > { %s813_s8 = sshll.u32 %s1385_s7, 8  ;;  %s814_s9 = sshll.u32 %s1385_s7, 6  ;;  %vm865_vm2 = vmand %vm560_vm0, %vm561_vm1 }
   0xd   : > { %s854_s12 = scalar_lea.vmem %s1380_s0, %s813_s8  ;;  %s859_s15 = scalar_lea.vmem %s1381_s1, %s814_s9 }
   0xe   : > { %v112_v0 = vld [vmem:[%s854_s12] sm:$0x1]  ;;  %v113_v1 = vld [vmem:[%s854_s12 + $0x1] sm:$0x1]  ;;  %v128_v2 = vld [vmem:[%s854_s12 + $0x10] sm:$0x1] }
   0xf   : > { %v129_v3 = vld [vmem:[%s854_s12 + $0x11] sm:$0x1]  ;;  %v368_v4 = vmax.bf16 %v113_v1, %v112_v0  ;;  %v114_v6 = vld [vmem:[%s854_s12 + $0x2] sm:$0x1]  ;;  %v115_v8 = vld [vmem:[%s854_s12 + $0x3] sm:$0x1] }
  0x10   : > { %v376_v7 = vmax.bf16 %v129_v3, %v128_v2  ;;  %v130_v9 = vld [vmem:[%s854_s12 + $0x12] sm:$0x1]  ;;  %v131_v10 = vld [vmem:[%s854_s12 + $0x13] sm:$0x1]  ;;  %v563_v11 = vld [vmem:[%s859_s15] sm:$0x1]  ;;  %v369_v12 = vmax.bf16 %v115_v8, %v114_v6 }
  0x11   : > { %v377_v13 = vmax.bf16 %v131_v10, %v130_v9  ;;  %v116_v14 = vld [vmem:[%s854_s12 + $0x4] sm:$0x1]  ;;  %v117_v15 = vld [vmem:[%s854_s12 + $0x5] sm:$0x1]  ;;  %v566_v17 = vld [vmem:[%s859_s15 + $0x1] sm:$0x1] }
  0x12   : > { %v496_v16 = vmax.bf16 %v376_v7, %v368_v4  ;;  %v132_v18 = vld [vmem:[%s854_s12 + $0x14] sm:$0x1]  ;;  %v133_v19 = vld [vmem:[%s854_s12 + $0x15] sm:$0x1]  ;;  %v370_v20 = vmax.bf16 %v117_v15, %v116_v14  ;;  %v118_v23 = vld [vmem:[%s854_s12 + $0x6] sm:$0x1] }
  0x13   : > { %v497_v21 = vmax.bf16 %v377_v13, %v369_v12  ;;  %v378_v22 = vmax.bf16 %v133_v19, %v132_v18  ;;  %v119_v24 = vld [vmem:[%s854_s12 + $0x7] sm:$0x1]  ;;  %v134_v25 = vld [vmem:[%s854_s12 + $0x16] sm:$0x1]  ;;  %v569_v27 = vld [vmem:[%s859_s15 + $0x2] sm:$0x1] }
  0x14   : > { %v564_v26 = vsel %vm865_vm2, %v496_v16, %v563_v11  ;;  %v135_v28 = vld [vmem:[%s854_s12 + $0x17] sm:$0x1]  ;;  %v371_v29 = vmax.bf16 %v119_v24, %v118_v23  ;;  %v120_v30 = vld [vmem:[%s854_s12 + $0x8] sm:$0x1]  ;;  %v121_v34 = vld [vmem:[%s854_s12 + $0x9] sm:$0x1] }
  0x15   : > { %565 = vst [vmem:[%s859_s15] sm:$0x1] %v564_v26  ;;  %v567_v31 = vsel %vm865_vm2, %v497_v21, %v566_v17  ;;  %v498_v32 = vmax.bf16 %v378_v22, %v370_v20  ;;  %v379_v33 = vmax.bf16 %v135_v28, %v134_v25  ;;  %v136_v35 = vld [vmem:[%s854_s12 + $0x18] sm:$0x1]  ;;  %v137_v36 = vld [vmem:[%s854_s12 + $0x19] sm:$0x1]  ;;  %v372_v38 = vmax.bf16 %v121_v34, %v120_v30 }
  0x16   : > { %568 = vst [vmem:[%s859_s15 + $0x1] sm:$0x1] %v567_v31  ;;  %v572_v37 = vld [vmem:[%s859_s15 + $0x3] sm:$0x1]  ;;  %v380_v39 = vmax.bf16 %v137_v36, %v136_v35  ;;  %v122_v40 = vld [vmem:[%s854_s12 + $0xa] sm:$0x1] }
  0x17   : > { %v123_v41 = vld [vmem:[%s854_s12 + $0xb] sm:$0x1]  ;;  %v570_v42 = vsel %vm865_vm2, %v498_v32, %v569_v27  ;;  %v499_v43 = vmax.bf16 %v379_v33, %v371_v29  ;;  %v575_v44 = vld [vmem:[%s859_s15 + $0x4] sm:$0x1]  ;;  %v138_v45 = vld [vmem:[%s854_s12 + $0x1a] sm:$0x1] }
  0x18   : > { %v139_v46 = vld [vmem:[%s854_s12 + $0x1b] sm:$0x1]  ;;  %v373_v47 = vmax.bf16 %v123_v41, %v122_v40  ;;  %571 = vst [vmem:[%s859_s15 + $0x2] sm:$0x1] %v570_v42  ;;  %v500_v48 = vmax.bf16 %v380_v39, %v372_v38  ;;  %v124_v50 = vld [vmem:[%s854_s12 + $0xc] sm:$0x1] }
  0x19   : > { %v381_v49 = vmax.bf16 %v139_v46, %v138_v45  ;;  %v125_v51 = vld [vmem:[%s854_s12 + $0xd] sm:$0x1]  ;;  %v140_v52 = vld [vmem:[%s854_s12 + $0x1c] sm:$0x1]  ;;  %v573_v53 = vsel %vm865_vm2, %v499_v43, %v572_v37  ;;  %v578_v54 = vld [vmem:[%s859_s15 + $0x5] sm:$0x1] }
  0x1a   : > { %v141_v55 = vld [vmem:[%s854_s12 + $0x1d] sm:$0x1]  ;;  %v374_v56 = vmax.bf16 %v125_v51, %v124_v50  ;;  %v126_v57 = vld [vmem:[%s854_s12 + $0xe] sm:$0x1]  ;;  %574 = vst [vmem:[%s859_s15 + $0x3] sm:$0x1] %v573_v53  ;;  %v576_v58 = vsel %vm865_vm2, %v500_v48, %v575_v44 }
  0x1b   : > { %v501_v59 = vmax.bf16 %v381_v49, %v373_v47  ;;  %v382_v60 = vmax.bf16 %v141_v55, %v140_v52  ;;  %v127_v61 = vld [vmem:[%s854_s12 + $0xf] sm:$0x1]  ;;  %v142_v62 = vld [vmem:[%s854_s12 + $0x1e] sm:$0x1]  ;;  %v143_v63 = vld [vmem:[%s854_s12 + $0x1f] sm:$0x1] }
  0x1c   : > { %577 = vst [vmem:[%s859_s15 + $0x4] sm:$0x1] %v576_v58  ;;  %v581_v0 = vld [vmem:[%s859_s15 + $0x6] sm:$0x1]  ;;  %v375_v1 = vmax.bf16 %v127_v61, %v126_v57  ;;  %v383_v2 = vmax.bf16 %v143_v63, %v142_v62  ;;  %v144_v3 = vld [vmem:[%s854_s12 + $0x20] sm:$0x1] }
  0x1d   : > { %v145_v4 = vld [vmem:[%s854_s12 + $0x21] sm:$0x1]  ;;  %v579_v6 = vsel %vm865_vm2, %v501_v59, %v578_v54  ;;  %v502_v7 = vmax.bf16 %v382_v60, %v374_v56  ;;  %v584_v8 = vld [vmem:[%s859_s15 + $0x7] sm:$0x1]  ;;  %v160_v9 = vld [vmem:[%s854_s12 + $0x30] sm:$0x1] }
  0x1e   : > { %v161_v10 = vld [vmem:[%s854_s12 + $0x31] sm:$0x1]  ;;  %v384_v11 = vmax.bf16 %v145_v4, %v144_v3  ;;  %580 = vst [vmem:[%s859_s15 + $0x5] sm:$0x1] %v579_v6  ;;  %v503_v12 = vmax.bf16 %v383_v2, %v375_v1  ;;  %v146_v14 = vld [vmem:[%s854_s12 + $0x22] sm:$0x1] }
  0x1f   : > { %v392_v13 = vmax.bf16 %v161_v10, %v160_v9  ;;  %v147_v15 = vld [vmem:[%s854_s12 + $0x23] sm:$0x1]  ;;  %v162_v16 = vld [vmem:[%s854_s12 + $0x32] sm:$0x1]  ;;  %v582_v17 = vsel %vm865_vm2, %v502_v7, %v581_v0  ;;  %v587_v18 = vld [vmem:[%s859_s15 + $0x8] sm:$0x1] }
  0x20   : > { %v163_v19 = vld [vmem:[%s854_s12 + $0x33] sm:$0x1]  ;;  %v385_v20 = vmax.bf16 %v147_v15, %v146_v14  ;;  %v148_v21 = vld [vmem:[%s854_s12 + $0x24] sm:$0x1]  ;;  %583 = vst [vmem:[%s859_s15 + $0x6] sm:$0x1] %v582_v17  ;;  %v585_v22 = vsel %vm865_vm2, %v503_v12, %v584_v8 }
  0x21   : > { %v504_v23 = vmax.bf16 %v392_v13, %v384_v11  ;;  %v393_v24 = vmax.bf16 %v163_v19, %v162_v16  ;;  %v149_v25 = vld [vmem:[%s854_s12 + $0x25] sm:$0x1]  ;;  %v164_v26 = vld [vmem:[%s854_s12 + $0x34] sm:$0x1]  ;;  %v165_v27 = vld [vmem:[%s854_s12 + $0x35] sm:$0x1] }
  0x22   : > { %586 = vst [vmem:[%s859_s15 + $0x7] sm:$0x1] %v585_v22  ;;  %v590_v28 = vld [vmem:[%s859_s15 + $0x9] sm:$0x1]  ;;  %v386_v29 = vmax.bf16 %v149_v25, %v148_v21  ;;  %v394_v30 = vmax.bf16 %v165_v27, %v164_v26  ;;  %v150_v31 = vld [vmem:[%s854_s12 + $0x26] sm:$0x1] }
  0x23   : > { %v151_v32 = vld [vmem:[%s854_s12 + $0x27] sm:$0x1]  ;;  %v588_v33 = vsel %vm865_vm2, %v504_v23, %v587_v18  ;;  %v505_v34 = vmax.bf16 %v393_v24, %v385_v20  ;;  %v593_v35 = vld [vmem:[%s859_s15 + $0xa] sm:$0x1]  ;;  %v166_v36 = vld [vmem:[%s854_s12 + $0x36] sm:$0x1] }
  0x24   : > { %v167_v37 = vld [vmem:[%s854_s12 + $0x37] sm:$0x1]  ;;  %v387_v38 = vmax.bf16 %v151_v32, %v150_v31  ;;  %589 = vst [vmem:[%s859_s15 + $0x8] sm:$0x1] %v588_v33  ;;  %v506_v39 = vmax.bf16 %v394_v30, %v386_v29  ;;  %v152_v41 = vld [vmem:[%s854_s12 + $0x28] sm:$0x1] }
  0x25   : > { %v395_v40 = vmax.bf16 %v167_v37, %v166_v36  ;;  %v153_v42 = vld [vmem:[%s854_s12 + $0x29] sm:$0x1]  ;;  %v168_v43 = vld [vmem:[%s854_s12 + $0x38] sm:$0x1]  ;;  %v591_v44 = vsel %vm865_vm2, %v505_v34, %v590_v28  ;;  %v596_v45 = vld [vmem:[%s859_s15 + $0xb] sm:$0x1] }
  0x26   : > { %v169_v46 = vld [vmem:[%s854_s12 + $0x39] sm:$0x1]  ;;  %v388_v47 = vmax.bf16 %v153_v42, %v152_v41  ;;  %v154_v48 = vld [vmem:[%s854_s12 + $0x2a] sm:$0x1]  ;;  %592 = vst [vmem:[%s859_s15 + $0x9] sm:$0x1] %v591_v44  ;;  %v594_v49 = vsel %vm865_vm2, %v506_v39, %v593_v35 }
  0x27   : > { %v507_v50 = vmax.bf16 %v395_v40, %v387_v38  ;;  %v396_v51 = vmax.bf16 %v169_v46, %v168_v43  ;;  %v155_v52 = vld [vmem:[%s854_s12 + $0x2b] sm:$0x1]  ;;  %v170_v53 = vld [vmem:[%s854_s12 + $0x3a] sm:$0x1]  ;;  %v171_v54 = vld [vmem:[%s854_s12 + $0x3b] sm:$0x1] }
  0x28   : > { %595 = vst [vmem:[%s859_s15 + $0xa] sm:$0x1] %v594_v49  ;;  %v599_v55 = vld [vmem:[%s859_s15 + $0xc] sm:$0x1]  ;;  %v389_v56 = vmax.bf16 %v155_v52, %v154_v48  ;;  %v397_v57 = vmax.bf16 %v171_v54, %v170_v53  ;;  %v157_v59 = vld [vmem:[%s854_s12 + $0x2d] sm:$0x1] }
  0x29   : > { %v156_v58 = vld [vmem:[%s854_s12 + $0x2c] sm:$0x1]  ;;  %v597_v60 = vsel %vm865_vm2, %v507_v50, %v596_v45  ;;  %v508_v61 = vmax.bf16 %v396_v51, %v388_v47  ;;  %v602_v62 = vld [vmem:[%s859_s15 + $0xd] sm:$0x1]  ;;  %v172_v63 = vld [vmem:[%s854_s12 + $0x3c] sm:$0x1] }
  0x2a   : > { %v173_v0 = vld [vmem:[%s854_s12 + $0x3d] sm:$0x1]  ;;  %v390_v1 = vmax.bf16 %v157_v59, %v156_v58  ;;  %598 = vst [vmem:[%s859_s15 + $0xb] sm:$0x1] %v597_v60  ;;  %v509_v2 = vmax.bf16 %v397_v57, %v389_v56  ;;  %v158_v4 = vld [vmem:[%s854_s12 + $0x2e] sm:$0x1] }
  0x2b   : > { %v398_v3 = vmax.bf16 %v173_v0, %v172_v63  ;;  %v159_v6 = vld [vmem:[%s854_s12 + $0x2f] sm:$0x1]  ;;  %v174_v7 = vld [vmem:[%s854_s12 + $0x3e] sm:$0x1]  ;;  %v600_v8 = vsel %vm865_vm2, %v508_v61, %v599_v55  ;;  %v605_v9 = vld [vmem:[%s859_s15 + $0xe] sm:$0x1] }
  0x2c   : > { %v175_v10 = vld [vmem:[%s854_s12 + $0x3f] sm:$0x1]  ;;  %v391_v11 = vmax.bf16 %v159_v6, %v158_v4  ;;  %v176_v12 = vld [vmem:[%s854_s12 + $0x40] sm:$0x1]  ;;  %601 = vst [vmem:[%s859_s15 + $0xc] sm:$0x1] %v600_v8  ;;  %v603_v13 = vsel %vm865_vm2, %v509_v2, %v602_v62 }
  0x2d   : > { %v510_v14 = vmax.bf16 %v398_v3, %v390_v1  ;;  %v399_v15 = vmax.bf16 %v175_v10, %v174_v7  ;;  %v177_v16 = vld [vmem:[%s854_s12 + $0x41] sm:$0x1]  ;;  %v192_v17 = vld [vmem:[%s854_s12 + $0x50] sm:$0x1]  ;;  %v193_v18 = vld [vmem:[%s854_s12 + $0x51] sm:$0x1] }
  0x2e   : > { %604 = vst [vmem:[%s859_s15 + $0xd] sm:$0x1] %v603_v13  ;;  %v608_v19 = vld [vmem:[%s859_s15 + $0xf] sm:$0x1]  ;;  %v400_v20 = vmax.bf16 %v177_v16, %v176_v12  ;;  %v408_v21 = vmax.bf16 %v193_v18, %v192_v17  ;;  %v178_v22 = vld [vmem:[%s854_s12 + $0x42] sm:$0x1] }
  0x2f   : > { %v179_v23 = vld [vmem:[%s854_s12 + $0x43] sm:$0x1]  ;;  %v606_v24 = vsel %vm865_vm2, %v510_v14, %v605_v9  ;;  %v511_v25 = vmax.bf16 %v399_v15, %v391_v11  ;;  %v611_v26 = vld [vmem:[%s859_s15 + $0x10] sm:$0x1]  ;;  %v194_v27 = vld [vmem:[%s854_s12 + $0x52] sm:$0x1] }
  0x30   : > { %v195_v28 = vld [vmem:[%s854_s12 + $0x53] sm:$0x1]  ;;  %v401_v29 = vmax.bf16 %v179_v23, %v178_v22  ;;  %607 = vst [vmem:[%s859_s15 + $0xe] sm:$0x1] %v606_v24  ;;  %v512_v30 = vmax.bf16 %v408_v21, %v400_v20  ;;  %v180_v32 = vld [vmem:[%s854_s12 + $0x44] sm:$0x1] }
  0x31   : > { %v409_v31 = vmax.bf16 %v195_v28, %v194_v27  ;;  %v181_v33 = vld [vmem:[%s854_s12 + $0x45] sm:$0x1]  ;;  %v196_v34 = vld [vmem:[%s854_s12 + $0x54] sm:$0x1]  ;;  %v609_v35 = vsel %vm865_vm2, %v511_v25, %v608_v19  ;;  %v614_v36 = vld [vmem:[%s859_s15 + $0x11] sm:$0x1] }
  0x32   : > { %v197_v37 = vld [vmem:[%s854_s12 + $0x55] sm:$0x1]  ;;  %v402_v38 = vmax.bf16 %v181_v33, %v180_v32  ;;  %v182_v39 = vld [vmem:[%s854_s12 + $0x46] sm:$0x1]  ;;  %610 = vst [vmem:[%s859_s15 + $0xf] sm:$0x1] %v609_v35  ;;  %v612_v40 = vsel %vm865_vm2, %v512_v30, %v611_v26 }
  0x33   : > { %v513_v41 = vmax.bf16 %v409_v31, %v401_v29  ;;  %v410_v42 = vmax.bf16 %v197_v37, %v196_v34  ;;  %v183_v43 = vld [vmem:[%s854_s12 + $0x47] sm:$0x1]  ;;  %v198_v44 = vld [vmem:[%s854_s12 + $0x56] sm:$0x1]  ;;  %v199_v45 = vld [vmem:[%s854_s12 + $0x57] sm:$0x1] }
  0x34   : > { %613 = vst [vmem:[%s859_s15 + $0x10] sm:$0x1] %v612_v40  ;;  %v617_v46 = vld [vmem:[%s859_s15 + $0x12] sm:$0x1]  ;;  %v403_v47 = vmax.bf16 %v183_v43, %v182_v39  ;;  %v411_v48 = vmax.bf16 %v199_v45, %v198_v44  ;;  %v184_v49 = vld [vmem:[%s854_s12 + $0x48] sm:$0x1] }
  0x35   : > { %v185_v50 = vld [vmem:[%s854_s12 + $0x49] sm:$0x1]  ;;  %v615_v51 = vsel %vm865_vm2, %v513_v41, %v614_v36  ;;  %v514_v52 = vmax.bf16 %v410_v42, %v402_v38  ;;  %v620_v53 = vld [vmem:[%s859_s15 + $0x13] sm:$0x1]  ;;  %v200_v54 = vld [vmem:[%s854_s12 + $0x58] sm:$0x1] }
  0x36   : > { %v201_v55 = vld [vmem:[%s854_s12 + $0x59] sm:$0x1]  ;;  %v404_v56 = vmax.bf16 %v185_v50, %v184_v49  ;;  %616 = vst [vmem:[%s859_s15 + $0x11] sm:$0x1] %v615_v51  ;;  %v515_v57 = vmax.bf16 %v411_v48, %v403_v47  ;;  %v186_v59 = vld [vmem:[%s854_s12 + $0x4a] sm:$0x1] }
  0x37   : > { %v412_v58 = vmax.bf16 %v201_v55, %v200_v54  ;;  %v187_v60 = vld [vmem:[%s854_s12 + $0x4b] sm:$0x1]  ;;  %v202_v61 = vld [vmem:[%s854_s12 + $0x5a] sm:$0x1]  ;;  %v618_v62 = vsel %vm865_vm2, %v514_v52, %v617_v46  ;;  %v623_v63 = vld [vmem:[%s859_s15 + $0x14] sm:$0x1] }
  0x38   : > { %v203_v0 = vld [vmem:[%s854_s12 + $0x5b] sm:$0x1]  ;;  %v405_v1 = vmax.bf16 %v187_v60, %v186_v59  ;;  %v188_v2 = vld [vmem:[%s854_s12 + $0x4c] sm:$0x1]  ;;  %619 = vst [vmem:[%s859_s15 + $0x12] sm:$0x1] %v618_v62  ;;  %v621_v3 = vsel %vm865_vm2, %v515_v57, %v620_v53 }
  0x39   : > { %v516_v4 = vmax.bf16 %v412_v58, %v404_v56  ;;  %v413_v6 = vmax.bf16 %v203_v0, %v202_v61  ;;  %v189_v7 = vld [vmem:[%s854_s12 + $0x4d] sm:$0x1]  ;;  %v204_v8 = vld [vmem:[%s854_s12 + $0x5c] sm:$0x1]  ;;  %v205_v9 = vld [vmem:[%s854_s12 + $0x5d] sm:$0x1] }
  0x3a   : > { %622 = vst [vmem:[%s859_s15 + $0x13] sm:$0x1] %v621_v3  ;;  %v626_v10 = vld [vmem:[%s859_s15 + $0x15] sm:$0x1]  ;;  %v406_v11 = vmax.bf16 %v189_v7, %v188_v2  ;;  %v414_v12 = vmax.bf16 %v205_v9, %v204_v8  ;;  %v190_v13 = vld [vmem:[%s854_s12 + $0x4e] sm:$0x1] }
  0x3b   : > { %v191_v14 = vld [vmem:[%s854_s12 + $0x4f] sm:$0x1]  ;;  %v624_v15 = vsel %vm865_vm2, %v516_v4, %v623_v63  ;;  %v517_v16 = vmax.bf16 %v413_v6, %v405_v1  ;;  %v629_v17 = vld [vmem:[%s859_s15 + $0x16] sm:$0x1]  ;;  %v206_v18 = vld [vmem:[%s854_s12 + $0x5e] sm:$0x1] }
  0x3c   : > { %v207_v19 = vld [vmem:[%s854_s12 + $0x5f] sm:$0x1]  ;;  %v407_v20 = vmax.bf16 %v191_v14, %v190_v13  ;;  %625 = vst [vmem:[%s859_s15 + $0x14] sm:$0x1] %v624_v15  ;;  %v518_v21 = vmax.bf16 %v414_v12, %v406_v11  ;;  %v208_v23 = vld [vmem:[%s854_s12 + $0x60] sm:$0x1] }
  0x3d   : > { %v415_v22 = vmax.bf16 %v207_v19, %v206_v18  ;;  %v209_v24 = vld [vmem:[%s854_s12 + $0x61] sm:$0x1]  ;;  %v224_v25 = vld [vmem:[%s854_s12 + $0x70] sm:$0x1]  ;;  %v627_v26 = vsel %vm865_vm2, %v517_v16, %v626_v10  ;;  %v632_v27 = vld [vmem:[%s859_s15 + $0x17] sm:$0x1] }
  0x3e   : > { %v225_v28 = vld [vmem:[%s854_s12 + $0x71] sm:$0x1]  ;;  %v416_v29 = vmax.bf16 %v209_v24, %v208_v23  ;;  %v210_v30 = vld [vmem:[%s854_s12 + $0x62] sm:$0x1]  ;;  %628 = vst [vmem:[%s859_s15 + $0x15] sm:$0x1] %v627_v26  ;;  %v630_v31 = vsel %vm865_vm2, %v518_v21, %v629_v17 }
  0x3f   : > { %v519_v32 = vmax.bf16 %v415_v22, %v407_v20  ;;  %v424_v33 = vmax.bf16 %v225_v28, %v224_v25  ;;  %v211_v34 = vld [vmem:[%s854_s12 + $0x63] sm:$0x1]  ;;  %v226_v35 = vld [vmem:[%s854_s12 + $0x72] sm:$0x1]  ;;  %v227_v36 = vld [vmem:[%s854_s12 + $0x73] sm:$0x1] }
  0x40   : > { %631 = vst [vmem:[%s859_s15 + $0x16] sm:$0x1] %v630_v31  ;;  %v635_v37 = vld [vmem:[%s859_s15 + $0x18] sm:$0x1]  ;;  %v417_v38 = vmax.bf16 %v211_v34, %v210_v30  ;;  %v425_v39 = vmax.bf16 %v227_v36, %v226_v35  ;;  %v212_v40 = vld [vmem:[%s854_s12 + $0x64] sm:$0x1] }
  0x41   : > { %v213_v41 = vld [vmem:[%s854_s12 + $0x65] sm:$0x1]  ;;  %v633_v42 = vsel %vm865_vm2, %v519_v32, %v632_v27  ;;  %v520_v43 = vmax.bf16 %v424_v33, %v416_v29  ;;  %v638_v44 = vld [vmem:[%s859_s15 + $0x19] sm:$0x1]  ;;  %v228_v45 = vld [vmem:[%s854_s12 + $0x74] sm:$0x1] }
  0x42   : > { %v229_v46 = vld [vmem:[%s854_s12 + $0x75] sm:$0x1]  ;;  %v418_v47 = vmax.bf16 %v213_v41, %v212_v40  ;;  %634 = vst [vmem:[%s859_s15 + $0x17] sm:$0x1] %v633_v42  ;;  %v521_v48 = vmax.bf16 %v425_v39, %v417_v38  ;;  %v214_v50 = vld [vmem:[%s854_s12 + $0x66] sm:$0x1] }
  0x43   : > { %v426_v49 = vmax.bf16 %v229_v46, %v228_v45  ;;  %v215_v51 = vld [vmem:[%s854_s12 + $0x67] sm:$0x1]  ;;  %v230_v52 = vld [vmem:[%s854_s12 + $0x76] sm:$0x1]  ;;  %v636_v53 = vsel %vm865_vm2, %v520_v43, %v635_v37  ;;  %v641_v54 = vld [vmem:[%s859_s15 + $0x1a] sm:$0x1] }
  0x44   : > { %v231_v55 = vld [vmem:[%s854_s12 + $0x77] sm:$0x1]  ;;  %v419_v56 = vmax.bf16 %v215_v51, %v214_v50  ;;  %v216_v57 = vld [vmem:[%s854_s12 + $0x68] sm:$0x1]  ;;  %637 = vst [vmem:[%s859_s15 + $0x18] sm:$0x1] %v636_v53  ;;  %v639_v58 = vsel %vm865_vm2, %v521_v48, %v638_v44 }
  0x45   : > { %v522_v59 = vmax.bf16 %v426_v49, %v418_v47  ;;  %v427_v60 = vmax.bf16 %v231_v55, %v230_v52  ;;  %v217_v61 = vld [vmem:[%s854_s12 + $0x69] sm:$0x1]  ;;  %v232_v62 = vld [vmem:[%s854_s12 + $0x78] sm:$0x1]  ;;  %v233_v63 = vld [vmem:[%s854_s12 + $0x79] sm:$0x1] }
  0x46   : > { %640 = vst [vmem:[%s859_s15 + $0x19] sm:$0x1] %v639_v58  ;;  %v644_v0 = vld [vmem:[%s859_s15 + $0x1b] sm:$0x1]  ;;  %v420_v1 = vmax.bf16 %v217_v61, %v216_v57  ;;  %v428_v2 = vmax.bf16 %v233_v63, %v232_v62  ;;  %v218_v3 = vld [vmem:[%s854_s12 + $0x6a] sm:$0x1] }
  0x47   : > { %v219_v4 = vld [vmem:[%s854_s12 + $0x6b] sm:$0x1]  ;;  %v642_v6 = vsel %vm865_vm2, %v522_v59, %v641_v54  ;;  %v523_v7 = vmax.bf16 %v427_v60, %v419_v56  ;;  %v647_v8 = vld [vmem:[%s859_s15 + $0x1c] sm:$0x1]  ;;  %v234_v9 = vld [vmem:[%s854_s12 + $0x7a] sm:$0x1] }
  0x48   : > { %v235_v10 = vld [vmem:[%s854_s12 + $0x7b] sm:$0x1]  ;;  %v421_v11 = vmax.bf16 %v219_v4, %v218_v3  ;;  %643 = vst [vmem:[%s859_s15 + $0x1a] sm:$0x1] %v642_v6  ;;  %v524_v12 = vmax.bf16 %v428_v2, %v420_v1  ;;  %v220_v14 = vld [vmem:[%s854_s12 + $0x6c] sm:$0x1] }
  0x49   : > { %v429_v13 = vmax.bf16 %v235_v10, %v234_v9  ;;  %v221_v15 = vld [vmem:[%s854_s12 + $0x6d] sm:$0x1]  ;;  %v236_v16 = vld [vmem:[%s854_s12 + $0x7c] sm:$0x1]  ;;  %v645_v17 = vsel %vm865_vm2, %v523_v7, %v644_v0  ;;  %v650_v18 = vld [vmem:[%s859_s15 + $0x1d] sm:$0x1] }
  0x4a   : > { %v237_v19 = vld [vmem:[%s854_s12 + $0x7d] sm:$0x1]  ;;  %v422_v20 = vmax.bf16 %v221_v15, %v220_v14  ;;  %v222_v21 = vld [vmem:[%s854_s12 + $0x6e] sm:$0x1]  ;;  %646 = vst [vmem:[%s859_s15 + $0x1b] sm:$0x1] %v645_v17  ;;  %v648_v22 = vsel %vm865_vm2, %v524_v12, %v647_v8 }
  0x4b   : > { %v525_v23 = vmax.bf16 %v429_v13, %v421_v11  ;;  %v430_v24 = vmax.bf16 %v237_v19, %v236_v16  ;;  %v223_v25 = vld [vmem:[%s854_s12 + $0x6f] sm:$0x1]  ;;  %v238_v26 = vld [vmem:[%s854_s12 + $0x7e] sm:$0x1]  ;;  %v239_v27 = vld [vmem:[%s854_s12 + $0x7f] sm:$0x1] }
  0x4c   : > { %649 = vst [vmem:[%s859_s15 + $0x1c] sm:$0x1] %v648_v22  ;;  %v653_v28 = vld [vmem:[%s859_s15 + $0x1e] sm:$0x1]  ;;  %v423_v29 = vmax.bf16 %v223_v25, %v222_v21  ;;  %v431_v30 = vmax.bf16 %v239_v27, %v238_v26  ;;  %v240_v31 = vld [vmem:[%s854_s12 + $0x80] sm:$0x1] }
  0x4d   : > { %v241_v32 = vld [vmem:[%s854_s12 + $0x81] sm:$0x1]  ;;  %v651_v33 = vsel %vm865_vm2, %v525_v23, %v650_v18  ;;  %v526_v34 = vmax.bf16 %v430_v24, %v422_v20  ;;  %v656_v35 = vld [vmem:[%s859_s15 + $0x1f] sm:$0x1]  ;;  %v256_v36 = vld [vmem:[%s854_s12 + $0x90] sm:$0x1] }
  0x4e   : > { %v257_v37 = vld [vmem:[%s854_s12 + $0x91] sm:$0x1]  ;;  %v432_v38 = vmax.bf16 %v241_v32, %v240_v31  ;;  %652 = vst [vmem:[%s859_s15 + $0x1d] sm:$0x1] %v651_v33  ;;  %v527_v39 = vmax.bf16 %v431_v30, %v423_v29  ;;  %v242_v41 = vld [vmem:[%s854_s12 + $0x82] sm:$0x1] }
  0x4f   : > { %v440_v40 = vmax.bf16 %v257_v37, %v256_v36  ;;  %v243_v42 = vld [vmem:[%s854_s12 + $0x83] sm:$0x1]  ;;  %v258_v43 = vld [vmem:[%s854_s12 + $0x92] sm:$0x1]  ;;  %v654_v44 = vsel %vm865_vm2, %v526_v34, %v653_v28  ;;  %v659_v45 = vld [vmem:[%s859_s15 + $0x20] sm:$0x1] }
  0x50   : > { %v259_v46 = vld [vmem:[%s854_s12 + $0x93] sm:$0x1]  ;;  %v433_v47 = vmax.bf16 %v243_v42, %v242_v41  ;;  %v244_v48 = vld [vmem:[%s854_s12 + $0x84] sm:$0x1]  ;;  %655 = vst [vmem:[%s859_s15 + $0x1e] sm:$0x1] %v654_v44  ;;  %v657_v49 = vsel %vm865_vm2, %v527_v39, %v656_v35 }
  0x51   : > { %v528_v50 = vmax.bf16 %v440_v40, %v432_v38  ;;  %v441_v51 = vmax.bf16 %v259_v46, %v258_v43  ;;  %v245_v52 = vld [vmem:[%s854_s12 + $0x85] sm:$0x1]  ;;  %v260_v53 = vld [vmem:[%s854_s12 + $0x94] sm:$0x1]  ;;  %v261_v54 = vld [vmem:[%s854_s12 + $0x95] sm:$0x1] }
  0x52   : > { %658 = vst [vmem:[%s859_s15 + $0x1f] sm:$0x1] %v657_v49  ;;  %v662_v55 = vld [vmem:[%s859_s15 + $0x21] sm:$0x1]  ;;  %v434_v56 = vmax.bf16 %v245_v52, %v244_v48  ;;  %v442_v57 = vmax.bf16 %v261_v54, %v260_v53  ;;  %v246_v58 = vld [vmem:[%s854_s12 + $0x86] sm:$0x1] }
  0x53   : > { %v247_v59 = vld [vmem:[%s854_s12 + $0x87] sm:$0x1]  ;;  %v660_v60 = vsel %vm865_vm2, %v528_v50, %v659_v45  ;;  %v529_v61 = vmax.bf16 %v441_v51, %v433_v47  ;;  %v665_v62 = vld [vmem:[%s859_s15 + $0x22] sm:$0x1]  ;;  %v262_v63 = vld [vmem:[%s854_s12 + $0x96] sm:$0x1] }
  0x54   : > { %v263_v0 = vld [vmem:[%s854_s12 + $0x97] sm:$0x1]  ;;  %v435_v1 = vmax.bf16 %v247_v59, %v246_v58  ;;  %661 = vst [vmem:[%s859_s15 + $0x20] sm:$0x1] %v660_v60  ;;  %v530_v2 = vmax.bf16 %v442_v57, %v434_v56  ;;  %v248_v4 = vld [vmem:[%s854_s12 + $0x88] sm:$0x1] }
  0x55   : > { %v443_v3 = vmax.bf16 %v263_v0, %v262_v63  ;;  %v249_v6 = vld [vmem:[%s854_s12 + $0x89] sm:$0x1]  ;;  %v264_v7 = vld [vmem:[%s854_s12 + $0x98] sm:$0x1]  ;;  %v663_v8 = vsel %vm865_vm2, %v529_v61, %v662_v55  ;;  %v668_v9 = vld [vmem:[%s859_s15 + $0x23] sm:$0x1] }
  0x56   : > { %v265_v10 = vld [vmem:[%s854_s12 + $0x99] sm:$0x1]  ;;  %v436_v11 = vmax.bf16 %v249_v6, %v248_v4  ;;  %v250_v12 = vld [vmem:[%s854_s12 + $0x8a] sm:$0x1]  ;;  %664 = vst [vmem:[%s859_s15 + $0x21] sm:$0x1] %v663_v8  ;;  %v666_v13 = vsel %vm865_vm2, %v530_v2, %v665_v62 }
  0x57   : > { %v531_v14 = vmax.bf16 %v443_v3, %v435_v1  ;;  %v444_v15 = vmax.bf16 %v265_v10, %v264_v7  ;;  %v251_v16 = vld [vmem:[%s854_s12 + $0x8b] sm:$0x1]  ;;  %v266_v17 = vld [vmem:[%s854_s12 + $0x9a] sm:$0x1]  ;;  %v267_v18 = vld [vmem:[%s854_s12 + $0x9b] sm:$0x1] }
  0x58   : > { %667 = vst [vmem:[%s859_s15 + $0x22] sm:$0x1] %v666_v13  ;;  %v671_v19 = vld [vmem:[%s859_s15 + $0x24] sm:$0x1]  ;;  %v437_v20 = vmax.bf16 %v251_v16, %v250_v12  ;;  %v445_v21 = vmax.bf16 %v267_v18, %v266_v17  ;;  %v252_v22 = vld [vmem:[%s854_s12 + $0x8c] sm:$0x1] }
  0x59   : > { %v253_v23 = vld [vmem:[%s854_s12 + $0x8d] sm:$0x1]  ;;  %v669_v24 = vsel %vm865_vm2, %v531_v14, %v668_v9  ;;  %v532_v25 = vmax.bf16 %v444_v15, %v436_v11  ;;  %v674_v26 = vld [vmem:[%s859_s15 + $0x25] sm:$0x1]  ;;  %v268_v27 = vld [vmem:[%s854_s12 + $0x9c] sm:$0x1] }
  0x5a   : > { %v269_v28 = vld [vmem:[%s854_s12 + $0x9d] sm:$0x1]  ;;  %v438_v29 = vmax.bf16 %v253_v23, %v252_v22  ;;  %670 = vst [vmem:[%s859_s15 + $0x23] sm:$0x1] %v669_v24  ;;  %v533_v30 = vmax.bf16 %v445_v21, %v437_v20  ;;  %v254_v32 = vld [vmem:[%s854_s12 + $0x8e] sm:$0x1] }
  0x5b   : > { %v446_v31 = vmax.bf16 %v269_v28, %v268_v27  ;;  %v255_v33 = vld [vmem:[%s854_s12 + $0x8f] sm:$0x1]  ;;  %v270_v34 = vld [vmem:[%s854_s12 + $0x9e] sm:$0x1]  ;;  %v672_v35 = vsel %vm865_vm2, %v532_v25, %v671_v19  ;;  %v677_v36 = vld [vmem:[%s859_s15 + $0x26] sm:$0x1] }
  0x5c   : > { %v271_v37 = vld [vmem:[%s854_s12 + $0x9f] sm:$0x1]  ;;  %v439_v38 = vmax.bf16 %v255_v33, %v254_v32  ;;  %v272_v39 = vld [vmem:[%s854_s12 + $0xa0] sm:$0x1]  ;;  %673 = vst [vmem:[%s859_s15 + $0x24] sm:$0x1] %v672_v35  ;;  %v675_v40 = vsel %vm865_vm2, %v533_v30, %v674_v26 }
  0x5d   : > { %v534_v41 = vmax.bf16 %v446_v31, %v438_v29  ;;  %v447_v42 = vmax.bf16 %v271_v37, %v270_v34  ;;  %v273_v43 = vld [vmem:[%s854_s12 + $0xa1] sm:$0x1]  ;;  %v288_v44 = vld [vmem:[%s854_s12 + $0xb0] sm:$0x1]  ;;  %v289_v45 = vld [vmem:[%s854_s12 + $0xb1] sm:$0x1] }
  0x5e   : > { %676 = vst [vmem:[%s859_s15 + $0x25] sm:$0x1] %v675_v40  ;;  %v680_v46 = vld [vmem:[%s859_s15 + $0x27] sm:$0x1]  ;;  %v448_v47 = vmax.bf16 %v273_v43, %v272_v39  ;;  %v456_v48 = vmax.bf16 %v289_v45, %v288_v44  ;;  %v274_v49 = vld [vmem:[%s854_s12 + $0xa2] sm:$0x1] }
  0x5f   : > { %v275_v50 = vld [vmem:[%s854_s12 + $0xa3] sm:$0x1]  ;;  %v678_v51 = vsel %vm865_vm2, %v534_v41, %v677_v36  ;;  %v535_v52 = vmax.bf16 %v447_v42, %v439_v38  ;;  %v683_v53 = vld [vmem:[%s859_s15 + $0x28] sm:$0x1]  ;;  %v290_v54 = vld [vmem:[%s854_s12 + $0xb2] sm:$0x1] }
  0x60   : > { %v291_v55 = vld [vmem:[%s854_s12 + $0xb3] sm:$0x1]  ;;  %v449_v56 = vmax.bf16 %v275_v50, %v274_v49  ;;  %679 = vst [vmem:[%s859_s15 + $0x26] sm:$0x1] %v678_v51  ;;  %v536_v57 = vmax.bf16 %v456_v48, %v448_v47  ;;  %v276_v59 = vld [vmem:[%s854_s12 + $0xa4] sm:$0x1] }
  0x61   : > { %v457_v58 = vmax.bf16 %v291_v55, %v290_v54  ;;  %v277_v60 = vld [vmem:[%s854_s12 + $0xa5] sm:$0x1]  ;;  %v292_v61 = vld [vmem:[%s854_s12 + $0xb4] sm:$0x1]  ;;  %v681_v62 = vsel %vm865_vm2, %v535_v52, %v680_v46  ;;  %v686_v63 = vld [vmem:[%s859_s15 + $0x29] sm:$0x1] }
  0x62   : > { %v293_v0 = vld [vmem:[%s854_s12 + $0xb5] sm:$0x1]  ;;  %v450_v1 = vmax.bf16 %v277_v60, %v276_v59  ;;  %v278_v2 = vld [vmem:[%s854_s12 + $0xa6] sm:$0x1]  ;;  %682 = vst [vmem:[%s859_s15 + $0x27] sm:$0x1] %v681_v62  ;;  %v684_v3 = vsel %vm865_vm2, %v536_v57, %v683_v53 }
  0x63   : > { %v537_v4 = vmax.bf16 %v457_v58, %v449_v56  ;;  %v458_v6 = vmax.bf16 %v293_v0, %v292_v61  ;;  %v279_v7 = vld [vmem:[%s854_s12 + $0xa7] sm:$0x1]  ;;  %v294_v8 = vld [vmem:[%s854_s12 + $0xb6] sm:$0x1]  ;;  %v295_v9 = vld [vmem:[%s854_s12 + $0xb7] sm:$0x1] }
  0x64   : > { %685 = vst [vmem:[%s859_s15 + $0x28] sm:$0x1] %v684_v3  ;;  %v689_v10 = vld [vmem:[%s859_s15 + $0x2a] sm:$0x1]  ;;  %v451_v11 = vmax.bf16 %v279_v7, %v278_v2  ;;  %v459_v12 = vmax.bf16 %v295_v9, %v294_v8  ;;  %v280_v13 = vld [vmem:[%s854_s12 + $0xa8] sm:$0x1] }
  0x65   : > { %v281_v14 = vld [vmem:[%s854_s12 + $0xa9] sm:$0x1]  ;;  %v687_v15 = vsel %vm865_vm2, %v537_v4, %v686_v63  ;;  %v538_v16 = vmax.bf16 %v458_v6, %v450_v1  ;;  %v692_v17 = vld [vmem:[%s859_s15 + $0x2b] sm:$0x1]  ;;  %v296_v18 = vld [vmem:[%s854_s12 + $0xb8] sm:$0x1] }
  0x66   : > { %v297_v19 = vld [vmem:[%s854_s12 + $0xb9] sm:$0x1]  ;;  %v452_v20 = vmax.bf16 %v281_v14, %v280_v13  ;;  %688 = vst [vmem:[%s859_s15 + $0x29] sm:$0x1] %v687_v15  ;;  %v539_v21 = vmax.bf16 %v459_v12, %v451_v11  ;;  %v282_v23 = vld [vmem:[%s854_s12 + $0xaa] sm:$0x1] }
  0x67   : > { %v460_v22 = vmax.bf16 %v297_v19, %v296_v18  ;;  %v283_v24 = vld [vmem:[%s854_s12 + $0xab] sm:$0x1]  ;;  %v298_v25 = vld [vmem:[%s854_s12 + $0xba] sm:$0x1]  ;;  %v690_v26 = vsel %vm865_vm2, %v538_v16, %v689_v10  ;;  %v695_v27 = vld [vmem:[%s859_s15 + $0x2c] sm:$0x1] }
  0x68   : > { %v299_v28 = vld [vmem:[%s854_s12 + $0xbb] sm:$0x1]  ;;  %v453_v29 = vmax.bf16 %v283_v24, %v282_v23  ;;  %v284_v30 = vld [vmem:[%s854_s12 + $0xac] sm:$0x1]  ;;  %691 = vst [vmem:[%s859_s15 + $0x2a] sm:$0x1] %v690_v26  ;;  %v693_v31 = vsel %vm865_vm2, %v539_v21, %v692_v17 }
  0x69   : > { %v540_v32 = vmax.bf16 %v460_v22, %v452_v20  ;;  %v461_v33 = vmax.bf16 %v299_v28, %v298_v25  ;;  %v285_v34 = vld [vmem:[%s854_s12 + $0xad] sm:$0x1]  ;;  %v300_v35 = vld [vmem:[%s854_s12 + $0xbc] sm:$0x1]  ;;  %v301_v36 = vld [vmem:[%s854_s12 + $0xbd] sm:$0x1] }
  0x6a   : > { %694 = vst [vmem:[%s859_s15 + $0x2b] sm:$0x1] %v693_v31  ;;  %v698_v37 = vld [vmem:[%s859_s15 + $0x2d] sm:$0x1]  ;;  %v454_v38 = vmax.bf16 %v285_v34, %v284_v30  ;;  %v462_v39 = vmax.bf16 %v301_v36, %v300_v35  ;;  %v286_v40 = vld [vmem:[%s854_s12 + $0xae] sm:$0x1] }
  0x6b   : > { %v287_v41 = vld [vmem:[%s854_s12 + $0xaf] sm:$0x1]  ;;  %v696_v42 = vsel %vm865_vm2, %v540_v32, %v695_v27  ;;  %v541_v43 = vmax.bf16 %v461_v33, %v453_v29  ;;  %v701_v44 = vld [vmem:[%s859_s15 + $0x2e] sm:$0x1]  ;;  %v302_v45 = vld [vmem:[%s854_s12 + $0xbe] sm:$0x1] }
  0x6c   : > { %v303_v46 = vld [vmem:[%s854_s12 + $0xbf] sm:$0x1]  ;;  %v455_v47 = vmax.bf16 %v287_v41, %v286_v40  ;;  %697 = vst [vmem:[%s859_s15 + $0x2c] sm:$0x1] %v696_v42  ;;  %v542_v48 = vmax.bf16 %v462_v39, %v454_v38  ;;  %v304_v50 = vld [vmem:[%s854_s12 + $0xc0] sm:$0x1] }
  0x6d   : > { %v463_v49 = vmax.bf16 %v303_v46, %v302_v45  ;;  %v305_v51 = vld [vmem:[%s854_s12 + $0xc1] sm:$0x1]  ;;  %v320_v52 = vld [vmem:[%s854_s12 + $0xd0] sm:$0x1]  ;;  %v699_v53 = vsel %vm865_vm2, %v541_v43, %v698_v37  ;;  %v704_v54 = vld [vmem:[%s859_s15 + $0x2f] sm:$0x1] }
  0x6e   : > { %v321_v55 = vld [vmem:[%s854_s12 + $0xd1] sm:$0x1]  ;;  %v464_v56 = vmax.bf16 %v305_v51, %v304_v50  ;;  %v306_v57 = vld [vmem:[%s854_s12 + $0xc2] sm:$0x1]  ;;  %700 = vst [vmem:[%s859_s15 + $0x2d] sm:$0x1] %v699_v53  ;;  %v702_v58 = vsel %vm865_vm2, %v542_v48, %v701_v44 }
  0x6f   : > { %v543_v59 = vmax.bf16 %v463_v49, %v455_v47  ;;  %v472_v60 = vmax.bf16 %v321_v55, %v320_v52  ;;  %v307_v61 = vld [vmem:[%s854_s12 + $0xc3] sm:$0x1]  ;;  %v322_v62 = vld [vmem:[%s854_s12 + $0xd2] sm:$0x1]  ;;  %v323_v63 = vld [vmem:[%s854_s12 + $0xd3] sm:$0x1] }
  0x70   : > { %703 = vst [vmem:[%s859_s15 + $0x2e] sm:$0x1] %v702_v58  ;;  %v707_v0 = vld [vmem:[%s859_s15 + $0x30] sm:$0x1]  ;;  %v465_v1 = vmax.bf16 %v307_v61, %v306_v57  ;;  %v473_v2 = vmax.bf16 %v323_v63, %v322_v62  ;;  %v308_v3 = vld [vmem:[%s854_s12 + $0xc4] sm:$0x1] }
  0x71   : > { %v309_v4 = vld [vmem:[%s854_s12 + $0xc5] sm:$0x1]  ;;  %v705_v6 = vsel %vm865_vm2, %v543_v59, %v704_v54  ;;  %v544_v7 = vmax.bf16 %v472_v60, %v464_v56  ;;  %v710_v8 = vld [vmem:[%s859_s15 + $0x31] sm:$0x1]  ;;  %v324_v9 = vld [vmem:[%s854_s12 + $0xd4] sm:$0x1] }
  0x72   : > { %v325_v10 = vld [vmem:[%s854_s12 + $0xd5] sm:$0x1]  ;;  %v466_v11 = vmax.bf16 %v309_v4, %v308_v3  ;;  %706 = vst [vmem:[%s859_s15 + $0x2f] sm:$0x1] %v705_v6  ;;  %v545_v12 = vmax.bf16 %v473_v2, %v465_v1  ;;  %v310_v14 = vld [vmem:[%s854_s12 + $0xc6] sm:$0x1] }
  0x73   : > { %v474_v13 = vmax.bf16 %v325_v10, %v324_v9  ;;  %v311_v15 = vld [vmem:[%s854_s12 + $0xc7] sm:$0x1]  ;;  %v326_v16 = vld [vmem:[%s854_s12 + $0xd6] sm:$0x1]  ;;  %v708_v17 = vsel %vm865_vm2, %v544_v7, %v707_v0  ;;  %v713_v18 = vld [vmem:[%s859_s15 + $0x32] sm:$0x1] }
  0x74   : > { %v327_v19 = vld [vmem:[%s854_s12 + $0xd7] sm:$0x1]  ;;  %v467_v20 = vmax.bf16 %v311_v15, %v310_v14  ;;  %v312_v21 = vld [vmem:[%s854_s12 + $0xc8] sm:$0x1]  ;;  %709 = vst [vmem:[%s859_s15 + $0x30] sm:$0x1] %v708_v17  ;;  %v711_v22 = vsel %vm865_vm2, %v545_v12, %v710_v8 }
  0x75   : > { %v546_v23 = vmax.bf16 %v474_v13, %v466_v11  ;;  %v475_v24 = vmax.bf16 %v327_v19, %v326_v16  ;;  %v313_v25 = vld [vmem:[%s854_s12 + $0xc9] sm:$0x1]  ;;  %v328_v26 = vld [vmem:[%s854_s12 + $0xd8] sm:$0x1]  ;;  %v329_v27 = vld [vmem:[%s854_s12 + $0xd9] sm:$0x1] }
  0x76   : > { %712 = vst [vmem:[%s859_s15 + $0x31] sm:$0x1] %v711_v22  ;;  %v716_v28 = vld [vmem:[%s859_s15 + $0x33] sm:$0x1]  ;;  %v468_v29 = vmax.bf16 %v313_v25, %v312_v21  ;;  %v476_v30 = vmax.bf16 %v329_v27, %v328_v26  ;;  %v314_v31 = vld [vmem:[%s854_s12 + $0xca] sm:$0x1] }
  0x77   : > { %v315_v32 = vld [vmem:[%s854_s12 + $0xcb] sm:$0x1]  ;;  %v714_v33 = vsel %vm865_vm2, %v546_v23, %v713_v18  ;;  %v547_v34 = vmax.bf16 %v475_v24, %v467_v20  ;;  %v719_v35 = vld [vmem:[%s859_s15 + $0x34] sm:$0x1]  ;;  %v330_v36 = vld [vmem:[%s854_s12 + $0xda] sm:$0x1] }
  0x78   : > { %v331_v37 = vld [vmem:[%s854_s12 + $0xdb] sm:$0x1]  ;;  %v469_v38 = vmax.bf16 %v315_v32, %v314_v31  ;;  %715 = vst [vmem:[%s859_s15 + $0x32] sm:$0x1] %v714_v33  ;;  %v548_v39 = vmax.bf16 %v476_v30, %v468_v29  ;;  %v316_v41 = vld [vmem:[%s854_s12 + $0xcc] sm:$0x1] }
  0x79   : > { %v477_v40 = vmax.bf16 %v331_v37, %v330_v36  ;;  %v317_v42 = vld [vmem:[%s854_s12 + $0xcd] sm:$0x1]  ;;  %v332_v43 = vld [vmem:[%s854_s12 + $0xdc] sm:$0x1]  ;;  %v717_v44 = vsel %vm865_vm2, %v547_v34, %v716_v28  ;;  %v722_v45 = vld [vmem:[%s859_s15 + $0x35] sm:$0x1] }
  0x7a   : > { %v333_v46 = vld [vmem:[%s854_s12 + $0xdd] sm:$0x1]  ;;  %v470_v47 = vmax.bf16 %v317_v42, %v316_v41  ;;  %v318_v48 = vld [vmem:[%s854_s12 + $0xce] sm:$0x1]  ;;  %718 = vst [vmem:[%s859_s15 + $0x33] sm:$0x1] %v717_v44  ;;  %v720_v49 = vsel %vm865_vm2, %v548_v39, %v719_v35 }
  0x7b   : > { %v549_v50 = vmax.bf16 %v477_v40, %v469_v38  ;;  %v478_v51 = vmax.bf16 %v333_v46, %v332_v43  ;;  %v319_v52 = vld [vmem:[%s854_s12 + $0xcf] sm:$0x1]  ;;  %v334_v53 = vld [vmem:[%s854_s12 + $0xde] sm:$0x1]  ;;  %v335_v54 = vld [vmem:[%s854_s12 + $0xdf] sm:$0x1] }
  0x7c   : > { %721 = vst [vmem:[%s859_s15 + $0x34] sm:$0x1] %v720_v49  ;;  %v725_v55 = vld [vmem:[%s859_s15 + $0x36] sm:$0x1]  ;;  %v471_v56 = vmax.bf16 %v319_v52, %v318_v48  ;;  %v479_v57 = vmax.bf16 %v335_v54, %v334_v53  ;;  %v336_v58 = vld [vmem:[%s854_s12 + $0xe0] sm:$0x1] }
  0x7d   : > { %v337_v59 = vld [vmem:[%s854_s12 + $0xe1] sm:$0x1]  ;;  %v723_v60 = vsel %vm865_vm2, %v549_v50, %v722_v45  ;;  %v550_v61 = vmax.bf16 %v478_v51, %v470_v47  ;;  %v728_v62 = vld [vmem:[%s859_s15 + $0x37] sm:$0x1]  ;;  %v352_v63 = vld [vmem:[%s854_s12 + $0xf0] sm:$0x1] }
  0x7e   : > { %v353_v0 = vld [vmem:[%s854_s12 + $0xf1] sm:$0x1]  ;;  %v480_v1 = vmax.bf16 %v337_v59, %v336_v58  ;;  %724 = vst [vmem:[%s859_s15 + $0x35] sm:$0x1] %v723_v60  ;;  %v551_v2 = vmax.bf16 %v479_v57, %v471_v56  ;;  %v338_v4 = vld [vmem:[%s854_s12 + $0xe2] sm:$0x1] }
  0x7f   : > { %v488_v3 = vmax.bf16 %v353_v0, %v352_v63  ;;  %v339_v6 = vld [vmem:[%s854_s12 + $0xe3] sm:$0x1]  ;;  %v354_v7 = vld [vmem:[%s854_s12 + $0xf2] sm:$0x1]  ;;  %v726_v8 = vsel %vm865_vm2, %v550_v61, %v725_v55  ;;  %v731_v9 = vld [vmem:[%s859_s15 + $0x38] sm:$0x1] }
  0x80   : > { %v355_v10 = vld [vmem:[%s854_s12 + $0xf3] sm:$0x1]  ;;  %v481_v11 = vmax.bf16 %v339_v6, %v338_v4  ;;  %v340_v12 = vld [vmem:[%s854_s12 + $0xe4] sm:$0x1]  ;;  %727 = vst [vmem:[%s859_s15 + $0x36] sm:$0x1] %v726_v8  ;;  %v729_v13 = vsel %vm865_vm2, %v551_v2, %v728_v62 }
  0x81   : > { %v552_v14 = vmax.bf16 %v488_v3, %v480_v1  ;;  %v489_v15 = vmax.bf16 %v355_v10, %v354_v7  ;;  %v341_v16 = vld [vmem:[%s854_s12 + $0xe5] sm:$0x1]  ;;  %v356_v17 = vld [vmem:[%s854_s12 + $0xf4] sm:$0x1]  ;;  %v357_v18 = vld [vmem:[%s854_s12 + $0xf5] sm:$0x1] }
  0x82   : > { %730 = vst [vmem:[%s859_s15 + $0x37] sm:$0x1] %v729_v13  ;;  %v734_v19 = vld [vmem:[%s859_s15 + $0x39] sm:$0x1]  ;;  %v482_v20 = vmax.bf16 %v341_v16, %v340_v12  ;;  %v490_v21 = vmax.bf16 %v357_v18, %v356_v17  ;;  %v342_v22 = vld [vmem:[%s854_s12 + $0xe6] sm:$0x1] }
  0x83   : > { %v343_v23 = vld [vmem:[%s854_s12 + $0xe7] sm:$0x1]  ;;  %v732_v24 = vsel %vm865_vm2, %v552_v14, %v731_v9  ;;  %v553_v25 = vmax.bf16 %v489_v15, %v481_v11  ;;  %v737_v26 = vld [vmem:[%s859_s15 + $0x3a] sm:$0x1]  ;;  %v358_v27 = vld [vmem:[%s854_s12 + $0xf6] sm:$0x1] }
  0x84   : > { %v359_v28 = vld [vmem:[%s854_s12 + $0xf7] sm:$0x1]  ;;  %v483_v29 = vmax.bf16 %v343_v23, %v342_v22  ;;  %733 = vst [vmem:[%s859_s15 + $0x38] sm:$0x1] %v732_v24  ;;  %v554_v30 = vmax.bf16 %v490_v21, %v482_v20  ;;  %v344_v32 = vld [vmem:[%s854_s12 + $0xe8] sm:$0x1] }
  0x85   : > { %v491_v31 = vmax.bf16 %v359_v28, %v358_v27  ;;  %v345_v33 = vld [vmem:[%s854_s12 + $0xe9] sm:$0x1]  ;;  %v360_v34 = vld [vmem:[%s854_s12 + $0xf8] sm:$0x1]  ;;  %v735_v35 = vsel %vm865_vm2, %v553_v25, %v734_v19  ;;  %v740_v36 = vld [vmem:[%s859_s15 + $0x3b] sm:$0x1] }
  0x86   : > { %v361_v37 = vld [vmem:[%s854_s12 + $0xf9] sm:$0x1]  ;;  %v484_v38 = vmax.bf16 %v345_v33, %v344_v32  ;;  %v346_v39 = vld [vmem:[%s854_s12 + $0xea] sm:$0x1]  ;;  %736 = vst [vmem:[%s859_s15 + $0x39] sm:$0x1] %v735_v35  ;;  %v738_v40 = vsel %vm865_vm2, %v554_v30, %v737_v26 }
  0x87   : > { %v555_v41 = vmax.bf16 %v491_v31, %v483_v29  ;;  %v492_v42 = vmax.bf16 %v361_v37, %v360_v34  ;;  %v347_v43 = vld [vmem:[%s854_s12 + $0xeb] sm:$0x1]  ;;  %v362_v44 = vld [vmem:[%s854_s12 + $0xfa] sm:$0x1]  ;;  %v363_v45 = vld [vmem:[%s854_s12 + $0xfb] sm:$0x1] }
  0x88   : > { %739 = vst [vmem:[%s859_s15 + $0x3a] sm:$0x1] %v738_v40  ;;  %v743_v46 = vld [vmem:[%s859_s15 + $0x3c] sm:$0x1]  ;;  %v485_v47 = vmax.bf16 %v347_v43, %v346_v39  ;;  %v493_v48 = vmax.bf16 %v363_v45, %v362_v44  ;;  %v348_v49 = vld [vmem:[%s854_s12 + $0xec] sm:$0x1] }
  0x89   : > { %v349_v50 = vld [vmem:[%s854_s12 + $0xed] sm:$0x1]  ;;  %v741_v51 = vsel %vm865_vm2, %v555_v41, %v740_v36  ;;  %v556_v52 = vmax.bf16 %v492_v42, %v484_v38  ;;  %v746_v53 = vld [vmem:[%s859_s15 + $0x3d] sm:$0x1]  ;;  %v364_v54 = vld [vmem:[%s854_s12 + $0xfc] sm:$0x1] }
  0x8a   : > { %v365_v55 = vld [vmem:[%s854_s12 + $0xfd] sm:$0x1]  ;;  %v486_v56 = vmax.bf16 %v349_v50, %v348_v49  ;;  %742 = vst [vmem:[%s859_s15 + $0x3b] sm:$0x1] %v741_v51  ;;  %v557_v57 = vmax.bf16 %v493_v48, %v485_v47  ;;  %v350_v59 = vld [vmem:[%s854_s12 + $0xee] sm:$0x1] }
  0x8b   : > { %v494_v58 = vmax.bf16 %v365_v55, %v364_v54  ;;  %v351_v60 = vld [vmem:[%s854_s12 + $0xef] sm:$0x1]  ;;  %v366_v61 = vld [vmem:[%s854_s12 + $0xfe] sm:$0x1]  ;;  %v744_v62 = vsel %vm865_vm2, %v556_v52, %v743_v46  ;;  %v367_v0 = vld [vmem:[%s854_s12 + $0xff] sm:$0x1] }
  0x8c   : > { %v749_v63 = vld [vmem:[%s859_s15 + $0x3e] sm:$0x1]  ;;  %v487_v1 = vmax.bf16 %v351_v60, %v350_v59  ;;  %745 = vst [vmem:[%s859_s15 + $0x3c] sm:$0x1] %v744_v62  ;;  %v747_v2 = vsel %vm865_vm2, %v557_v57, %v746_v53  ;;  %v495_v4 = vmax.bf16 %v367_v0, %v366_v61  ;;  %v752_v6 = vld [vmem:[%s859_s15 + $0x3f] sm:$0x1] }
  0x8d   : > { %v558_v3 = vmax.bf16 %v494_v58, %v486_v56  ;;  %748 = vst [vmem:[%s859_s15 + $0x3d] sm:$0x1] %v747_v2 }
  0x8e   : > { %v559_v8 = vmax.bf16 %v495_v4, %v487_v1 }
  0x8f   : > { %v750_v7 = vsel %vm865_vm2, %v558_v3, %v749_v63 }
  0x90   : > { %751 = vst [vmem:[%s859_s15 + $0x3e] sm:$0x1] %v750_v7  ;;  %v753_v9 = vsel %vm865_vm2, %v559_v8, %v752_v6 }
  0x91   : > { %754 = vst [vmem:[%s859_s15 + $0x3f] sm:$0x1] %v753_v9 }
  0x92 PF: > { %s11_s6 = sadd.s32 1, %s831_s6  }
  0x93   : > { %p8_p4 = scmp.ge.s32.totalorder %s11_s6, 4  }
  0x95   :  { %10 = sbr.rel (!%p8_p4) target bundleno = 1 (0x1), region = 54 }

// kernel: _lambda_.10
= control target key start
LH: loop header
LB: loop body
LE: loop exit
PB: predicated region body
PF: predicated region fallthrough
CT: control target
= control target key end

     0   :  { %s363_s6 = smov 0   ;;  %s516_s0 = inlined_call_operand.vmem [shape: bf16[2,8,8,1,128], index: 0, kind: input, shape index: {}]   ;;  %s517_s1 = inlined_call_operand.vmem [shape: bf16[2,4,4,1,128], index: 1, kind: output, shape index: {}]  }
   0x1 LB: > { %s328_s7 = sadd.s32 4294967295, %s351_s6   ;;  %p332_p0 = scmp.ge.s32.totalorder %s351_s6, 1  ;;  %s351_s6 = sphi %s363_s6, %s11_s6  }
   0x2   : > { %p86_p1 = scmp.lt.s32.totalorder %s351_s6, 3 }
   0x4   : > { %p87_p2 = pnand %p332_p0, %p86_p1 }
   0x5   : > { %p104_p3 = scmp.lt.s32.totalorder (!%p87_p2), %s328_s7, 1 }
   0x6   : > { %90 = sbr.rel (%p87_p2) target bundleno = 51 (0x33), region = 24 }
   0xb   : > { %s521_s7 = smov (!%p104_p3, %s328_s7), 1  ;;  %vm224_vm0 = vcmask 1040384   ;;  %vm225_vm1 = vsmask.f32 256 }
   0xc   : > { %s333_s8 = sshll.u32 %s521_s7, 6  ;;  %s334_s9 = sshll.u32 %s521_s7, 4  ;;  %vm385_vm2 = vmand %vm224_vm0, %vm225_vm1 }
   0xd   : > { %s374_s12 = scalar_lea.vmem %s516_s0, %s333_s8  ;;  %s379_s15 = scalar_lea.vmem %s517_s1, %s334_s9 }
   0xe   : > { %v112_v0 = vld [vmem:[%s374_s12] sm:$0x1]  ;;  %v113_v1 = vld [vmem:[%s374_s12 + $0x1] sm:$0x1]  ;;  %v120_v2 = vld [vmem:[%s374_s12 + $0x8] sm:$0x1] }
   0xf   : > { %v121_v3 = vld [vmem:[%s374_s12 + $0x9] sm:$0x1]  ;;  %v176_v4 = vmax.bf16 %v113_v1, %v112_v0  ;;  %v114_v6 = vld [vmem:[%s374_s12 + $0x2] sm:$0x1]  ;;  %v115_v8 = vld [vmem:[%s374_s12 + $0x3] sm:$0x1] }
  0x10   : > { %v180_v7 = vmax.bf16 %v121_v3, %v120_v2  ;;  %v122_v9 = vld [vmem:[%s374_s12 + $0xa] sm:$0x1]  ;;  %v123_v10 = vld [vmem:[%s374_s12 + $0xb] sm:$0x1]  ;;  %v227_v11 = vld [vmem:[%s379_s15] sm:$0x1]  ;;  %v177_v12 = vmax.bf16 %v115_v8, %v114_v6 }
  0x11   : > { %v181_v13 = vmax.bf16 %v123_v10, %v122_v9  ;;  %v116_v14 = vld [vmem:[%s374_s12 + $0x4] sm:$0x1]  ;;  %v117_v15 = vld [vmem:[%s374_s12 + $0x5] sm:$0x1]  ;;  %v230_v17 = vld [vmem:[%s379_s15 + $0x1] sm:$0x1] }
  0x12   : > { %v208_v16 = vmax.bf16 %v180_v7, %v176_v4  ;;  %v124_v18 = vld [vmem:[%s374_s12 + $0xc] sm:$0x1]  ;;  %v125_v19 = vld [vmem:[%s374_s12 + $0xd] sm:$0x1]  ;;  %v178_v20 = vmax.bf16 %v117_v15, %v116_v14  ;;  %v118_v23 = vld [vmem:[%s374_s12 + $0x6] sm:$0x1] }
  0x13   : > { %v209_v21 = vmax.bf16 %v181_v13, %v177_v12  ;;  %v182_v22 = vmax.bf16 %v125_v19, %v124_v18  ;;  %v119_v24 = vld [vmem:[%s374_s12 + $0x7] sm:$0x1]  ;;  %v126_v25 = vld [vmem:[%s374_s12 + $0xe] sm:$0x1]  ;;  %v233_v27 = vld [vmem:[%s379_s15 + $0x2] sm:$0x1] }
  0x14   : > { %v228_v26 = vsel %vm385_vm2, %v208_v16, %v227_v11  ;;  %v127_v28 = vld [vmem:[%s374_s12 + $0xf] sm:$0x1]  ;;  %v179_v29 = vmax.bf16 %v119_v24, %v118_v23  ;;  %v128_v30 = vld [vmem:[%s374_s12 + $0x10] sm:$0x1]  ;;  %v129_v34 = vld [vmem:[%s374_s12 + $0x11] sm:$0x1] }
  0x15   : > { %229 = vst [vmem:[%s379_s15] sm:$0x1] %v228_v26  ;;  %v231_v31 = vsel %vm385_vm2, %v209_v21, %v230_v17  ;;  %v210_v32 = vmax.bf16 %v182_v22, %v178_v20  ;;  %v183_v33 = vmax.bf16 %v127_v28, %v126_v25  ;;  %v136_v35 = vld [vmem:[%s374_s12 + $0x18] sm:$0x1]  ;;  %v137_v36 = vld [vmem:[%s374_s12 + $0x19] sm:$0x1]  ;;  %v184_v38 = vmax.bf16 %v129_v34, %v128_v30 }
  0x16   : > { %232 = vst [vmem:[%s379_s15 + $0x1] sm:$0x1] %v231_v31  ;;  %v236_v37 = vld [vmem:[%s379_s15 + $0x3] sm:$0x1]  ;;  %v188_v39 = vmax.bf16 %v137_v36, %v136_v35  ;;  %v130_v40 = vld [vmem:[%s374_s12 + $0x12] sm:$0x1] }
  0x17   : > { %v131_v41 = vld [vmem:[%s374_s12 + $0x13] sm:$0x1]  ;;  %v234_v42 = vsel %vm385_vm2, %v210_v32, %v233_v27  ;;  %v211_v43 = vmax.bf16 %v183_v33, %v179_v29  ;;  %v239_v44 = vld [vmem:[%s379_s15 + $0x4] sm:$0x1]  ;;  %v138_v45 = vld [vmem:[%s374_s12 + $0x1a] sm:$0x1] }
  0x18   : > { %v139_v46 = vld [vmem:[%s374_s12 + $0x1b] sm:$0x1]  ;;  %v185_v47 = vmax.bf16 %v131_v41, %v130_v40  ;;  %235 = vst [vmem:[%s379_s15 + $0x2] sm:$0x1] %v234_v42  ;;  %v212_v48 = vmax.bf16 %v188_v39, %v184_v38  ;;  %v132_v50 = vld [vmem:[%s374_s12 + $0x14] sm:$0x1] }
  0x19   : > { %v189_v49 = vmax.bf16 %v139_v46, %v138_v45  ;;  %v133_v51 = vld [vmem:[%s374_s12 + $0x15] sm:$0x1]  ;;  %v140_v52 = vld [vmem:[%s374_s12 + $0x1c] sm:$0x1]  ;;  %v237_v53 = vsel %vm385_vm2, %v211_v43, %v236_v37  ;;  %v242_v54 = vld [vmem:[%s379_s15 + $0x5] sm:$0x1] }
  0x1a   : > { %v141_v55 = vld [vmem:[%s374_s12 + $0x1d] sm:$0x1]  ;;  %v186_v56 = vmax.bf16 %v133_v51, %v132_v50  ;;  %v134_v57 = vld [vmem:[%s374_s12 + $0x16] sm:$0x1]  ;;  %238 = vst [vmem:[%s379_s15 + $0x3] sm:$0x1] %v237_v53  ;;  %v240_v58 = vsel %vm385_vm2, %v212_v48, %v239_v44 }
  0x1b   : > { %v213_v59 = vmax.bf16 %v189_v49, %v185_v47  ;;  %v190_v60 = vmax.bf16 %v141_v55, %v140_v52  ;;  %v135_v61 = vld [vmem:[%s374_s12 + $0x17] sm:$0x1]  ;;  %v142_v62 = vld [vmem:[%s374_s12 + $0x1e] sm:$0x1]  ;;  %v143_v63 = vld [vmem:[%s374_s12 + $0x1f] sm:$0x1] }
  0x1c   : > { %241 = vst [vmem:[%s379_s15 + $0x4] sm:$0x1] %v240_v58  ;;  %v245_v0 = vld [vmem:[%s379_s15 + $0x6] sm:$0x1]  ;;  %v187_v1 = vmax.bf16 %v135_v61, %v134_v57  ;;  %v191_v2 = vmax.bf16 %v143_v63, %v142_v62  ;;  %v144_v3 = vld [vmem:[%s374_s12 + $0x20] sm:$0x1] }
  0x1d   : > { %v145_v4 = vld [vmem:[%s374_s12 + $0x21] sm:$0x1]  ;;  %v243_v6 = vsel %vm385_vm2, %v213_v59, %v242_v54  ;;  %v214_v7 = vmax.bf16 %v190_v60, %v186_v56  ;;  %v248_v8 = vld [vmem:[%s379_s15 + $0x7] sm:$0x1]  ;;  %v152_v9 = vld [vmem:[%s374_s12 + $0x28] sm:$0x1] }
  0x1e   : > { %v153_v10 = vld [vmem:[%s374_s12 + $0x29] sm:$0x1]  ;;  %v192_v11 = vmax.bf16 %v145_v4, %v144_v3  ;;  %244 = vst [vmem:[%s379_s15 + $0x5] sm:$0x1] %v243_v6  ;;  %v215_v12 = vmax.bf16 %v191_v2, %v187_v1  ;;  %v146_v14 = vld [vmem:[%s374_s12 + $0x22] sm:$0x1] }
  0x1f   : > { %v196_v13 = vmax.bf16 %v153_v10, %v152_v9  ;;  %v147_v15 = vld [vmem:[%s374_s12 + $0x23] sm:$0x1]  ;;  %v154_v16 = vld [vmem:[%s374_s12 + $0x2a] sm:$0x1]  ;;  %v246_v17 = vsel %vm385_vm2, %v214_v7, %v245_v0  ;;  %v251_v18 = vld [vmem:[%s379_s15 + $0x8] sm:$0x1] }
  0x20   : > { %v155_v19 = vld [vmem:[%s374_s12 + $0x2b] sm:$0x1]  ;;  %v193_v20 = vmax.bf16 %v147_v15, %v146_v14  ;;  %v148_v21 = vld [vmem:[%s374_s12 + $0x24] sm:$0x1]  ;;  %247 = vst [vmem:[%s379_s15 + $0x6] sm:$0x1] %v246_v17  ;;  %v249_v22 = vsel %vm385_vm2, %v215_v12, %v248_v8 }
  0x21   : > { %v216_v23 = vmax.bf16 %v196_v13, %v192_v11  ;;  %v197_v24 = vmax.bf16 %v155_v19, %v154_v16  ;;  %v149_v25 = vld [vmem:[%s374_s12 + $0x25] sm:$0x1]  ;;  %v156_v26 = vld [vmem:[%s374_s12 + $0x2c] sm:$0x1]  ;;  %v157_v27 = vld [vmem:[%s374_s12 + $0x2d] sm:$0x1] }
  0x22   : > { %250 = vst [vmem:[%s379_s15 + $0x7] sm:$0x1] %v249_v22  ;;  %v254_v28 = vld [vmem:[%s379_s15 + $0x9] sm:$0x1]  ;;  %v194_v29 = vmax.bf16 %v149_v25, %v148_v21  ;;  %v198_v30 = vmax.bf16 %v157_v27, %v156_v26  ;;  %v150_v31 = vld [vmem:[%s374_s12 + $0x26] sm:$0x1] }
  0x23   : > { %v151_v32 = vld [vmem:[%s374_s12 + $0x27] sm:$0x1]  ;;  %v252_v33 = vsel %vm385_vm2, %v216_v23, %v251_v18  ;;  %v217_v34 = vmax.bf16 %v197_v24, %v193_v20  ;;  %v257_v35 = vld [vmem:[%s379_s15 + $0xa] sm:$0x1]  ;;  %v158_v36 = vld [vmem:[%s374_s12 + $0x2e] sm:$0x1] }
  0x24   : > { %v159_v37 = vld [vmem:[%s374_s12 + $0x2f] sm:$0x1]  ;;  %v195_v38 = vmax.bf16 %v151_v32, %v150_v31  ;;  %253 = vst [vmem:[%s379_s15 + $0x8] sm:$0x1] %v252_v33  ;;  %v218_v39 = vmax.bf16 %v198_v30, %v194_v29  ;;  %v160_v41 = vld [vmem:[%s374_s12 + $0x30] sm:$0x1] }
  0x25   : > { %v199_v40 = vmax.bf16 %v159_v37, %v158_v36  ;;  %v161_v42 = vld [vmem:[%s374_s12 + $0x31] sm:$0x1]  ;;  %v168_v43 = vld [vmem:[%s374_s12 + $0x38] sm:$0x1]  ;;  %v255_v44 = vsel %vm385_vm2, %v217_v34, %v254_v28  ;;  %v260_v45 = vld [vmem:[%s379_s15 + $0xb] sm:$0x1] }
  0x26   : > { %v169_v46 = vld [vmem:[%s374_s12 + $0x39] sm:$0x1]  ;;  %v200_v47 = vmax.bf16 %v161_v42, %v160_v41  ;;  %v162_v48 = vld [vmem:[%s374_s12 + $0x32] sm:$0x1]  ;;  %256 = vst [vmem:[%s379_s15 + $0x9] sm:$0x1] %v255_v44  ;;  %v258_v49 = vsel %vm385_vm2, %v218_v39, %v257_v35 }
  0x27   : > { %v219_v50 = vmax.bf16 %v199_v40, %v195_v38  ;;  %v204_v51 = vmax.bf16 %v169_v46, %v168_v43  ;;  %v163_v52 = vld [vmem:[%s374_s12 + $0x33] sm:$0x1]  ;;  %v170_v53 = vld [vmem:[%s374_s12 + $0x3a] sm:$0x1]  ;;  %v171_v54 = vld [vmem:[%s374_s12 + $0x3b] sm:$0x1] }
  0x28   : > { %259 = vst [vmem:[%s379_s15 + $0xa] sm:$0x1] %v258_v49  ;;  %v263_v55 = vld [vmem:[%s379_s15 + $0xc] sm:$0x1]  ;;  %v201_v56 = vmax.bf16 %v163_v52, %v162_v48  ;;  %v205_v57 = vmax.bf16 %v171_v54, %v170_v53  ;;  %v164_v58 = vld [vmem:[%s374_s12 + $0x34] sm:$0x1] }
  0x29   : > { %v165_v59 = vld [vmem:[%s374_s12 + $0x35] sm:$0x1]  ;;  %v261_v60 = vsel %vm385_vm2, %v219_v50, %v260_v45  ;;  %v220_v61 = vmax.bf16 %v204_v51, %v200_v47  ;;  %v266_v62 = vld [vmem:[%s379_s15 + $0xd] sm:$0x1]  ;;  %v172_v63 = vld [vmem:[%s374_s12 + $0x3c] sm:$0x1] }
  0x2a   : > { %v173_v0 = vld [vmem:[%s374_s12 + $0x3d] sm:$0x1]  ;;  %v202_v1 = vmax.bf16 %v165_v59, %v164_v58  ;;  %262 = vst [vmem:[%s379_s15 + $0xb] sm:$0x1] %v261_v60  ;;  %v221_v2 = vmax.bf16 %v205_v57, %v201_v56  ;;  %v166_v4 = vld [vmem:[%s374_s12 + $0x36] sm:$0x1] }
  0x2b   : > { %v206_v3 = vmax.bf16 %v173_v0, %v172_v63  ;;  %v167_v6 = vld [vmem:[%s374_s12 + $0x37] sm:$0x1]  ;;  %v174_v7 = vld [vmem:[%s374_s12 + $0x3e] sm:$0x1]  ;;  %v264_v8 = vsel %vm385_vm2, %v220_v61, %v263_v55  ;;  %v269_v9 = vld [vmem:[%s379_s15 + $0xe] sm:$0x1] }
  0x2c   : > { %v175_v10 = vld [vmem:[%s374_s12 + $0x3f] sm:$0x1]  ;;  %v203_v11 = vmax.bf16 %v167_v6, %v166_v4  ;;  %265 = vst [vmem:[%s379_s15 + $0xc] sm:$0x1] %v264_v8  ;;  %v267_v12 = vsel %vm385_vm2, %v221_v2, %v266_v62  ;;  %v272_v15 = vld [vmem:[%s379_s15 + $0xf] sm:$0x1] }
  0x2d   : > { %v222_v13 = vmax.bf16 %v206_v3, %v202_v1  ;;  %v207_v14 = vmax.bf16 %v175_v10, %v174_v7  ;;  %268 = vst [vmem:[%s379_s15 + $0xd] sm:$0x1] %v267_v12 }
  0x2f   : > { %v270_v16 = vsel %vm385_vm2, %v222_v13, %v269_v9  ;;  %v223_v17 = vmax.bf16 %v207_v14, %v203_v11 }
  0x30   : > { %271 = vst [vmem:[%s379_s15 + $0xe] sm:$0x1] %v270_v16 }
  0x31   : > { %v273_v18 = vsel %vm385_vm2, %v223_v17, %v272_v15 }
  0x32   : > { %274 = vst [vmem:[%s379_s15 + $0xf] sm:$0x1] %v273_v18 }
  0x33 PF: > { %s11_s6 = sadd.s32 1, %s351_s6  }
  0x34   : > { %p8_p4 = scmp.ge.s32.totalorder %s11_s6, 4  }
  0x36   :  { %10 = sbr.rel (!%p8_p4) target bundleno = 1 (0x1), region = 54 }

// kernel: _lambda_.9
= control target key start
LH: loop header
LB: loop body
LE: loop exit
PB: predicated region body
PF: predicated region fallthrough
CT: control target
= control target key end

     0   :  { %s3275_s15 = smov 0   ;;  %s3906_s0 = inlined_call_operand.vmem [shape: bf16[2,8,8,128], index: 0, kind: input, shape index: {}]   ;;  %s3907_s1 = inlined_call_operand.vmem [shape: bf16[1152,128], index: 1, kind: input, shape index: {}]   ;;  %s3908_s2 = inlined_call_operand.vmem [shape: f32[1,128], index: 2, kind: input, shape index: {}]   ;;  %s3909_s3 = inlined_call_operand.vmem [shape: f32[1,128], index: 3, kind: input, shape index: {}]   ;;  %s3910_s4 = inlined_call_operand.vmem [shape: bf16[2,8,8,128], index: 4, kind: output, shape index: {}]  }
   0x1 LB: > { %s2580_s16 = sadd.s32 4294967295, %s3247_s15   ;;  %p2584_p0 = scmp.ge.s32.totalorder %s3247_s15, 1  ;;  %s3247_s15 = sphi %s3275_s15, %s14_s15  }
   0x2   : > { %p162_p1 = scmp.lt.s32.totalorder %s3247_s15, 3 }
   0x4   : > { %p163_p2 = pnand %p2584_p0, %p162_p1 }
   0x6   : > { %166 = sbr.rel (%p163_p2) target bundleno = 401 (0x191), region = 36 }
   0xb   : > { %v3123_v0 = vld [vmem:[%s3907_s1 + $0x78] sm:$0xff]   ;;  %v3249_v3 = vmov 0   ;;  %v3127_v5 = vld [vmem:[%s3907_s1 + $0x70] sm:$0xff]   ;;  %v3131_v9 = vld [vmem:[%s3907_s1 + $0x68] sm:$0xff]   ;;  %p188_p3 = scmp.lt.s32.totalorder %s2580_s16, 1  ;;  %vm2642_vm0 = vcmask 1043456 }
   0xc   : > { %v3124_v1 = vld [vmem:[%s3907_s1 + $0xf8] sm:$0xff]   ;;  %2902 = vmatprep.subr.bf16.mxu0 %v3123_v0  ;;  %199 = vst [vmem:[#allocation2] sm:$0xf] %v3249_v3  ;;  %200 = vst [vmem:[#allocation2 + $0x4] sm:$0xf] %v3249_v3  ;;  %v3128_v6 = vld [vmem:[%s3907_s1 + $0xf0] sm:$0xff]  }
   0xd   : > { %v3125_v2 = vld [vmem:[%s3907_s1 + $0x38] sm:$0xff]   ;;  %202 = vst [vmem:[#allocation2 + $0xc] sm:$0xf] %v3249_v3  ;;  %203 = vst [vmem:[#allocation2 + $0x10] sm:$0xf] %v3249_v3  ;;  %2942 = vmatprep.subr.bf16.mxu1 %v3124_v1  ;;  %v3129_v7 = vld [vmem:[%s3907_s1 + $0x30] sm:$0xff]  }
   0xe   : > { %201 = vst [vmem:[#allocation2 + $0x8] sm:$0xf] %v3249_v3  ;;  %204 = vst [vmem:[#allocation2 + $0x14] sm:$0xf] %v3249_v3  ;;  %v3126_v4 = vld [vmem:[%s3907_s1 + $0xb8] sm:$0xff]   ;;  %2903 = vmatpush3.bf16.msra.mxu0 %v3125_v2  ;;  %v3130_v8 = vld [vmem:[%s3907_s1 + $0xb0] sm:$0xff]  }
   0xf   : > { %205 = vst [vmem:[#allocation2 + $0x18] sm:$0xf] %v3249_v3  ;;  %206 = vst [vmem:[#allocation2 + $0x1c] sm:$0xf] %v3249_v3  ;;  %2943 = vmatpush3.bf16.msra.mxu1 %v3126_v4  ;;  %2904 = vmatprep.subr.bf16.mxu0 %v3127_v5  ;;  %v3132_v10 = vld [vmem:[%s3907_s1 + $0xe8] sm:$0xff]   ;;  %v3135_v13 = vld [vmem:[%s3907_s1 + $0x60] sm:$0xff]  }
  0x10   : > { %207 = vst [vmem:[#allocation2 + $0x20] sm:$0xf] %v3249_v3  ;;  %208 = vst [vmem:[#allocation2 + $0x24] sm:$0xf] %v3249_v3  ;;  %2944 = vmatprep.subr.bf16.mxu1 %v3128_v6  ;;  %v3133_v11 = vld [vmem:[%s3907_s1 + $0x28] sm:$0xff]   ;;  %v3136_v14 = vld [vmem:[%s3907_s1 + $0xe0] sm:$0xff]  }
  0x11   : > { %209 = vst [vmem:[#allocation2 + $0x28] sm:$0xf] %v3249_v3  ;;  %210 = vst [vmem:[#allocation2 + $0x2c] sm:$0xf] %v3249_v3  ;;  %v3134_v12 = vld [vmem:[%s3907_s1 + $0xa8] sm:$0xff]   ;;  %v3137_v15 = vld [vmem:[%s3907_s1 + $0x20] sm:$0xff]  }
  0x12   : > { %211 = vst [vmem:[#allocation2 + $0x30] sm:$0xf] %v3249_v3  ;;  %212 = vst [vmem:[#allocation2 + $0x34] sm:$0xf] %v3249_v3  ;;  %2905 = vmatpush3.bf16.msra.mxu0 %v3129_v7  ;;  %v3138_v16 = vld [vmem:[%s3907_s1 + $0xa0] sm:$0xff]   ;;  %v3139_v17 = vld [vmem:[%s3907_s1 + $0x58] sm:$0xff]  }
  0x13   : > { %213 = vst [vmem:[#allocation2 + $0x38] sm:$0xf] %v3249_v3  ;;  %214 = vst [vmem:[#allocation2 + $0x3c] sm:$0xf] %v3249_v3  ;;  %2945 = vmatpush3.bf16.msra.mxu1 %v3130_v8  ;;  %2906 = vmatprep.subr.bf16.mxu0 %v3131_v9  ;;  %v3140_v18 = vld [vmem:[%s3907_s1 + $0xd8] sm:$0xff]   ;;  %v3143_v21 = vld [vmem:[%s3907_s1 + $0x50] sm:$0xff]  }
  0x14   : > { %215 = vst [vmem:[#allocation2 + $0x40] sm:$0xf] %v3249_v3  ;;  %216 = vst [vmem:[#allocation2 + $0x44] sm:$0xf] %v3249_v3  ;;  %2946 = vmatprep.subr.bf16.mxu1 %v3132_v10  ;;  %v3141_v19 = vld [vmem:[%s3907_s1 + $0x18] sm:$0xff]   ;;  %v3144_v22 = vld [vmem:[%s3907_s1 + $0xd0] sm:$0xff]  }
  0x15   : > { %217 = vst [vmem:[#allocation2 + $0x48] sm:$0xf] %v3249_v3  ;;  %218 = vst [vmem:[#allocation2 + $0x4c] sm:$0xf] %v3249_v3  ;;  %v3142_v20 = vld [vmem:[%s3907_s1 + $0x98] sm:$0xff]   ;;  %v3145_v23 = vld [vmem:[%s3907_s1 + $0x10] sm:$0xff]  }
  0x16   : > { %219 = vst [vmem:[#allocation2 + $0x50] sm:$0xf] %v3249_v3  ;;  %220 = vst [vmem:[#allocation2 + $0x54] sm:$0xf] %v3249_v3  ;;  %2907 = vmatpush3.bf16.msra.mxu0 %v3133_v11  ;;  %s3940_s16 = smov (!%p188_p3, %s2580_s16), 1  ;;  %v3146_v24 = vld [vmem:[%s3907_s1 + $0x90] sm:$0xff]  }
  0x17   : > { %221 = vst [vmem:[#allocation2 + $0x58] sm:$0xf] %v3249_v3  ;;  %222 = vst [vmem:[#allocation2 + $0x5c] sm:$0xf] %v3249_v3  ;;  %2947 = vmatpush3.bf16.msra.mxu1 %v3134_v12  ;;  %2908 = vmatprep.subr.bf16.mxu0 %v3135_v13  ;;  %v3147_v25 = vld [vmem:[%s3907_s1 + $0x48] sm:$0xff]   ;;  %s2877_s23 = sshll.u32 %s3940_s16, 5 }
  0x18   : > { %223 = vst [vmem:[#allocation2 + $0x60] sm:$0xf] %v3249_v3  ;;  %224 = vst [vmem:[#allocation2 + $0x64] sm:$0xf] %v3249_v3  ;;  %2948 = vmatprep.subr.bf16.mxu1 %v3136_v14  ;;  %v3148_v26 = vld [vmem:[%s3907_s1 + $0xc8] sm:$0xff]   ;;  %v3151_v29 = vld [vmem:[%s3907_s1 + $0x40] sm:$0xff]   ;;  %s3385_s6 = scalar_lea.vmem %s3906_s0, %s2877_s23  ;;  %s197_s7 = scalar_lea.vmem %s3910_s4, %s2877_s23 }
  0x19   : > { %225 = vst [vmem:[#allocation2 + $0x68] sm:$0xf] %v3249_v3  ;;  %226 = vst [vmem:[#allocation2 + $0x6c] sm:$0xf] %v3249_v3  ;;  %v3149_v27 = vld [vmem:[%s3907_s1 + $0x8] sm:$0xff]   ;;  %v3152_v30 = vld [vmem:[%s3907_s1 + $0xc0] sm:$0xff]  }
  0x1a   : > { %227 = vst [vmem:[#allocation2 + $0x70] sm:$0xf] %v3249_v3  ;;  %228 = vst [vmem:[#allocation2 + $0x74] sm:$0xf] %v3249_v3  ;;  %2909 = vmatpush3.bf16.msra.mxu0 %v3137_v15  ;;  %v3150_v28 = vld [vmem:[%s3907_s1 + $0x88] sm:$0xff]   ;;  %v3153_v31 = vld [vmem:[%s3907_s1] sm:$0xff]  }
  0x1b   : > { %2949 = vmatpush3.bf16.msra.mxu1 %v3138_v16  ;;  %2910 = vmatprep.subr.bf16.mxu0 %v3139_v17  ;;  %v3154_v32 = vld [vmem:[%s3907_s1 + $0x80] sm:$0xff]   ;;  %v262_v37 = vld [vmem:[#allocation2 + $0x8] sm:$0x1]  ;;  %v263_v42 = vld [vmem:[#allocation2 + $0x14] sm:$0x1] }
  0x1c   : > { %2950 = vmatprep.subr.bf16.mxu1 %v3140_v18  ;;  %v229_v33 = vld [vmem:[%s3385_s6] sm:$0xf]  ;;  %v247_v34 = vld [vmem:[#allocation2 + $0x4] sm:$0xf]  ;;  %v3159_v46 = vld [vmem:[%s3907_s1 + $0x178] sm:$0xff]  }
  0x1d   : > { %238 = vst [vmem:[#allocation2 + $0x10] sm:$0xf] %v229_v33  ;;  %v2589_v35 = vcombine.low %v247_v34, %v247_v34  ;;  %v230_v36 = vld [vmem:[%s3385_s6 + $0x4] sm:$0xf]  ;;  %v2597_v40 = vcombine.low %v247_v34, %v262_v37  ;;  %v246_v41 = vld [vmem:[#allocation2] sm:$0x8] }
  0x1e   : > { %2911 = vmatpush3.bf16.msra.mxu0 %v3141_v19  ;;  %239 = vst [vmem:[#allocation2 + $0x1c] sm:$0xf] %v230_v36  ;;  %vm903_vm1 = vsmask.f32 256  ;;  %v3160_v47 = vld [vmem:[%s3907_s1 + $0x1f8] sm:$0xff]  }
  0x1f   : > { %2951 = vmatpush3.bf16.msra.mxu1 %v3142_v20  ;;  %2912 = vmatprep.subr.bf16.mxu0 %v3143_v21  ;;  %v360_v38 = vshrl.u32 %v2589_v35, 16  ;;  %v363_v39 = vshll.u32 %v2589_v35, 16  ;;  %v447_v45 = vrot.slane %v2597_v40, 5  ;;  %v270_v49 = vld [vmem:[#allocation2 + $0xc] sm:$0x8] }
  0x20   : > { %2952 = vmatprep.subr.bf16.mxu1 %v3144_v22  ;;  %v272_v58 = vld [vmem:[#allocation2 + $0x18] sm:$0x8]  ;;  %v248_v2 = vld [vmem:[#allocation2 + $0xc] sm:$0x8]  ;;  %vm904_vm2 = vsmask.f32 4368 }
  0x21   : > { %v362_v43 = vrot.slane %v360_v38, 4  ;;  %v365_v44 = vrot.slane %v363_v39, 5  ;;  %v734_v52 = vunpack.c.h.b16 %v447_v45  ;;  %v2638_v61 = vcombine.low %v447_v45, %v270_v49  ;;  %v231_v17 = vld [vmem:[%s3385_s6 + $0x8] sm:$0xf]  ;;  %vm3412_vm3 = vmor %vm903_vm1, %vm904_vm2  ;;  %v264_v33 = vld [vmem:[#allocation2 + $0x20] sm:$0x1] }
  0x22   : > { %2913 = vmatpush3.bf16.msra.mxu0 %v3145_v23  ;;  %240 = vst [vmem:[#allocation2 + $0x28] sm:$0xf] %v231_v17  ;;  %v265_v40 = vld [vmem:[#allocation2 + $0x2c] sm:$0x1] }
  0x23   : > { %2953 = vmatpush3.bf16.msra.mxu1 %v3146_v24  ;;  %2914 = vmatprep.subr.bf16.mxu0 %v3147_v25  ;;  %v366_v48 = vor.u32 %v365_v44, %v362_v43  ;;  %v920_v11 = vshrl.u32 %v2638_v61, 16 }
  0x24   : > { %2954 = vmatprep.subr.bf16.mxu1 %v3148_v26  ;;  %v249_v50 = vld [vmem:[#allocation2 + $0x10] sm:$0xf] }
  0x25   : > { %v3401_v51 = vld [vmem:[#allocation2 + $0x10] sm:$0xf]  ;;  %v2590_v53 = vcombine.low %v249_v50, %v249_v50  ;;  %v2637_v54 = vcombine.low %v246_v41, %v366_v48  ;;  %v2643_v55 = vsel %vm2642_vm0, %v247_v34, %v366_v48  ;;  %v2598_v56 = vcombine.low %v249_v50, %v263_v42  ;;  %v3404_v59 = vld [vmem:[#allocation2 + $0x1c] sm:$0xf]  ;;  %v250_v48 = vld [vmem:[#allocation2 + $0x18] sm:$0x8] }
  0x26   : > { %2915 = vmatpush3.bf16.msra.mxu0 %v3149_v27  ;;  %v912_v57 = vshrl.u32 %v2643_v55, 16  ;;  %v472_v60 = vunpack.c.l.b16 %v3401_v51  ;;  %v915_v4 = vshll.u32 %v2643_v55, 16  ;;  %v474_v5 = vunpack.c.l.b16 %v3404_v59  ;;  %v251_v22 = vld [vmem:[#allocation2 + $0x1c] sm:$0xf] }
  0x27   : > { %2955 = vmatpush3.bf16.msra.mxu1 %v3150_v28  ;;  %2916 = vmatprep.subr.bf16.mxu0 %v3151_v29  ;;  %v368_v62 = vshrl.u32 %v2590_v53, 16  ;;  %v371_v63 = vshll.u32 %v2590_v53, 16  ;;  %v907_v0 = vshrl.u32 %v2637_v54, 16  ;;  %v448_v1 = vrot.slane %v2598_v56, 5  ;;  %v232_v28 = vld [vmem:[%s3385_s6 + $0xc] sm:$0xf] }
  0x28   : > { %2956 = vmatprep.subr.bf16.mxu1 %v3152_v30  ;;  %v914_v3 = vrot.slane %v912_v57, 7  ;;  %v829_v6 = vpack.c.b16 %v472_v60, %v734_v52  ;;  %v2726_v19 = vrot.slane %v920_v11, 11  ;;  %241 = vst [vmem:[#allocation2 + $0x34] sm:$0xf] %v232_v28  ;;  %v2591_v36 = vcombine.low %v251_v22, %v251_v22  ;;  %v3161_v52 = vld [vmem:[%s3907_s1 + $0x138] sm:$0xff]   ;;  %v3164_v53 = vld [vmem:[%s3907_s1 + $0x1f0] sm:$0xff]  }
  0x29   : > { %v370_v7 = vrot.slane %v368_v62, 4  ;;  %v373_v8 = vrot.slane %v371_v63, 5  ;;  %v746_v9 = vunpack.c.h.b16 %v448_v1  ;;  %v2649_v10 = vcombine.low %v448_v1, %v272_v58  ;;  %v253_v54 = vld [vmem:[#allocation2 + $0x28] sm:$0xf]  ;;  %v3163_v62 = vld [vmem:[%s3907_s1 + $0x170] sm:$0xff]  }
  0x2a   : > { %2917 = vmatpush3.bf16.msra.mxu0 %v3153_v31  ;;  %v925_v12 = vshrl.u32 %v829_v6, 16  ;;  %v2725_v14 = vrot.slane %v907_v0, 11  ;;  %v928_v16 = vshll.u32 %v829_v6, 16  ;;  %v917_v18 = vor.u32 %v915_v4, %v914_v3  ;;  %v3432_v57 = vld [vmem:[#allocation2 + $0x28] sm:$0xf]  ;;  %v3165_v11 = vld [vmem:[%s3907_s1 + $0x130] sm:$0xff]  }
  0x2b   : > { %2957 = vmatpush3.bf16.msra.mxu1 %v3154_v32  ;;  %2982 = vmatprep.subr.bf16.mxu0 %v3159_v46  ;;  %v374_v13 = vor.u32 %v373_v8, %v370_v7  ;;  %v839_v15 = vpack.c.b16 %v474_v5, %v746_v9  ;;  %v985_v21 = vshrl.u32 %v2649_v10, 16  ;;  %v2599_v37 = vcombine.low %v251_v22, %v264_v33  ;;  %v274_v0 = vld [vmem:[#allocation2 + $0x24] sm:$0x8]  ;;  %v276_v4 = vld [vmem:[#allocation2 + $0x30] sm:$0x8]  ;;  %v3172_v28 = vld [vmem:[%s3907_s1 + $0x1e8] sm:$0xff]  }
  0x2c   : > { %3022 = vmatprep.subr.bf16.mxu1 %v3160_v47  ;;  %v927_v20 = vrot.slane %v925_v12, 7  ;;  %v376_v43 = vshrl.u32 %v2591_v36, 16  ;;  %v379_v44 = vshll.u32 %v2591_v36, 16  ;;  %v918_v45 = vsel %vm3412_vm3, %v2725_v14, %v917_v18  ;;  %v3162_v47 = vld [vmem:[%s3907_s1 + $0x1b8] sm:$0xff]   ;;  %v3166_v12 = vld [vmem:[%s3907_s1 + $0x1b0] sm:$0xff]  }
  0x2d   : > { %v2648_v23 = vcombine.low %v248_v2, %v374_v13  ;;  %v2654_v24 = vsel %vm2642_vm0, %v249_v50, %v374_v13  ;;  %v990_v26 = vshrl.u32 %v839_v15, 16  ;;  %v993_v27 = vshll.u32 %v839_v15, 16  ;;  %v252_v13 = vld [vmem:[#allocation2 + $0x24] sm:$0x8] }
  0x2e   : > { %v977_v29 = vshrl.u32 %v2654_v24, 16  ;;  %v980_v30 = vshll.u32 %v2654_v24, 16  ;;  %v930_v31 = vor.u32 %v928_v16, %v927_v20  ;;  %v2731_v32 = vrot.slane %v985_v21, 11 }
  0x2f   : > { %v972_v34 = vshrl.u32 %v2648_v23, 16  ;;  %v992_v35 = vrot.slane %v990_v26, 7  ;;  %v449_v49 = vrot.slane %v2599_v37, 5  ;;  %v378_v55 = vrot.slane %v376_v43, 4  ;;  %v3439_v5 = vld [vmem:[#allocation2 + $0x34] sm:$0xf] }
  0x30   : > { %v979_v38 = vrot.slane %v977_v29, 7  ;;  %v931_v39 = vsel %vm3412_vm3, %v2726_v19, %v930_v31  ;;  %v381_v56 = vrot.slane %v379_v44, 5  ;;  %v2592_v63 = vcombine.low %v253_v54, %v253_v54  ;;  %v3171_v31 = vld [vmem:[%s3907_s1 + $0x168] sm:$0xff]   ;;  %v3468_v43 = vld [vmem:[#allocation2 + $0x34] sm:$0xf] }
  0x31   : > { %v2730_v41 = vrot.slane %v972_v34, 11  ;;  %v995_v42 = vor.u32 %v993_v27, %v992_v35  ;;  %v2600_v6 = vcombine.low %v253_v54, %v265_v40  ;;  %v476_v9 = vunpack.c.l.b16 %v3432_v57  ;;  %v3173_v37 = vld [vmem:[%s3907_s1 + $0x128] sm:$0xff]   ;;  %v234_v44 = vld [vmem:[%s3385_s6 + $0x14] sm:$0xf] }
  0x32   : > { %v982_v46 = vor.u32 %v980_v30, %v979_v38  ;;  %v382_v3 = vor.u32 %v381_v56, %v378_v55  ;;  %v384_v7 = vshrl.u32 %v2592_v63, 16  ;;  %v387_v8 = vshll.u32 %v2592_v63, 16  ;;  %v3174_v38 = vld [vmem:[%s3907_s1 + $0x1a8] sm:$0xff]   ;;  %243 = vst [vmem:[#allocation2 + $0x4c] sm:$0xf] %v234_v44  ;;  %v3175_v56 = vld [vmem:[%s3907_s1 + $0x160] sm:$0xff]  }
  0x33   : > { %v996_v50 = vsel %vm3412_vm3, %v2731_v32, %v995_v42  ;;  %v478_v10 = vunpack.c.l.b16 %v3439_v5  ;;  %v450_v16 = vrot.slane %v2600_v6, 5  ;;  %v758_v17 = vunpack.c.h.b16 %v449_v49  ;;  %v233_v32 = vld [vmem:[%s3385_s6 + $0x10] sm:$0xf]  ;;  %v3178_v63 = vld [vmem:[%s3907_s1 + $0x1a0] sm:$0xff]  }
  0x34   : > { %v983_v58 = vsel %vm3412_vm3, %v2730_v41, %v982_v46  ;;  %v2767_v60 = vcombine.low %v931_v39, %v996_v50  ;;  %v2768_v61 = vcombine.high %v931_v39, %v996_v50  ;;  %v2659_v14 = vcombine.low %v250_v48, %v382_v3  ;;  %242 = vst [vmem:[#allocation2 + $0x40] sm:$0xf] %v233_v32  ;;  %v266_v50 = vld [vmem:[#allocation2 + $0x38] sm:$0x1] }
  0x35   : > { %v2765_v1 = vcombine.low %v918_v45, %v983_v58  ;;  %v2766_v2 = vcombine.high %v918_v45, %v983_v58  ;;  %v2665_v15 = vsel %vm2642_vm0, %v251_v22, %v382_v3  ;;  %v386_v18 = vrot.slane %v384_v7, 4  ;;  %v3184_v7 = vld [vmem:[%s3907_s1 + $0x1d8] sm:$0xff]  }
  0x36   : > { %2243 = vmatprep.mubr.bf16.mxu1 %v2768_v61  ;;  %v389_v19 = vrot.slane %v387_v8, 5  ;;  %v1042_v20 = vshrl.u32 %v2665_v15, 16  ;;  %v1045_v21 = vshll.u32 %v2665_v15, 16  ;;  %v1037_v23 = vshrl.u32 %v2659_v14, 16  ;;  %v254_v15 = vld [vmem:[#allocation2 + $0x30] sm:$0x8] }
  0x37   : > { %2178 = vmatprep.mubr.bf16.mxu0 %v2766_v2  ;;  %2244 = vmatmul.mubr.bf16.vlgmr.msra.gmra.mxu1 %v2767_v60  ;;  %v770_v24 = vunpack.c.h.b16 %v450_v16  ;;  %v2660_v26 = vcombine.low %v449_v49, %v274_v0  ;;  %v849_v27 = vpack.c.b16 %v476_v9, %v758_v17  ;;  %v2671_v30 = vcombine.low %v450_v16, %v276_v4  ;;  %v3176_v49 = vld [vmem:[%s3907_s1 + $0x1e0] sm:$0xff]  }
  0x38   : > { %2179 = vmatmul.mubr.bf16.vlgmr.msra.gmra.mxu0 %v2765_v1  ;;  %3023 = vmatpush3.bf16.msra.mxu1 %v3162_v47  ;;  %v390_v22 = vor.u32 %v389_v19, %v386_v18  ;;  %v1044_v29 = vrot.slane %v1042_v20, 7  ;;  %v3459_v33 = vcombine.low %v3401_v51, %v3401_v51  ;;  %v2735_v41 = vrot.slane %v1037_v23, 11  ;;  %v267_v1 = vld [vmem:[#allocation2 + $0x44] sm:$0x1]  ;;  %v3183_v19 = vld [vmem:[%s3907_s1 + $0x158] sm:$0xff]  }
  0x39   : > { %2983 = vmatpush3.bf16.msra.mxu0 %v3161_v52  ;;  %3024 = vmatprep.subr.bf16.mxu1 %v3164_v53  ;;  %v859_v34 = vpack.c.b16 %v478_v10, %v770_v24  ;;  %v1050_v35 = vshrl.u32 %v2660_v26, 16  ;;  %v1055_v36 = vshrl.u32 %v849_v27, 16  ;;  %v1058_v42 = vshll.u32 %v849_v27, 16  ;;  %v3185_v26 = vld [vmem:[%s3907_s1 + $0x118] sm:$0xff]   ;;  %v3516_v32 = vld [vmem:[#allocation2 + $0x4c] sm:$0xf] }
  0x3a   : > { %2984 = vmatprep.subr.bf16.mxu0 %v3163_v62  ;;  %v2670_v39 = vcombine.low %v252_v13, %v390_v22  ;;  %v2676_v40 = vsel %vm2642_vm0, %v253_v54, %v390_v22  ;;  %v1047_v45 = vor.u32 %v1045_v21, %v1044_v29  ;;  %v1115_v54 = vshrl.u32 %v2671_v30, 16  ;;  %v3177_v62 = vld [vmem:[%s3907_s1 + $0x120] sm:$0xff]   ;;  %v3186_v27 = vld [vmem:[%s3907_s1 + $0x198] sm:$0xff]  }
  0x3b   : > { %v1107_v46 = vshrl.u32 %v2676_v40, 16  ;;  %v1110_v47 = vshll.u32 %v2676_v40, 16  ;;  %v1057_v48 = vrot.slane %v1055_v36, 7  ;;  %v2736_v53 = vrot.slane %v1050_v35, 11  ;;  %v3497_v16 = vld [vmem:[#allocation2 + $0x40] sm:$0xf] }
  0x3c   : > { %3025 = vmatpush3.bf16.msra.mxu1 %v3166_v12  ;;  %v1102_v52 = vshrl.u32 %v2670_v39, 16  ;;  %v1120_v55 = vshrl.u32 %v859_v34, 16  ;;  %v1123_v61 = vshll.u32 %v859_v34, 16  ;;  %v2593_v0 = vcombine.low %v3468_v43, %v3468_v43  ;;  %v3499_v17 = vld [vmem:[#allocation2 + $0x40] sm:$0xf]  ;;  %v3187_v35 = vld [vmem:[%s3907_s1 + $0x150] sm:$0xff]  }
  0x3d   : > { %2985 = vmatpush3.bf16.msra.mxu0 %v3165_v11  ;;  %3026 = vmatprep.subr.bf16.mxu1 %v3172_v28  ;;  %v1109_v58 = vrot.slane %v1107_v46, 7  ;;  %v1060_v60 = vor.u32 %v1058_v42, %v1057_v48  ;;  %v2741_v3 = vrot.slane %v1115_v54, 11  ;;  %v2601_v6 = vcombine.low %v3468_v43, %v266_v50  ;;  %v278_v30 = vld [vmem:[#allocation2 + $0x3c] sm:$0x8]  ;;  %v3188_v40 = vld [vmem:[%s3907_s1 + $0x1d0] sm:$0xff]  }
  0x3e   : > { %2986 = vmatprep.subr.bf16.mxu0 %v3171_v31  ;;  %v2740_v2 = vrot.slane %v1102_v52, 11  ;;  %v1122_v4 = vrot.slane %v1120_v55, 7  ;;  %v1048_v8 = vsel %vm3412_vm3, %v2735_v41, %v1047_v45  ;;  %v392_v10 = vshrl.u32 %v2593_v0, 16  ;;  %v280_v31 = vld [vmem:[#allocation2 + $0x48] sm:$0x8] }
  0x3f   : > { %v1112_v9 = vor.u32 %v1110_v47, %v1109_v58  ;;  %v395_v11 = vshll.u32 %v2593_v0, 16  ;;  %v3493_v12 = vcombine.low %v3404_v59, %v3404_v59  ;;  %v1061_v13 = vsel %vm3412_vm3, %v2736_v53, %v1060_v60  ;;  %v256_v46 = vld [vmem:[#allocation2 + $0x3c] sm:$0x8] }
  0x40   : > { %3027 = vmatpush3.bf16.msra.mxu1 %v3174_v38  ;;  %v1125_v14 = vor.u32 %v1123_v61, %v1122_v4  ;;  %v451_v18 = vrot.slane %v2601_v6, 5  ;;  %v2594_v21 = vcombine.low %v3497_v16, %v3497_v16  ;;  %v394_v23 = vrot.slane %v392_v10, 4  ;;  %v3196_v4 = vld [vmem:[%s3907_s1 + $0x1c8] sm:$0xff]  }
  0x41   : > { %2987 = vmatpush3.bf16.msra.mxu0 %v3173_v37  ;;  %3028 = vmatprep.subr.bf16.mxu1 %v3176_v49  ;;  %v1113_v20 = vsel %vm3412_vm3, %v2740_v2, %v1112_v9  ;;  %v397_v24 = vrot.slane %v395_v11, 5  ;;  %v2602_v34 = vcombine.low %v3497_v16, %v267_v1  ;;  %v480_v44 = vunpack.c.l.b16 %v3499_v17  ;;  %v235_v2 = vld [vmem:[%s3385_s6 + $0x18] sm:$0xf]  ;;  %v3197_v10 = vld [vmem:[%s3907_s1 + $0x108] sm:$0xff]  }
  0x42   : > { %2988 = vmatprep.subr.bf16.mxu0 %v3175_v56  ;;  %v2775_v28 = vcombine.high %v1048_v8, %v1113_v20  ;;  %v1126_v22 = vsel %vm3412_vm3, %v2741_v3, %v1125_v14  ;;  %v2774_v29 = vcombine.low %v1048_v8, %v1113_v20  ;;  %v400_v39 = vshrl.u32 %v2594_v21, 16  ;;  %v3189_v56 = vld [vmem:[%s3907_s1 + $0x110] sm:$0xff]   ;;  %v3195_v3 = vld [vmem:[%s3907_s1 + $0x148] sm:$0xff]   ;;  %244 = vst [vmem:[#allocation2 + $0x58] sm:$0xf] %v235_v2 }
  0x43   : > { %v2777_v36 = vcombine.high %v1061_v13, %v1126_v22  ;;  %v2776_v37 = vcombine.low %v1061_v13, %v1126_v22  ;;  %v398_v38 = vor.u32 %v397_v24, %v394_v23  ;;  %v403_v41 = vshll.u32 %v2594_v21, 16  ;;  %v236_v20 = vld [vmem:[%s3385_s6 + $0x1c] sm:$0xf]  ;;  %v284_v2 = vld [vmem:[#allocation2 + $0x60] sm:$0x8] }
  0x44   : > { %3029 = vmatpush3.bf16.msra.mxu1 %v3178_v63  ;;  %2186 = vmatprep.mubr.bf16.mxu0 %v2775_v28  ;;  %v452_v42 = vrot.slane %v2602_v34, 5  ;;  %v482_v45 = vunpack.c.l.b16 %v3516_v32  ;;  %v402_v47 = vrot.slane %v400_v39, 4  ;;  %v782_v50 = vunpack.c.h.b16 %v451_v18  ;;  %245 = vst [vmem:[#allocation2 + $0x64] sm:$0xf] %v236_v20  ;;  %v3198_v28 = vld [vmem:[%s3907_s1 + $0x188] sm:$0xff]  }
  0x45   : > { %2989 = vmatpush3.bf16.msra.mxu0 %v3177_v62  ;;  %3030 = vmatprep.subr.bf16.mxu1 %v3184_v7  ;;  %v2681_v48 = vcombine.low %v254_v15, %v398_v38  ;;  %v2687_v49 = vsel %vm2642_vm0, %v3468_v43, %v398_v38  ;;  %v405_v52 = vrot.slane %v403_v41, 5  ;;  %v2682_v60 = vcombine.low %v451_v18, %v278_v30  ;;  %v3190_v43 = vld [vmem:[%s3907_s1 + $0x190] sm:$0xff]   ;;  %v269_v38 = vld [vmem:[#allocation2 + $0x5c] sm:$0x1] }
  0x46   : > { %2990 = vmatprep.subr.bf16.mxu0 %v3183_v19  ;;  %2251 = vmatprep.mubr.bf16.mxu1 %v2777_v36  ;;  %v1172_v53 = vshrl.u32 %v2687_v49, 16  ;;  %v1175_v54 = vshll.u32 %v2687_v49, 16  ;;  %v794_v55 = vunpack.c.h.b16 %v452_v42  ;;  %v869_v61 = vpack.c.b16 %v480_v44, %v782_v50  ;;  %v3555_v19 = vld [vmem:[#allocation2 + $0x4c] sm:$0xf]  ;;  %v258_v50 = vld [vmem:[#allocation2 + $0x48] sm:$0x8] }
  0x47   : > { %2187 = vmatmul.mubr.bf16.gmra.mxu0 %v2774_v29  ;;  %2252 = vmatmul.mubr.bf16.gmra.mxu1 %v2776_v37  ;;  %v1167_v58 = vshrl.u32 %v2681_v48, 16  ;;  %v2693_v62 = vcombine.low %v452_v42, %v280_v31  ;;  %v406_v63 = vor.u32 %v405_v52, %v402_v47  ;;  %v3544_v6 = vcombine.low %v3432_v57, %v3432_v57  ;;  %v3199_v31 = vld [vmem:[%s3907_s1 + $0x140] sm:$0xff]  }
  0x48   : > { %3031 = vmatpush3.bf16.msra.mxu1 %v3186_v27  ;;  %v1174_v0 = vrot.slane %v1172_v53, 7  ;;  %v879_v1 = vpack.c.b16 %v482_v45, %v794_v55  ;;  %v1180_v7 = vshrl.u32 %v2682_v60, 16  ;;  %v1185_v8 = vshrl.u32 %v869_v61, 16  ;;  %v268_v27 = vld [vmem:[#allocation2 + $0x50] sm:$0x1]  ;;  %v3200_v55 = vld [vmem:[%s3907_s1 + $0x1c0] sm:$0xff]  }
  0x49   : > { %2991 = vmatpush3.bf16.msra.mxu0 %v3185_v26  ;;  %3032 = vmatprep.subr.bf16.mxu1 %v3188_v40  ;;  %v1188_v9 = vshll.u32 %v869_v61, 16  ;;  %v3551_v11 = vcombine.low %v3439_v5, %v3439_v5  ;;  %v2692_v13 = vcombine.low %v256_v46, %v406_v63  ;;  %v2698_v14 = vsel %vm2642_vm0, %v3497_v16, %v406_v63  ;;  %v261_v52 = vld [vmem:[#allocation2 + $0x58] sm:$0xf] }
  0x4a   : > { %2992 = vmatprep.subr.bf16.mxu0 %v3187_v35  ;;  %v2745_v15 = vrot.slane %v1167_v58, 11  ;;  %v1245_v18 = vshrl.u32 %v2693_v62, 16  ;;  %v1177_v21 = vor.u32 %v1175_v54, %v1174_v0  ;;  %v1237_v23 = vshrl.u32 %v2698_v14, 16  ;;  %v3575_v53 = vld [vmem:[#allocation2 + $0x58] sm:$0xf] }
  0x4b   : > { %v1240_v24 = vshll.u32 %v2698_v14, 16  ;;  %v1187_v26 = vrot.slane %v1185_v8, 7  ;;  %v1232_v22 = vshrl.u32 %v2692_v13, 16  ;;  %v2746_v29 = vrot.slane %v1180_v7, 11  ;;  %v3201_v13 = vld [vmem:[%s3907_s1 + $0x100] sm:$0xff]  }
  0x4c   : > { %3033 = vmatpush3.bf16.msra.mxu1 %v3190_v43  ;;  %v2751_v16 = vrot.slane %v1245_v18, 11  ;;  %v1250_v30 = vshrl.u32 %v879_v1, 16  ;;  %v1239_v34 = vrot.slane %v1237_v23, 7  ;;  %v1253_v36 = vshll.u32 %v879_v1, 16  ;;  %v282_v1 = vld [vmem:[#allocation2 + $0x54] sm:$0x8] }
  0x4d   : > { %2993 = vmatpush3.bf16.msra.mxu0 %v3189_v56  ;;  %3034 = vmatprep.subr.bf16.mxu1 %v3196_v4  ;;  %v1190_v35 = vor.u32 %v1188_v9, %v1187_v26  ;;  %v2595_v37 = vcombine.low %v3555_v19, %v3555_v19  ;;  %v2750_v39 = vrot.slane %v1232_v22, 11  ;;  %v2603_v41 = vcombine.low %v3555_v19, %v268_v27  ;;  %v3202_v27 = vld [vmem:[%s3907_s1 + $0x180] sm:$0xff]  }
  0x4e   : > { %2994 = vmatprep.subr.bf16.mxu0 %v3195_v3  ;;  %v1252_v40 = vrot.slane %v1250_v30, 7  ;;  %v3569_v42 = vcombine.low %v3499_v17, %v3499_v17  ;;  %v1178_v44 = vsel %vm3412_vm3, %v2745_v15, %v1177_v21  ;;  %v1242_v45 = vor.u32 %v1240_v24, %v1239_v34  ;;  %v3588_v3 = vld [vmem:[#allocation2 + $0x64] sm:$0xf]  ;;  %v3603_v30 = vld [vmem:[%s3907_s1 + $0x238] sm:$0xff]  }
  0x4f   : > { %v408_v46 = vshrl.u32 %v2595_v37, 16  ;;  %v411_v47 = vshll.u32 %v2595_v37, 16  ;;  %v1191_v48 = vsel %vm3412_vm3, %v2746_v29, %v1190_v35  ;;  %v453_v54 = vrot.slane %v2603_v41, 5 }
  0x50   : > { %3035 = vmatpush3.bf16.msra.mxu1 %v3198_v28  ;;  %v1255_v49 = vor.u32 %v1253_v36, %v1252_v40  ;;  %v3582_v56 = vcombine.low %v3516_v32, %v3516_v32  ;;  %v1243_v58 = vsel %vm3412_vm3, %v2750_v39, %v1242_v45  ;;  %v2596_v60 = vcombine.low %v261_v52, %v261_v52 }
  0x51   : > { %2995 = vmatpush3.bf16.msra.mxu0 %v3197_v10  ;;  %v410_v61 = vrot.slane %v408_v46, 4  ;;  %v413_v62 = vrot.slane %v411_v47, 5  ;;  %v2784_v43 = vcombine.high %v1178_v44, %v1243_v58  ;;  %v2783_v0 = vcombine.low %v1178_v44, %v1243_v58  ;;  %3036 = vmatprep.subr.bf16.mxu1 %v3200_v55 }
  0x52   : > { %2996 = vmatprep.subr.bf16.mxu0 %v3199_v31  ;;  %v1256_v63 = vsel %vm3412_vm3, %v2751_v16, %v1255_v49  ;;  %v2604_v4 = vcombine.low %v261_v52, %v269_v38  ;;  %v416_v10 = vshrl.u32 %v2596_v60, 16  ;;  %v419_v14 = vshll.u32 %v2596_v60, 16  ;;  %v260_v31 = vld [vmem:[#allocation2 + $0x54] sm:$0x8] }
  0x53   : > { %v2786_v7 = vcombine.high %v1191_v48, %v1256_v63  ;;  %v2785_v8 = vcombine.low %v1191_v48, %v1256_v63  ;;  %v414_v9 = vor.u32 %v413_v62, %v410_v61  ;;  %2194 = vmatprep.mubr.bf16.mxu0 %v2784_v43  ;;  %v484_v18 = vunpack.c.l.b16 %v3575_v53  ;;  %v287_v62 = vld [vmem:[#allocation2 + $0x20] sm:$0x1] }
  0x54   : > { %v454_v15 = vrot.slane %v2604_v4, 5  ;;  %v486_v20 = vunpack.c.l.b16 %v3588_v3  ;;  %2195 = vmatmul.mubr.bf16.gmra.mxu0 %v2783_v0  ;;  %v418_v21 = vrot.slane %v416_v10, 4  ;;  %v806_v26 = vunpack.c.h.b16 %v453_v54  ;;  %3037 = vmatpush3.bf16.msra.mxu1 %v3202_v27 }
  0x55   : > { %2259 = vmatprep.mubr.bf16.mxu1 %v2786_v7  ;;  %v2703_v23 = vcombine.low %v258_v50, %v414_v9  ;;  %v2709_v24 = vsel %vm2642_vm0, %v3555_v19, %v414_v9  ;;  %v421_v28 = vrot.slane %v419_v14, 5  ;;  %2997 = vmatpush3.bf16.msra.mxu0 %v3201_v13  ;;  %v2704_v35 = vcombine.low %v453_v54, %v282_v1  ;;  %v286_v54 = vld [vmem:[#allocation2 + $0x14] sm:$0x1] }
  0x56   : > { %2260 = vmatmul.mubr.bf16.gmra.mxu1 %v2785_v8  ;;  %v1302_v22 = vshrl.u32 %v2709_v24, 16  ;;  %v1305_v29 = vshll.u32 %v2709_v24, 16  ;;  %v818_v16 = vunpack.c.h.b16 %v454_v15  ;;  %v889_v19 = vpack.c.b16 %v484_v18, %v806_v26  ;;  %3074 = vmatprep.subr.bf16.mxu0 %v3603_v30 }
  0x57   : > { %v1297_v34 = vshrl.u32 %v2703_v23, 16  ;;  %v2715_v36 = vcombine.low %v454_v15, %v284_v2  ;;  %v422_v37 = vor.u32 %v421_v28, %v418_v21  ;;  %v496_v40 = vshrl.u32 %v3459_v33, 16  ;;  %3098 = vmatprep.subr.bf16.mxu1 %v3603_v30  ;;  %v3611_v2 = vld [vmem:[#allocation2 + $0x1c] sm:$0xf] }
  0x58   : > { %v1304_v38 = vrot.slane %v1302_v22, 7  ;;  %v899_v39 = vpack.c.b16 %v486_v20, %v818_v16  ;;  %v1310_v44 = vshrl.u32 %v2704_v35, 16  ;;  %v1315_v45 = vshrl.u32 %v889_v19, 16 }
  0x59   : > { %v2755_v41 = vrot.slane %v1297_v34, 11  ;;  %v1318_v46 = vshll.u32 %v889_v19, 16  ;;  %v2714_v47 = vcombine.low %v260_v31, %v422_v37  ;;  %v2720_v48 = vsel %vm2642_vm0, %v261_v52, %v422_v37 }
  0x5a   : > { %v1307_v49 = vor.u32 %v1305_v29, %v1304_v38  ;;  %v1375_v50 = vshrl.u32 %v2715_v36, 16  ;;  %v1367_v55 = vshrl.u32 %v2720_v48, 16  ;;  %v1370_v58 = vshll.u32 %v2720_v48, 16  ;;  %v3622_v29 = vld [vmem:[#allocation2 + $0x28] sm:$0xf] }
  0x5b   : > { %v2756_v60 = vrot.slane %v1310_v44, 11  ;;  %v1317_v61 = vrot.slane %v1315_v45, 7  ;;  %v1362_v63 = vshrl.u32 %v2714_v47, 16  ;;  %v1380_v1 = vshrl.u32 %v899_v39, 16 }
  0x5c   : > { %v1308_v43 = vsel %vm3412_vm3, %v2755_v41, %v1307_v49  ;;  %v2761_v0 = vrot.slane %v1375_v50, 11  ;;  %v1369_v4 = vrot.slane %v1367_v55, 7  ;;  %v1383_v8 = vshll.u32 %v899_v39, 16 }
  0x5d   : > { %v1320_v7 = vor.u32 %v1318_v46, %v1317_v61  ;;  %v498_v52 = vrot.slane %v496_v40, 4  ;;  %v2760_v9 = vrot.slane %v1362_v63, 11  ;;  %v1382_v10 = vrot.slane %v1380_v1, 7 }
  0x5e   : > { %v499_v13 = vshll.u32 %v3459_v33, 16  ;;  %v504_v14 = vshrl.u32 %v3493_v12, 16  ;;  %v1372_v15 = vor.u32 %v1370_v58, %v1369_v4  ;;  %v507_v20 = vshll.u32 %v3493_v12, 16 }
  0x5f   : > { %v1321_v18 = vsel %vm3412_vm3, %v2756_v60, %v1320_v7  ;;  %v2613_v21 = vcombine.low %v3401_v51, %v286_v54  ;;  %v1385_v23 = vor.u32 %v1383_v8, %v1382_v10  ;;  %v2614_v27 = vcombine.low %v3404_v59, %v287_v62  ;;  %v297_v7 = vld [vmem:[#allocation2 + $0x24] sm:$0x8] }
  0x60   : > { %v501_v24 = vrot.slane %v499_v13, 5  ;;  %v506_v26 = vrot.slane %v504_v14, 4  ;;  %v1373_v28 = vsel %vm3412_vm3, %v2760_v9, %v1372_v15  ;;  %v509_v22 = vrot.slane %v507_v20, 5 }
  0x61   : > { %v583_v33 = vrot.slane %v2613_v21, 5  ;;  %v2621_v16 = vcombine.low %v3611_v2, %v3611_v2  ;;  %v2793_v31 = vcombine.high %v1308_v43, %v1373_v28  ;;  %v1386_v12 = vsel %vm3412_vm3, %v2761_v0, %v1385_v23 }
  0x62   : > { %v2792_v51 = vcombine.low %v1308_v43, %v1373_v28  ;;  %v502_v34 = vor.u32 %v501_v24, %v498_v52  ;;  %v2795_v35 = vcombine.high %v1321_v18, %v1386_v12  ;;  %v2794_v19 = vcombine.low %v1321_v18, %v1386_v12  ;;  %v295_v43 = vld [vmem:[#allocation2 + $0x18] sm:$0x8] }
  0x63   : > { %v510_v36 = vor.u32 %v509_v22, %v506_v26  ;;  %v584_v59 = vrot.slane %v2614_v27, 5  ;;  %2202 = vmatprep.mubr.bf16.mxu0 %v2793_v31  ;;  %v2622_v39 = vcombine.low %v3622_v29, %v3622_v29  ;;  %v632_v40 = vshrl.u32 %v2621_v16, 16 }
  0x64   : > { %v2639_v37 = vcombine.low %v502_v34, %v583_v33  ;;  %v2644_v38 = vcombine.high %v502_v34, %v583_v33  ;;  %2267 = vmatprep.mubr.bf16.mxu1 %v2795_v35  ;;  %2203 = vmatmul.mubr.bf16.gmra.mxu0 %v2792_v51  ;;  %v635_v45 = vshll.u32 %v2621_v16, 16  ;;  %v512_v46 = vshrl.u32 %v3544_v6, 16  ;;  %v288_v33 = vld [vmem:[#allocation2 + $0x2c] sm:$0x1]  ;;  %v3644_v35 = vld [vmem:[%s3907_s1 + $0x230] sm:$0xff]  }
  0x65   : > { %v2650_v41 = vcombine.low %v510_v36, %v584_v59  ;;  %v2655_v44 = vcombine.high %v510_v36, %v584_v59  ;;  %2268 = vmatmul.mubr.bf16.gmra.mxu1 %v2794_v19  ;;  %v634_v50 = vrot.slane %v632_v40, 4  ;;  %v640_v63 = vshrl.u32 %v2622_v39, 16  ;;  %v289_v19 = vld [vmem:[#allocation2 + $0x38] sm:$0x1]  ;;  %v3646_v36 = vld [vmem:[#allocation2 + $0x34] sm:$0xf] }
  0x66   : > { %v933_v47 = vshrl.u32 %v2639_v37, 16  ;;  %v938_v48 = vshrl.u32 %v2644_v38, 16  ;;  %v941_v49 = vshll.u32 %v2644_v38, 16  ;;  %v637_v60 = vrot.slane %v635_v45, 5  ;;  %v3648_v40 = vld [vmem:[#allocation2 + $0x40] sm:$0xf] }
  0x67   : > { %v998_v54 = vshrl.u32 %v2650_v41, 16  ;;  %v1003_v55 = vshrl.u32 %v2655_v44, 16  ;;  %v1006_v58 = vshll.u32 %v2655_v44, 16  ;;  %v643_v0 = vshll.u32 %v2622_v39, 16 }
  0x68   : > { %v2727_v61 = vrot.slane %v933_v47, 11  ;;  %v940_v62 = vrot.slane %v938_v48, 7  ;;  %v638_v8 = vor.u32 %v637_v60, %v634_v50  ;;  %v514_v52 = vrot.slane %v512_v46, 4 }
  0x69   : > { %v2732_v1 = vrot.slane %v998_v54, 11  ;;  %v1005_v4 = vrot.slane %v1003_v55, 7  ;;  %v642_v10 = vrot.slane %v640_v63, 4  ;;  %v645_v13 = vrot.slane %v643_v0, 5 }
  0x6a   : > { %v943_v9 = vor.u32 %v941_v49, %v940_v62  ;;  %v515_v14 = vshll.u32 %v3544_v6, 16  ;;  %v2640_v18 = vcombine.low %v295_v43, %v638_v8  ;;  %v2646_v20 = vsel %vm2642_vm0, %v3611_v2, %v638_v8 }
  0x6b   : > { %v1008_v15 = vor.u32 %v1006_v58, %v1005_v4  ;;  %v520_v21 = vshrl.u32 %v3551_v11, 16  ;;  %v646_v24 = vor.u32 %v645_v13, %v642_v10  ;;  %v951_v26 = vshrl.u32 %v2646_v20, 16 }
  0x6c   : > { %v944_v23 = vsel %vm3412_vm3, %v2727_v61, %v943_v9  ;;  %v954_v27 = vshll.u32 %v2646_v20, 16  ;;  %v946_v22 = vshrl.u32 %v2640_v18, 16  ;;  %v517_v16 = vrot.slane %v515_v14, 5  ;;  %v3672_v18 = vld [vmem:[%s3907_s1 + $0x220] sm:$0xff]  }
  0x6d   : > { %v1009_v28 = vsel %vm3412_vm3, %v2732_v1, %v1008_v15  ;;  %v522_v6 = vrot.slane %v520_v21, 4  ;;  %v2651_v51 = vcombine.low %v297_v7, %v646_v24  ;;  %v2657_v34 = vsel %vm2642_vm0, %v3622_v29, %v646_v24  ;;  %v313_v15 = vld [vmem:[#allocation2 + $0x38] sm:$0x1]  ;;  %v314_v24 = vld [vmem:[#allocation2 + $0x44] sm:$0x1] }
  0x6e   : > { %v2769_v31 = vcombine.low %v944_v23, %v1009_v28  ;;  %v2770_v12 = vcombine.high %v944_v23, %v1009_v28  ;;  %v2728_v59 = vrot.slane %v946_v22, 11  ;;  %v953_v37 = vrot.slane %v951_v26, 7 }
  0x6f   : > { %v1016_v38 = vshrl.u32 %v2657_v34, 16  ;;  %v1019_v39 = vshll.u32 %v2657_v34, 16  ;;  %v1011_v41 = vshrl.u32 %v2651_v51, 16  ;;  %v518_v44 = vor.u32 %v517_v16, %v514_v52 }
  0x70   : > { %2308 = vmatprep.mubr.bf16.mxu0 %v2770_v12  ;;  %v523_v45 = vshll.u32 %v3551_v11, 16  ;;  %v2615_v46 = vcombine.low %v3432_v57, %v288_v33  ;;  %v956_v47 = vor.u32 %v954_v27, %v953_v37  ;;  %v2616_v49 = vcombine.low %v3439_v5, %v289_v19  ;;  %v3664_v5 = vld [vmem:[%s3907_s1 + $0x228] sm:$0xff]   ;;  %v299_v33 = vld [vmem:[#allocation2 + $0x30] sm:$0x8] }
  0x71   : > { %v1018_v48 = vrot.slane %v1016_v38, 7  ;;  %2309 = vmatmul.mubr.bf16.vlgmr.msra.gmra.mxu0 %v2769_v31  ;;  %v2623_v50 = vcombine.low %v3646_v36, %v3646_v36  ;;  %v2733_v54 = vrot.slane %v1011_v41, 11  ;;  %v2624_v60 = vcombine.low %v3648_v40, %v3648_v40 }
  0x72   : > { %3075 = vmatpush3.bf16.msra.mxu0 %v3603_v30  ;;  %v525_v55 = vrot.slane %v523_v45, 5  ;;  %v585_v58 = vrot.slane %v2615_v46, 5  ;;  %v957_v11 = vsel %vm3412_vm3, %v2728_v59, %v956_v47  ;;  %v586_v61 = vrot.slane %v2616_v49, 5  ;;  %v301_v59 = vld [vmem:[#allocation2 + $0x3c] sm:$0x8] }
  0x73   : > { %v1021_v57 = vor.u32 %v1019_v39, %v1018_v48  ;;  %3076 = vmatprep.subr.bf16.mxu0 %v3644_v35  ;;  %v648_v62 = vshrl.u32 %v2623_v50, 16  ;;  %v651_v1 = vshll.u32 %v2623_v50, 16  ;;  %v656_v8 = vshrl.u32 %v2624_v60, 16 }
  0x74   : > { %v526_v43 = vor.u32 %v525_v55, %v522_v6  ;;  %v2661_v63 = vcombine.low %v518_v44, %v585_v58  ;;  %v2666_v0 = vcombine.high %v518_v44, %v585_v58  ;;  %v659_v52 = vshll.u32 %v2624_v60, 16 }
  0x75   : > { %v1022_v4 = vsel %vm3412_vm3, %v2733_v54, %v1021_v57  ;;  %v650_v7 = vrot.slane %v648_v62, 4  ;;  %v653_v26 = vrot.slane %v651_v1, 5  ;;  %v658_v16 = vrot.slane %v656_v8, 4  ;;  %v3714_v8 = vld [vmem:[%s3907_s1 + $0x210] sm:$0xff]  }
  0x76   : > { %v2771_v9 = vcombine.low %v957_v11, %v1022_v4  ;;  %v2772_v10 = vcombine.high %v957_v11, %v1022_v4  ;;  %3077 = vmatpush3.bf16.msra.mxu0 %v3644_v35  ;;  %v2672_v13 = vcombine.low %v526_v43, %v586_v61  ;;  %v2677_v14 = vcombine.high %v526_v43, %v586_v61  ;;  %v291_v4 = vld [vmem:[#allocation2 + $0x50] sm:$0x1] }
  0x77   : > { %v1063_v20 = vshrl.u32 %v2661_v63, 16  ;;  %v1068_v21 = vshrl.u32 %v2666_v0, 16  ;;  %v1071_v23 = vshll.u32 %v2666_v0, 16  ;;  %3078 = vmatprep.subr.bf16.mxu0 %v3664_v5  ;;  %v654_v12 = vor.u32 %v653_v26, %v650_v7 }
  0x78   : > { %2373 = vmatprep.mubr.bf16.mxu1 %v2772_v10  ;;  %v1128_v27 = vshrl.u32 %v2672_v13, 16  ;;  %v1133_v28 = vshrl.u32 %v2677_v14, 16  ;;  %v1136_v22 = vshll.u32 %v2677_v14, 16  ;;  %v661_v51 = vrot.slane %v659_v52, 5  ;;  %v3718_v14 = vld [vmem:[#allocation2 + $0x4c] sm:$0xf] }
  0x79   : > { %2374 = vmatmul.mubr.bf16.vlgmr.msra.gmra.mxu1 %v2771_v9  ;;  %v2737_v6 = vrot.slane %v1063_v20, 11  ;;  %v1070_v31 = vrot.slane %v1068_v21, 7  ;;  %v2631_v37 = vcombine.low %v3646_v36, %v313_v15  ;;  %v2632_v38 = vcombine.low %v3648_v40, %v314_v24  ;;  %v3723_v24 = vld [vmem:[#allocation2 + $0x58] sm:$0xf] }
  0x7a   : > { %3106 = vmatpush3.bf16.msra.mxu1 %v3603_v30  ;;  %v2742_v34 = vrot.slane %v1128_v27, 11  ;;  %v1135_v19 = vrot.slane %v1133_v28, 7  ;;  %3079 = vmatpush3.bf16.msra.mxu0 %v3664_v5  ;;  %v662_v41 = vor.u32 %v661_v51, %v658_v16  ;;  %v2662_v44 = vcombine.low %v299_v33, %v654_v12  ;;  %v3685_v30 = vld [vmem:[%s3907_s1 + $0x218] sm:$0xff]  }
  0x7b   : > { %3099 = vmatprep.subr.bf16.mxu1 %v3644_v35  ;;  %v1073_v39 = vor.u32 %v1071_v23, %v1070_v31  ;;  %v2668_v45 = vsel %vm2642_vm0, %v3646_v36, %v654_v12  ;;  %v3687_v47 = vrot.slane %v2631_v37, 5  ;;  %v3689_v48 = vrot.slane %v2632_v38, 5  ;;  %3080 = vmatprep.subr.bf16.mxu0 %v3672_v18 }
  0x7c   : > { %v1138_v46 = vor.u32 %v1136_v22, %v1135_v19  ;;  %v1081_v49 = vshrl.u32 %v2668_v45, 16  ;;  %v2673_v54 = vcombine.low %v301_v59, %v662_v41  ;;  %v2679_v36 = vsel %vm2642_vm0, %v3648_v40, %v662_v41 }
  0x7d   : > { %v1074_v50 = vsel %vm3412_vm3, %v2737_v6, %v1073_v39  ;;  %v1076_v55 = vshrl.u32 %v2662_v44, 16  ;;  %v3701_v60 = vcombine.high %v3687_v47, %v3687_v47  ;;  %v3705_v11 = vcombine.high %v3689_v48, %v3689_v48 }
  0x7e   : > { %3107 = vmatpush3.bf16.msra.mxu1 %v3644_v35  ;;  %v1139_v58 = vsel %vm3412_vm3, %v2742_v34, %v1138_v46  ;;  %v1083_v57 = vrot.slane %v1081_v49, 7  ;;  %3081 = vmatpush3.bf16.msra.mxu0 %v3672_v18  ;;  %v1084_v40 = vshll.u32 %v2668_v45, 16  ;;  %v1141_v43 = vshrl.u32 %v2673_v54, 16  ;;  %v290_v35 = vld [vmem:[#allocation2 + $0x44] sm:$0x1] }
  0x7f   : > { %v2779_v61 = vcombine.high %v1074_v50, %v1139_v58  ;;  %v2738_v62 = vrot.slane %v1076_v55, 11  ;;  %3100 = vmatprep.subr.bf16.mxu1 %v3664_v5  ;;  %3082 = vmatprep.subr.bf16.mxu0 %v3685_v30  ;;  %v1146_v63 = vshrl.u32 %v2679_v36, 16  ;;  %v1149_v0 = vshll.u32 %v2679_v36, 16  ;;  %v3752_v49 = vld [vmem:[%s3907_s1 + $0x200] sm:$0xff]   ;;  %v303_v36 = vld [vmem:[#allocation2 + $0x48] sm:$0x8] }
  0x80   : > { %v2778_v1 = vcombine.low %v1074_v50, %v1139_v58  ;;  %v528_v7 = vshrl.u32 %v3569_v42, 16  ;;  %v1086_v52 = vor.u32 %v1084_v40, %v1083_v57  ;;  %v2743_v9 = vrot.slane %v1141_v43, 11 }
  0x81   : > { %2316 = vmatprep.mubr.bf16.mxu0 %v2779_v61  ;;  %v531_v10 = vshll.u32 %v3569_v42, 16  ;;  %v536_v13 = vshrl.u32 %v3582_v56, 16  ;;  %v1148_v15 = vrot.slane %v1146_v63, 7  ;;  %v539_v21 = vshll.u32 %v3582_v56, 16 }
  0x82   : > { %2317 = vmatmul.mubr.bf16.gmra.mxu0 %v2778_v1  ;;  %3108 = vmatpush3.bf16.msra.mxu1 %v3664_v5  ;;  %v530_v20 = vrot.slane %v528_v7, 4  ;;  %v2617_v23 = vcombine.low %v3499_v17, %v290_v35  ;;  %v1087_v26 = vsel %vm3412_vm3, %v2738_v62, %v1086_v52  ;;  %v2618_v28 = vcombine.low %v3516_v32, %v291_v4  ;;  %v3742_v32 = vld [vmem:[%s3907_s1 + $0x208] sm:$0xff]  }
  0x83   : > { %3101 = vmatprep.subr.bf16.mxu1 %v3672_v18  ;;  %v533_v42 = vrot.slane %v531_v10, 5  ;;  %v538_v27 = vrot.slane %v536_v13, 4  ;;  %3083 = vmatpush3.bf16.msra.mxu0 %v3685_v30  ;;  %v1151_v22 = vor.u32 %v1149_v0, %v1148_v15  ;;  %v541_v5 = vrot.slane %v539_v21, 5 }
  0x84   : > { %v587_v33 = vrot.slane %v2617_v23, 5  ;;  %v2625_v56 = vcombine.low %v3718_v14, %v3718_v14  ;;  %3084 = vmatprep.subr.bf16.mxu0 %v3714_v8  ;;  %v588_v16 = vrot.slane %v2618_v28, 5  ;;  %v2626_v6 = vcombine.low %v3723_v24, %v3723_v24 }
  0x85   : > { %v534_v17 = vor.u32 %v533_v42, %v530_v20  ;;  %v3737_v31 = vcombine.low %v3575_v53, %v3575_v53  ;;  %v1152_v12 = vsel %vm3412_vm3, %v2743_v9, %v1151_v22  ;;  %v542_v51 = vor.u32 %v541_v5, %v538_v27  ;;  %v305_v20 = vld [vmem:[#allocation2 + $0x54] sm:$0x8] }
  0x86   : > { %3109 = vmatpush3.bf16.msra.mxu1 %v3672_v18  ;;  %v664_v34 = vshrl.u32 %v2625_v56, 16  ;;  %v667_v19 = vshll.u32 %v2625_v56, 16  ;;  %v2781_v59 = vcombine.high %v1087_v26, %v1152_v12  ;;  %v2780_v37 = vcombine.low %v1087_v26, %v1152_v12 }
  0x87   : > { %v2683_v38 = vcombine.low %v534_v17, %v587_v33  ;;  %v2688_v39 = vcombine.high %v534_v17, %v587_v33  ;;  %3102 = vmatprep.subr.bf16.mxu1 %v3685_v30  ;;  %v2694_v41 = vcombine.low %v542_v51, %v588_v16  ;;  %v2699_v44 = vcombine.high %v542_v51, %v588_v16  ;;  %v292_v51 = vld [vmem:[#allocation2 + $0x5c] sm:$0x1] }
  0x88   : > { %v666_v45 = vrot.slane %v664_v34, 4  ;;  %v669_v46 = vrot.slane %v667_v19, 5  ;;  %3085 = vmatpush3.bf16.msra.mxu0 %v3714_v8  ;;  %2381 = vmatprep.mubr.bf16.mxu1 %v2781_v59  ;;  %v672_v55 = vshrl.u32 %v2626_v6, 16  ;;  %v675_v63 = vshll.u32 %v2626_v6, 16  ;;  %v3774_v34 = vld [vmem:[#allocation2 + $0x64] sm:$0xf] }
  0x89   : > { %v1193_v18 = vshrl.u32 %v2683_v38, 16  ;;  %v1198_v50 = vshrl.u32 %v2688_v39, 16  ;;  %v1201_v54 = vshll.u32 %v2688_v39, 16  ;;  %3086 = vmatprep.subr.bf16.mxu0 %v3742_v32  ;;  %2382 = vmatmul.mubr.bf16.gmra.mxu1 %v2780_v37  ;;  %v1258_v58 = vshrl.u32 %v2694_v41, 16  ;;  %v3776_v38 = vld [vmem:[#allocation2 + $0x70] sm:$0xf] }
  0x8a   : > { %v1263_v57 = vshrl.u32 %v2699_v44, 16  ;;  %v1266_v61 = vshll.u32 %v2699_v44, 16  ;;  %v670_v62 = vor.u32 %v669_v46, %v666_v45  ;;  %v674_v35 = vrot.slane %v672_v55, 4  ;;  %3110 = vmatpush3.bf16.msra.mxu1 %v3685_v30  ;;  %v317_v46 = vld [vmem:[#allocation2 + $0x68] sm:$0x1] }
  0x8b   : > { %v2747_v40 = vrot.slane %v1193_v18, 11  ;;  %v1200_v43 = vrot.slane %v1198_v50, 7  ;;  %v2752_v0 = vrot.slane %v1258_v58, 11  ;;  %3103 = vmatprep.subr.bf16.mxu1 %v3714_v8  ;;  %v677_v9 = vrot.slane %v675_v63, 5 }
  0x8c   : > { %v1265_v1 = vrot.slane %v1263_v57, 7  ;;  %v2684_v4 = vcombine.low %v303_v36, %v670_v62  ;;  %v2690_v7 = vsel %vm2642_vm0, %v3718_v14, %v670_v62  ;;  %3087 = vmatpush3.bf16.msra.mxu0 %v3742_v32  ;;  %v2612_v30 = vcombine.low %v3588_v3, %v3588_v3 }
  0x8d   : > { %v1203_v52 = vor.u32 %v1201_v54, %v1200_v43  ;;  %v1211_v10 = vshrl.u32 %v2690_v7, 16  ;;  %v1214_v13 = vshll.u32 %v2690_v7, 16  ;;  %3088 = vmatprep.subr.bf16.mxu0 %v3752_v49  ;;  %v544_v23 = vshrl.u32 %v3737_v31, 16 }
  0x8e   : > { %v1268_v15 = vor.u32 %v1266_v61, %v1265_v1  ;;  %v1206_v21 = vshrl.u32 %v2684_v4, 16  ;;  %v678_v42 = vor.u32 %v677_v9, %v674_v35  ;;  %3111 = vmatpush3.bf16.msra.mxu1 %v3714_v8  ;;  %v547_v28 = vshll.u32 %v3737_v31, 16  ;;  %v293_v8 = vld [vmem:[#allocation2 + $0x68] sm:$0x1] }
  0x8f   : > { %v1204_v26 = vsel %vm3412_vm3, %v2747_v40, %v1203_v52  ;;  %v1213_v27 = vrot.slane %v1211_v10, 7  ;;  %v546_v33 = vrot.slane %v544_v23, 4  ;;  %v552_v56 = vshrl.u32 %v2612_v30, 16  ;;  %3104 = vmatprep.subr.bf16.mxu1 %v3742_v32 }
  0x90   : > { %v1269_v22 = vsel %vm3412_vm3, %v2752_v0, %v1268_v15  ;;  %v2748_v5 = vrot.slane %v1206_v21, 11  ;;  %3089 = vmatpush3.bf16.msra.mxu0 %v3752_v49  ;;  %v2695_v16 = vcombine.low %v305_v20, %v678_v42  ;;  %v2701_v6 = vsel %vm2642_vm0, %v3723_v24, %v678_v42 }
  0x91   : > { %v2788_v17 = vcombine.high %v1204_v26, %v1269_v22  ;;  %v1216_v12 = vor.u32 %v1214_v13, %v1213_v27  ;;  %v1276_v31 = vshrl.u32 %v2701_v6, 16  ;;  %v1279_v19 = vshll.u32 %v2701_v6, 16 }
  0x92   : > { %v2787_v59 = vcombine.low %v1204_v26, %v1269_v22  ;;  %v549_v37 = vrot.slane %v547_v28, 5  ;;  %v1271_v41 = vshrl.u32 %v2695_v16, 16  ;;  %v554_v44 = vrot.slane %v552_v56, 4  ;;  %3112 = vmatpush3.bf16.msra.mxu1 %v3742_v32  ;;  %v311_v28 = vld [vmem:[#allocation2 + $0x20] sm:$0x1] }
  0x93   : > { %2324 = vmatprep.mubr.bf16.mxu0 %v2788_v17  ;;  %v1217_v39 = vsel %vm3412_vm3, %v2748_v5, %v1216_v12  ;;  %v555_v45 = vshll.u32 %v2612_v30, 16  ;;  %v1278_v18 = vrot.slane %v1276_v31, 7  ;;  %v2619_v54 = vcombine.low %v3575_v53, %v292_v51  ;;  %3105 = vmatprep.subr.bf16.mxu1 %v3752_v49  ;;  %v318_v30 = vld [vmem:[#allocation2 + $0x74] sm:$0x1]  ;;  %v309_v12 = vld [vmem:[#allocation2 + $0x6c] sm:$0x8] }
  0x94   : > { %2325 = vmatmul.mubr.bf16.gmra.mxu0 %v2787_v59  ;;  %v550_v50 = vor.u32 %v549_v37, %v546_v33  ;;  %v2620_v36 = vcombine.low %v3588_v3, %v293_v8  ;;  %v2753_v55 = vrot.slane %v1271_v41, 11  ;;  %v2627_v57 = vcombine.low %v3774_v34, %v3774_v34  ;;  %v307_v33 = vld [vmem:[#allocation2 + $0x60] sm:$0x8] }
  0x95   : > { %v557_v58 = vrot.slane %v555_v45, 5  ;;  %v2628_v61 = vcombine.low %v3776_v38, %v3776_v38  ;;  %v1281_v62 = vor.u32 %v1279_v19, %v1278_v18  ;;  %v589_v40 = vrot.slane %v2619_v54, 5 }
  0x96   : > { %v590_v32 = vrot.slane %v2620_v36, 5  ;;  %v2635_v43 = vcombine.low %v3774_v34, %v317_v46  ;;  %v680_v63 = vshrl.u32 %v2627_v57, 16  ;;  %v683_v53 = vshll.u32 %v2627_v57, 16  ;;  %3113 = vmatpush3.bf16.msra.mxu1 %v3752_v49  ;;  %v315_v57 = vld [vmem:[#allocation2 + $0x50] sm:$0x1] }
  0x97   : > { %v558_v35 = vor.u32 %v557_v58, %v554_v44  ;;  %v688_v0 = vshrl.u32 %v2628_v61, 16  ;;  %v1282_v3 = vsel %vm3412_vm3, %v2753_v55, %v1281_v62  ;;  %v2705_v1 = vcombine.low %v550_v50, %v589_v40  ;;  %v312_v58 = vld [vmem:[#allocation2 + $0x2c] sm:$0x1] }
  0x98   : > { %v2710_v4 = vcombine.high %v550_v50, %v589_v40  ;;  %v691_v7 = vshll.u32 %v2628_v61, 16  ;;  %v2790_v52 = vcombine.high %v1217_v39, %v1282_v3  ;;  %v2789_v9 = vcombine.low %v1217_v39, %v1282_v3 }
  0x99   : > { %v2716_v10 = vcombine.low %v558_v35, %v590_v32  ;;  %v2721_v13 = vcombine.high %v558_v35, %v590_v32  ;;  %v1323_v15 = vshrl.u32 %v2705_v1, 16  ;;  %v682_v23 = vrot.slane %v680_v63, 4 }
  0x9a   : > { %v1328_v20 = vshrl.u32 %v2710_v4, 16  ;;  %v1331_v21 = vshll.u32 %v2710_v4, 16  ;;  %2389 = vmatprep.mubr.bf16.mxu1 %v2790_v52  ;;  %v685_v49 = vrot.slane %v683_v53, 5  ;;  %v690_v56 = vrot.slane %v688_v0, 4 }
  0x9b   : > { %v1388_v26 = vshrl.u32 %v2716_v10, 16  ;;  %v1393_v42 = vshrl.u32 %v2721_v13, 16  ;;  %v1396_v27 = vshll.u32 %v2721_v13, 16  ;;  %2390 = vmatmul.mubr.bf16.gmra.mxu1 %v2789_v9  ;;  %v2757_v22 = vrot.slane %v1323_v15, 11 }
  0x9c   : > { %v1330_v5 = vrot.slane %v1328_v20, 7  ;;  %v693_v17 = vrot.slane %v691_v7, 5  ;;  %v686_v51 = vor.u32 %v685_v49, %v682_v23  ;;  %v2636_v8 = vcombine.low %v3776_v38, %v318_v30 }
  0x9d   : > { %v2762_v16 = vrot.slane %v1388_v26, 11  ;;  %v1395_v6 = vrot.slane %v1393_v42, 7  ;;  %v3793_v59 = vrot.slane %v2635_v43, 5  ;;  %v2629_v37 = vcombine.low %v3611_v2, %v311_v28  ;;  %v316_v43 = vld [vmem:[#allocation2 + $0x5c] sm:$0x1] }
  0x9e   : > { %v1333_v31 = vor.u32 %v1331_v21, %v1330_v5  ;;  %v694_v19 = vor.u32 %v693_v17, %v690_v56  ;;  %v3796_v41 = vrot.slane %v2636_v8, 5  ;;  %v2706_v44 = vcombine.low %v307_v33, %v686_v51 }
  0x9f   : > { %v1398_v39 = vor.u32 %v1396_v27, %v1395_v6  ;;  %v2712_v45 = vsel %vm2642_vm0, %v3774_v34, %v686_v51  ;;  %v3804_v18 = vcombine.high %v3793_v59, %v3793_v59  ;;  %v2630_v1 = vcombine.low %v3622_v29, %v312_v58 }
  0xa0   : > { %v1334_v46 = vsel %vm3412_vm3, %v2757_v22, %v1333_v31  ;;  %v2717_v50 = vcombine.low %v309_v12, %v694_v19  ;;  %v2723_v54 = vsel %vm2642_vm0, %v3776_v38, %v694_v19  ;;  %v3812_v36 = vcombine.high %v3796_v41, %v3796_v41 }
  0xa1   : > { %v1399_v2 = vsel %vm3412_vm3, %v2762_v16, %v1398_v39  ;;  %v1336_v55 = vshrl.u32 %v2706_v44, 16  ;;  %v1341_v34 = vshrl.u32 %v2712_v45, 16  ;;  %v1344_v62 = vshll.u32 %v2712_v45, 16 }
  0xa2   : > { %v2797_v61 = vcombine.high %v1334_v46, %v1399_v2  ;;  %v1401_v40 = vshrl.u32 %v2717_v50, 16  ;;  %v1406_v32 = vshrl.u32 %v2723_v54, 16  ;;  %v1409_v53 = vshll.u32 %v2723_v54, 16 }
  0xa3   : > { %v2758_v35 = vrot.slane %v1336_v55, 11  ;;  %v1343_v63 = vrot.slane %v1341_v34, 7  ;;  %v2796_v38 = vcombine.low %v1334_v46, %v1399_v2  ;;  %v719_v4 = vrot.slane %v2629_v37, 5 }
  0xa4   : > { %2332 = vmatprep.mubr.bf16.mxu0 %v2797_v61  ;;  %v2763_v0 = vrot.slane %v1401_v40, 11  ;;  %v1408_v3 = vrot.slane %v1406_v32, 7  ;;  %v2633_v52 = vcombine.low %v3718_v14, %v315_v57  ;;  %v2634_v9 = vcombine.low %v3723_v24, %v316_v43 }
  0xa5   : > { %v1346_v7 = vor.u32 %v1344_v62, %v1343_v63  ;;  %2333 = vmatmul.mubr.bf16.gmra.mxu0 %v2796_v38  ;;  %v2663_v10 = vcombine.low %v3687_v47, %v3687_v47  ;;  %v720_v15 = vrot.slane %v2630_v1, 5  ;;  %v2641_v20 = vcombine.low %v719_v4, %v719_v4 }
  0xa6   : > { %v1411_v13 = vor.u32 %v1409_v53, %v1408_v3  ;;  %v2647_v21 = vcombine.high %v719_v4, %v719_v4  ;;  %v723_v23 = vrot.slane %v2633_v52, 5  ;;  %v724_v26 = vrot.slane %v2634_v9, 5 }
  0xa7   : > { %v1347_v30 = vsel %vm3412_vm3, %v2758_v35, %v1346_v7  ;;  %v2674_v29 = vcombine.low %v3689_v48, %v3689_v48  ;;  %v2652_v42 = vcombine.low %v720_v15, %v720_v15  ;;  %v2658_v24 = vcombine.high %v720_v15, %v720_v15 }
  0xa8   : > { %v1412_v14 = vsel %vm3412_vm3, %v2763_v0, %v1411_v13  ;;  %v959_v27 = vshrl.u32 %v2641_v20, 16  ;;  %v964_v28 = vshrl.u32 %v2647_v21, 16  ;;  %v967_v22 = vshll.u32 %v2647_v21, 16 }
  0xa9   : > { %v2799_v49 = vcombine.high %v1347_v30, %v1412_v14  ;;  %v2798_v47 = vcombine.low %v1347_v30, %v1412_v14  ;;  %v1024_v33 = vshrl.u32 %v2652_v42, 16  ;;  %v1029_v56 = vshrl.u32 %v2658_v24, 16 }
  0xaa   : > { %v2729_v5 = vrot.slane %v959_v27, 11  ;;  %v1032_v17 = vshll.u32 %v2658_v24, 16  ;;  %v966_v16 = vrot.slane %v964_v28, 7  ;;  %v2685_v6 = vcombine.low %v723_v23, %v723_v23 }
  0xab   : > { %2397 = vmatprep.mubr.bf16.mxu1 %v2799_v49  ;;  %v2691_v12 = vcombine.high %v723_v23, %v723_v23  ;;  %v2696_v51 = vcombine.low %v724_v26, %v724_v26  ;;  %v2734_v48 = vrot.slane %v1024_v33, 11  ;;  %v1031_v8 = vrot.slane %v1029_v56, 7 }
  0xac   : > { %2398 = vmatmul.mubr.bf16.gmra.mxu1 %v2798_v47  ;;  %v2702_v31 = vcombine.high %v724_v26, %v724_v26  ;;  %v1089_v19 = vshrl.u32 %v2663_v10, 16  ;;  %v969_v37 = vor.u32 %v967_v22, %v966_v16  ;;  %v1219_v39 = vshrl.u32 %v2685_v6, 16 }
  0xad   : > { %v1224_v44 = vshrl.u32 %v2691_v12, 16  ;;  %v1227_v45 = vshll.u32 %v2691_v12, 16  ;;  %v1034_v46 = vor.u32 %v1032_v17, %v1031_v8  ;;  %v1284_v50 = vshrl.u32 %v2696_v51, 16 }
  0xae   : > { %v1289_v54 = vshrl.u32 %v2702_v31, 16  ;;  %v1292_v2 = vshll.u32 %v2702_v31, 16  ;;  %v970_v55 = vsel %vm3412_vm3, %v2729_v5, %v969_v37  ;;  %v2749_v34 = vrot.slane %v1219_v39, 11 }
  0xaf   : > { %v1226_v58 = vrot.slane %v1224_v44, 7  ;;  %v2739_v57 = vrot.slane %v1089_v19, 11  ;;  %v1035_v61 = vsel %vm3412_vm3, %v2734_v48, %v1034_v46  ;;  %v2754_v62 = vrot.slane %v1284_v50, 11 }
  0xb0   : > { %v1291_v40 = vrot.slane %v1289_v54, 7  ;;  %v1094_v32 = vshrl.u32 %v3701_v60, 16  ;;  %v2773_v43 = vcombine.low %v970_v55, %v1035_v61  ;;  %v1097_v63 = vshll.u32 %v3701_v60, 16 }
  0xb1   : > { %v1229_v35 = vor.u32 %v1227_v45, %v1226_v58  ;;  %v1154_v53 = vshrl.u32 %v2674_v29, 16  ;;  %v1159_v3 = vshrl.u32 %v3705_v11, 16  ;;  %v1162_v1 = vshll.u32 %v3705_v11, 16 }
  0xb2   : > { %v1294_v38 = vor.u32 %v1292_v2, %v1291_v40  ;;  %v1096_v0 = vrot.slane %v1094_v32, 7  ;;  %3090 = vmatprep.mubr.bf16.mxu0 %v2773_v43  ;;  %v2707_v52 = vcombine.low %v3793_v59, %v3793_v59  ;;  %v2718_v9 = vcombine.low %v3796_v41, %v3796_v41 }
  0xb3   : > { %v1230_v4 = vsel %vm3412_vm3, %v2749_v34, %v1229_v35  ;;  %v2744_v7 = vrot.slane %v1154_v53, 11  ;;  %v1161_v13 = vrot.slane %v1159_v3, 7  ;;  %v1354_v15 = vshrl.u32 %v3804_v18, 16 }
  0xb4   : > { %v1295_v60 = vsel %vm3412_vm3, %v2754_v62, %v1294_v38  ;;  %v1099_v10 = vor.u32 %v1097_v63, %v1096_v0  ;;  %v1349_v11 = vshrl.u32 %v2707_v52, 16  ;;  %v1357_v21 = vshll.u32 %v3804_v18, 16 }
  0xb5   : > { %v2791_v20 = vcombine.low %v1230_v4, %v1295_v60  ;;  %v1414_v30 = vshrl.u32 %v2718_v9, 16  ;;  %v1164_v26 = vor.u32 %v1162_v1, %v1161_v13  ;;  %v1356_v59 = vrot.slane %v1354_v15, 7 }
  0xb6   : > { %v1100_v23 = vsel %vm3412_vm3, %v2739_v57, %v1099_v10  ;;  %v1419_v29 = vshrl.u32 %v3812_v36, 16  ;;  %v2759_v41 = vrot.slane %v1349_v11, 11  ;;  %v1422_v14 = vshll.u32 %v3812_v36, 16 }
  0xb7   : > { %3094 = vmatprep.mubr.bf16.mxu1 %v2791_v20  ;;  %v1165_v42 = vsel %vm3412_vm3, %v2744_v7, %v1164_v26  ;;  %v1359_v24 = vor.u32 %v1357_v21, %v1356_v59  ;;  %v2764_v27 = vrot.slane %v1414_v30, 11 }
  0xb8   : > { %v1421_v49 = vrot.slane %v1419_v29, 7  ;;  %v2782_v47 = vcombine.low %v1100_v23, %v1165_v42 }
  0xb9   : > { %v1360_v18 = vsel %vm3412_vm3, %v2759_v41, %v1359_v24 }
  0xba   : > { %v1424_v28 = vor.u32 %v1422_v14, %v1421_v49  ;;  %3091 = vmatmul.mubr.bf16.vlgmr.msra.gmra.mxu0 %v2782_v47 }
  0xbc   : > { %v1425_v22 = vsel %vm3412_vm3, %v2764_v27, %v1424_v28 }
  0xbd   : > { %v2800_v5 = vcombine.low %v1360_v18, %v1425_v22 }
  0xbf   : > { %3095 = vmatmul.mubr.bf16.vlgmr.msra.gmra.mxu1 %v2800_v5 }
  0xf7   : > { %v2958_v36 = vpop.f32.mrf.mxu1 }
  0xf8   : > { %v2918_v33 = vpop.f32.mrf.mxu0 }
  0xf9   : > { %v2959_v16 = vpop.f32.mrf.mxu1 }
  0xfa   : > { %v2919_v56 = vpop.f32.mrf.mxu0  ;;  %v2960_v22 = vadd.f32 %v2959_v16, %v2958_v36 }
  0xfb   : > { %v3857_v12 = vpop.f32.mrf.mxu1  ;;  %v2920_v28 = vadd.f32 %v2919_v56, %v2918_v33 }
  0xfc   : > { %v3853_v17 = vpop.f32.mrf.mxu0  ;;  %3915 = vst [vmem:[#allocation5_spill] sm:$0xff] %v3857_v12 }
  0xfd   : > { %3913 = vst [vmem:[#allocation3_spill] sm:$0xff] %v3853_v17  ;;  %v3859_v48 = vpop.f32.mrf.mxu1  ;;  %v2246_v12 = vadd.f32 %v2960_v22, %v2920_v28 }
  0xfe   : > { %v3855_v6 = vpop.f32.mrf.mxu0  ;;  %3916 = vst [vmem:[#allocation6_spill] sm:$0xff] %v3859_v48 }
  0xff   : > { %3914 = vst [vmem:[#allocation4_spill] sm:$0xff] %v3855_v6 }
 0x107   : > { %v2924_v51 = vpop.f32.mrf.mxu0  ;;  %v2964_v31 = vpop.f32.mrf.mxu1 }
 0x109   : > { %v2925_v8 = vpop.f32.mrf.mxu0  ;;  %v2965_v25 = vpop.f32.mrf.mxu1 }
 0x10a   : > { %v2926_v47 = vadd.f32 %v2925_v8, %v2924_v51  ;;  %v2966_v18 = vadd.f32 %v2965_v25, %v2964_v31  ;;  %v3927_v8 = vld [vmem:[#allocation6_spill] sm:$0xff] }
 0x10b   : > { %v2927_v19 = vpop.f32.mrf.mxu0  ;;  %v2967_v39 = vpop.f32.mrf.mxu1 }
 0x10d   : > { %v2928_v37 = vpop.f32.mrf.mxu0  ;;  %v2968_v45 = vpop.f32.mrf.mxu1 }
 0x114   : > { %v2930_v44 = vpop.f32.mrf.mxu0 }
 0x116   : > { %v2931_v46 = vpop.f32.mrf.mxu0  ;;  %v2970_v50 = vpop.f32.mrf.mxu1 }
 0x118   : > { %v3861_v54 = vpop.f32.mrf.mxu0  ;;  %v2971_v2 = vpop.f32.mrf.mxu1 }
 0x119   : > { %3917 = vst [vmem:[#allocation7_spill] sm:$0xff] %v3861_v54  ;;  %v2972_v54 = vadd.f32 %v2971_v2, %v2970_v50 }
 0x11a   : > { %v3863_v55 = vpop.f32.mrf.mxu0  ;;  %v3865_v34 = vpop.f32.mrf.mxu1 }
 0x11b   : > { %3918 = vst [vmem:[#allocation8_spill] sm:$0xff] %v3863_v55  ;;  %3919 = vst [vmem:[#allocation9_spill] sm:$0xff] %v3865_v34  ;;  %v2932_v55 = vadd.f32 %v2931_v46, %v2930_v44 }
 0x11c   : > { %v3867_v57 = vpop.f32.mrf.mxu1 }
 0x11d   : > { %3920 = vst [vmem:[#allocation10_spill] sm:$0xff] %v3867_v57  ;;  %v2929_v57 = vadd.f32 %v2928_v37, %v2927_v19  ;;  %v3929_v19 = vld [vmem:[#allocation4_spill] sm:$0xff]  ;;  %v2262_v44 = vadd.f32 %v2972_v54, %v2932_v55 }
 0x124   : > { %v2936_v58 = vpop.f32.mrf.mxu0 }
 0x125   : > { %v2976_v62 = vpop.f32.mrf.mxu1 }
 0x126   : > { %v2937_v61 = vpop.f32.mrf.mxu0 }
 0x127   : > { %v2977_v32 = vpop.f32.mrf.mxu1  ;;  %v2938_v5 = vadd.f32 %v2937_v61, %v2936_v58  ;;  %v3928_v58 = vld [vmem:[#allocation3_spill] sm:$0xff] }
 0x128   : > { %v2939_v40 = vpop.f32.mrf.mxu0  ;;  %v2923_v37 = vadd.f32 %v3929_v19, %v3928_v58 }
 0x129   : > { %v2979_v35 = vpop.f32.mrf.mxu1 }
 0x12a   : > { %v2940_v43 = vpop.f32.mrf.mxu0 }
 0x12b   : > { %v2980_v53 = vpop.f32.mrf.mxu1  ;;  %v2941_v33 = vadd.f32 %v2940_v43, %v2939_v40 }
 0x12c   : > { %v2981_v56 = vadd.f32 %v2980_v53, %v2979_v35 }
 0x12e   : > { %v2273_v35 = vadd.f32 %v2981_v56, %v2941_v33 }
 0x131   : > { %v2998_v63 = vpop.f32.mrf.mxu0 }
 0x133   : > { %v2999_v38 = vpop.f32.mrf.mxu0 }
 0x134   : > { %v3000_v6 = vadd.f32 %v2999_v38, %v2998_v63  ;;  %v3931_v63 = vld [vmem:[#allocation8_spill] sm:$0xff] }
 0x135   : > { %v3001_v3 = vpop.f32.mrf.mxu0 }
 0x137   : > { %v3002_v4 = vpop.f32.mrf.mxu0 }
 0x139   : > { %v3038_v0 = vpop.f32.mrf.mxu1 }
 0x13b   : > { %v3039_v1 = vpop.f32.mrf.mxu1 }
 0x13c   : > { %v3040_v43 = vadd.f32 %v3039_v1, %v3038_v0 }
 0x13d   : > { %v3869_v7 = vpop.f32.mrf.mxu1 }
 0x13e   : > { %3921 = vst [vmem:[#allocation11_spill] sm:$0xff] %v3869_v7 }
 0x13f   : > { %v3871_v9 = vpop.f32.mrf.mxu1 }
 0x140   : > { %3922 = vst [vmem:[#allocation12_spill] sm:$0xff] %v3871_v9  ;;  %v2978_v9 = vadd.f32 %v2977_v32, %v2976_v62  ;;  %v3930_v32 = vld [vmem:[#allocation7_spill] sm:$0xff] }
 0x141   : > { %v2935_v38 = vadd.f32 %v3931_v63, %v3930_v32 }
 0x142   : > { %v3004_v52 = vpop.f32.mrf.mxu0  ;;  %v2270_v25 = vadd.f32 %v2978_v9, %v2938_v5  ;;  %v3933_v9 = vld [vmem:[#allocation10_spill] sm:$0xff] }
 0x144   : > { %v3005_v60 = vpop.f32.mrf.mxu0 }
 0x145   : > { %v3006_v34 = vadd.f32 %v3005_v60, %v3004_v52  ;;  %v3932_v52 = vld [vmem:[#allocation9_spill] sm:$0xff] }
 0x146   : > { %v3007_v13 = vpop.f32.mrf.mxu0  ;;  %v2975_v40 = vadd.f32 %v3933_v9, %v3932_v52 }
 0x148   : > { %v3008_v20 = vpop.f32.mrf.mxu0  ;;  %v2265_v0 = vadd.f32 %v2975_v40, %v2935_v38 }
 0x149   : > { %v3044_v10 = vpop.f32.mrf.mxu1  ;;  %v3009_v16 = vadd.f32 %v3008_v20, %v3007_v13  ;;  %v2873_v20 = vld [vmem:[%s3908_s2] ss:$0 sm:$0xff] }
 0x14b   : > { %v3045_v15 = vpop.f32.mrf.mxu1 }
 0x14c   : > { %v3046_v50 = vadd.f32 %v3045_v15, %v3044_v10 }
 0x14d   : > { %v3047_v11 = vpop.f32.mrf.mxu1 }
 0x14f   : > { %v3048_v30 = vpop.f32.mrf.mxu1 }
 0x150   : > { %v3049_v54 = vadd.f32 %v3048_v30, %v3047_v11  ;;  %v3935_v30 = vld [vmem:[#allocation11_spill] sm:$0xff] }
 0x154   : > { %v3010_v21 = vpop.f32.mrf.mxu0 }
 0x156   : > { %v3011_v23 = vpop.f32.mrf.mxu0 }
 0x157   : > { %v3012_v2 = vadd.f32 %v3011_v23, %v3010_v21 }
 0x158   : > { %v3013_v59 = vpop.f32.mrf.mxu0 }
 0x15a   : > { %v3014_v41 = vpop.f32.mrf.mxu0 }
 0x15b   : > { %v3873_v26 = vpop.f32.mrf.mxu1 }
 0x15c   : > { %3923 = vst [vmem:[#allocation13_spill] sm:$0xff] %v3873_v26  ;;  %v2969_v26 = vadd.f32 %v2968_v45, %v2967_v39  ;;  %v2311_v45 = vadd.f32 %v3000_v6, %v2246_v12  ;;  %v3015_v6 = vadd.f32 %v3014_v41, %v3013_v59  ;;  %v3936_v59 = vld [vmem:[#allocation12_spill] sm:$0xff] }
 0x15d   : > { %v3051_v29 = vpop.f32.mrf.mxu1  ;;  %v3043_v41 = vadd.f32 %v3936_v59, %v3935_v30 }
 0x15e   : > { %v2257_v39 = vadd.f32 %v2969_v26, %v2929_v57  ;;  %v2376_v10 = vadd.f32 %v3040_v43, %v2311_v45 }
 0x15f   : > { %v3875_v14 = vpop.f32.mrf.mxu1 }
 0x160   : > { %3924 = vst [vmem:[#allocation14_spill] sm:$0xff] %v3875_v14  ;;  %v2254_v14 = vadd.f32 %v2966_v18, %v2926_v47  ;;  %v2322_v53 = vadd.f32 %v3009_v16, %v2257_v39 }
 0x161   : > { %v3877_v24 = vpop.f32.mrf.mxu1 }
 0x162   : > { %3925 = vst [vmem:[#allocation15_spill] sm:$0xff] %v3877_v24  ;;  %v3926_v24 = vld [vmem:[#allocation5_spill] sm:$0xff]  ;;  %v2319_v36 = vadd.f32 %v3006_v34, %v2254_v14  ;;  %v3003_v34 = vadd.f32 %v3002_v4, %v3001_v3  ;;  %v2387_v11 = vadd.f32 %v3049_v54, %v2322_v53  ;;  %v2330_v14 = vadd.f32 %v3015_v6, %v2265_v0 }
 0x163   : > { %v2963_v51 = vadd.f32 %v3927_v8, %v3926_v24  ;;  %v3934_v4 = vld [vmem:[#allocation13_spill] sm:$0xff] }
 0x164   : > { %v2384_v13 = vadd.f32 %v3046_v50, %v2319_v36 }
 0x165   : > { %v3016_v42 = vpop.f32.mrf.mxu0  ;;  %v2249_v57 = vadd.f32 %v2963_v51, %v2923_v37 }
 0x167   : > { %v3017_v27 = vpop.f32.mrf.mxu0  ;;  %v2314_v3 = vadd.f32 %v3003_v34, %v2249_v57 }
 0x168   : > { %v3018_v48 = vadd.f32 %v3017_v27, %v3016_v42 }
 0x169   : > { %v3019_v7 = vpop.f32.mrf.mxu0  ;;  %v2379_v8 = vadd.f32 %v3043_v41, %v2314_v3 }
 0x16a   : > { %v2335_v61 = vadd.f32 %v3018_v48, %v2270_v25  ;;  %v2327_v48 = vadd.f32 %v3012_v2, %v2262_v44  ;;  %v3937_v25 = vld [vmem:[#allocation14_spill] sm:$0xff] }
 0x16b   : > { %v3020_v31 = vpop.f32.mrf.mxu0 }
 0x16c   : > { %v3056_v49 = vpop.f32.mrf.mxu1  ;;  %v3021_v62 = vadd.f32 %v3020_v31, %v3019_v7  ;;  %v3938_v31 = vld [vmem:[#allocation15_spill] sm:$0xff] }
 0x16d   : > { %v3055_v33 = vadd.f32 %v3938_v31, %v3937_v25 }
 0x16e   : > { %v3057_v17 = vpop.f32.mrf.mxu1  ;;  %v2338_v7 = vadd.f32 %v3021_v62, %v2273_v35 }
 0x16f   : > { %v3058_v60 = vadd.f32 %v3057_v17, %v3056_v49  ;;  %v3052_v17 = vadd.f32 %v3051_v29, %v3934_v4  ;;  %v2874_v49 = vld [vmem:[%s3909_s3] ss:$0 sm:$0xff]  ;;  %v2395_v45 = vadd.f32 %v3055_v33, %v2330_v14 }
 0x170   : > { %v3059_v46 = vpop.f32.mrf.mxu1 }
 0x171   : > { %v2400_v21 = vadd.f32 %v3058_v60, %v2335_v61  ;;  %v2392_v18 = vadd.f32 %v3052_v17, %v2327_v48 }
 0x172   : > { %v3060_v12 = vpop.f32.mrf.mxu1 }
 0x173   : > { %v3061_v23 = vadd.f32 %v3060_v12, %v3059_v46 }
 0x175   : > { %v2403_v22 = vadd.f32 %v3061_v23, %v2338_v7 }
 0x17a   : > { %v3092_v55 = vpop.f32.mrf.mxu0 }
 0x17b   : > { %v2449_v15 = vadd.f32 %v3092_v55, %v2384_v13 }
 0x17c   : > { %v2440_v1 = vpop.f32.mrf.mxu0 }
 0x17d   : > { %v2441_v26 = vadd.f32 %v2440_v1, %v2376_v10  ;;  %v2480_v42 = vmul.f32 %v2873_v20, %v2449_v15 }
 0x17e   : > { %v3093_v27 = vpop.f32.mrf.mxu0 }
 0x17f   : > { %v3096_v24 = vpop.f32.mrf.mxu1  ;;  %v2452_v28 = vadd.f32 %v3093_v27, %v2387_v11  ;;  %v2478_v5 = vmul.f32 %v2873_v20, %v2441_v26  ;;  %v2495_v16 = vadd.f32 %v2874_v49, %v2480_v42 }
 0x180   : > { %v2465_v47 = vadd.f32 %v3096_v24, %v2400_v21  ;;  %v2443_v51 = vpop.f32.mrf.mxu0 }
 0x181   : > { %v2456_v29 = vpop.f32.mrf.mxu1  ;;  %v2481_v58 = vmul.f32 %v2873_v20, %v2452_v28  ;;  %v2444_v37 = vadd.f32 %v2443_v51, %v2379_v8  ;;  %v2493_v46 = vadd.f32 %v2874_v49, %v2478_v5  ;;  %v2503_v38 = vmax.f32 %v2495_v16, 0.0 }
 0x182   : > { %v2484_v56 = vmul.f32 %v2873_v20, %v2465_v47  ;;  %v2457_v36 = vadd.f32 %v2456_v29, %v2392_v18 }
 0x183   : > { %v3097_v19 = vpop.f32.mrf.mxu1  ;;  %v2496_v50 = vadd.f32 %v2874_v49, %v2481_v58  ;;  %v2479_v2 = vmul.f32 %v2873_v20, %v2444_v37  ;;  %v2501_v35 = vmax.f32 %v2493_v46, 0.0 }
 0x184   : > { %v2482_v39 = vmul.f32 %v2873_v20, %v2457_v36  ;;  %v2468_v44 = vadd.f32 %v3097_v19, %v2403_v22  ;;  %v2499_v62 = vadd.f32 %v2874_v49, %v2484_v56 }
 0x185   : > { %v2459_v61 = vpop.f32.mrf.mxu1  ;;  %v2504_v52 = vmax.f32 %v2496_v50, 0.0  ;;  %v2494_v9 = vadd.f32 %v2874_v49, %v2479_v2 }
 0x186   : > { %v2485_v32 = vmul.f32 %v2873_v20, %v2468_v44  ;;  %v2460_v63 = vadd.f32 %v2459_v61, %v2395_v45  ;;  %v2497_v40 = vadd.f32 %v2874_v49, %v2482_v39  ;;  %v2507_v13 = vmax.f32 %v2499_v62, 0.0 }
 0x187   : > { %v2887_v53 = vpack.c.bf16 %v2504_v52, %v2503_v38  ;;  %v2502_v60 = vmax.f32 %v2494_v9, 0.0 }
 0x188   : > { %v2500_v43 = vadd.f32 %v2874_v49, %v2485_v32  ;;  %v2483_v34 = vmul.f32 %v2873_v20, %v2460_v63  ;;  %v2505_v12 = vmax.f32 %v2497_v40, 0.0 }
 0x189   : > { %2899 = vst [vmem:[%s197_s7 + $0x8] sm:$0xff] %v2887_v53   ;;  %v2882_v6 = vpack.c.bf16 %v2502_v60, %v2501_v35 }
 0x18a   : > { %v2508_v57 = vmax.f32 %v2500_v43, 0.0  ;;  %v2498_v54 = vadd.f32 %v2874_v49, %v2483_v34 }
 0x18b   : > { %2883 = vst [vmem:[%s197_s7] sm:$0xff] %v2882_v6  }
 0x18c   : > { %v2897_v55 = vpack.c.bf16 %v2508_v57, %v2507_v13  ;;  %v2506_v10 = vmax.f32 %v2498_v54, 0.0 }
 0x18e   : > { %2901 = vst [vmem:[%s197_s7 + $0x18] sm:$0xff] %v2897_v55   ;;  %v2892_v48 = vpack.c.bf16 %v2506_v10, %v2505_v12 }
 0x190   : > { %2900 = vst [vmem:[%s197_s7 + $0x10] sm:$0xff] %v2892_v48  }
 0x191 PF: > { %s14_s15 = sadd.s32 1, %s3247_s15  }
 0x192   : > { %p11_p4 = scmp.ge.s32.totalorder %s14_s15, 4  }
 0x194   :  { %13 = sbr.rel (!%p11_p4) target bundleno = 1 (0x1), region = 68 }

// kernel: _lambda_.11
= control target key start
LH: loop header
LB: loop body
LE: loop exit
PB: predicated region body
PF: predicated region fallthrough
CT: control target
= control target key end

     0   :  { %v57_v9 = vlaneseq  ;;  %v692_v10 = vmov 1966171168   ;;  %s894_s0 = inlined_call_operand.vmem [shape: bf16[2,256], index: 0, kind: input, shape index: {}]   ;;  %s895_s1 = inlined_call_operand.vmem [shape: bf16[256,256], index: 1, kind: input, shape index: {}]   ;;  %s896_s2 = inlined_call_operand.vmem [shape: f32[1,256], index: 2, kind: input, shape index: {}]   ;;  %s897_s3 = inlined_call_operand.vmem [shape: bf16[256,128], index: 3, kind: input, shape index: {}]   ;;  %s898_s4 = inlined_call_operand.vmem [shape: f32[1,128], index: 4, kind: input, shape index: {}]   ;;  %s899_s5 = inlined_call_operand.hbm [shape: f32[2,128], index: 5, kind: output, shape index: {}]  }
   0x1   :  { %v606_v0 = vld [vmem:[%s895_s1 + $0x74] ss:$8 sps:$4 sm:$0xff]   ;;  %v608_v1 = vld [vmem:[%s895_s1 + $0x70] ss:$8 sps:$4 sm:$0xff]   ;;  %v609_v2 = vld [vmem:[%s895_s1 + $0x64] ss:$8 sps:$4 sm:$0xff]   ;;  %v77_v11 = vunpack.c.l.s4 %v692_v10 }
   0x2   :  { %252 = vmatprep.subr.bf16.mxu0 %v606_v0  ;;  %297 = vmatprep.subr.bf16.mxu1 %v606_v0  ;;  %v611_v3 = vld [vmem:[%s895_s1 + $0x60] ss:$8 sps:$4 sm:$0xff]   ;;  %v612_v4 = vld [vmem:[%s895_s1 + $0x54] ss:$8 sps:$4 sm:$0xff]   ;;  %v614_v5 = vld [vmem:[%s895_s1 + $0x50] ss:$8 sps:$4 sm:$0xff]  }
   0x3   :  { %253 = vmatpush1.bf16.msra.mxu0 %v608_v1  ;;  %298 = vmatpush1.bf16.msra.mxu1 %v608_v1  ;;  %v615_v6 = vld [vmem:[%s895_s1 + $0x44] ss:$8 sps:$4 sm:$0xff]   ;;  %v617_v7 = vld [vmem:[%s895_s1 + $0x40] ss:$8 sps:$4 sm:$0xff]   ;;  %v618_v8 = vld [vmem:[%s895_s1 + $0x34] ss:$8 sps:$4 sm:$0xff]   ;;  %v78_v15 = vunpack.c.0.s8 %v77_v11 }
   0x4   :  { %254 = vmatprep.subr.bf16.mxu0 %v609_v2  ;;  %299 = vmatprep.subr.bf16.mxu1 %v609_v2  ;;  %v620_v12 = vld [vmem:[%s895_s1 + $0x30] ss:$8 sps:$4 sm:$0xff]   ;;  %v621_v13 = vld [vmem:[%s895_s1 + $0x24] ss:$8 sps:$4 sm:$0xff]   ;;  %v757_v14 = vshrl.u32 %v57_v9, 7 }
   0x5   :  { %v623_v16 = vld [vmem:[%s895_s1 + $0x20] ss:$8 sps:$4 sm:$0xff]   ;;  %v624_v17 = vld [vmem:[%s895_s1 + $0x14] ss:$8 sps:$4 sm:$0xff]   ;;  %v626_v19 = vld [vmem:[%s895_s1 + $0x10] ss:$8 sps:$4 sm:$0xff]  }
   0x6   :  { %v766_v18 = vsub.s32 %v78_v15, %v757_v14  ;;  %v774_v20 = vld.sshfl [vmem:[%s894_s0] sm:$0x11 pattern:$0x75316420]  ;;  %v627_v21 = vld [vmem:[%s895_s1 + $0x4] ss:$8 sps:$4 sm:$0xff]  }
   0x7   :  { %255 = vmatpush1.bf16.msra.mxu0 %v611_v3  ;;  %300 = vmatpush1.bf16.msra.mxu1 %v611_v3  ;;  %v75_v22 = vcombine.high %v774_v20, %v774_v20  ;;  %v629_v24 = vld [vmem:[%s895_s1] ss:$8 sps:$4 sm:$0xff]   ;;  %v630_v25 = vld [vmem:[%s895_s1 + $0xf4] ss:$8 sps:$4 sm:$0xff]   ;;  %v632_v26 = vld [vmem:[%s895_s1 + $0xf0] ss:$8 sps:$4 sm:$0xff]  }
   0x8   :  { %256 = vmatprep.subr.bf16.mxu0 %v612_v4  ;;  %301 = vmatprep.subr.bf16.mxu1 %v612_v4  ;;  %v633_v27 = vld [vmem:[%s895_s1 + $0xe4] ss:$8 sps:$4 sm:$0xff]  }
   0x9   :  { %v89_v23 = vrot.slane %v75_v22, %v766_v18 }
   0xb   :  { %257 = vmatpush1.bf16.msra.mxu0 %v614_v5  ;;  %302 = vmatpush1.bf16.msra.mxu1 %v614_v5 }
   0xc   :  { %258 = vmatprep.subr.bf16.mxu0 %v615_v6  ;;  %303 = vmatprep.subr.bf16.mxu1 %v615_v6 }
   0xd   :  { %284 = vmatprep.mubr.bf16.mxu0 %v89_v23 }
   0xf   :  { %259 = vmatpush1.bf16.msra.mxu0 %v617_v7  ;;  %304 = vmatpush1.bf16.msra.mxu1 %v617_v7 }
  0x10   :  { %260 = vmatprep.subr.bf16.mxu0 %v618_v8  ;;  %305 = vmatprep.subr.bf16.mxu1 %v618_v8 }
  0x13   :  { %261 = vmatpush1.bf16.msra.mxu0 %v620_v12  ;;  %306 = vmatpush1.bf16.msra.mxu1 %v620_v12 }
  0x14   :  { %262 = vmatprep.subr.bf16.mxu0 %v621_v13  ;;  %307 = vmatprep.subr.bf16.mxu1 %v621_v13 }
  0x17   :  { %263 = vmatpush1.bf16.msra.mxu0 %v623_v16  ;;  %308 = vmatpush1.bf16.msra.mxu1 %v623_v16 }
  0x18   :  { %264 = vmatprep.subr.bf16.mxu0 %v624_v17  ;;  %309 = vmatprep.subr.bf16.mxu1 %v624_v17 }
  0x1b   :  { %265 = vmatpush1.bf16.msra.mxu0 %v626_v19  ;;  %310 = vmatpush1.bf16.msra.mxu1 %v626_v19 }
  0x1c   :  { %266 = vmatprep.subr.bf16.mxu0 %v627_v21  ;;  %311 = vmatprep.subr.bf16.mxu1 %v627_v21 }
  0x1f   :  { %267 = vmatpush1.bf16.msra.mxu0 %v629_v24  ;;  %312 = vmatpush1.bf16.msra.mxu1 %v629_v24 }
  0x20   :  { %268 = vmatprep.subr.bf16.mxu0 %v630_v25  ;;  %313 = vmatprep.subr.bf16.mxu1 %v630_v25 }
  0x21   :  { %10 = vsyncpa [#allocation3], 0  ;;  %v635_v28 = vld [vmem:[%s895_s1 + $0xe0] ss:$8 sps:$4 sm:$0xff]   ;;  %v636_v29 = vld [vmem:[%s895_s1 + $0xd4] ss:$8 sps:$4 sm:$0xff]   ;;  %v82_v41 = vrot.slane %v774_v20, %v766_v18 }
  0x22   :  { %v638_v30 = vld [vmem:[%s895_s1 + $0xd0] ss:$8 sps:$4 sm:$0xff]   ;;  %v639_v31 = vld [vmem:[%s895_s1 + $0xc4] ss:$8 sps:$4 sm:$0xff]   ;;  %v641_v32 = vld [vmem:[%s895_s1 + $0xc0] ss:$8 sps:$4 sm:$0xff]  }
  0x23   :  { %269 = vmatpush2.bf16.msra.mxu0 %v632_v26  ;;  %314 = vmatpush2.bf16.msra.mxu1 %v632_v26  ;;  %v642_v33 = vld [vmem:[%s895_s1 + $0xb4] ss:$8 sps:$4 sm:$0xff]   ;;  %v644_v34 = vld [vmem:[%s895_s1 + $0xb0] ss:$8 sps:$4 sm:$0xff]   ;;  %v645_v35 = vld [vmem:[%s895_s1 + $0xa4] ss:$8 sps:$4 sm:$0xff]  }
  0x24   :  { %270 = vmatprep.subr.bf16.mxu0 %v633_v27  ;;  %315 = vmatprep.subr.bf16.mxu1 %v633_v27  ;;  %v647_v36 = vld [vmem:[%s895_s1 + $0xa0] ss:$8 sps:$4 sm:$0xff]   ;;  %v648_v37 = vld [vmem:[%s895_s1 + $0x94] ss:$8 sps:$4 sm:$0xff]   ;;  %v650_v38 = vld [vmem:[%s895_s1 + $0x90] ss:$8 sps:$4 sm:$0xff]  }
  0x25   :  { %v651_v39 = vld [vmem:[%s895_s1 + $0x84] ss:$8 sps:$4 sm:$0xff]   ;;  %v653_v40 = vld [vmem:[%s895_s1 + $0x80] ss:$8 sps:$4 sm:$0xff]   ;;  %v654_v42 = vld [vmem:[%s897_s3 + $0x78] sm:$0xff]   ;;  %v59_v54 = vsub.s32 0, %v757_v14 }
  0x26   :  { %v655_v43 = vld [vmem:[%s897_s3 + $0x38] sm:$0xff]   ;;  %v656_v44 = vld [vmem:[%s897_s3 + $0x70] sm:$0xff]   ;;  %v658_v46 = vld [vmem:[%s897_s3 + $0x68] sm:$0xff]   ;;  %v63_v56 = vsub.s32 1, %v757_v14 }
  0x27   :  { %271 = vmatpush2.bf16.msra.mxu0 %v635_v28  ;;  %316 = vmatpush2.bf16.msra.mxu1 %v635_v28  ;;  %v657_v45 = vld [vmem:[%s897_s3 + $0x30] sm:$0xff]   ;;  %v659_v47 = vld [vmem:[%s897_s3 + $0x28] sm:$0xff]   ;;  %v660_v48 = vld [vmem:[%s897_s3 + $0x60] sm:$0xff]  }
  0x28   :  { %272 = vmatprep.subr.bf16.mxu0 %v636_v29  ;;  %317 = vmatprep.subr.bf16.mxu1 %v636_v29  ;;  %v661_v49 = vld [vmem:[%s897_s3 + $0x20] sm:$0xff]   ;;  %v662_v50 = vld [vmem:[%s897_s3 + $0x58] sm:$0xff]   ;;  %v664_v52 = vld [vmem:[%s897_s3 + $0x50] sm:$0xff]  }
  0x29   :  { %v663_v51 = vld [vmem:[%s897_s3 + $0x18] sm:$0xff]   ;;  %v665_v53 = vld [vmem:[%s897_s3 + $0x10] sm:$0xff]   ;;  %v55_v55 = vld [vmem:[%s896_s2] sm:$0x3] }
  0x2a   :  { %v60_v57 = vrot.slane %v55_v55, %v59_v54  ;;  %v64_v58 = vrot.slane %v55_v55, %v63_v56  ;;  %v666_v5 = vld [vmem:[%s897_s3 + $0x48] sm:$0xff]   ;;  %v668_v7 = vld [vmem:[%s897_s3 + $0x40] sm:$0xff]  }
  0x2b   :  { %273 = vmatpush2.bf16.msra.mxu0 %v638_v30  ;;  %318 = vmatpush2.bf16.msra.mxu1 %v638_v30  ;;  %v667_v6 = vld [vmem:[%s897_s3 + $0x8] sm:$0xff]   ;;  %v669_v8 = vld [vmem:[%s897_s3] sm:$0xff]   ;;  %s693_s3 = smov [#allocation2]  }
  0x2c   :  { %274 = vmatprep.subr.bf16.mxu0 %v639_v31  ;;  %319 = vmatprep.subr.bf16.mxu1 %v639_v31  ;;  %v565_v21 = vld [vmem:[%s898_s4] ss:$0 sm:$0xff]  ;;  %s524_s14 = sshll.u32 %s693_s3, 4  ;;  %s525_s14 = int_to_ptr.vmem [resolvable:$true] %s524_s14 }
  0x2d   :  { %s670_s15 = scalar_lea.vmem %s525_s14, 32  ;;  %p675_p1 = scmp.lt.s32.totalorder %s525_s14, %s525_s14 }
  0x2e   :  { %p671_p0 = scmp.ne.s32.totalorder %s525_s14, %s670_s15  ;;  %p676_p2 = scmp.lt.s32.totalorder %s670_s15, %s670_s15 }
  0x2f   :  { %275 = vmatpush2.bf16.msra.mxu0 %v641_v32  ;;  %320 = vmatpush2.bf16.msra.mxu1 %v641_v32 }
  0x30   :  { %276 = vmatprep.subr.bf16.mxu0 %v642_v33  ;;  %321 = vmatprep.subr.bf16.mxu1 %v642_v33  ;;  %p677_p3 = por %p676_p2, %p675_p1 }
  0x32   :  { %p678_p4 = pnand %p677_p3, %p671_p0 }
  0x33   :  { %277 = vmatpush2.bf16.msra.mxu0 %v644_v34  ;;  %322 = vmatpush2.bf16.msra.mxu1 %v644_v34 }
  0x34   :  { %278 = vmatprep.subr.bf16.mxu0 %v645_v35  ;;  %323 = vmatprep.subr.bf16.mxu1 %v645_v35 }
  0x37   :  { %279 = vmatpush2.bf16.msra.mxu0 %v647_v36  ;;  %324 = vmatpush2.bf16.msra.mxu1 %v647_v36 }
  0x38   :  { %280 = vmatprep.subr.bf16.mxu0 %v648_v37  ;;  %325 = vmatprep.subr.bf16.mxu1 %v648_v37 }
  0x3b   :  { %281 = vmatpush2.bf16.msra.mxu0 %v650_v38  ;;  %326 = vmatpush2.bf16.msra.mxu1 %v650_v38 }
  0x3c   :  { %282 = vmatprep.subr.bf16.mxu0 %v651_v39  ;;  %327 = vmatprep.subr.bf16.mxu1 %v651_v39 }
  0x3f   :  { %283 = vmatpush2.bf16.msra.mxu0 %v653_v40  ;;  %328 = vmatpush2.bf16.msra.mxu1 %v653_v40 }
  0x40   :  { %582 = vmatprep.subr.bf16.mxu0 %v654_v42 }
  0x42   :  { %285 = vmatmul.mubr.bf16.vlgmr.msra.gmra.mxu0 %v82_v41 }
  0x43   :  { %583 = vmatpush3.bf16.msra.mxu0 %v655_v43 }
  0x44   :  { %584 = vmatprep.subr.bf16.mxu0 %v656_v44 }
  0x47   :  { %585 = vmatpush3.bf16.msra.mxu0 %v657_v45 }
  0x48   :  { %586 = vmatprep.subr.bf16.mxu0 %v658_v46 }
  0x4b   :  { %587 = vmatpush3.bf16.msra.mxu0 %v659_v47 }
  0x4c   :  { %588 = vmatprep.subr.bf16.mxu0 %v660_v48 }
  0x4f   :  { %589 = vmatpush3.bf16.msra.mxu0 %v661_v49 }
  0x50   :  { %590 = vmatprep.subr.bf16.mxu0 %v662_v50 }
  0x53   :  { %591 = vmatpush3.bf16.msra.mxu0 %v663_v51 }
  0x54   :  { %592 = vmatprep.subr.bf16.mxu0 %v664_v52 }
  0x57   :  { %593 = vmatpush3.bf16.msra.mxu0 %v665_v53 }
  0x58   :  { %594 = vmatprep.subr.bf16.mxu0 %v666_v5 }
  0x5b   :  { %595 = vmatpush3.bf16.msra.mxu0 %v667_v6 }
  0x5c   :  { %596 = vmatprep.subr.bf16.mxu0 %v668_v7 }
  0x5f   :  { %597 = vmatpush3.bf16.msra.mxu0 %v669_v8 }
 0x102   :  { %v286_v59 = vpop.f32.mrf.mxu0 }
 0x103   :  { %v287_v60 = vadd.f32 %v286_v59, %v60_v57 }
 0x104   :  { %v288_v61 = vpop.f32.mrf.mxu0 }
 0x105   :  { %v289_v62 = vadd.f32 %v288_v61, %v64_v58  ;;  %v293_v63 = vmax.f32 %v287_v60, 0.0 }
 0x106   :  { %v290_v0 = vpop.f32.mrf.mxu0 }
 0x107   :  { %v294_v1 = vmax.f32 %v289_v62, 0.0  ;;  %v295_v4 = vpack.c.bf16 %v293_v63, %v293_v63 }
 0x108   :  { %v291_v2 = vpop.f32.mrf.mxu0 }
 0x109   :  { %v296_v3 = vpack.c.bf16 %v294_v1, %v294_v1 }
 0x10b   :  { %329 = vmatprep.mubr.bf16.mxu1 %v296_v3 }
 0x10c   :  { %330 = vmatmul.mubr.bf16.vlgmr.msra.gmra.mxu1 %v295_v4 }
 0x1cc   :  { %v331_v9 = vpop.f32.mrf.mxu1 }
 0x1cd   :  { %v332_v10 = vadd.f32 %v331_v9, %v60_v57 }
 0x1ce   :  { %v333_v11 = vpop.f32.mrf.mxu1 }
 0x1cf   :  { %v334_v12 = vadd.f32 %v333_v11, %v64_v58  ;;  %v338_v13 = vmax.f32 %v332_v10, 0.0 }
 0x1d0   :  { %v335_v14 = vpop.f32.mrf.mxu1 }
 0x1d1   :  { %v339_v15 = vmax.f32 %v334_v12, 0.0  ;;  %v340_v18 = vpack.c.bf16 %v338_v13, %v338_v13 }
 0x1d2   :  { %v336_v16 = vpop.f32.mrf.mxu1 }
 0x1d3   :  { %v341_v17 = vpack.c.bf16 %v339_v15, %v339_v15 }
 0x1d5   :  { %509 = vmatprep.mubr.bf16.mxu0 %v341_v17 }
 0x1d6   :  { %510 = vmatmul.mubr.bf16.vlgmr.msra.gmra.mxu0 %v340_v18 }
 0x296   :  { %v598_v19 = vpop.f32.mrf.mxu0 }
 0x298   :  { %v599_v20 = vpop.f32.mrf.mxu0 }
 0x299   :  { %v600_v22 = vadd.f32 %v599_v20, %v598_v19 }
 0x29a   :  { %v601_v23 = vpop.f32.mrf.mxu0 }
 0x29b   :  { %v512_v24 = vadd.f32 %v600_v22, %v565_v21 }
 0x29c   :  { %v602_v25 = vpop.f32.mrf.mxu0 }
 0x29d   :  { %517 = vst [vmem:[#allocation2] sm:$0x3] %v512_v24 }
 0x29e   :  { %681 = shalt.err (!%p678_p4)
}
 0x29f   :  { %527 = dma.vmem_to_hbm [thread:$0]  %s525_s14, 32, %s899_s5, [#allocation3]  }
 0x2a0   :  { %690 = dma.done.wait [#allocation3], 32  }
 0x2a1   :  { %691 = vsyncadd [#allocation3], 4294967264 }
 0x2a2   :  { %531 = vsyncpa [#allocation3], 1 }

// kernel: _lambda_.6
= control target key start
LH: loop header
LB: loop body
LE: loop exit
PB: predicated region body
PF: predicated region fallthrough
CT: control target
= control target key end

     0   :  { %s6828_s15 = smov 0   ;;  %s8379_s0 = inlined_call_operand.vmem [shape: bf16[2,16,16,128], index: 0, kind: input, shape index: {}]   ;;  %s8380_s1 = inlined_call_operand.vmem [shape: bf16[1152,128], index: 1, kind: input, shape index: {}]   ;;  %s8381_s2 = inlined_call_operand.vmem [shape: f32[1,128], index: 2, kind: input, shape index: {}]   ;;  %s8382_s3 = inlined_call_operand.vmem [shape: f32[1,128], index: 3, kind: input, shape index: {}]   ;;  %s8383_s4 = inlined_call_operand.vmem [shape: bf16[2,16,16,128], index: 4, kind: output, shape index: {}]  }
   0x1 LB: > { %s5549_s16 = sadd.s32 4294967295, %s6800_s15   ;;  %p5553_p0 = scmp.ge.s32.totalorder %s6800_s15, 1  ;;  %s6800_s15 = sphi %s6828_s15, %s14_s15  }
   0x2   : > { %p162_p1 = scmp.lt.s32.totalorder %s6800_s15, 3 }
   0x4   : > { %p163_p2 = pnand %p5553_p0, %p162_p1 }
   0x6   : > { %166 = sbr.rel (%p163_p2) target bundleno = 732 (0x2dc), region = 36 }
   0xb   : > { %v6839_v0 = vld [vmem:[%s8380_s1 + $0x78] sm:$0xff]   ;;  %v6802_v2 = vmov 0   ;;  %v6534_v3 = vld [vmem:[%s8380_s1 + $0x70] sm:$0xff]   ;;  %p188_p3 = scmp.lt.s32.totalorder %s5549_s16, 1  ;;  %v6536_v5 = vld [vmem:[%s8380_s1 + $0x68] sm:$0xff]   ;;  %vm849_vm1 = vcmask 1042432  }
   0xc   : > { %v6844_v1 = vld [vmem:[%s8380_s1 + $0x38] sm:$0xff]   ;;  %200 = vst [vmem:[#allocation2 + $0x4] sm:$0xf] %v6802_v2  ;;  %201 = vst [vmem:[#allocation2 + $0x8] sm:$0xf] %v6802_v2  ;;  %5987 = vmatprep.subr.bf16.mxu0 %v6839_v0  ;;  %6507 = vmatprep.subr.bf16.mxu1 %v6839_v0  ;;  %v6535_v4 = vld [vmem:[%s8380_s1 + $0x30] sm:$0xff]  }
   0xd   : > { %199 = vst [vmem:[#allocation2] sm:$0xf] %v6802_v2  ;;  %202 = vst [vmem:[#allocation2 + $0xc] sm:$0xf] %v6802_v2  ;;  %5988 = vmatpush3.bf16.msra.mxu0 %v6844_v1  ;;  %6515 = vmatpush3.bf16.msra.mxu1 %v6844_v1  ;;  %s8669_s16 = smov (!%p188_p3, %s5549_s16), 1  ;;  %v6537_v6 = vld [vmem:[%s8380_s1 + $0x28] sm:$0xff]  }
   0xe   : > { %203 = vst [vmem:[#allocation2 + $0x10] sm:$0xf] %v6802_v2  ;;  %204 = vst [vmem:[#allocation2 + $0x14] sm:$0xf] %v6802_v2  ;;  %5989 = vmatprep.subr.bf16.mxu0 %v6534_v3  ;;  %6508 = vmatprep.subr.bf16.mxu1 %v6534_v3  ;;  %v6538_v7 = vld [vmem:[%s8380_s1 + $0x60] sm:$0xff]   ;;  %s5858_s5 = sshll.u32 %s8669_s16, 7 }
   0xf   : > { %205 = vst [vmem:[#allocation2 + $0x18] sm:$0xf] %v6802_v2  ;;  %206 = vst [vmem:[#allocation2 + $0x1c] sm:$0xf] %v6802_v2  ;;  %v6539_v8 = vld [vmem:[%s8380_s1 + $0x20] sm:$0xff]   ;;  %v6540_v9 = vld [vmem:[%s8380_s1 + $0x58] sm:$0xff]   ;;  %s6955_s12 = scalar_lea.vmem %s8379_s0, %s5858_s5  ;;  %s8144_s11 = scalar_lea.vmem %s8383_s4, %s5858_s5 }
  0x10   : > { %207 = vst [vmem:[#allocation2 + $0x20] sm:$0xf] %v6802_v2  ;;  %208 = vst [vmem:[#allocation2 + $0x24] sm:$0xf] %v6802_v2  ;;  %v6541_v10 = vld [vmem:[%s8380_s1 + $0x18] sm:$0xff]   ;;  %v6542_v11 = vld [vmem:[%s8380_s1 + $0x50] sm:$0xff]  }
  0x11   : > { %209 = vst [vmem:[#allocation2 + $0x28] sm:$0xf] %v6802_v2  ;;  %210 = vst [vmem:[#allocation2 + $0x2c] sm:$0xf] %v6802_v2  ;;  %5990 = vmatpush3.bf16.msra.mxu0 %v6535_v4  ;;  %6516 = vmatpush3.bf16.msra.mxu1 %v6535_v4  ;;  %v293_v14 = vld [vmem:[%s6955_s12 + $0x58] sm:$0xff]   ;;  %v6543_v19 = vld [vmem:[%s8380_s1 + $0x10] sm:$0xff]  }
  0x12   : > { %211 = vst [vmem:[#allocation2 + $0x30] sm:$0xf] %v6802_v2  ;;  %212 = vst [vmem:[#allocation2 + $0x34] sm:$0xf] %v6802_v2  ;;  %5991 = vmatprep.subr.bf16.mxu0 %v6536_v5  ;;  %6509 = vmatprep.subr.bf16.mxu1 %v6536_v5  ;;  %v6544_v23 = vld [vmem:[%s8380_s1 + $0x48] sm:$0xff]   ;;  %v6546_v32 = vld [vmem:[%s8380_s1 + $0x40] sm:$0xff]  }
  0x13   : > { %213 = vst [vmem:[#allocation2 + $0x38] sm:$0xf] %v6802_v2  ;;  %214 = vst [vmem:[#allocation2 + $0x3c] sm:$0xf] %v6802_v2  ;;  %v337_v12 = vld [vmem:[#allocation2 + $0x4] sm:$0xf] }
  0x14   : > { %215 = vst [vmem:[#allocation2 + $0x40] sm:$0xf] %v6802_v2  ;;  %216 = vst [vmem:[#allocation2 + $0x44] sm:$0xf] %v6802_v2  ;;  %v338_v13 = vld [vmem:[#allocation2 + $0x8] sm:$0xf] }
  0x15   : > { %217 = vst [vmem:[#allocation2 + $0x48] sm:$0xf] %v6802_v2  ;;  %218 = vst [vmem:[#allocation2 + $0x4c] sm:$0xf] %v6802_v2  ;;  %5992 = vmatpush3.bf16.msra.mxu0 %v6537_v6  ;;  %6517 = vmatpush3.bf16.msra.mxu1 %v6537_v6  ;;  %v5590_v15 = vcombine.low %v337_v12, %v338_v13  ;;  %v336_v16 = vld [vmem:[#allocation2] sm:$0x8]  ;;  %v5559_v17 = vcombine.low %v338_v13, %v338_v13 }
  0x16   : > { %219 = vst [vmem:[#allocation2 + $0x50] sm:$0xf] %v6802_v2  ;;  %220 = vst [vmem:[#allocation2 + $0x54] sm:$0xf] %v6802_v2  ;;  %5993 = vmatprep.subr.bf16.mxu0 %v6538_v7  ;;  %6510 = vmatprep.subr.bf16.mxu1 %v6538_v7  ;;  %v5558_v18 = vcombine.low %v336_v16, %v337_v12  ;;  %vm1634_vm0 = vsmask.f32 4352 }
  0x17   : > { %221 = vst [vmem:[#allocation2 + $0x58] sm:$0xf] %v6802_v2  ;;  %222 = vst [vmem:[#allocation2 + $0x5c] sm:$0xf] %v6802_v2  ;;  %v674_v20 = vshrl.u32 %v5590_v15, 16  ;;  %v677_v21 = vshll.u32 %v5590_v15, 16 }
  0x18   : > { %223 = vst [vmem:[#allocation2 + $0x60] sm:$0xf] %v6802_v2  ;;  %224 = vst [vmem:[#allocation2 + $0x64] sm:$0xf] %v6802_v2  ;;  %v1644_v22 = vshrl.u32 %v5559_v17, 16  ;;  %v1636_v24 = vshrl.u32 %v5558_v18, 16 }
  0x19   : > { %225 = vst [vmem:[#allocation2 + $0x68] sm:$0xf] %v6802_v2  ;;  %226 = vst [vmem:[#allocation2 + $0x6c] sm:$0xf] %v6802_v2  ;;  %5994 = vmatpush3.bf16.msra.mxu0 %v6539_v8  ;;  %6518 = vmatpush3.bf16.msra.mxu1 %v6539_v8  ;;  %v1639_v25 = vshll.u32 %v5558_v18, 16  ;;  %v1647_v26 = vshll.u32 %v5559_v17, 16 }
  0x1a   : > { %227 = vst [vmem:[#allocation2 + $0x70] sm:$0xf] %v6802_v2  ;;  %228 = vst [vmem:[#allocation2 + $0x74] sm:$0xf] %v6802_v2  ;;  %5995 = vmatprep.subr.bf16.mxu0 %v6540_v9  ;;  %6511 = vmatprep.subr.bf16.mxu1 %v6540_v9  ;;  %v6545_v28 = vld [vmem:[%s8380_s1 + $0x8] sm:$0xff]   ;;  %v676_v29 = vrot.slane %v674_v20, 4 }
  0x1b   : > { %229 = vst [vmem:[#allocation2 + $0x78] sm:$0xf] %v6802_v2  ;;  %230 = vst [vmem:[#allocation2 + $0x7c] sm:$0xf] %v6802_v2  ;;  %v679_v30 = vrot.slane %v677_v21, 5  ;;  %v6973_v31 = vrot.slane %v5590_v15, 5 }
  0x1c   : > { %231 = vst [vmem:[#allocation2 + $0x80] sm:$0xf] %v6802_v2  ;;  %232 = vst [vmem:[#allocation2 + $0x84] sm:$0xf] %v6802_v2  ;;  %v1638_v33 = vrot.slane %v1636_v24, 3  ;;  %v1641_v34 = vrot.slane %v1639_v25, 4 }
  0x1d   : > { %233 = vst [vmem:[#allocation2 + $0x88] sm:$0xf] %v6802_v2  ;;  %234 = vst [vmem:[#allocation2 + $0x8c] sm:$0xf] %v6802_v2  ;;  %5996 = vmatpush3.bf16.msra.mxu0 %v6541_v10  ;;  %6519 = vmatpush3.bf16.msra.mxu1 %v6541_v10  ;;  %v1646_v35 = vrot.slane %v1644_v22, 3  ;;  %v1649_v36 = vrot.slane %v1647_v26, 4  ;;  %v680_v37 = vor.u32 %v679_v30, %v676_v29 }
  0x1e   : > { %235 = vst [vmem:[#allocation2 + $0x90] sm:$0xf] %v6802_v2  ;;  %236 = vst [vmem:[#allocation2 + $0x94] sm:$0xf] %v6802_v2  ;;  %5997 = vmatprep.subr.bf16.mxu0 %v6542_v11  ;;  %6512 = vmatprep.subr.bf16.mxu1 %v6542_v11  ;;  %v1642_v40 = vor.u32 %v1641_v34, %v1638_v33  ;;  %v271_v47 = vld [vmem:[%s6955_s12] sm:$0xff]   ;;  %v1662_v49 = vshrl.u32 %v6973_v31, 16 }
  0x1f   : > { %237 = vst [vmem:[#allocation2 + $0x98] sm:$0xf] %v6802_v2  ;;  %238 = vst [vmem:[#allocation2 + $0x9c] sm:$0xf] %v6802_v2  ;;  %v1653_v41 = vshrl.u32 %v680_v37, 16  ;;  %v1656_v42 = vshll.u32 %v680_v37, 16  ;;  %v1650_v45 = vor.u32 %v1649_v36, %v1646_v35 }
  0x20   : > { %239 = vst [vmem:[#allocation2 + $0xa0] sm:$0xf] %v6802_v2  ;;  %240 = vst [vmem:[#allocation2 + $0xa4] sm:$0xf] %v6802_v2  ;;  %v295_v48 = vld [vmem:[%s6955_s12 + $0x60] sm:$0xff]   ;;  %v1665_v50 = vshll.u32 %v6973_v31, 16 }
  0x21   : > { %241 = vst [vmem:[#allocation2 + $0xa8] sm:$0xf] %v6802_v2  ;;  %242 = vst [vmem:[#allocation2 + $0xac] sm:$0xf] %v6802_v2  ;;  %5998 = vmatpush3.bf16.msra.mxu0 %v6543_v19  ;;  %6520 = vmatpush3.bf16.msra.mxu1 %v6543_v19  ;;  %v6547_v51 = vld [vmem:[%s8380_s1] sm:$0xff]   ;;  %v1655_v52 = vrot.slane %v1653_v41, 3  ;;  %v1651_v8 = vsel %vm1634_vm0, %v1642_v40, %v1650_v45 }
  0x22   : > { %243 = vst [vmem:[#allocation2 + $0xb0] sm:$0xf] %v6802_v2  ;;  %244 = vst [vmem:[#allocation2 + $0xb4] sm:$0xf] %v6802_v2  ;;  %5999 = vmatprep.subr.bf16.mxu0 %v6544_v23  ;;  %6513 = vmatprep.subr.bf16.mxu1 %v6544_v23  ;;  %v1658_v53 = vrot.slane %v1656_v42, 4  ;;  %v6552_v60 = vld [vmem:[%s8380_s1 + $0xf8] sm:$0xff]  }
  0x23   : > { %245 = vst [vmem:[#allocation2 + $0xb8] sm:$0xf] %v6802_v2  ;;  %246 = vst [vmem:[#allocation2 + $0xbc] sm:$0xf] %v6802_v2  ;;  %v6555_v61 = vld [vmem:[%s8380_s1 + $0x178] sm:$0xff]   ;;  %v7000_v15 = vrot.slane %v1662_v49, 3 }
  0x24   : > { %247 = vst [vmem:[#allocation2 + $0xc0] sm:$0xf] %v6802_v2  ;;  %248 = vst [vmem:[#allocation2 + $0xc4] sm:$0xf] %v6802_v2  ;;  %v1659_v62 = vor.u32 %v1658_v53, %v1655_v52  ;;  %v6557_v1 = vld [vmem:[%s8380_s1 + $0x138] sm:$0xff]   ;;  %v297_v25 = vld [vmem:[%s6955_s12 + $0x68] sm:$0xff]  }
  0x25   : > { %249 = vst [vmem:[#allocation2 + $0xc8] sm:$0xf] %v6802_v2  ;;  %250 = vst [vmem:[#allocation2 + $0xcc] sm:$0xf] %v6802_v2  ;;  %6000 = vmatpush3.bf16.msra.mxu0 %v6545_v28  ;;  %6521 = vmatpush3.bf16.msra.mxu1 %v6545_v28  ;;  %v339_v6 = vld [vmem:[#allocation2 + $0x10] sm:$0x8] }
  0x26   : > { %251 = vst [vmem:[#allocation2 + $0xd0] sm:$0xf] %v6802_v2  ;;  %252 = vst [vmem:[#allocation2 + $0xd4] sm:$0xf] %v6802_v2  ;;  %6001 = vmatprep.subr.bf16.mxu0 %v6546_v32  ;;  %6514 = vmatprep.subr.bf16.mxu1 %v6546_v32  ;;  %v6553_v26 = vld [vmem:[%s8380_s1 + $0xb8] sm:$0xff]   ;;  %v6575_v37 = vld [vmem:[%s8380_s1 + $0x170] sm:$0xff]  }
  0x27   : > { %253 = vst [vmem:[#allocation2 + $0xd8] sm:$0xf] %v6802_v2  ;;  %254 = vst [vmem:[#allocation2 + $0xdc] sm:$0xf] %v6802_v2  ;;  %4451 = vmatprep.mubr.bf16.mxu0 %v1659_v62  ;;  %v6556_v42 = vld [vmem:[%s8380_s1 + $0xb0] sm:$0xff]  }
  0x28   : > { %255 = vst [vmem:[#allocation2 + $0xe0] sm:$0xf] %v6802_v2  ;;  %256 = vst [vmem:[#allocation2 + $0xe4] sm:$0xf] %v6802_v2 }
  0x29   : > { %257 = vst [vmem:[#allocation2 + $0xe8] sm:$0xf] %v6802_v2  ;;  %258 = vst [vmem:[#allocation2 + $0xec] sm:$0xf] %v6802_v2  ;;  %6002 = vmatpush3.bf16.msra.mxu0 %v6547_v51  ;;  %6522 = vmatpush3.bf16.msra.mxu1 %v6547_v51 }
  0x2a   : > { %259 = vst [vmem:[#allocation2 + $0xf0] sm:$0xf] %v6802_v2  ;;  %260 = vst [vmem:[#allocation2 + $0xf4] sm:$0xf] %v6802_v2  ;;  %6099 = vmatprep.subr.bf16.mxu1 %v6552_v60  ;;  %6211 = vmatprep.subr.bf16.mxu0 %v6555_v61 }
  0x2b   : > { %261 = vst [vmem:[#allocation2 + $0xf8] sm:$0xf] %v6802_v2  ;;  %262 = vst [vmem:[#allocation2 + $0xfc] sm:$0xf] %v6802_v2  ;;  %v372_v27 = vld [vmem:[#allocation2 + $0xc0] sm:$0x8] }
  0x2c   : > { %263 = vst [vmem:[#allocation2 + $0x100] sm:$0xf] %v6802_v2  ;;  %264 = vst [vmem:[#allocation2 + $0x104] sm:$0xf] %v6802_v2  ;;  %4452 = vmatmul.mubr.bf16.vlgmr.msra.gmra.mxu0 %v1651_v8 }
  0x2d   : > { %265 = vst [vmem:[#allocation2 + $0x108] sm:$0xf] %v6802_v2  ;;  %266 = vst [vmem:[#allocation2 + $0x10c] sm:$0xf] %v6802_v2  ;;  %v375_v11 = vld [vmem:[#allocation2 + $0xd0] sm:$0x8]  ;;  %6212 = vmatpush3.bf16.msra.mxu0 %v6557_v1 }
  0x2e   : > { %267 = vst [vmem:[#allocation2 + $0x110] sm:$0xf] %v6802_v2  ;;  %268 = vst [vmem:[#allocation2 + $0x114] sm:$0xf] %v6802_v2  ;;  %6213 = vmatprep.subr.bf16.mxu0 %v6575_v37  ;;  %v6567_v37 = vld [vmem:[%s8380_s1 + $0xa0] sm:$0xff]  }
  0x2f   : > { %269 = vst [vmem:[#allocation2 + $0x118] sm:$0xf] %v6802_v2  ;;  %270 = vst [vmem:[#allocation2 + $0x11c] sm:$0xf] %v6802_v2 }
  0x30   : > { %326 = vst [vmem:[#allocation2 + $0xc4] sm:$0xff] %v293_v14   ;;  %304 = vst [vmem:[#allocation2 + $0x14] sm:$0xff] %v271_v47   ;;  %v273_v14 = vld [vmem:[%s6955_s12 + $0x8] sm:$0xff]  }
  0x31   : > { %328 = vst [vmem:[#allocation2 + $0xd4] sm:$0xff] %v295_v48   ;;  %306 = vst [vmem:[#allocation2 + $0x24] sm:$0xff] %v273_v14  }
  0x32   : > { %330 = vst [vmem:[#allocation2 + $0xe4] sm:$0xff] %v297_v25  }
  0x37   : > { %v373_v38 = vld [vmem:[#allocation2 + $0xc4] sm:$0xf]  ;;  %v374_v39 = vld [vmem:[#allocation2 + $0xc8] sm:$0xf]  ;;  %v340_v17 = vld [vmem:[#allocation2 + $0x14] sm:$0xf] }
  0x38   : > { %v6978_v43 = vcombine.low %v373_v38, %v374_v39  ;;  %v5582_v44 = vcombine.low %v372_v27, %v373_v38  ;;  %v5583_v46 = vcombine.low %v374_v39, %v374_v39  ;;  %v341_v18 = vld [vmem:[#allocation2 + $0x18] sm:$0xf]  ;;  %v376_v19 = vld [vmem:[#allocation2 + $0xd4] sm:$0xf]  ;;  %v5560_v24 = vcombine.low %v339_v6, %v340_v17 }
  0x39   : > { %v7003_v22 = vcombine.low %v340_v17, %v341_v18  ;;  %v377_v23 = vld [vmem:[#allocation2 + $0xd8] sm:$0xf]  ;;  %v6554_v27 = vld [vmem:[%s8380_s1 + $0xf0] sm:$0xff]   ;;  %v5561_v29 = vcombine.low %v341_v18, %v341_v18  ;;  %v5584_v30 = vcombine.low %v375_v11, %v376_v19  ;;  %v379_v6 = vld [vmem:[#allocation2 + $0xe4] sm:$0xf] }
  0x3a   : > { %v770_v54 = vshrl.u32 %v6978_v43, 16  ;;  %v773_v55 = vshll.u32 %v6978_v43, 16  ;;  %v3184_v56 = vshrl.u32 %v5582_v44, 16  ;;  %v3187_v57 = vshll.u32 %v5582_v44, 16  ;;  %v6566_v18 = vld [vmem:[%s8380_s1 + $0xe0] sm:$0xff]  }
  0x3b   : > { %v3192_v58 = vshrl.u32 %v5583_v46, 16  ;;  %v3195_v59 = vshll.u32 %v5583_v46, 16  ;;  %v7012_v28 = vcombine.low %v376_v19, %v377_v23  ;;  %v5585_v32 = vcombine.low %v377_v23, %v377_v23 }
  0x3c   : > { %v772_v63 = vrot.slane %v770_v54, 4  ;;  %v775_v0 = vrot.slane %v773_v55, 5  ;;  %v3186_v2 = vrot.slane %v3184_v56, 3  ;;  %v3189_v3 = vrot.slane %v3187_v57, 4  ;;  %v6564_v57 = vld [vmem:[%s8380_s1 + $0xe8] sm:$0xff]  }
  0x3d   : > { %v3194_v4 = vrot.slane %v3192_v58, 3  ;;  %v3197_v5 = vrot.slane %v3195_v59, 4  ;;  %v682_v34 = vshrl.u32 %v7003_v22, 16  ;;  %v685_v35 = vshll.u32 %v7003_v22, 16  ;;  %v343_v58 = vld [vmem:[#allocation2 + $0x24] sm:$0xf] }
  0x3e   : > { %v776_v7 = vor.u32 %v775_v0, %v772_v63  ;;  %v3190_v9 = vor.u32 %v3189_v3, %v3186_v2  ;;  %v1765_v36 = vshrl.u32 %v5560_v24, 16  ;;  %v778_v38 = vshrl.u32 %v7012_v28, 16  ;;  %v344_v63 = vld [vmem:[#allocation2 + $0x28] sm:$0xf]  ;;  %v342_v0 = vld [vmem:[#allocation2 + $0x20] sm:$0x8] }
  0x3f   : > { %v3198_v10 = vor.u32 %v3197_v5, %v3194_v4  ;;  %v781_v39 = vshll.u32 %v7012_v28, 16  ;;  %v1768_v40 = vshll.u32 %v5560_v24, 16  ;;  %v1773_v41 = vshrl.u32 %v5561_v29, 16  ;;  %v6565_v5 = vld [vmem:[%s8380_s1 + $0xa8] sm:$0xff]  }
  0x40   : > { %v3201_v12 = vshrl.u32 %v776_v7, 16  ;;  %v3204_v13 = vshll.u32 %v776_v7, 16  ;;  %v684_v44 = vrot.slane %v682_v34, 4  ;;  %v687_v45 = vrot.slane %v685_v35, 5  ;;  %v6577_v7 = vld [vmem:[%s8380_s1 + $0x130] sm:$0xff]  }
  0x41   : > { %v3199_v16 = vsel %vm1634_vm0, %v3190_v9, %v3198_v10  ;;  %v1767_v46 = vrot.slane %v1765_v36, 3  ;;  %v1776_v47 = vshll.u32 %v5561_v29, 16  ;;  %v780_v48 = vrot.slane %v778_v38, 4  ;;  %6214 = vmatpush3.bf16.msra.mxu0 %v6577_v7  ;;  %v275_v34 = vld [vmem:[%s6955_s12 + $0x10] sm:$0xff]   ;;  %v6589_v7 = vld [vmem:[%s8380_s1 + $0x168] sm:$0xff]  }
  0x42   : > { %v3203_v20 = vrot.slane %v3201_v12, 3  ;;  %v3206_v21 = vrot.slane %v3204_v13, 4  ;;  %v783_v49 = vrot.slane %v781_v39, 5  ;;  %v1770_v51 = vrot.slane %v1768_v40, 4  ;;  %v380_v12 = vld [vmem:[#allocation2 + $0xe8] sm:$0xf]  ;;  %6215 = vmatprep.subr.bf16.mxu0 %v6589_v7 }
  0x43   : > { %v1775_v52 = vrot.slane %v1773_v41, 3  ;;  %v688_v53 = vor.u32 %v687_v45, %v684_v44  ;;  %v1778_v54 = vrot.slane %v1776_v47, 4  ;;  %v3313_v55 = vshrl.u32 %v5584_v30, 16  ;;  %v299_v35 = vld [vmem:[%s6955_s12 + $0x70] sm:$0xff]   ;;  %v378_v41 = vld [vmem:[#allocation2 + $0xe0] sm:$0x8] }
  0x44   : > { %v3207_v33 = vor.u32 %v3206_v21, %v3203_v20  ;;  %v3316_v56 = vshll.u32 %v5584_v30, 16  ;;  %v784_v59 = vor.u32 %v783_v49, %v780_v48  ;;  %v1771_v60 = vor.u32 %v1770_v51, %v1767_v46  ;;  %308 = vst [vmem:[#allocation2 + $0x34] sm:$0xff] %v275_v34   ;;  %332 = vst [vmem:[#allocation2 + $0xf4] sm:$0xff] %v299_v35   ;;  %v6574_v47 = vld [vmem:[%s8380_s1 + $0xd8] sm:$0xff]  }
  0x45   : > { %v3321_v61 = vshrl.u32 %v5585_v32, 16  ;;  %v3324_v62 = vshll.u32 %v5585_v32, 16  ;;  %v1782_v1 = vshrl.u32 %v688_v53, 16  ;;  %v1785_v2 = vshll.u32 %v688_v53, 16 }
  0x46   : > { %4547 = vmatprep.mubr.bf16.mxu1 %v3207_v33  ;;  %v1779_v3 = vor.u32 %v1778_v54, %v1775_v52  ;;  %v3315_v4 = vrot.slane %v3313_v55, 3  ;;  %v3330_v8 = vshrl.u32 %v784_v59, 16  ;;  %v3333_v9 = vshll.u32 %v784_v59, 16 }
  0x47   : > { %4548 = vmatmul.mubr.bf16.vlgmr.msra.gmra.mxu1 %v3199_v16  ;;  %v3318_v10 = vrot.slane %v3316_v56, 4  ;;  %v3323_v11 = vrot.slane %v3321_v61, 3  ;;  %v1784_v13 = vrot.slane %v1782_v1, 3  ;;  %v1787_v14 = vrot.slane %v1785_v2, 4  ;;  %v6578_v1 = vld [vmem:[%s8380_s1 + $0xd0] sm:$0xff]  }
  0x48   : > { %6100 = vmatpush3.bf16.msra.mxu1 %v6553_v26  ;;  %v1780_v16 = vsel %vm1634_vm0, %v1771_v60, %v1779_v3  ;;  %v3326_v17 = vrot.slane %v3324_v62, 4  ;;  %v3332_v19 = vrot.slane %v3330_v8, 3  ;;  %v3335_v20 = vrot.slane %v3333_v9, 4  ;;  %v6576_v60 = vld [vmem:[%s8380_s1 + $0x98] sm:$0xff]   ;;  %v345_v2 = vld [vmem:[#allocation2 + $0x30] sm:$0x8] }
  0x49   : > { %6101 = vmatprep.subr.bf16.mxu1 %v6554_v27  ;;  %v3319_v21 = vor.u32 %v3318_v10, %v3315_v4  ;;  %v7037_v23 = vcombine.low %v343_v58, %v344_v63  ;;  %v1788_v24 = vor.u32 %v1787_v14, %v1784_v13  ;;  %v7039_v26 = vcombine.low %v379_v6, %v380_v12 }
  0x4a   : > { %v3327_v25 = vor.u32 %v3326_v17, %v3323_v11  ;;  %v5562_v27 = vcombine.low %v342_v0, %v343_v58  ;;  %v3336_v29 = vor.u32 %v3335_v20, %v3332_v19  ;;  %v5563_v33 = vcombine.low %v344_v63, %v344_v63  ;;  %v6586_v20 = vld [vmem:[%s8380_s1 + $0xc8] sm:$0xff]  }
  0x4b   : > { %v690_v30 = vshrl.u32 %v7037_v23, 16  ;;  %v693_v32 = vshll.u32 %v7037_v23, 16  ;;  %4459 = vmatprep.mubr.bf16.mxu0 %v1788_v24  ;;  %v786_v38 = vshrl.u32 %v7039_v26, 16  ;;  %v789_v39 = vshll.u32 %v7039_v26, 16  ;;  %v346_v13 = vld [vmem:[#allocation2 + $0x34] sm:$0xf] }
  0x4c   : > { %6102 = vmatpush3.bf16.msra.mxu1 %v6556_v42  ;;  %v3328_v36 = vsel %vm1634_vm0, %v3319_v21, %v3327_v25  ;;  %v1894_v40 = vshrl.u32 %v5562_v27, 16  ;;  %4555 = vmatprep.mubr.bf16.mxu1 %v3336_v29  ;;  %v1897_v45 = vshll.u32 %v5562_v27, 16  ;;  %v1902_v46 = vshrl.u32 %v5563_v33, 16  ;;  %v347_v19 = vld [vmem:[#allocation2 + $0x38] sm:$0xf] }
  0x4d   : > { %6103 = vmatprep.subr.bf16.mxu1 %v6564_v57  ;;  %4460 = vmatmul.mubr.bf16.gmra.mxu0 %v1780_v16  ;;  %v692_v42 = vrot.slane %v690_v30, 4  ;;  %v695_v44 = vrot.slane %v693_v32, 5  ;;  %v788_v48 = vrot.slane %v786_v38, 4  ;;  %v791_v49 = vrot.slane %v789_v39, 5  ;;  %v382_v29 = vld [vmem:[#allocation2 + $0xf4] sm:$0xf] }
  0x4e   : > { %v1896_v51 = vrot.slane %v1894_v40, 3  ;;  %v1905_v52 = vshll.u32 %v5563_v33, 16  ;;  %v1899_v54 = vrot.slane %v1897_v45, 4  ;;  %v1904_v55 = vrot.slane %v1902_v46, 3  ;;  %v383_v30 = vld [vmem:[#allocation2 + $0xf8] sm:$0xf] }
  0x4f   : > { %4556 = vmatmul.mubr.bf16.gmra.mxu1 %v3328_v36  ;;  %v696_v53 = vor.u32 %v695_v44, %v692_v42  ;;  %v5586_v56 = vcombine.low %v378_v41, %v379_v6  ;;  %v792_v57 = vor.u32 %v791_v49, %v788_v48  ;;  %v5587_v59 = vcombine.low %v380_v12, %v380_v12  ;;  %v6579_v12 = vld [vmem:[%s8380_s1 + $0x90] sm:$0xff]   ;;  %v6587_v41 = vld [vmem:[%s8380_s1 + $0x88] sm:$0xff]   ;;  %v6588_v48 = vld [vmem:[%s8380_s1 + $0xc0] sm:$0xff]  }
  0x50   : > { %6104 = vmatpush3.bf16.msra.mxu1 %v6565_v5  ;;  %v1907_v58 = vrot.slane %v1905_v52, 4  ;;  %v1900_v63 = vor.u32 %v1899_v54, %v1896_v51  ;;  %v7070_v27 = vcombine.low %v346_v13, %v347_v19  ;;  %v7072_v34 = vcombine.low %v382_v29, %v383_v30  ;;  %v381_v40 = vld [vmem:[#allocation2 + $0xf0] sm:$0x8]  ;;  %v6591_v42 = vld [vmem:[%s8380_s1 + $0x128] sm:$0xff]   ;;  %v277_v54 = vld [vmem:[%s6955_s12 + $0x18] sm:$0xff]  }
  0x51   : > { %6105 = vmatprep.subr.bf16.mxu1 %v6566_v18  ;;  %v1911_v61 = vshrl.u32 %v696_v53, 16  ;;  %v1914_v62 = vshll.u32 %v696_v53, 16  ;;  %v3442_v0 = vshrl.u32 %v5586_v56, 16  ;;  %v3459_v3 = vshrl.u32 %v792_v57, 16  ;;  %6216 = vmatpush3.bf16.msra.mxu0 %v6591_v42  ;;  %310 = vst [vmem:[#allocation2 + $0x44] sm:$0xff] %v277_v54  }
  0x52   : > { %v3462_v4 = vshll.u32 %v792_v57, 16  ;;  %v1908_v5 = vor.u32 %v1907_v58, %v1904_v55  ;;  %v3445_v6 = vshll.u32 %v5586_v56, 16  ;;  %v3450_v11 = vshrl.u32 %v5587_v59, 16  ;;  %v400_v55 = vld [vmem:[#allocation2 + $0x10] sm:$0x8] }
  0x53   : > { %v1913_v8 = vrot.slane %v1911_v61, 3  ;;  %v1916_v9 = vrot.slane %v1914_v62, 4  ;;  %v3444_v10 = vrot.slane %v3442_v0, 3  ;;  %v3461_v14 = vrot.slane %v3459_v3, 3 }
  0x54   : > { %6106 = vmatpush3.bf16.msra.mxu1 %v6567_v37  ;;  %v3464_v16 = vrot.slane %v3462_v4, 4  ;;  %v1909_v17 = vsel %vm1634_vm0, %v1900_v63, %v1908_v5  ;;  %v3447_v18 = vrot.slane %v3445_v6, 4  ;;  %v3452_v24 = vrot.slane %v3450_v11, 3  ;;  %v6590_v5 = vld [vmem:[%s8380_s1 + $0x80] sm:$0xff]   ;;  %v6599_v11 = vld [vmem:[%s8380_s1 + $0x1f8] sm:$0xff]  }
  0x55   : > { %6107 = vmatprep.subr.bf16.mxu1 %v6574_v47  ;;  %v1917_v21 = vor.u32 %v1916_v9, %v1913_v8  ;;  %v3453_v25 = vshll.u32 %v5587_v59, 16  ;;  %v5564_v35 = vcombine.low %v345_v2, %v346_v13  ;;  %v698_v37 = vshrl.u32 %v7070_v27, 16  ;;  %v402_v9 = vld [vmem:[#allocation2 + $0x18] sm:$0xf] }
  0x56   : > { %v3465_v32 = vor.u32 %v3464_v16, %v3461_v14  ;;  %v3448_v33 = vor.u32 %v3447_v18, %v3444_v10  ;;  %v701_v38 = vshll.u32 %v7070_v27, 16  ;;  %v5565_v39 = vcombine.low %v347_v19, %v347_v19 }
  0x57   : > { %4467 = vmatprep.mubr.bf16.mxu0 %v1917_v21  ;;  %v3455_v36 = vrot.slane %v3453_v25, 4  ;;  %v794_v44 = vshrl.u32 %v7072_v34, 16  ;;  %v797_v45 = vshll.u32 %v7072_v34, 16  ;;  %v2023_v46 = vshrl.u32 %v5564_v35, 16  ;;  %v279_v21 = vld [vmem:[%s6955_s12 + $0x20] sm:$0xff]  }
  0x58   : > { %6108 = vmatpush3.bf16.msra.mxu1 %v6576_v60  ;;  %4563 = vmatprep.mubr.bf16.mxu1 %v3465_v32  ;;  %v2026_v47 = vshll.u32 %v5564_v35, 16  ;;  %v700_v51 = vrot.slane %v698_v37, 4  ;;  %v703_v52 = vrot.slane %v701_v38, 5  ;;  %v2031_v53 = vshrl.u32 %v5565_v39, 16  ;;  %v401_v60 = vld [vmem:[#allocation2 + $0x14] sm:$0xf] }
  0x59   : > { %6109 = vmatprep.subr.bf16.mxu1 %v6578_v1  ;;  %4468 = vmatmul.mubr.bf16.gmra.mxu0 %v1909_v17  ;;  %v3456_v49 = vor.u32 %v3455_v36, %v3452_v24  ;;  %v796_v56 = vrot.slane %v794_v44, 4  ;;  %v799_v57 = vrot.slane %v797_v45, 5  ;;  %v2025_v58 = vrot.slane %v2023_v46, 3  ;;  %312 = vst [vmem:[#allocation2 + $0x54] sm:$0xff] %v279_v21   ;;  %v349_v37 = vld [vmem:[#allocation2 + $0x44] sm:$0xf] }
  0x5a   : > { %v2028_v59 = vrot.slane %v2026_v47, 4  ;;  %v704_v62 = vor.u32 %v703_v52, %v700_v51  ;;  %v2033_v63 = vrot.slane %v2031_v53, 3  ;;  %v2034_v0 = vshll.u32 %v5565_v39, 16  ;;  %v350_v38 = vld [vmem:[#allocation2 + $0x48] sm:$0xf] }
  0x5b   : > { %v3457_v61 = vsel %vm1634_vm0, %v3448_v33, %v3456_v49  ;;  %v800_v1 = vor.u32 %v799_v57, %v796_v56  ;;  %v5588_v3 = vcombine.low %v381_v40, %v382_v29  ;;  %v5589_v4 = vcombine.low %v383_v30, %v383_v30  ;;  %v6608_v49 = vld [vmem:[%s8380_s1 + $0x160] sm:$0xff]  }
  0x5c   : > { %6110 = vmatpush3.bf16.msra.mxu1 %v6579_v12  ;;  %v2029_v2 = vor.u32 %v2028_v59, %v2025_v58  ;;  %v2040_v6 = vshrl.u32 %v704_v62, 16  ;;  %v2043_v7 = vshll.u32 %v704_v62, 16  ;;  %v2036_v8 = vrot.slane %v2034_v0, 4  ;;  %v6598_v59 = vld [vmem:[#allocation2 + $0xc] ss:$0 sps:$4 sm:$0x11]   ;;  %6217 = vmatprep.subr.bf16.mxu0 %v6608_v49 }
  0x5d   : > { %6111 = vmatprep.subr.bf16.mxu1 %v6586_v20  ;;  %4564 = vmatmul.mubr.bf16.gmra.mxu1 %v3457_v61  ;;  %v5622_v10 = vcombine.low %v400_v55, %v401_v60  ;;  %v3588_v12 = vshrl.u32 %v800_v1, 16  ;;  %v3591_v13 = vshll.u32 %v800_v1, 16  ;;  %v3571_v14 = vshrl.u32 %v5588_v3, 16  ;;  %v351_v49 = vld [vmem:[#allocation2 + $0x50] sm:$0x8] }
  0x5e   : > { %v3574_v16 = vshll.u32 %v5588_v3, 16  ;;  %v2042_v17 = vrot.slane %v2040_v6, 3  ;;  %v2045_v18 = vrot.slane %v2043_v7, 4  ;;  %v2037_v19 = vor.u32 %v2036_v8, %v2033_v63 }
  0x5f   : > { %v3579_v20 = vshrl.u32 %v5589_v4, 16  ;;  %v3590_v24 = vrot.slane %v3588_v12, 3  ;;  %v3593_v25 = vrot.slane %v3591_v13, 4  ;;  %v3573_v29 = vrot.slane %v3571_v14, 3 }
  0x60   : > { %6112 = vmatpush3.bf16.msra.mxu1 %v6587_v41  ;;  %v3576_v30 = vrot.slane %v3574_v16, 4  ;;  %v2046_v32 = vor.u32 %v2045_v18, %v2042_v17  ;;  %v2038_v33 = vsel %vm1634_vm0, %v2029_v2, %v2037_v19  ;;  %v3582_v36 = vshll.u32 %v5589_v4, 16  ;;  %v352_v4 = vld [vmem:[#allocation2 + $0x54] sm:$0xf]  ;;  %v281_v16 = vld [vmem:[%s6955_s12 + $0x28] sm:$0xff]  }
  0x61   : > { %6113 = vmatprep.subr.bf16.mxu1 %v6588_v48  ;;  %v3581_v35 = vrot.slane %v3579_v20, 3  ;;  %v3594_v39 = vor.u32 %v3593_v25, %v3590_v24  ;;  %v7097_v41 = vcombine.low %v349_v37, %v350_v38  ;;  %v5623_v42 = vcombine.low %v402_v9, %v402_v9  ;;  %v348_v48 = vld [vmem:[#allocation2 + $0x40] sm:$0x8]  ;;  %314 = vst [vmem:[#allocation2 + $0x64] sm:$0xff] %v281_v16  }
  0x62   : > { %v3577_v40 = vor.u32 %v3576_v30, %v3573_v29  ;;  %4475 = vmatprep.mubr.bf16.mxu0 %v2046_v32  ;;  %v3584_v44 = vrot.slane %v3582_v36, 4  ;;  %v7099_v45 = vcombine.low %v401_v60, %v402_v9  ;;  %v1679_v46 = vshrl.u32 %v5622_v10, 16  ;;  %v403_v30 = vld [vmem:[#allocation2 + $0x20] sm:$0x8]  ;;  %v404_v32 = vld [vmem:[#allocation2 + $0x24] sm:$0xf] }
  0x63   : > { %v1682_v47 = vshll.u32 %v5622_v10, 16  ;;  %4571 = vmatprep.mubr.bf16.mxu1 %v3594_v39  ;;  %4476 = vmatmul.mubr.bf16.gmra.mxu0 %v2038_v33  ;;  %v706_v51 = vshrl.u32 %v7097_v41, 16  ;;  %v709_v52 = vshll.u32 %v7097_v41, 16  ;;  %v1687_v53 = vshrl.u32 %v5623_v42, 16  ;;  %v353_v10 = vld [vmem:[#allocation2 + $0x58] sm:$0xf] }
  0x64   : > { %6114 = vmatpush3.bf16.msra.mxu1 %v6590_v5  ;;  %v1690_v54 = vshll.u32 %v5623_v42, 16  ;;  %v3585_v55 = vor.u32 %v3584_v44, %v3581_v35  ;;  %v1043_v56 = vshrl.u32 %v7099_v45, 16  ;;  %v1046_v57 = vshll.u32 %v7099_v45, 16  ;;  %v6609_v5 = vld [vmem:[%s8380_s1 + $0x120] sm:$0xff]  }
  0x65   : > { %6323 = vmatprep.subr.bf16.mxu1 %v6599_v11  ;;  %v1681_v58 = vrot.slane %v1679_v46, 3  ;;  %v708_v60 = vrot.slane %v706_v51, 4  ;;  %v711_v61 = vrot.slane %v709_v52, 5  ;;  %v1684_v62 = vrot.slane %v1682_v47, 4  ;;  %6218 = vmatpush3.bf16.msra.mxu0 %v6609_v5 }
  0x66   : > { %v1689_v63 = vrot.slane %v1687_v53, 3  ;;  %v3586_v0 = vsel %vm1634_vm0, %v3577_v40, %v3585_v55  ;;  %v7109_v1 = vrot.slane %v1043_v56, 4  ;;  %v7111_v2 = vrot.slane %v1046_v57, 5 }
  0x67   : > { %v1692_v3 = vrot.slane %v1690_v54, 4  ;;  %4572 = vmatmul.mubr.bf16.gmra.mxu1 %v3586_v0  ;;  %v712_v6 = vor.u32 %v711_v61, %v708_v60  ;;  %v1685_v7 = vor.u32 %v1684_v62, %v1681_v58  ;;  %v5566_v8 = vcombine.low %v348_v48, %v349_v37  ;;  %v405_v37 = vld [vmem:[#allocation2 + $0x28] sm:$0xf]  ;;  %v6620_v62 = vld [vmem:[%s8380_s1 + $0x118] sm:$0xff]  }
  0x68   : > { %v5567_v9 = vcombine.low %v350_v38, %v350_v38  ;;  %v851_v12 = vrot.slane %v6598_v59, 5  ;;  %v1667_v13 = vrot.slane %v1665_v50, 4  ;;  %v7118_v14 = vcombine.low %v352_v4, %v353_v10  ;;  %v6600_v0 = vld [vmem:[%s8380_s1 + $0x1b8] sm:$0xff]  }
  0x69   : > { %v1693_v11 = vor.u32 %v1692_v3, %v1689_v63  ;;  %v2169_v17 = vshrl.u32 %v712_v6, 16  ;;  %v2172_v18 = vshll.u32 %v712_v6, 16  ;;  %v2152_v19 = vshrl.u32 %v5566_v8, 16 }
  0x6a   : > { %v2155_v20 = vshll.u32 %v5566_v8, 16  ;;  %v2160_v24 = vshrl.u32 %v5567_v9, 16  ;;  %v2163_v25 = vshll.u32 %v5567_v9, 16  ;;  %v852_v29 = vsel %vm849_vm1, %v6973_v31, %v851_v12  ;;  %v6619_v31 = vld [vmem:[%s8380_s1 + $0x158] sm:$0xff]   ;;  %v6617_v8 = vld [vmem:[%s8380_s1 + $0x1f0] sm:$0xff]  }
  0x6b   : > { %v1694_v21 = vsel %vm1634_vm0, %v1685_v7, %v1693_v11  ;;  %v2171_v33 = vrot.slane %v2169_v17, 3  ;;  %v2174_v50 = vrot.slane %v2172_v18, 4  ;;  %v2154_v35 = vrot.slane %v2152_v19, 3  ;;  %6219 = vmatprep.subr.bf16.mxu0 %v6619_v31  ;;  %v6607_v7 = vld [vmem:[#allocation2 + $0x1c] ss:$0 sps:$4 sm:$0x11]  }
  0x6c   : > { %4612 = vmatprep.mubr.bf16.mxu1 %v1694_v21  ;;  %v2157_v36 = vrot.slane %v2155_v20, 4  ;;  %v2162_v38 = vrot.slane %v2160_v24, 3  ;;  %v2165_v39 = vrot.slane %v2163_v25, 4  ;;  %v1668_v40 = vor.u32 %v1667_v13, %v7000_v15  ;;  %6220 = vmatpush3.bf16.msra.mxu0 %v6620_v62  ;;  %v283_v20 = vld [vmem:[%s6955_s12 + $0x30] sm:$0xff]  }
  0x6d   : > { %v1670_v42 = vshrl.u32 %v852_v29, 16  ;;  %v2175_v44 = vor.u32 %v2174_v50, %v2171_v33  ;;  %v1673_v47 = vshll.u32 %v852_v29, 16  ;;  %v714_v48 = vshrl.u32 %v7118_v14, 16  ;;  %v406_v29 = vld [vmem:[#allocation2 + $0x30] sm:$0x8]  ;;  %316 = vst [vmem:[#allocation2 + $0x74] sm:$0xff] %v283_v20  }
  0x6e   : > { %v2158_v46 = vor.u32 %v2157_v36, %v2154_v35  ;;  %v2166_v51 = vor.u32 %v2165_v39, %v2162_v38  ;;  %v717_v53 = vshll.u32 %v7118_v14, 16  ;;  %v5624_v54 = vcombine.low %v403_v30, %v404_v32  ;;  %v407_v30 = vld [vmem:[#allocation2 + $0x34] sm:$0xf] }
  0x6f   : > { %v1672_v52 = vrot.slane %v1670_v42, 3  ;;  %4483 = vmatprep.mubr.bf16.mxu0 %v2175_v44  ;;  %v1675_v55 = vrot.slane %v1673_v47, 4  ;;  %v716_v56 = vrot.slane %v714_v48, 4  ;;  %v5625_v15 = vcombine.low %v405_v37, %v405_v37  ;;  %v6635_v38 = vld [vmem:[%s8380_s1 + $0x150] sm:$0xff]  }
  0x70   : > { %v7130_v57 = vcombine.low %v404_v32, %v405_v37  ;;  %v2167_v58 = vsel %vm1634_vm0, %v2158_v46, %v2166_v51  ;;  %v719_v59 = vrot.slane %v717_v53, 5  ;;  %v1808_v60 = vshrl.u32 %v5624_v54, 16  ;;  %v6618_v32 = vld [vmem:[%s8380_s1 + $0x1b0] sm:$0xff]   ;;  %v355_v37 = vld [vmem:[#allocation2 + $0x64] sm:$0xf]  ;;  %6221 = vmatprep.subr.bf16.mxu0 %v6635_v38  ;;  %v6636_v51 = vld [vmem:[%s8380_s1 + $0x1e8] sm:$0xff]  }
  0x71   : > { %v1811_v61 = vshll.u32 %v5624_v54, 16  ;;  %4484 = vmatmul.mubr.bf16.gmra.mxu0 %v2167_v58  ;;  %v1676_v63 = vor.u32 %v1675_v55, %v1672_v52  ;;  %v1816_v3 = vshrl.u32 %v5625_v15, 16  ;;  %v1819_v5 = vshll.u32 %v5625_v15, 16  ;;  %v356_v46 = vld [vmem:[#allocation2 + $0x68] sm:$0xf] }
  0x72   : > { %v5568_v6 = vcombine.low %v351_v49, %v352_v4  ;;  %v720_v9 = vor.u32 %v719_v59, %v716_v56  ;;  %v1810_v11 = vrot.slane %v1808_v60, 3  ;;  %v5569_v13 = vcombine.low %v353_v10, %v353_v10  ;;  %v285_v10 = vld [vmem:[%s6955_s12 + $0x38] sm:$0xff]   ;;  %v6637_v60 = vld [vmem:[%s8380_s1 + $0x110] sm:$0xff]  }
  0x73   : > { %v1813_v12 = vrot.slane %v1811_v61, 4  ;;  %v1677_v16 = vsel %vm1634_vm0, %v1668_v40, %v1676_v63  ;;  %v1818_v17 = vrot.slane %v1816_v3, 3  ;;  %v1821_v18 = vrot.slane %v1819_v5, 4  ;;  %318 = vst [vmem:[#allocation2 + $0x84] sm:$0xff] %v285_v10   ;;  %v408_v56 = vld [vmem:[#allocation2 + $0x38] sm:$0xf]  ;;  %6222 = vmatpush3.bf16.msra.mxu0 %v6637_v60 }
  0x74   : > { %v2281_v19 = vshrl.u32 %v5568_v6, 16  ;;  %4613 = vmatmul.mubr.bf16.vlgmr.msra.gmra.mxu1 %v1677_v16  ;;  %v2298_v21 = vshrl.u32 %v720_v9, 16  ;;  %v2301_v4 = vshll.u32 %v720_v9, 16  ;;  %v2284_v25 = vshll.u32 %v5568_v6, 16  ;;  %v411_v60 = vld [vmem:[#allocation2 + $0x48] sm:$0xf] }
  0x75   : > { %v1814_v24 = vor.u32 %v1813_v12, %v1810_v11  ;;  %6324 = vmatpush3.bf16.msra.mxu1 %v6600_v0  ;;  %v1822_v33 = vor.u32 %v1821_v18, %v1818_v17  ;;  %v2289_v35 = vshrl.u32 %v5569_v13, 16  ;;  %v2292_v36 = vshll.u32 %v5569_v13, 16 }
  0x76   : > { %v2283_v50 = vrot.slane %v2281_v19, 3  ;;  %v2300_v39 = vrot.slane %v2298_v21, 3  ;;  %v2303_v40 = vrot.slane %v2301_v4, 4  ;;  %v2286_v42 = vrot.slane %v2284_v25, 4  ;;  %6325 = vmatprep.subr.bf16.mxu1 %v6617_v8  ;;  %v354_v8 = vld [vmem:[#allocation2 + $0x60] sm:$0x8] }
  0x77   : > { %v853_v44 = vrot.slane %v7003_v22, 5  ;;  %v1823_v47 = vsel %vm1634_vm0, %v1814_v24, %v1822_v33  ;;  %v2291_v48 = vrot.slane %v2289_v35, 3  ;;  %v2294_v49 = vrot.slane %v2292_v36, 4  ;;  %v6616_v33 = vld [vmem:[#allocation2 + $0x2c] ss:$0 sps:$4 sm:$0x11]  }
  0x78   : > { %v854_v31 = vrot.slane %v6607_v7, 5  ;;  %v2304_v52 = vor.u32 %v2303_v40, %v2300_v39  ;;  %4620 = vmatprep.mubr.bf16.mxu1 %v1823_v47  ;;  %v2287_v53 = vor.u32 %v2286_v42, %v2283_v50  ;;  %v7157_v58 = vcombine.low %v355_v37, %v356_v46  ;;  %v6638_v50 = vld [vmem:[%s8380_s1 + $0x1a8] sm:$0xff]   ;;  %v287_v39 = vld [vmem:[%s6955_s12 + $0x40] sm:$0xff]   ;;  %v358_v47 = vld [vmem:[#allocation2 + $0x74] sm:$0xf] }
  0x79   : > { %v1791_v54 = vshrl.u32 %v853_v44, 16  ;;  %v1794_v55 = vshll.u32 %v853_v44, 16  ;;  %v2295_v15 = vor.u32 %v2294_v49, %v2291_v48  ;;  %v5626_v59 = vcombine.low %v406_v29, %v407_v30  ;;  %6326 = vmatpush3.bf16.msra.mxu1 %v6618_v32  ;;  %v359_v48 = vld [vmem:[#allocation2 + $0x78] sm:$0xf]  ;;  %v409_v49 = vld [vmem:[#allocation2 + $0x40] sm:$0x8] }
  0x7a   : > { %v855_v22 = vsel %vm849_vm1, %v853_v44, %v854_v31  ;;  %4491 = vmatprep.mubr.bf16.mxu0 %v2304_v52  ;;  %6327 = vmatprep.subr.bf16.mxu1 %v6636_v51  ;;  %v722_v5 = vshrl.u32 %v7157_v58, 16  ;;  %v725_v6 = vshll.u32 %v7157_v58, 16  ;;  %v5627_v7 = vcombine.low %v408_v56, %v408_v56  ;;  %320 = vst [vmem:[#allocation2 + $0x94] sm:$0xff] %v287_v39   ;;  %v6646_v31 = vld [vmem:[%s8380_s1 + $0x148] sm:$0xff]  }
  0x7b   : > { %v1793_v61 = vrot.slane %v1791_v54, 3  ;;  %v1796_v62 = vrot.slane %v1794_v55, 4  ;;  %v1799_v63 = vshrl.u32 %v855_v22, 16  ;;  %v1802_v0 = vshll.u32 %v855_v22, 16  ;;  %v6647_v55 = vld [vmem:[%s8380_s1 + $0x108] sm:$0xff]   ;;  %6223 = vmatprep.subr.bf16.mxu0 %v6646_v31 }
  0x7c   : > { %v2296_v3 = vsel %vm1634_vm0, %v2287_v53, %v2295_v15  ;;  %v7165_v13 = vcombine.low %v407_v30, %v408_v56  ;;  %v724_v16 = vrot.slane %v722_v5, 4  ;;  %v727_v17 = vrot.slane %v725_v6, 5  ;;  %6224 = vmatpush3.bf16.msra.mxu0 %v6647_v55 }
  0x7d   : > { %4492 = vmatmul.mubr.bf16.gmra.mxu0 %v2296_v3  ;;  %v1797_v9 = vor.u32 %v1796_v62, %v1793_v61  ;;  %v1801_v11 = vrot.slane %v1799_v63, 3  ;;  %v1804_v12 = vrot.slane %v1802_v0, 4  ;;  %v1937_v18 = vshrl.u32 %v5626_v59, 16  ;;  %6328 = vmatpush3.bf16.msra.mxu1 %v6638_v50  ;;  %v289_v3 = vld [vmem:[%s6955_s12 + $0x48] sm:$0xff]  }
  0x7e   : > { %v1940_v19 = vshll.u32 %v5626_v59, 16  ;;  %v1945_v21 = vshrl.u32 %v5627_v7, 16  ;;  %v1948_v4 = vshll.u32 %v5627_v7, 16  ;;  %v5570_v24 = vcombine.low %v354_v8, %v355_v37  ;;  %322 = vst [vmem:[#allocation2 + $0xa4] sm:$0xff] %v289_v3  }
  0x7f   : > { %v1805_v20 = vor.u32 %v1804_v12, %v1801_v11  ;;  %v728_v25 = vor.u32 %v727_v17, %v724_v16  ;;  %v1939_v29 = vrot.slane %v1937_v18, 3  ;;  %v5571_v10 = vcombine.low %v356_v46, %v356_v46  ;;  %v410_v46 = vld [vmem:[#allocation2 + $0x44] sm:$0xf] }
  0x80   : > { %v1942_v32 = vrot.slane %v1940_v19, 4  ;;  %v1947_v35 = vrot.slane %v1945_v21, 3  ;;  %v1950_v36 = vrot.slane %v1948_v4, 4  ;;  %v2410_v38 = vshrl.u32 %v5570_v24, 16 }
  0x81   : > { %v1806_v30 = vsel %vm1634_vm0, %v1797_v9, %v1805_v20  ;;  %v2427_v40 = vshrl.u32 %v728_v25, 16  ;;  %v2430_v42 = vshll.u32 %v728_v25, 16  ;;  %v2413_v37 = vshll.u32 %v5570_v24, 16  ;;  %v357_v25 = vld [vmem:[#allocation2 + $0x70] sm:$0x8] }
  0x82   : > { %4621 = vmatmul.mubr.bf16.gmra.mxu1 %v1806_v30  ;;  %v1943_v44 = vor.u32 %v1942_v32, %v1939_v29  ;;  %v1951_v51 = vor.u32 %v1950_v36, %v1947_v35  ;;  %v2412_v52 = vrot.slane %v2410_v38, 3  ;;  %v2418_v53 = vshrl.u32 %v5571_v10, 16 }
  0x83   : > { %v2421_v54 = vshll.u32 %v5571_v10, 16  ;;  %v2429_v56 = vrot.slane %v2427_v40, 3  ;;  %v2432_v15 = vrot.slane %v2430_v42, 4  ;;  %v2415_v22 = vrot.slane %v2413_v37, 4  ;;  %v6655_v37 = vld [vmem:[%s8380_s1 + $0x1e0] sm:$0xff]  }
  0x84   : > { %v856_v59 = vrot.slane %v7037_v23, 5  ;;  %v1952_v61 = vsel %vm1634_vm0, %v1943_v44, %v1951_v51  ;;  %v2420_v62 = vrot.slane %v2418_v53, 3  ;;  %v857_v0 = vrot.slane %v6616_v33, 5  ;;  %v6627_v44 = vld [vmem:[#allocation2 + $0x3c] ss:$0 sps:$4 sm:$0x11]   ;;  %6329 = vmatprep.subr.bf16.mxu1 %v6655_v37 }
  0x85   : > { %v2423_v63 = vrot.slane %v2421_v54, 4  ;;  %v2433_v5 = vor.u32 %v2432_v15, %v2429_v56  ;;  %4628 = vmatprep.mubr.bf16.mxu1 %v1952_v61  ;;  %v2416_v6 = vor.u32 %v2415_v22, %v2412_v52  ;;  %v7182_v12 = vcombine.low %v358_v47, %v359_v48  ;;  %v413_v61 = vld [vmem:[#allocation2 + $0x54] sm:$0xf] }
  0x86   : > { %v1920_v7 = vshrl.u32 %v856_v59, 16  ;;  %v1923_v8 = vshll.u32 %v856_v59, 16  ;;  %v858_v11 = vsel %vm849_vm1, %v856_v59, %v857_v0  ;;  %v5628_v23 = vcombine.low %v409_v49, %v410_v46 }
  0x87   : > { %v2424_v9 = vor.u32 %v2423_v63, %v2420_v62  ;;  %4499 = vmatprep.mubr.bf16.mxu0 %v2433_v5  ;;  %v1928_v18 = vshrl.u32 %v858_v11, 16  ;;  %v1931_v19 = vshll.u32 %v858_v11, 16  ;;  %v730_v21 = vshrl.u32 %v7182_v12, 16  ;;  %v291_v62 = vld [vmem:[%s6955_s12 + $0x50] sm:$0xff]   ;;  %v361_v5 = vld [vmem:[#allocation2 + $0x84] sm:$0xf] }
  0x88   : > { %v1922_v16 = vrot.slane %v1920_v7, 3  ;;  %v1925_v17 = vrot.slane %v1923_v8, 4  ;;  %v733_v4 = vshll.u32 %v7182_v12, 16  ;;  %v5629_v24 = vcombine.low %v411_v60, %v411_v60  ;;  %324 = vst [vmem:[#allocation2 + $0xb4] sm:$0xff] %v291_v62  }
  0x89   : > { %v2425_v20 = vsel %vm1634_vm0, %v2416_v6, %v2424_v9  ;;  %v1930_v32 = vrot.slane %v1928_v18, 3  ;;  %v1933_v10 = vrot.slane %v1931_v19, 4  ;;  %v7187_v33 = vcombine.low %v410_v46, %v411_v60  ;;  %v412_v60 = vld [vmem:[#allocation2 + $0x50] sm:$0x8]  ;;  %v6664_v6 = vld [vmem:[%s8380_s1 + $0x140] sm:$0xff]  }
  0x8a   : > { %4500 = vmatmul.mubr.bf16.gmra.mxu0 %v2425_v20  ;;  %v1926_v29 = vor.u32 %v1925_v17, %v1922_v16  ;;  %v732_v50 = vrot.slane %v730_v21, 4  ;;  %v735_v30 = vrot.slane %v733_v4, 5  ;;  %v2066_v35 = vshrl.u32 %v5628_v23, 16  ;;  %6225 = vmatprep.subr.bf16.mxu0 %v6664_v6  ;;  %v6665_v20 = vld [vmem:[%s8380_s1 + $0x100] sm:$0xff]  }
  0x8b   : > { %v2069_v36 = vshll.u32 %v5628_v23, 16  ;;  %v1934_v38 = vor.u32 %v1933_v10, %v1930_v32  ;;  %v2074_v39 = vshrl.u32 %v5629_v24, 16  ;;  %v2077_v40 = vshll.u32 %v5629_v24, 16  ;;  %v362_v23 = vld [vmem:[#allocation2 + $0x88] sm:$0xf]  ;;  %6226 = vmatpush3.bf16.msra.mxu0 %v6665_v20 }
  0x8c   : > { %v5572_v42 = vcombine.low %v357_v25, %v358_v47  ;;  %v736_v49 = vor.u32 %v735_v30, %v732_v50  ;;  %v2068_v31 = vrot.slane %v2066_v35, 3  ;;  %v5573_v52 = vcombine.low %v359_v48, %v359_v48  ;;  %v6656_v47 = vld [vmem:[%s8380_s1 + $0x1a0] sm:$0xff]   ;;  %v6671_v35 = vld [vmem:[%s8380_s1 + $0x1d8] sm:$0xff]  }
  0x8d   : > { %v2071_v51 = vrot.slane %v2069_v36, 4  ;;  %v1935_v46 = vsel %vm1634_vm0, %v1926_v29, %v1934_v38  ;;  %v2076_v53 = vrot.slane %v2074_v39, 3  ;;  %v2079_v54 = vrot.slane %v2077_v40, 4  ;;  %6330 = vmatpush3.bf16.msra.mxu1 %v6656_v47  ;;  %v414_v29 = vld [vmem:[#allocation2 + $0x58] sm:$0xf] }
  0x8e   : > { %v2539_v55 = vshrl.u32 %v5572_v42, 16  ;;  %4629 = vmatmul.mubr.bf16.gmra.mxu1 %v1935_v46  ;;  %v2556_v56 = vshrl.u32 %v736_v49, 16  ;;  %v2559_v15 = vshll.u32 %v736_v49, 16  ;;  %v2542_v59 = vshll.u32 %v5572_v42, 16  ;;  %v360_v30 = vld [vmem:[#allocation2 + $0x80] sm:$0x8]  ;;  %6331 = vmatprep.subr.bf16.mxu1 %v6671_v35 }
  0x8f   : > { %v2072_v22 = vor.u32 %v2071_v51, %v2068_v31  ;;  %v2080_v63 = vor.u32 %v2079_v54, %v2076_v53  ;;  %v2547_v0 = vshrl.u32 %v5573_v52, 16  ;;  %v2550_v3 = vshll.u32 %v5573_v52, 16  ;;  %v416_v20 = vld [vmem:[#allocation2 + $0x64] sm:$0xf] }
  0x90   : > { %v2541_v48 = vrot.slane %v2539_v55, 3  ;;  %v2558_v7 = vrot.slane %v2556_v56, 3  ;;  %v2561_v8 = vrot.slane %v2559_v15, 4  ;;  %v2544_v9 = vrot.slane %v2542_v59, 4 }
  0x91   : > { %v859_v11 = vrot.slane %v7070_v27, 5  ;;  %v2081_v16 = vsel %vm1634_vm0, %v2072_v22, %v2080_v63  ;;  %v2549_v17 = vrot.slane %v2547_v0, 3  ;;  %v2552_v18 = vrot.slane %v2550_v3, 4 }
  0x92   : > { %v860_v19 = vrot.slane %v6627_v44, 5  ;;  %v2562_v21 = vor.u32 %v2561_v8, %v2558_v7  ;;  %4636 = vmatprep.mubr.bf16.mxu1 %v2081_v16  ;;  %v2545_v4 = vor.u32 %v2544_v9, %v2541_v48  ;;  %v7206_v10 = vcombine.low %v361_v5, %v362_v23  ;;  %v6634_v8 = vld [vmem:[#allocation2 + $0x4c] ss:$0 sps:$4 sm:$0x11]  }
  0x93   : > { %v2049_v24 = vshrl.u32 %v859_v11, 16  ;;  %v2052_v25 = vshll.u32 %v859_v11, 16  ;;  %v2553_v32 = vor.u32 %v2552_v18, %v2549_v17  ;;  %v5630_v50 = vcombine.low %v412_v60, %v413_v61  ;;  %v364_v17 = vld [vmem:[#allocation2 + $0x94] sm:$0xf]  ;;  %v365_v18 = vld [vmem:[#allocation2 + $0x98] sm:$0xf] }
  0x94   : > { %v861_v27 = vsel %vm849_vm1, %v859_v11, %v860_v19  ;;  %4507 = vmatprep.mubr.bf16.mxu0 %v2562_v21  ;;  %v738_v44 = vshrl.u32 %v7206_v10, 16  ;;  %v741_v37 = vshll.u32 %v7206_v10, 16  ;;  %v5631_v49 = vcombine.low %v414_v29, %v414_v29  ;;  %v415_v19 = vld [vmem:[#allocation2 + $0x60] sm:$0x8] }
  0x95   : > { %v2051_v36 = vrot.slane %v2049_v24, 3  ;;  %v2054_v38 = vrot.slane %v2052_v25, 4  ;;  %v2057_v39 = vshrl.u32 %v861_v27, 16  ;;  %v2060_v40 = vshll.u32 %v861_v27, 16  ;;  %v7223_v25 = vld [vmem:[%s8380_s1 + $0x238] sm:$0xff]  }
  0x96   : > { %v2554_v42 = vsel %vm1634_vm0, %v2545_v4, %v2553_v32  ;;  %v7214_v46 = vcombine.low %v413_v61, %v414_v29  ;;  %v740_v53 = vrot.slane %v738_v44, 4  ;;  %v743_v54 = vrot.slane %v741_v37, 5  ;;  %6459 = vmatprep.subr.bf16.mxu0 %v7223_v25 }
  0x97   : > { %4508 = vmatmul.mubr.bf16.gmra.mxu0 %v2554_v42  ;;  %v2055_v31 = vor.u32 %v2054_v38, %v2051_v36  ;;  %v2059_v51 = vrot.slane %v2057_v39, 3  ;;  %v2062_v52 = vrot.slane %v2060_v40, 4  ;;  %v2195_v55 = vshrl.u32 %v5630_v50, 16  ;;  %v6684_v39 = vld [vmem:[%s8380_s1 + $0x1d0] sm:$0xff]  }
  0x98   : > { %v2198_v47 = vshll.u32 %v5630_v50, 16  ;;  %v2203_v15 = vshrl.u32 %v5631_v49, 16  ;;  %v2206_v22 = vshll.u32 %v5631_v49, 16  ;;  %v5574_v59 = vcombine.low %v360_v30, %v361_v5  ;;  %v6672_v5 = vld [vmem:[%s8380_s1 + $0x198] sm:$0xff]   ;;  %v417_v49 = vld [vmem:[#allocation2 + $0x68] sm:$0xf] }
  0x99   : > { %v2063_v56 = vor.u32 %v2062_v52, %v2059_v51  ;;  %v744_v60 = vor.u32 %v743_v54, %v740_v53  ;;  %v2197_v62 = vrot.slane %v2195_v55, 3  ;;  %v5575_v48 = vcombine.low %v362_v23, %v362_v23  ;;  %6332 = vmatpush3.bf16.msra.mxu1 %v6672_v5  ;;  %v6645_v5 = vld [vmem:[#allocation2 + $0x5c] ss:$0 sps:$4 sm:$0x11]  }
  0x9a   : > { %v2200_v63 = vrot.slane %v2198_v47, 4  ;;  %v2205_v3 = vrot.slane %v2203_v15, 3  ;;  %v2208_v6 = vrot.slane %v2206_v22, 4  ;;  %v2668_v7 = vshrl.u32 %v5574_v59, 16  ;;  %6333 = vmatprep.subr.bf16.mxu1 %v6684_v39  ;;  %v368_v39 = vld [vmem:[#allocation2 + $0xa8] sm:$0xf] }
  0x9b   : > { %v2064_v0 = vsel %vm1634_vm0, %v2055_v31, %v2063_v56  ;;  %v2685_v61 = vshrl.u32 %v744_v60, 16  ;;  %v2688_v9 = vshll.u32 %v744_v60, 16  ;;  %v2671_v16 = vshll.u32 %v5574_v59, 16  ;;  %v363_v60 = vld [vmem:[#allocation2 + $0x90] sm:$0x8] }
  0x9c   : > { %4637 = vmatmul.mubr.bf16.gmra.mxu1 %v2064_v0  ;;  %v2201_v11 = vor.u32 %v2200_v63, %v2197_v62  ;;  %v2209_v23 = vor.u32 %v2208_v6, %v2205_v3  ;;  %v2670_v21 = vrot.slane %v2668_v7, 3  ;;  %v2676_v4 = vshrl.u32 %v5575_v48, 16  ;;  %v6685_v62 = vld [vmem:[%s8380_s1 + $0x190] sm:$0xff]  }
  0x9d   : > { %v2679_v24 = vshll.u32 %v5575_v48, 16  ;;  %v2687_v29 = vrot.slane %v2685_v61, 3  ;;  %v2690_v32 = vrot.slane %v2688_v9, 4  ;;  %v2673_v27 = vrot.slane %v2671_v16, 4  ;;  %6334 = vmatpush3.bf16.msra.mxu1 %v6685_v62 }
  0x9e   : > { %v862_v50 = vrot.slane %v7097_v41, 5  ;;  %v2210_v30 = vsel %vm1634_vm0, %v2201_v11, %v2209_v23  ;;  %v2678_v35 = vrot.slane %v2676_v4, 3  ;;  %v863_v38 = vrot.slane %v6634_v8, 5 }
  0x9f   : > { %v2681_v36 = vrot.slane %v2679_v24, 4  ;;  %v2691_v40 = vor.u32 %v2690_v32, %v2687_v29  ;;  %4644 = vmatprep.mubr.bf16.mxu1 %v2210_v30  ;;  %v2674_v42 = vor.u32 %v2673_v27, %v2670_v21  ;;  %v7232_v51 = vcombine.low %v364_v17, %v365_v18 }
  0xa0   : > { %v2178_v44 = vshrl.u32 %v862_v50, 16  ;;  %v2181_v37 = vshll.u32 %v862_v50, 16  ;;  %v864_v41 = vsel %vm849_vm1, %v862_v50, %v863_v38  ;;  %v5632_v52 = vcombine.low %v415_v19, %v416_v20  ;;  %v6697_v50 = vld [vmem:[%s8380_s1 + $0x1c8] sm:$0xff]  }
  0xa1   : > { %v2682_v31 = vor.u32 %v2681_v36, %v2678_v35  ;;  %4515 = vmatprep.mubr.bf16.mxu0 %v2691_v40  ;;  %v2186_v55 = vshrl.u32 %v864_v41, 16  ;;  %v2189_v47 = vshll.u32 %v864_v41, 16  ;;  %v746_v15 = vshrl.u32 %v7232_v51, 16  ;;  %v418_v40 = vld [vmem:[#allocation2 + $0x70] sm:$0x8]  ;;  %6335 = vmatprep.subr.bf16.mxu1 %v6697_v50 }
  0xa2   : > { %v2180_v53 = vrot.slane %v2178_v44, 3  ;;  %v2183_v54 = vrot.slane %v2181_v37, 4  ;;  %v749_v22 = vshll.u32 %v7232_v51, 16  ;;  %v5633_v59 = vcombine.low %v417_v49, %v417_v49 }
  0xa3   : > { %v2683_v56 = vsel %vm1634_vm0, %v2674_v42, %v2682_v31  ;;  %v2188_v48 = vrot.slane %v2186_v55, 3  ;;  %v2191_v0 = vrot.slane %v2189_v47, 4  ;;  %v7240_v3 = vcombine.low %v416_v20, %v417_v49  ;;  %v419_v31 = vld [vmem:[#allocation2 + $0x74] sm:$0xf] }
  0xa4   : > { %4516 = vmatmul.mubr.bf16.gmra.mxu0 %v2683_v56  ;;  %v2184_v63 = vor.u32 %v2183_v54, %v2180_v53  ;;  %v748_v6 = vrot.slane %v746_v15, 4  ;;  %v751_v7 = vrot.slane %v749_v22, 5  ;;  %v2324_v8 = vshrl.u32 %v5632_v52, 16 }
  0xa5   : > { %v2327_v61 = vshll.u32 %v5632_v52, 16  ;;  %v2192_v9 = vor.u32 %v2191_v0, %v2188_v48  ;;  %v2332_v11 = vshrl.u32 %v5633_v59, 16  ;;  %v2335_v16 = vshll.u32 %v5633_v59, 16 }
  0xa6   : > { %v5576_v19 = vcombine.low %v363_v60, %v364_v17  ;;  %v752_v23 = vor.u32 %v751_v7, %v748_v6  ;;  %v2326_v21 = vrot.slane %v2324_v8, 3  ;;  %v5577_v24 = vcombine.low %v365_v18, %v365_v18  ;;  %v367_v17 = vld [vmem:[#allocation2 + $0xa4] sm:$0xf]  ;;  %v6698_v18 = vld [vmem:[%s8380_s1 + $0x188] sm:$0xff]  }
  0xa7   : > { %v2329_v4 = vrot.slane %v2327_v61, 4  ;;  %v2193_v29 = vsel %vm1634_vm0, %v2184_v63, %v2192_v9  ;;  %v2334_v32 = vrot.slane %v2332_v11, 3  ;;  %v2337_v27 = vrot.slane %v2335_v16, 4  ;;  %6336 = vmatpush3.bf16.msra.mxu1 %v6698_v18  ;;  %v420_v63 = vld [vmem:[#allocation2 + $0x78] sm:$0xf] }
  0xa8   : > { %v2797_v20 = vshrl.u32 %v5576_v19, 16  ;;  %4645 = vmatmul.mubr.bf16.gmra.mxu1 %v2193_v29  ;;  %v2814_v30 = vshrl.u32 %v752_v23, 16  ;;  %v2817_v35 = vshll.u32 %v752_v23, 16  ;;  %v2800_v38 = vshll.u32 %v5576_v19, 16  ;;  %v366_v16 = vld [vmem:[#allocation2 + $0xa0] sm:$0x8] }
  0xa9   : > { %v2330_v36 = vor.u32 %v2329_v4, %v2326_v21  ;;  %v2338_v42 = vor.u32 %v2337_v27, %v2334_v32  ;;  %v2805_v37 = vshrl.u32 %v5577_v24, 16  ;;  %v2808_v49 = vshll.u32 %v5577_v24, 16  ;;  %v6711_v27 = vld [vmem:[%s8380_s1 + $0x180] sm:$0xff]  }
  0xaa   : > { %v2799_v44 = vrot.slane %v2797_v20, 3  ;;  %v2816_v41 = vrot.slane %v2814_v30, 3  ;;  %v2819_v52 = vrot.slane %v2817_v35, 4  ;;  %v2802_v53 = vrot.slane %v2800_v38, 4 }
  0xab   : > { %v865_v54 = vrot.slane %v7118_v14, 5  ;;  %v2339_v55 = vsel %vm1634_vm0, %v2330_v36, %v2338_v42  ;;  %v2807_v47 = vrot.slane %v2805_v37, 3  ;;  %v2810_v56 = vrot.slane %v2808_v49, 4  ;;  %v6710_v14 = vld [vmem:[%s8380_s1 + $0x1c0] sm:$0xff]  }
  0xac   : > { %v866_v15 = vrot.slane %v6645_v5, 5  ;;  %v2820_v22 = vor.u32 %v2819_v52, %v2816_v41  ;;  %4652 = vmatprep.mubr.bf16.mxu1 %v2339_v55  ;;  %v2803_v59 = vor.u32 %v2802_v53, %v2799_v44  ;;  %v7252_v6 = vcombine.low %v367_v17, %v368_v39  ;;  %6337 = vmatprep.subr.bf16.mxu1 %v6710_v14  ;;  %v6654_v42 = vld [vmem:[#allocation2 + $0x6c] ss:$0 sps:$4 sm:$0x11]   ;;  %v301_v55 = vld [vmem:[%s6955_s12 + $0x78] sm:$0xff]  }
  0xad   : > { %v2307_v60 = vshrl.u32 %v865_v54, 16  ;;  %v2310_v62 = vshll.u32 %v865_v54, 16  ;;  %v2811_v48 = vor.u32 %v2810_v56, %v2807_v47  ;;  %v5634_v7 = vcombine.low %v418_v40, %v419_v31  ;;  %6338 = vmatpush3.bf16.msra.mxu1 %v6711_v27  ;;  %334 = vst [vmem:[#allocation2 + $0x104] sm:$0xff] %v301_v55  }
  0xae   : > { %v867_v0 = vsel %vm849_vm1, %v865_v54, %v866_v15  ;;  %4523 = vmatprep.mubr.bf16.mxu0 %v2820_v22  ;;  %v754_v5 = vshrl.u32 %v7252_v6, 16  ;;  %v757_v23 = vshll.u32 %v7252_v6, 16  ;;  %v5635_v21 = vcombine.low %v420_v63, %v420_v63 }
  0xaf   : > { %v2309_v8 = vrot.slane %v2307_v60, 3  ;;  %v2312_v61 = vrot.slane %v2310_v62, 4  ;;  %v2315_v9 = vshrl.u32 %v867_v0, 16  ;;  %v2318_v11 = vshll.u32 %v867_v0, 16  ;;  %v371_v60 = vld [vmem:[#allocation2 + $0xb8] sm:$0xf] }
  0xb0   : > { %v2812_v19 = vsel %vm1634_vm0, %v2803_v59, %v2811_v48  ;;  %v7260_v32 = vcombine.low %v419_v31, %v420_v63  ;;  %v756_v20 = vrot.slane %v754_v5, 4  ;;  %v759_v50 = vrot.slane %v757_v23, 5  ;;  %v370_v59 = vld [vmem:[#allocation2 + $0xb4] sm:$0xf] }
  0xb1   : > { %4524 = vmatmul.mubr.bf16.gmra.mxu0 %v2812_v19  ;;  %v2313_v4 = vor.u32 %v2312_v61, %v2309_v8  ;;  %v2317_v24 = vrot.slane %v2315_v9, 3  ;;  %v2320_v29 = vrot.slane %v2318_v11, 4  ;;  %v2453_v30 = vshrl.u32 %v5634_v7, 16  ;;  %v422_v61 = vld [vmem:[#allocation2 + $0x84] sm:$0xf] }
  0xb2   : > { %v2456_v35 = vshll.u32 %v5634_v7, 16  ;;  %v2461_v38 = vshrl.u32 %v5635_v21, 16  ;;  %v2464_v40 = vshll.u32 %v5635_v21, 16  ;;  %v5578_v18 = vcombine.low %v366_v16, %v367_v17  ;;  %v421_v17 = vld [vmem:[#allocation2 + $0x80] sm:$0x8] }
  0xb3   : > { %v2321_v36 = vor.u32 %v2320_v29, %v2317_v24  ;;  %v760_v44 = vor.u32 %v759_v50, %v756_v20  ;;  %v2455_v37 = vrot.slane %v2453_v30, 3  ;;  %v5579_v31 = vcombine.low %v368_v39, %v368_v39  ;;  %v423_v24 = vld [vmem:[#allocation2 + $0x88] sm:$0xf] }
  0xb4   : > { %v2458_v49 = vrot.slane %v2456_v35, 4  ;;  %v2463_v52 = vrot.slane %v2461_v38, 3  ;;  %v2466_v53 = vrot.slane %v2464_v40, 4  ;;  %v2926_v54 = vshrl.u32 %v5578_v18, 16 }
  0xb5   : > { %v2322_v41 = vsel %vm1634_vm0, %v2313_v4, %v2321_v36  ;;  %v2943_v47 = vshrl.u32 %v760_v44, 16  ;;  %v2946_v56 = vshll.u32 %v760_v44, 16  ;;  %v2929_v22 = vshll.u32 %v5578_v18, 16  ;;  %v369_v44 = vld [vmem:[#allocation2 + $0xb0] sm:$0x8] }
  0xb6   : > { %4653 = vmatmul.mubr.bf16.gmra.mxu1 %v2322_v41  ;;  %v2459_v15 = vor.u32 %v2458_v49, %v2455_v37  ;;  %v2467_v62 = vor.u32 %v2466_v53, %v2463_v52  ;;  %v2928_v63 = vrot.slane %v2926_v54, 3  ;;  %v2934_v48 = vshrl.u32 %v5579_v31, 16 }
  0xb7   : > { %v2937_v0 = vshll.u32 %v5579_v31, 16  ;;  %v2945_v39 = vrot.slane %v2943_v47, 3  ;;  %v2948_v7 = vrot.slane %v2946_v56, 4  ;;  %v2931_v14 = vrot.slane %v2929_v22, 4 }
  0xb8   : > { %v868_v8 = vrot.slane %v7157_v58, 5  ;;  %v2468_v9 = vsel %vm1634_vm0, %v2459_v15, %v2467_v62  ;;  %v2936_v11 = vrot.slane %v2934_v48, 3  ;;  %v869_v19 = vrot.slane %v6654_v42, 5 }
  0xb9   : > { %v2939_v16 = vrot.slane %v2937_v0, 4  ;;  %v2949_v5 = vor.u32 %v2948_v7, %v2945_v39  ;;  %4660 = vmatprep.mubr.bf16.mxu1 %v2468_v9  ;;  %v2932_v23 = vor.u32 %v2931_v14, %v2928_v63  ;;  %v7270_v20 = vcombine.low %v370_v59, %v371_v60 }
  0xba   : > { %v2436_v21 = vshrl.u32 %v868_v8, 16  ;;  %v2439_v4 = vshll.u32 %v868_v8, 16  ;;  %v870_v27 = vsel %vm849_vm1, %v868_v8, %v869_v19  ;;  %v5636_v50 = vcombine.low %v421_v17, %v422_v61  ;;  %v6663_v8 = vld [vmem:[#allocation2 + $0x7c] ss:$0 sps:$4 sm:$0x11]  }
  0xbb   : > { %v2940_v29 = vor.u32 %v2939_v16, %v2936_v11  ;;  %4531 = vmatprep.mubr.bf16.mxu0 %v2949_v5  ;;  %v2444_v35 = vshrl.u32 %v870_v27, 16  ;;  %v2447_v36 = vshll.u32 %v870_v27, 16  ;;  %v762_v40 = vshrl.u32 %v7270_v20, 16  ;;  %v424_v19 = vld [vmem:[#allocation2 + $0x90] sm:$0x8] }
  0xbc   : > { %v2438_v58 = vrot.slane %v2436_v21, 3  ;;  %v2441_v30 = vrot.slane %v2439_v4, 4  ;;  %v765_v18 = vshll.u32 %v7270_v20, 16  ;;  %v5637_v42 = vcombine.low %v423_v24, %v423_v24  ;;  %v425_v5 = vld [vmem:[#allocation2 + $0x94] sm:$0xf] }
  0xbd   : > { %v2941_v38 = vsel %vm1634_vm0, %v2932_v23, %v2940_v29  ;;  %v2446_v49 = vrot.slane %v2444_v35, 3  ;;  %v2449_v31 = vrot.slane %v2447_v36, 4  ;;  %v7275_v41 = vcombine.low %v422_v61, %v423_v24  ;;  %v426_v23 = vld [vmem:[#allocation2 + $0x98] sm:$0xf] }
  0xbe   : > { %4532 = vmatmul.mubr.bf16.gmra.mxu0 %v2941_v38  ;;  %v2442_v37 = vor.u32 %v2441_v30, %v2438_v58  ;;  %v764_v52 = vrot.slane %v762_v40, 4  ;;  %v767_v53 = vrot.slane %v765_v18, 5  ;;  %v2582_v54 = vshrl.u32 %v5636_v50, 16 }
  0xbf   : > { %v2585_v55 = vshll.u32 %v5636_v50, 16  ;;  %v2450_v47 = vor.u32 %v2449_v31, %v2446_v49  ;;  %v2590_v56 = vshrl.u32 %v5637_v42, 16  ;;  %v2593_v15 = vshll.u32 %v5637_v42, 16 }
  0xc0   : > { %v5580_v22 = vcombine.low %v369_v44, %v370_v59  ;;  %v768_v17 = vor.u32 %v767_v53, %v764_v52  ;;  %v2584_v62 = vrot.slane %v2582_v54, 3  ;;  %v5581_v48 = vcombine.low %v371_v60, %v371_v60  ;;  %v6669_v52 = vld [vmem:[#allocation2 + $0x1c] ss:$0 sps:$4 sm:$0x11]  }
  0xc1   : > { %v2587_v63 = vrot.slane %v2585_v55, 4  ;;  %v2451_v0 = vsel %vm1634_vm0, %v2442_v37, %v2450_v47  ;;  %v2592_v39 = vrot.slane %v2590_v56, 3  ;;  %v2595_v7 = vrot.slane %v2593_v15, 4 }
  0xc2   : > { %v3055_v14 = vshrl.u32 %v5580_v22, 16  ;;  %4661 = vmatmul.mubr.bf16.gmra.mxu1 %v2451_v0  ;;  %v3072_v61 = vshrl.u32 %v768_v17, 16  ;;  %v3075_v9 = vshll.u32 %v768_v17, 16  ;;  %v3058_v16 = vshll.u32 %v5580_v22, 16 }
  0xc3   : > { %v2588_v11 = vor.u32 %v2587_v63, %v2584_v62  ;;  %v2596_v21 = vor.u32 %v2595_v7, %v2592_v39  ;;  %v3063_v4 = vshrl.u32 %v5581_v48, 16  ;;  %v3066_v24 = vshll.u32 %v5581_v48, 16  ;;  %v6670_v0 = vld [vmem:[#allocation2 + $0x8c] ss:$0 sps:$4 sm:$0x11]  }
  0xc4   : > { %v3057_v59 = vrot.slane %v3055_v14, 3  ;;  %v3074_v29 = vrot.slane %v3072_v61, 3  ;;  %v3077_v60 = vrot.slane %v3075_v9, 4  ;;  %v3060_v27 = vrot.slane %v3058_v16, 4 }
  0xc5   : > { %v871_v50 = vrot.slane %v7182_v12, 5  ;;  %v2597_v58 = vsel %vm1634_vm0, %v2588_v11, %v2596_v21  ;;  %v3065_v30 = vrot.slane %v3063_v4, 3  ;;  %v3068_v35 = vrot.slane %v3066_v24, 4 }
  0xc6   : > { %v872_v36 = vrot.slane %v6663_v8, 5  ;;  %v3078_v38 = vor.u32 %v3077_v60, %v3074_v29  ;;  %4668 = vmatprep.mubr.bf16.mxu1 %v2597_v58  ;;  %v3061_v40 = vor.u32 %v3060_v27, %v3057_v59  ;;  %v5638_v49 = vcombine.low %v424_v19, %v425_v5  ;;  %v427_v60 = vld [vmem:[#allocation2 + $0xa0] sm:$0x8] }
  0xc7   : > { %v2565_v18 = vshrl.u32 %v871_v50, 16  ;;  %v2568_v42 = vshll.u32 %v871_v50, 16  ;;  %v3069_v44 = vor.u32 %v3068_v35, %v3065_v30  ;;  %v5639_v31 = vcombine.low %v426_v23, %v426_v23  ;;  %v428_v30 = vld [vmem:[#allocation2 + $0xa4] sm:$0xf] }
  0xc8   : > { %v873_v37 = vsel %vm849_vm1, %v871_v50, %v872_v36  ;;  %4539 = vmatprep.mubr.bf16.mxu0 %v3078_v38  ;;  %v7282_v56 = vcombine.low %v425_v5, %v426_v23  ;;  %v2711_v15 = vshrl.u32 %v5638_v49, 16  ;;  %v2714_v22 = vshll.u32 %v5638_v49, 16 }
  0xc9   : > { %v2567_v53 = vrot.slane %v2565_v18, 3  ;;  %v2570_v54 = vrot.slane %v2568_v42, 4  ;;  %v2573_v12 = vshrl.u32 %v873_v37, 16  ;;  %v2576_v55 = vshll.u32 %v873_v37, 16 }
  0xca   : > { %v3070_v47 = vsel %vm1634_vm0, %v3061_v40, %v3069_v44  ;;  %v2719_v48 = vshrl.u32 %v5639_v31, 16  ;;  %v2713_v39 = vrot.slane %v2711_v15, 3  ;;  %v2716_v7 = vrot.slane %v2714_v22, 4  ;;  %v429_v40 = vld [vmem:[#allocation2 + $0xa8] sm:$0xf] }
  0xcb   : > { %4540 = vmatmul.mubr.bf16.gmra.mxu0 %v3070_v47  ;;  %v2571_v17 = vor.u32 %v2570_v54, %v2567_v53  ;;  %v2575_v62 = vrot.slane %v2573_v12, 3  ;;  %v2578_v63 = vrot.slane %v2576_v55, 4  ;;  %v2722_v14 = vshll.u32 %v5639_v31, 16  ;;  %v6677_v54 = vld [vmem:[#allocation2 + $0x2c] ss:$0 sps:$4 sm:$0x11]  }
  0xcc   : > { %v1218_v8 = vrot.slane %v7099_v45, 5  ;;  %v2721_v9 = vrot.slane %v2719_v48, 3  ;;  %v1219_v11 = vrot.slane %v6669_v52, 5  ;;  %v874_v16 = vrot.slane %v7206_v10, 5 }
  0xcd   : > { %v2579_v61 = vor.u32 %v2578_v63, %v2575_v62  ;;  %v2717_v19 = vor.u32 %v2716_v7, %v2713_v39  ;;  %v2724_v5 = vrot.slane %v2722_v14, 4  ;;  %v875_v24 = vrot.slane %v6670_v0, 5  ;;  %v6678_v22 = vld [vmem:[#allocation2 + $0x9c] ss:$0 sps:$4 sm:$0x11]  }
  0xce   : > { %v1705_v23 = vshrl.u32 %v1218_v8, 16  ;;  %v1708_v21 = vshll.u32 %v1218_v8, 16  ;;  %v1220_v4 = vsel %vm849_vm1, %v1218_v8, %v1219_v11  ;;  %v2694_v29 = vshrl.u32 %v874_v16, 16 }
  0xcf   : > { %v2580_v59 = vsel %vm1634_vm0, %v2571_v17, %v2579_v61  ;;  %v2725_v27 = vor.u32 %v2724_v5, %v2721_v9  ;;  %v1713_v58 = vshrl.u32 %v1220_v4, 16  ;;  %v1716_v35 = vshll.u32 %v1220_v4, 16 }
  0xd0   : > { %4669 = vmatmul.mubr.bf16.gmra.mxu1 %v2580_v59  ;;  %v1707_v50 = vrot.slane %v1705_v23, 3  ;;  %v1710_v45 = vrot.slane %v1708_v21, 4  ;;  %v876_v10 = vsel %vm849_vm1, %v874_v16, %v875_v24  ;;  %v2696_v36 = vrot.slane %v2694_v29, 3 }
  0xd1   : > { %v2697_v38 = vshll.u32 %v874_v16, 16  ;;  %v2726_v18 = vsel %vm1634_vm0, %v2717_v19, %v2725_v27  ;;  %v1715_v44 = vrot.slane %v1713_v58, 3  ;;  %v2702_v37 = vshrl.u32 %v876_v10, 16  ;;  %v6686_v27 = vld [vmem:[%s8380_s1 + $0x230] sm:$0xff]  }
  0xd2   : > { %v1711_v42 = vor.u32 %v1710_v45, %v1707_v50  ;;  %4676 = vmatprep.mubr.bf16.mxu1 %v2726_v18  ;;  %v1718_v49 = vrot.slane %v1716_v35, 4  ;;  %v2705_v52 = vshll.u32 %v876_v10, 16  ;;  %v1049_v53 = vor.u32 %v7111_v2, %v7109_v1 }
  0xd3   : > { %v2699_v31 = vrot.slane %v2697_v38, 4  ;;  %v2704_v12 = vrot.slane %v2702_v37, 3  ;;  %v5640_v55 = vcombine.low %v427_v60, %v428_v30  ;;  %v5641_v47 = vcombine.low %v429_v40, %v429_v40  ;;  %v431_v37 = vld [vmem:[#allocation2 + $0xb4] sm:$0xf] }
  0xd4   : > { %v7292_v15 = vcombine.low %v428_v30, %v429_v40  ;;  %v1719_v17 = vor.u32 %v1718_v49, %v1715_v44  ;;  %v2707_v63 = vrot.slane %v2705_v52, 4  ;;  %v1696_v48 = vshrl.u32 %v1049_v53, 16  ;;  %v430_v40 = vld [vmem:[#allocation2 + $0xb0] sm:$0x8]  ;;  %v6699_v49 = vld [vmem:[%s8380_s1 + $0x228] sm:$0xff]  }
  0xd5   : > { %v2700_v62 = vor.u32 %v2699_v31, %v2696_v36  ;;  %v1699_v0 = vshll.u32 %v1049_v53, 16  ;;  %v2840_v39 = vshrl.u32 %v5640_v55, 16  ;;  %v2843_v7 = vshll.u32 %v5640_v55, 16  ;;  %v6682_v55 = vld [vmem:[#allocation2 + $0x3c] ss:$0 sps:$4 sm:$0x11]  }
  0xd6   : > { %v2848_v14 = vshrl.u32 %v5641_v47, 16  ;;  %v1720_v8 = vsel %vm1634_vm0, %v1711_v42, %v1719_v17  ;;  %v2708_v61 = vor.u32 %v2707_v63, %v2704_v12  ;;  %v1698_v9 = vrot.slane %v1696_v48, 3  ;;  %v432_v12 = vld [vmem:[#allocation2 + $0xb8] sm:$0xf] }
  0xd7   : > { %v2851_v1 = vshll.u32 %v5641_v47, 16  ;;  %4773 = vmatprep.mubr.bf16.mxu0 %v1720_v8  ;;  %v1701_v2 = vrot.slane %v1699_v0, 4  ;;  %v2842_v11 = vrot.slane %v2840_v39, 3  ;;  %v2845_v16 = vrot.slane %v2843_v7, 4 }
  0xd8   : > { %v2850_v19 = vrot.slane %v2848_v14, 3  ;;  %v2709_v5 = vsel %vm1634_vm0, %v2700_v62, %v2708_v61  ;;  %v1221_v21 = vrot.slane %v7130_v57, 5  ;;  %v1222_v59 = vrot.slane %v6677_v54, 5 }
  0xd9   : > { %v2853_v23 = vrot.slane %v2851_v1, 4  ;;  %4677 = vmatmul.mubr.bf16.gmra.mxu1 %v2709_v5  ;;  %v1702_v4 = vor.u32 %v1701_v2, %v1698_v9  ;;  %v2846_v24 = vor.u32 %v2845_v16, %v2842_v11  ;;  %v877_v29 = vrot.slane %v7232_v51, 5  ;;  %v6712_v11 = vld [vmem:[%s8380_s1 + $0x220] sm:$0xff]  }
  0xda   : > { %v878_v60 = vrot.slane %v6678_v22, 5  ;;  %v1223_v45 = vsel %vm849_vm1, %v1221_v21, %v1222_v59  ;;  %v1834_v58 = vshrl.u32 %v1221_v21, 16  ;;  %v1837_v30 = vshll.u32 %v1221_v21, 16 }
  0xdb   : > { %v2854_v50 = vor.u32 %v2853_v23, %v2850_v19  ;;  %4774 = vmatmul.mubr.bf16.vlgmr.msra.gmra.mxu0 %v1702_v4  ;;  %v1842_v35 = vshrl.u32 %v1223_v45, 16  ;;  %v1845_v10 = vshll.u32 %v1223_v45, 16  ;;  %v2823_v38 = vshrl.u32 %v877_v29, 16 }
  0xdc   : > { %v879_v36 = vsel %vm849_vm1, %v877_v29, %v878_v60  ;;  %6460 = vmatpush3.bf16.msra.mxu0 %v7223_v25  ;;  %v1836_v18 = vrot.slane %v1834_v58, 3  ;;  %v1839_v42 = vrot.slane %v1837_v30, 4  ;;  %v2826_v44 = vshll.u32 %v877_v29, 16 }
  0xdd   : > { %v2855_v51 = vsel %vm1634_vm0, %v2846_v24, %v2854_v50  ;;  %v1844_v31 = vrot.slane %v1842_v35, 3  ;;  %v1847_v52 = vrot.slane %v1845_v10, 4  ;;  %v2825_v53 = vrot.slane %v2823_v38, 3  ;;  %6461 = vmatprep.subr.bf16.mxu0 %v6686_v27  ;;  %v6683_v50 = vld [vmem:[#allocation2 + $0xac] ss:$0 sps:$4 sm:$0x11]  }
  0xde   : > { %4684 = vmatprep.mubr.bf16.mxu1 %v2855_v51  ;;  %v2831_v54 = vshrl.u32 %v879_v36, 16  ;;  %v1840_v47 = vor.u32 %v1839_v42, %v1836_v18  ;;  %v2828_v25 = vrot.slane %v2826_v44, 4  ;;  %v2834_v22 = vshll.u32 %v879_v36, 16  ;;  %v6722_v10 = vld [vmem:[%s8380_s1 + $0x218] sm:$0xff]   ;;  %v433_v18 = vld [vmem:[#allocation2 + $0xc0] sm:$0x8] }
  0xdf   : > { %v1051_v17 = vshrl.u32 %v7130_v57, 16  ;;  %v1848_v62 = vor.u32 %v1847_v52, %v1844_v31  ;;  %v1054_v48 = vshll.u32 %v7130_v57, 16  ;;  %v5642_v0 = vcombine.low %v430_v40, %v431_v37  ;;  %v434_v42 = vld [vmem:[#allocation2 + $0xc4] sm:$0xf] }
  0xe0   : > { %v2833_v63 = vrot.slane %v2831_v54, 3  ;;  %v2829_v39 = vor.u32 %v2828_v25, %v2825_v53  ;;  %v2836_v7 = vrot.slane %v2834_v22, 4  ;;  %v5643_v8 = vcombine.low %v432_v12, %v432_v12  ;;  %6462 = vmatpush3.bf16.msra.mxu0 %v6686_v27 }
  0xe1   : > { %v1053_v14 = vrot.slane %v1051_v17, 4  ;;  %v1849_v61 = vsel %vm1634_vm0, %v1840_v47, %v1848_v62  ;;  %v1056_v9 = vrot.slane %v1054_v48, 5  ;;  %v7311_v1 = vcombine.low %v431_v37, %v432_v12  ;;  %6463 = vmatprep.subr.bf16.mxu0 %v6699_v49  ;;  %v6731_v17 = vld [vmem:[%s8380_s1 + $0x210] sm:$0xff]  }
  0xe2   : > { %v2969_v2 = vshrl.u32 %v5642_v0, 16  ;;  %4781 = vmatprep.mubr.bf16.mxu0 %v1849_v61  ;;  %v2837_v16 = vor.u32 %v2836_v7, %v2833_v63  ;;  %v2972_v57 = vshll.u32 %v5642_v0, 16  ;;  %v2977_v19 = vshrl.u32 %v5643_v8, 16  ;;  %v6690_v61 = vld [vmem:[#allocation2 + $0x4c] ss:$0 sps:$4 sm:$0x11]  }
  0xe3   : > { %v2980_v5 = vshll.u32 %v5643_v8, 16  ;;  %v1057_v23 = vor.u32 %v1056_v9, %v1053_v14  ;;  %v1224_v59 = vrot.slane %v7165_v13, 5  ;;  %v1225_v4 = vrot.slane %v6682_v55, 5 }
  0xe4   : > { %v2971_v21 = vrot.slane %v2969_v2, 3  ;;  %v2838_v24 = vsel %vm1634_vm0, %v2829_v39, %v2837_v16  ;;  %v2974_v29 = vrot.slane %v2972_v57, 4  ;;  %v2979_v60 = vrot.slane %v2977_v19, 3  ;;  %6464 = vmatpush3.bf16.msra.mxu0 %v6699_v49  ;;  %v435_v39 = vld [vmem:[#allocation2 + $0xc8] sm:$0xf] }
  0xe5   : > { %v2982_v27 = vrot.slane %v2980_v5, 4  ;;  %4685 = vmatmul.mubr.bf16.gmra.mxu1 %v2838_v24  ;;  %v1825_v45 = vshrl.u32 %v1057_v23, 16  ;;  %v1828_v58 = vshll.u32 %v1057_v23, 16  ;;  %v1226_v30 = vsel %vm849_vm1, %v1224_v59, %v1225_v4  ;;  %6465 = vmatprep.subr.bf16.mxu0 %v6712_v11 }
  0xe6   : > { %v1963_v35 = vshrl.u32 %v1224_v59, 16  ;;  %v2975_v36 = vor.u32 %v2974_v29, %v2971_v21  ;;  %v1966_v40 = vshll.u32 %v1224_v59, 16  ;;  %v1971_v51 = vshrl.u32 %v1226_v30, 16 }
  0xe7   : > { %v2983_v38 = vor.u32 %v2982_v27, %v2979_v60  ;;  %v1827_v44 = vrot.slane %v1825_v45, 3  ;;  %v1830_v37 = vrot.slane %v1828_v58, 4  ;;  %v1974_v31 = vshll.u32 %v1226_v30, 16 }
  0xe8   : > { %v1965_v49 = vrot.slane %v1963_v35, 3  ;;  %v1968_v53 = vrot.slane %v1966_v40, 4  ;;  %v1973_v54 = vrot.slane %v1971_v51, 3  ;;  %v880_v12 = vrot.slane %v7252_v6, 5  ;;  %6466 = vmatpush3.bf16.msra.mxu0 %v6712_v11 }
  0xe9   : > { %v2984_v52 = vsel %vm1634_vm0, %v2975_v36, %v2983_v38  ;;  %v1831_v55 = vor.u32 %v1830_v37, %v1827_v44  ;;  %v1976_v47 = vrot.slane %v1974_v31, 4  ;;  %v881_v25 = vrot.slane %v6683_v50, 5  ;;  %6467 = vmatprep.subr.bf16.mxu0 %v6722_v10  ;;  %v6691_v35 = vld [vmem:[#allocation2 + $0xbc] ss:$0 sps:$4 sm:$0x11]   ;;  %v6740_v37 = vld [vmem:[%s8380_s1 + $0x208] sm:$0xff]  }
  0xea   : > { %4692 = vmatprep.mubr.bf16.mxu1 %v2984_v52  ;;  %v1059_v22 = vshrl.u32 %v7165_v13, 16  ;;  %v1969_v62 = vor.u32 %v1968_v53, %v1965_v49  ;;  %v2952_v63 = vshrl.u32 %v880_v12, 16  ;;  %v2955_v48 = vshll.u32 %v880_v12, 16 }
  0xeb   : > { %v1062_v0 = vshll.u32 %v7165_v13, 16  ;;  %4782 = vmatmul.mubr.bf16.gmra.mxu0 %v1831_v55  ;;  %v1977_v6 = vor.u32 %v1976_v47, %v1973_v54  ;;  %v882_v7 = vsel %vm849_vm1, %v880_v12, %v881_v25  ;;  %v5644_v8 = vcombine.low %v433_v18, %v434_v42 }
  0xec   : > { %v1061_v14 = vrot.slane %v1059_v22, 4  ;;  %v2954_v9 = vrot.slane %v2952_v63, 3  ;;  %v2957_v2 = vrot.slane %v2955_v48, 4  ;;  %v2960_v11 = vshrl.u32 %v882_v7, 16  ;;  %6468 = vmatpush3.bf16.msra.mxu0 %v6722_v10  ;;  %v436_v63 = vld [vmem:[#allocation2 + $0xd0] sm:$0x8] }
  0xed   : > { %v2963_v16 = vshll.u32 %v882_v7, 16  ;;  %v1978_v57 = vsel %vm1634_vm0, %v1969_v62, %v1977_v6  ;;  %v1064_v19 = vrot.slane %v1062_v0, 5  ;;  %v5645_v5 = vcombine.low %v435_v39, %v435_v39  ;;  %6469 = vmatprep.subr.bf16.mxu0 %v6731_v17  ;;  %v437_v7 = vld [vmem:[#allocation2 + $0xd4] sm:$0xf] }
  0xee   : > { %v7331_v23 = vcombine.low %v434_v42, %v435_v39  ;;  %4789 = vmatprep.mubr.bf16.mxu0 %v1978_v57  ;;  %v2958_v13 = vor.u32 %v2957_v2, %v2954_v9  ;;  %v2962_v21 = vrot.slane %v2960_v11, 3  ;;  %v3098_v4 = vshrl.u32 %v5644_v8, 16  ;;  %v438_v2 = vld [vmem:[#allocation2 + $0xd8] sm:$0xf] }
  0xef   : > { %v2965_v59 = vrot.slane %v2963_v16, 4  ;;  %v1065_v24 = vor.u32 %v1064_v19, %v1061_v14  ;;  %v3101_v29 = vshll.u32 %v5644_v8, 16  ;;  %v3106_v60 = vshrl.u32 %v5645_v5, 16 }
  0xf0   : > { %v3109_v27 = vshll.u32 %v5645_v5, 16  ;;  %v3100_v45 = vrot.slane %v3098_v4, 3  ;;  %v1227_v58 = vrot.slane %v7187_v33, 5  ;;  %v1228_v30 = vrot.slane %v6690_v61, 5  ;;  %6470 = vmatpush3.bf16.msra.mxu0 %v6731_v17 }
  0xf1   : > { %v2966_v50 = vor.u32 %v2965_v59, %v2962_v21  ;;  %v1954_v10 = vshrl.u32 %v1065_v24, 16  ;;  %v1957_v36 = vshll.u32 %v1065_v24, 16  ;;  %v3103_v38 = vrot.slane %v3101_v29, 4  ;;  %6471 = vmatprep.subr.bf16.mxu0 %v6740_v37  ;;  %v6695_v59 = vld [vmem:[#allocation2 + $0x5c] ss:$0 sps:$4 sm:$0x11]  }
  0xf2   : > { %v3108_v40 = vrot.slane %v3106_v60, 3  ;;  %v3111_v18 = vrot.slane %v3109_v27, 4  ;;  %v1229_v42 = vsel %vm849_vm1, %v1227_v58, %v1228_v30  ;;  %v2092_v44 = vshrl.u32 %v1227_v58, 16 }
  0xf3   : > { %v2967_v51 = vsel %vm1634_vm0, %v2958_v13, %v2966_v50  ;;  %v1956_v49 = vrot.slane %v1954_v10, 3  ;;  %v1959_v31 = vrot.slane %v1957_v36, 4  ;;  %v3104_v52 = vor.u32 %v3103_v38, %v3100_v45  ;;  %v7347_v38 = vpop.f32.mrf.mxu0 }
  0xf4   : > { %4693 = vmatmul.mubr.bf16.gmra.mxu1 %v2967_v51  ;;  %v2095_v53 = vshll.u32 %v1227_v58, 16  ;;  %v3112_v54 = vor.u32 %v3111_v18, %v3108_v40  ;;  %v2094_v12 = vrot.slane %v2092_v44, 3  ;;  %v2100_v55 = vshrl.u32 %v1229_v42, 16  ;;  %6472 = vmatpush3.bf16.msra.mxu0 %v6740_v37  ;;  %8384 = vst [vmem:[#allocation3_spill] sm:$0xff] %v7347_v38 }
  0xf5   : > { %v2103_v47 = vshll.u32 %v1229_v42, 16  ;;  %v1960_v25 = vor.u32 %v1959_v31, %v1956_v49  ;;  %v883_v17 = vrot.slane %v7270_v20, 5  ;;  %v884_v62 = vrot.slane %v6691_v35, 5  ;;  %v6696_v42 = vld [vmem:[#allocation2 + $0xcc] ss:$0 sps:$4 sm:$0x11]  }
  0xf6   : > { %v2097_v22 = vrot.slane %v2095_v53, 4  ;;  %v3113_v48 = vsel %vm1634_vm0, %v3104_v52, %v3112_v54  ;;  %v2102_v0 = vrot.slane %v2100_v55, 3  ;;  %v1067_v6 = vshrl.u32 %v7187_v33, 16 }
  0xf7   : > { %v2105_v39 = vrot.slane %v2103_v47, 4  ;;  %4790 = vmatmul.mubr.bf16.gmra.mxu0 %v1960_v25  ;;  %4700 = vmatprep.mubr.bf16.mxu1 %v3113_v48  ;;  %v885_v8 = vsel %vm849_vm1, %v883_v17, %v884_v62  ;;  %v3081_v61 = vshrl.u32 %v883_v17, 16  ;;  %v3084_v9 = vshll.u32 %v883_v17, 16  ;;  %v439_v17 = vld [vmem:[#allocation2 + $0xe0] sm:$0x8] }
  0xf8   : > { %v2098_v14 = vor.u32 %v2097_v22, %v2094_v12  ;;  %v3089_v20 = vshrl.u32 %v885_v8, 16  ;;  %v3092_v16 = vshll.u32 %v885_v8, 16  ;;  %v1069_v57 = vrot.slane %v1067_v6, 4  ;;  %v440_v62 = vld [vmem:[#allocation2 + $0xe4] sm:$0xf] }
  0xf9   : > { %v2106_v11 = vor.u32 %v2105_v39, %v2102_v0  ;;  %v3083_v19 = vrot.slane %v3081_v61, 3  ;;  %v3086_v5 = vrot.slane %v3084_v9, 4  ;;  %v1070_v13 = vshll.u32 %v7187_v33, 16 }
  0xfa   : > { %v5646_v21 = vcombine.low %v436_v63, %v437_v7  ;;  %v3091_v24 = vrot.slane %v3089_v20, 3  ;;  %v3094_v29 = vrot.slane %v3092_v16, 4  ;;  %v5647_v60 = vcombine.low %v438_v2, %v438_v2  ;;  %v7352_v63 = vpop.f32.mrf.mxu0 }
  0xfb   : > { %v2107_v4 = vsel %vm1634_vm0, %v2098_v14, %v2106_v11  ;;  %v3087_v27 = vor.u32 %v3086_v5, %v3083_v19  ;;  %v1072_v50 = vrot.slane %v1070_v13, 5  ;;  %v7345_v45 = vcombine.low %v437_v7, %v438_v2  ;;  %8385 = vst [vmem:[#allocation4_spill] sm:$0xff] %v7352_v63 }
  0xfc   : > { %4797 = vmatprep.mubr.bf16.mxu0 %v2107_v4  ;;  %v3227_v58 = vshrl.u32 %v5646_v21, 16  ;;  %v3095_v30 = vor.u32 %v3094_v29, %v3091_v24  ;;  %v3230_v35 = vshll.u32 %v5646_v21, 16  ;;  %v3235_v10 = vshrl.u32 %v5647_v60, 16  ;;  %v441_v21 = vld [vmem:[#allocation2 + $0xe8] sm:$0xf]  ;;  %v7362_v4 = vpop.f32.mrf.mxu0 }
  0xfd   : > { %v3238_v36 = vshll.u32 %v5647_v60, 16  ;;  %v1073_v33 = vor.u32 %v1072_v50, %v1069_v57  ;;  %v1230_v51 = vrot.slane %v7214_v46, 5  ;;  %v1231_v18 = vrot.slane %v6695_v59, 5  ;;  %8386 = vst [vmem:[#allocation5_spill] sm:$0xff] %v7362_v4 }
  0xfe   : > { %v3229_v40 = vrot.slane %v3227_v58, 3  ;;  %v3096_v44 = vsel %vm1634_vm0, %v3087_v27, %v3095_v30  ;;  %v3232_v37 = vrot.slane %v3230_v35, 4  ;;  %v3237_v49 = vrot.slane %v3235_v10, 3  ;;  %v6703_v27 = vld [vmem:[#allocation2 + $0x6c] ss:$0 sps:$4 sm:$0x11]  }
  0xff   : > { %v3240_v31 = vrot.slane %v3238_v36, 4  ;;  %4701 = vmatmul.mubr.bf16.gmra.mxu1 %v3096_v44  ;;  %v2083_v52 = vshrl.u32 %v1073_v33, 16  ;;  %v2086_v53 = vshll.u32 %v1073_v33, 16  ;;  %v1232_v54 = vsel %vm849_vm1, %v1230_v51, %v1231_v18 }
 0x100   : > { %v2221_v12 = vshrl.u32 %v1230_v51, 16  ;;  %v3233_v55 = vor.u32 %v3232_v37, %v3229_v40  ;;  %v2224_v25 = vshll.u32 %v1230_v51, 16  ;;  %v2229_v22 = vshrl.u32 %v1232_v54, 16  ;;  %v7370_v37 = vpop.f32.mrf.mxu0 }
 0x101   : > { %v3241_v47 = vor.u32 %v3240_v31, %v3237_v49  ;;  %v2085_v48 = vrot.slane %v2083_v52, 3  ;;  %v2088_v0 = vrot.slane %v2086_v53, 4  ;;  %v2232_v6 = vshll.u32 %v1232_v54, 16  ;;  %8387 = vst [vmem:[#allocation6_spill] sm:$0xff] %v7370_v37 }
 0x102   : > { %v2223_v39 = vrot.slane %v2221_v12, 3  ;;  %v2226_v14 = vrot.slane %v2224_v25, 4  ;;  %v2231_v8 = vrot.slane %v2229_v22, 3  ;;  %v886_v61 = vrot.slane %v6978_v43, 5 }
 0x103   : > { %v3242_v7 = vsel %vm1634_vm0, %v3233_v55, %v3241_v47  ;;  %v2089_v2 = vor.u32 %v2088_v0, %v2085_v48  ;;  %v2234_v11 = vrot.slane %v2232_v6, 4  ;;  %v887_v20 = vrot.slane %v6696_v42, 5  ;;  %v6704_v54 = vld [vmem:[#allocation2 + $0xdc] ss:$0 sps:$4 sm:$0x11]  }
 0x104   : > { %4708 = vmatprep.mubr.bf16.mxu1 %v3242_v7  ;;  %v1075_v16 = vshrl.u32 %v7214_v46, 16  ;;  %v2227_v57 = vor.u32 %v2226_v14, %v2223_v39  ;;  %v3210_v19 = vshrl.u32 %v886_v61, 16  ;;  %v3213_v5 = vshll.u32 %v886_v61, 16 }
 0x105   : > { %v1078_v13 = vshll.u32 %v7214_v46, 16  ;;  %4798 = vmatmul.mubr.bf16.gmra.mxu0 %v2089_v2  ;;  %v2235_v43 = vor.u32 %v2234_v11, %v2231_v8  ;;  %v888_v24 = vsel %vm849_vm1, %v886_v61, %v887_v20  ;;  %v5648_v60 = vcombine.low %v439_v17, %v440_v62  ;;  %v6749_v61 = vld [vmem:[%s8380_s1 + $0x200] sm:$0xff]  }
 0x106   : > { %v1077_v29 = vrot.slane %v1075_v16, 4  ;;  %v3212_v50 = vrot.slane %v3210_v19, 3  ;;  %v3215_v58 = vrot.slane %v3213_v5, 4  ;;  %v3218_v30 = vshrl.u32 %v888_v24, 16  ;;  %6473 = vmatprep.subr.bf16.mxu0 %v6749_v61 }
 0x107   : > { %v7356_v9 = vpop.f32.mrf.mxu1  ;;  %v3221_v35 = vshll.u32 %v888_v24, 16  ;;  %v2236_v46 = vsel %vm1634_vm0, %v2227_v57, %v2235_v43  ;;  %v1080_v36 = vrot.slane %v1078_v13, 5  ;;  %v5649_v33 = vcombine.low %v441_v21, %v441_v21  ;;  %6474 = vmatpush3.bf16.msra.mxu0 %v6749_v61 }
 0x108   : > { %v7368_v40 = vcombine.low %v440_v62, %v441_v21  ;;  %4805 = vmatprep.mubr.bf16.mxu0 %v2236_v46  ;;  %v3216_v51 = vor.u32 %v3215_v58, %v3212_v50  ;;  %v3220_v18 = vrot.slane %v3218_v30, 3  ;;  %v3356_v44 = vshrl.u32 %v5648_v60, 16  ;;  %v442_v50 = vld [vmem:[#allocation2 + $0xf0] sm:$0x8] }
 0x109   : > { %v7360_v59 = vpop.f32.mrf.mxu1  ;;  %v3223_v42 = vrot.slane %v3221_v35, 4  ;;  %v1081_v49 = vor.u32 %v1080_v36, %v1077_v29  ;;  %v3359_v31 = vshll.u32 %v5648_v60, 16  ;;  %v3364_v52 = vshrl.u32 %v5649_v33, 16 }
 0x10a   : > { %v3367_v53 = vshll.u32 %v5649_v33, 16  ;;  %v3358_v47 = vrot.slane %v3356_v44, 3  ;;  %v1233_v25 = vrot.slane %v7240_v3, 5  ;;  %v1234_v22 = vrot.slane %v6703_v27, 5  ;;  %v443_v33 = vld [vmem:[#allocation2 + $0xf4] sm:$0xf] }
 0x10b   : > { %v7365_v10 = vpop.f32.mrf.mxu1  ;;  %v3224_v55 = vor.u32 %v3223_v42, %v3220_v18  ;;  %v2212_v17 = vshrl.u32 %v1081_v49, 16  ;;  %v2215_v62 = vshll.u32 %v1081_v49, 16  ;;  %v3361_v48 = vrot.slane %v3359_v31, 4  ;;  %v444_v49 = vld [vmem:[#allocation2 + $0xf8] sm:$0xf] }
 0x10c   : > { %v3366_v0 = vrot.slane %v3364_v52, 3  ;;  %v3369_v6 = vrot.slane %v3367_v53, 4  ;;  %v1235_v7 = vsel %vm849_vm1, %v1233_v25, %v1234_v22  ;;  %v2350_v14 = vshrl.u32 %v1233_v25, 16 }
 0x10d   : > { %v7372_v12 = vpop.f32.mrf.mxu1  ;;  %v3225_v39 = vsel %vm1634_vm0, %v3216_v51, %v3224_v55  ;;  %v7377_v8 = vpop.f32.mrf.mxu0  ;;  %v2214_v2 = vrot.slane %v2212_v17, 3  ;;  %v2217_v11 = vrot.slane %v2215_v62, 4  ;;  %v3362_v20 = vor.u32 %v3361_v48, %v3358_v47  ;;  %v6708_v17 = vld [vmem:[#allocation2 + $0x7c] ss:$0 sps:$4 sm:$0x11]  }
 0x10e   : > { %8388 = vst [vmem:[#allocation7_spill] sm:$0xff] %v7377_v8  ;;  %4709 = vmatmul.mubr.bf16.gmra.mxu1 %v3225_v39  ;;  %v2353_v16 = vshll.u32 %v1233_v25, 16  ;;  %v3370_v19 = vor.u32 %v3369_v6, %v3366_v0  ;;  %v2352_v5 = vrot.slane %v2350_v14, 3  ;;  %v2358_v13 = vshrl.u32 %v1235_v7, 16 }
 0x10f   : > { %v7382_v57 = vpop.f32.mrf.mxu1  ;;  %v2361_v21 = vshll.u32 %v1235_v7, 16  ;;  %v7384_v43 = vpop.f32.mrf.mxu0  ;;  %v2218_v24 = vor.u32 %v2217_v11, %v2214_v2  ;;  %v889_v60 = vrot.slane %v7012_v28, 5  ;;  %v890_v27 = vrot.slane %v6704_v54, 5 }
 0x110   : > { %8389 = vst [vmem:[#allocation8_spill] sm:$0xff] %v7382_v57  ;;  %8390 = vst [vmem:[#allocation9_spill] sm:$0xff] %v7384_v43  ;;  %v2355_v29 = vrot.slane %v2353_v16, 4  ;;  %v3371_v30 = vsel %vm1634_vm0, %v3362_v20, %v3370_v19  ;;  %v2360_v35 = vrot.slane %v2358_v13, 3  ;;  %v1083_v36 = vshrl.u32 %v7240_v3, 16 }
 0x111   : > { %v7387_v58 = vpop.f32.mrf.mxu1  ;;  %v2363_v46 = vrot.slane %v2361_v21, 4  ;;  %v7391_v51 = vpop.f32.mrf.mxu0  ;;  %4806 = vmatmul.mubr.bf16.gmra.mxu0 %v2218_v24  ;;  %4716 = vmatprep.mubr.bf16.mxu1 %v3371_v30  ;;  %v891_v42 = vsel %vm849_vm1, %v889_v60, %v890_v27  ;;  %v3339_v28 = vshrl.u32 %v889_v60, 16  ;;  %v3342_v44 = vshll.u32 %v889_v60, 16  ;;  %v6785_v43 = vld [vmem:[#allocation2 + $0xec] ss:$0 sps:$4 sm:$0x11]  }
 0x112   : > { %8391 = vst [vmem:[#allocation10_spill] sm:$0xff] %v7387_v58  ;;  %8392 = vst [vmem:[#allocation11_spill] sm:$0xff] %v7391_v51  ;;  %v2356_v18 = vor.u32 %v2355_v29, %v2352_v5  ;;  %v3347_v52 = vshrl.u32 %v891_v42, 16  ;;  %v3350_v53 = vshll.u32 %v891_v42, 16  ;;  %v1085_v54 = vrot.slane %v1083_v36, 4 }
 0x113   : > { %v2364_v31 = vor.u32 %v2363_v46, %v2360_v35  ;;  %v3341_v55 = vrot.slane %v3339_v28, 3  ;;  %v3344_v47 = vrot.slane %v3342_v44, 4  ;;  %v1086_v25 = vshll.u32 %v7240_v3, 16  ;;  %v7395_v62 = vpop.f32.mrf.mxu1  ;;  %v7397_v48 = vpop.f32.mrf.mxu0  ;;  %v6709_v42 = vld [vmem:[#allocation2 + $0xec] ss:$0 sps:$4 sm:$0x11]  }
 0x114   : > { %v5650_v22 = vcombine.low %v442_v50, %v443_v33  ;;  %8393 = vst [vmem:[#allocation12_spill] sm:$0xff] %v7395_v62  ;;  %8394 = vst [vmem:[#allocation13_spill] sm:$0xff] %v7397_v48  ;;  %v3349_v39 = vrot.slane %v3347_v52, 3  ;;  %v3352_v6 = vrot.slane %v3350_v53, 4  ;;  %v5651_v7 = vcombine.low %v444_v49, %v444_v49 }
 0x115   : > { %v2365_v0 = vsel %vm1634_vm0, %v2356_v18, %v2364_v31  ;;  %v3345_v14 = vor.u32 %v3344_v47, %v3341_v55  ;;  %v1088_v61 = vrot.slane %v1086_v25, 5  ;;  %v7400_v2 = vcombine.low %v443_v33, %v444_v49  ;;  %v7403_v29 = vpop.f32.mrf.mxu1  ;;  %v445_v25 = vld [vmem:[#allocation2 + $0x100] sm:$0x8] }
 0x116   : > { %4813 = vmatprep.mubr.bf16.mxu0 %v2365_v0  ;;  %v3485_v11 = vshrl.u32 %v5650_v22, 16  ;;  %v3353_v20 = vor.u32 %v3352_v6, %v3349_v39  ;;  %v3488_v16 = vshll.u32 %v5650_v22, 16  ;;  %v3493_v3 = vshrl.u32 %v5651_v7, 16  ;;  %8395 = vst [vmem:[#allocation14_spill] sm:$0xff] %v7403_v29 }
 0x117   : > { %v3496_v19 = vshll.u32 %v5651_v7, 16  ;;  %v1089_v5 = vor.u32 %v1088_v61, %v1085_v54  ;;  %v1236_v21 = vrot.slane %v7260_v32, 5  ;;  %v1237_v24 = vrot.slane %v6708_v17, 5 }
 0x118   : > { %v3487_v13 = vrot.slane %v3485_v11, 3  ;;  %v3354_v27 = vsel %vm1634_vm0, %v3345_v14, %v3353_v20  ;;  %v3490_v50 = vrot.slane %v3488_v16, 4  ;;  %v3495_v30 = vrot.slane %v3493_v3, 3  ;;  %v446_v14 = vld [vmem:[#allocation2 + $0x104] sm:$0xf] }
 0x119   : > { %v7405_v60 = vpop.f32.mrf.mxu0  ;;  %v3498_v35 = vrot.slane %v3496_v19, 4  ;;  %4717 = vmatmul.mubr.bf16.gmra.mxu1 %v3354_v27  ;;  %v2341_v46 = vshrl.u32 %v1089_v5, 16  ;;  %v2344_v36 = vshll.u32 %v1089_v5, 16  ;;  %v1238_v33 = vsel %vm849_vm1, %v1236_v21, %v1237_v24  ;;  %v447_v24 = vld [vmem:[#allocation2 + $0x108] sm:$0xf] }
 0x11a   : > { %8396 = vst [vmem:[#allocation15_spill] sm:$0xff] %v7405_v60  ;;  %v2479_v18 = vshrl.u32 %v1236_v21, 16  ;;  %v3491_v44 = vor.u32 %v3490_v50, %v3487_v13  ;;  %v2482_v31 = vshll.u32 %v1236_v21, 16  ;;  %v2487_v52 = vshrl.u32 %v1238_v33, 16 }
 0x11b   : > { %v7409_v28 = vpop.f32.mrf.mxu0  ;;  %v3499_v49 = vor.u32 %v3498_v35, %v3495_v30  ;;  %v2343_v53 = vrot.slane %v2341_v46, 3  ;;  %v2346_v54 = vrot.slane %v2344_v36, 4  ;;  %v2490_v47 = vshll.u32 %v1238_v33, 16  ;;  %v6716_v35 = vld [vmem:[#allocation2 + $0x8c] ss:$0 sps:$4 sm:$0x11]  }
 0x11c   : > { %8397 = vst [vmem:[#allocation16_spill] sm:$0xff] %v7409_v28  ;;  %v2481_v55 = vrot.slane %v2479_v18, 3  ;;  %v2484_v39 = vrot.slane %v2482_v31, 4  ;;  %v2489_v6 = vrot.slane %v2487_v52, 3  ;;  %v892_v7 = vrot.slane %v7039_v26, 5 }
 0x11d   : > { %v7411_v22 = vpop.f32.mrf.mxu1  ;;  %v7413_v17 = vpop.f32.mrf.mxu0  ;;  %v3500_v0 = vsel %vm1634_vm0, %v3491_v44, %v3499_v49  ;;  %v2347_v61 = vor.u32 %v2346_v54, %v2343_v53  ;;  %v2492_v11 = vrot.slane %v2490_v47, 4  ;;  %v893_v20 = vrot.slane %v6709_v42, 5 }
 0x11e   : > { %8398 = vst [vmem:[#allocation17_spill] sm:$0xff] %v7411_v22  ;;  %8399 = vst [vmem:[#allocation18_spill] sm:$0xff] %v7413_v17  ;;  %4724 = vmatprep.mubr.bf16.mxu1 %v3500_v0  ;;  %v1091_v16 = vshrl.u32 %v7260_v32, 16  ;;  %v2485_v19 = vor.u32 %v2484_v39, %v2481_v55  ;;  %v3468_v5 = vshrl.u32 %v892_v7, 16  ;;  %v3471_v13 = vshll.u32 %v892_v7, 16 }
 0x11f   : > { %v7418_v3 = vpop.f32.mrf.mxu1  ;;  %v1094_v21 = vshll.u32 %v7260_v32, 16  ;;  %4814 = vmatmul.mubr.bf16.gmra.mxu0 %v2347_v61  ;;  %v2493_v27 = vor.u32 %v2492_v11, %v2489_v6  ;;  %v894_v50 = vsel %vm849_vm1, %v892_v7, %v893_v20  ;;  %v5652_v30 = vcombine.low %v445_v25, %v446_v14  ;;  %v7424_v36 = vpop.f32.mrf.mxu0  ;;  %v6793_v22 = vld [vmem:[#allocation2 + $0x11c] ss:$0 sps:$4 sm:$0x11]  }
 0x120   : > { %8400 = vst [vmem:[#allocation19_spill] sm:$0xff] %v7418_v3  ;;  %v1093_v26 = vrot.slane %v1091_v16, 4  ;;  %8402 = vst [vmem:[#allocation21_spill] sm:$0xff] %v7424_v36  ;;  %v3470_v33 = vrot.slane %v3468_v5, 3  ;;  %v3473_v18 = vrot.slane %v3471_v13, 4  ;;  %v3476_v42 = vshrl.u32 %v894_v50, 16 }
 0x121   : > { %v7422_v46 = vpop.f32.mrf.mxu1  ;;  %v3479_v44 = vshll.u32 %v894_v50, 16  ;;  %v2494_v49 = vsel %vm1634_vm0, %v2485_v19, %v2493_v27  ;;  %v1096_v31 = vrot.slane %v1094_v21, 5  ;;  %v5653_v32 = vcombine.low %v447_v24, %v447_v24 }
 0x122   : > { %8401 = vst [vmem:[#allocation20_spill] sm:$0xff] %v7422_v46  ;;  %v7427_v52 = vcombine.low %v446_v14, %v447_v24  ;;  %4821 = vmatprep.mubr.bf16.mxu0 %v2494_v49  ;;  %v3474_v53 = vor.u32 %v3473_v18, %v3470_v33  ;;  %v3478_v54 = vrot.slane %v3476_v42, 3  ;;  %v3614_v47 = vshrl.u32 %v5652_v30, 16  ;;  %v6717_v14 = vld [vmem:[#allocation2 + $0xfc] ss:$0 sps:$4 sm:$0x11]  }
 0x123   : > { %v3481_v55 = vrot.slane %v3479_v44, 4  ;;  %v1097_v25 = vor.u32 %v1096_v31, %v1093_v26  ;;  %v3617_v0 = vshll.u32 %v5652_v30, 16  ;;  %v3622_v39 = vshrl.u32 %v5653_v32, 16  ;;  %v7429_v7 = vpop.f32.mrf.mxu1  ;;  %v7431_v61 = vpop.f32.mrf.mxu0 }
 0x124   : > { %v3625_v6 = vshll.u32 %v5653_v32, 16  ;;  %8403 = vst [vmem:[#allocation22_spill] sm:$0xff] %v7429_v7  ;;  %8404 = vst [vmem:[#allocation23_spill] sm:$0xff] %v7431_v61  ;;  %v3616_v20 = vrot.slane %v3614_v47, 3  ;;  %v1239_v16 = vrot.slane %v7275_v41, 5  ;;  %v1240_v19 = vrot.slane %v6716_v35, 5 }
 0x125   : > { %v3482_v11 = vor.u32 %v3481_v55, %v3478_v54  ;;  %v2470_v5 = vshrl.u32 %v1097_v25, 16  ;;  %v2473_v13 = vshll.u32 %v1097_v25, 16  ;;  %v3619_v21 = vrot.slane %v3617_v0, 4  ;;  %v7434_v27 = vpop.f32.mrf.mxu0  ;;  %v470_v61 = vld [vmem:[#allocation2 + $0x38] sm:$0xf] }
 0x126   : > { %v3624_v24 = vrot.slane %v3622_v39, 3  ;;  %8405 = vst [vmem:[#allocation24_spill] sm:$0xff] %v7434_v27  ;;  %v3627_v26 = vrot.slane %v3625_v6, 4  ;;  %v1241_v30 = vsel %vm849_vm1, %v1239_v16, %v1240_v19  ;;  %v2608_v33 = vshrl.u32 %v1239_v16, 16 }
 0x127   : > { %v3483_v50 = vsel %vm1634_vm0, %v3474_v53, %v3482_v11  ;;  %v2472_v18 = vrot.slane %v2470_v5, 3  ;;  %v2475_v42 = vrot.slane %v2473_v13, 4  ;;  %v3620_v44 = vor.u32 %v3619_v21, %v3616_v20  ;;  %v7438_v31 = vpop.f32.mrf.mxu1  ;;  %v7443_v6 = vpop.f32.mrf.mxu0  ;;  %v6718_v5 = vld [vmem:[#allocation2 + $0x9c] ss:$0 sps:$4 sm:$0x11]  }
 0x128   : > { %4725 = vmatmul.mubr.bf16.gmra.mxu1 %v3483_v50  ;;  %v2611_v49 = vshll.u32 %v1239_v16, 16  ;;  %8406 = vst [vmem:[#allocation25_spill] sm:$0xff] %v7438_v31  ;;  %v3628_v35 = vor.u32 %v3627_v26, %v3624_v24  ;;  %v2610_v32 = vrot.slane %v2608_v33, 3  ;;  %v2616_v54 = vshrl.u32 %v1241_v30, 16  ;;  %8408 = vst [vmem:[#allocation27_spill] sm:$0xff] %v7443_v6 }
 0x129   : > { %v2619_v55 = vshll.u32 %v1241_v30, 16  ;;  %v2476_v47 = vor.u32 %v2475_v42, %v2472_v18  ;;  %v895_v0 = vrot.slane %v7072_v34, 5  ;;  %v896_v53 = vrot.slane %v6717_v14, 5  ;;  %v7441_v39 = vpop.f32.mrf.mxu1  ;;  %v466_v33 = vld [vmem:[#allocation2 + $0x24] sm:$0xf] }
 0x12a   : > { %v2613_v25 = vrot.slane %v2611_v49, 4  ;;  %8407 = vst [vmem:[#allocation26_spill] sm:$0xff] %v7441_v39  ;;  %v3629_v11 = vsel %vm1634_vm0, %v3620_v44, %v3628_v35  ;;  %v2618_v19 = vrot.slane %v2616_v54, 3  ;;  %v1099_v16 = vshrl.u32 %v7275_v41, 16  ;;  %v467_v54 = vld [vmem:[#allocation2 + $0x28] sm:$0xf] }
 0x12b   : > { %v2621_v20 = vrot.slane %v2619_v55, 4  ;;  %4822 = vmatmul.mubr.bf16.gmra.mxu0 %v2476_v47  ;;  %4732 = vmatprep.mubr.bf16.mxu1 %v3629_v11  ;;  %v897_v21 = vsel %vm849_vm1, %v895_v0, %v896_v53  ;;  %v3597_v24 = vshrl.u32 %v895_v0, 16  ;;  %v3600_v50 = vshll.u32 %v895_v0, 16  ;;  %v7448_v18 = vpop.f32.mrf.mxu1  ;;  %v7452_v55 = vpop.f32.mrf.mxu0 }
 0x12c   : > { %v2614_v13 = vor.u32 %v2613_v25, %v2610_v32  ;;  %v3605_v14 = vshrl.u32 %v897_v21, 16  ;;  %v3608_v26 = vshll.u32 %v897_v21, 16  ;;  %v1101_v30 = vrot.slane %v1099_v16, 4  ;;  %8409 = vst [vmem:[#allocation28_spill] sm:$0xff] %v7448_v18  ;;  %8410 = vst [vmem:[#allocation29_spill] sm:$0xff] %v7452_v55 }
 0x12d   : > { %v2622_v34 = vor.u32 %v2621_v20, %v2618_v19  ;;  %v3599_v42 = vrot.slane %v3597_v24, 3  ;;  %v3602_v44 = vrot.slane %v3600_v50, 4  ;;  %v1102_v49 = vshll.u32 %v7275_v41, 16  ;;  %v7459_v50 = vpop.f32.mrf.mxu1 }
 0x12e   : > { %v1242_v35 = vrot.slane %v7282_v56, 5  ;;  %v3607_v47 = vrot.slane %v3605_v14, 3  ;;  %v3610_v25 = vrot.slane %v3608_v26, 4  ;;  %v1243_v0 = vrot.slane %v6718_v5, 5  ;;  %8411 = vst [vmem:[#allocation30_spill] sm:$0xff] %v7459_v50 }
 0x12f   : > { %v2623_v32 = vsel %vm1634_vm0, %v2614_v13, %v2622_v34  ;;  %v3603_v53 = vor.u32 %v3602_v44, %v3599_v42  ;;  %v1104_v11 = vrot.slane %v1102_v49, 5  ;;  %v7456_v24 = vcombine.low %v466_v33, %v467_v54  ;;  %v465_v49 = vld [vmem:[#allocation2 + $0x20] sm:$0x8] }
 0x130   : > { %4829 = vmatprep.mubr.bf16.mxu0 %v2623_v32  ;;  %v2737_v19 = vshrl.u32 %v1242_v35, 16  ;;  %v2740_v20 = vshll.u32 %v1242_v35, 16  ;;  %v3611_v16 = vor.u32 %v3610_v25, %v3607_v47  ;;  %v1244_v21 = vsel %vm849_vm1, %v1242_v35, %v1243_v0 }
 0x131   : > { %v1107_v41 = vshrl.u32 %v7282_v56, 16  ;;  %v1105_v55 = vor.u32 %v1104_v11, %v1101_v30  ;;  %v2745_v34 = vshrl.u32 %v1244_v21, 16  ;;  %v7461_v14 = vpop.f32.mrf.mxu0  ;;  %v2748_v26 = vshll.u32 %v1244_v21, 16 }
 0x132   : > { %v2739_v6 = vrot.slane %v2737_v19, 3  ;;  %v2742_v13 = vrot.slane %v2740_v20, 4  ;;  %8412 = vst [vmem:[#allocation31_spill] sm:$0xff] %v7461_v14  ;;  %v3612_v5 = vsel %vm1634_vm0, %v3603_v53, %v3611_v16  ;;  %v1411_v42 = vshrl.u32 %v7456_v24, 16 }
 0x133   : > { %v1414_v44 = vshll.u32 %v7456_v24, 16  ;;  %4733 = vmatmul.mubr.bf16.gmra.mxu1 %v3612_v5  ;;  %v2599_v35 = vshrl.u32 %v1105_v55, 16  ;;  %v2602_v32 = vshll.u32 %v1105_v55, 16  ;;  %v2747_v25 = vrot.slane %v2745_v34, 3  ;;  %v7466_v0 = vpop.f32.mrf.mxu0 }
 0x134   : > { %v2743_v47 = vor.u32 %v2742_v13, %v2739_v6  ;;  %8413 = vst [vmem:[#allocation32_spill] sm:$0xff] %v7466_v0  ;;  %v2750_v30 = vrot.slane %v2748_v26, 4  ;;  %v1413_v11 = vrot.slane %v1411_v42, 4  ;;  %v1109_v20 = vrot.slane %v1107_v41, 4  ;;  %v7468_v14 = vpop.f32.mrf.mxu1 }
 0x135   : > { %v1416_v19 = vrot.slane %v1414_v44, 5  ;;  %8414 = vst [vmem:[#allocation33_spill] sm:$0xff] %v7468_v14  ;;  %v2601_v53 = vrot.slane %v2599_v35, 3  ;;  %v2604_v16 = vrot.slane %v2602_v32, 4  ;;  %v1110_v21 = vshll.u32 %v7282_v56, 16  ;;  %v7471_v17 = vpop.f32.mrf.mxu0 }
 0x136   : > { %v5686_v36 = vcombine.low %v465_v49, %v466_v33  ;;  %8415 = vst [vmem:[#allocation34_spill] sm:$0xff] %v7471_v17  ;;  %v2751_v5 = vor.u32 %v2750_v30, %v2747_v25  ;;  %v5687_v55 = vcombine.low %v467_v54, %v467_v54  ;;  %v6723_v6 = vld [vmem:[#allocation2 + $0xac] ss:$0 sps:$4 sm:$0x11]   ;;  %v1245_v13 = vrot.slane %v7292_v15, 5  ;;  %v7474_v34 = vpop.f32.mrf.mxu1 }
 0x137   : > { %v1417_v27 = vor.u32 %v1416_v19, %v1413_v11  ;;  %8416 = vst [vmem:[#allocation35_spill] sm:$0xff] %v7474_v34  ;;  %v2605_v26 = vor.u32 %v2604_v16, %v2601_v53  ;;  %v1112_v42 = vrot.slane %v1110_v21, 5  ;;  %v7477_v33 = vpop.f32.mrf.mxu0  ;;  %v1246_v21 = vrot.slane %v6723_v6, 5  ;;  %v508_v14 = vld [vmem:[#allocation2 + $0x104] sm:$0xf] }
 0x138   : > { %v1722_v41 = vshrl.u32 %v5686_v36, 16  ;;  %v1725_v44 = vshll.u32 %v5686_v36, 16  ;;  %v2752_v35 = vsel %vm1634_vm0, %v2743_v47, %v2751_v5  ;;  %v1730_v56 = vshrl.u32 %v5687_v55, 16  ;;  %8417 = vst [vmem:[#allocation36_spill] sm:$0xff] %v7477_v33  ;;  %v7479_v11 = vpop.f32.mrf.mxu1  ;;  %v469_v36 = vld [vmem:[#allocation2 + $0x34] sm:$0xf] }
 0x139   : > { %v1739_v32 = vshrl.u32 %v1417_v27, 16  ;;  %v1742_v0 = vshll.u32 %v1417_v27, 16  ;;  %4830 = vmatmul.mubr.bf16.gmra.mxu0 %v2605_v26  ;;  %v1113_v49 = vor.u32 %v1112_v42, %v1109_v20  ;;  %v1733_v30 = vshll.u32 %v5687_v55, 16  ;;  %8418 = vst [vmem:[#allocation37_spill] sm:$0xff] %v7479_v11 }
 0x13a   : > { %v1724_v25 = vrot.slane %v1722_v41, 3  ;;  %v1727_v54 = vrot.slane %v1725_v44, 4  ;;  %4837 = vmatprep.mubr.bf16.mxu0 %v2752_v35  ;;  %v1732_v16 = vrot.slane %v1730_v56, 3  ;;  %v1247_v26 = vsel %vm849_vm1, %v1245_v13, %v1246_v21 }
 0x13b   : > { %v1741_v19 = vrot.slane %v1739_v32, 3  ;;  %v1744_v53 = vrot.slane %v1742_v0, 4  ;;  %v2728_v17 = vshrl.u32 %v1113_v49, 16  ;;  %v2731_v47 = vshll.u32 %v1113_v49, 16  ;;  %v7484_v0 = vpop.f32.mrf.mxu1 }
 0x13c   : > { %v1728_v5 = vor.u32 %v1727_v54, %v1724_v25  ;;  %v1735_v27 = vrot.slane %v1733_v30, 4  ;;  %v2866_v20 = vshrl.u32 %v1245_v13, 16  ;;  %v2869_v42 = vshll.u32 %v1245_v13, 16  ;;  %8420 = vst [vmem:[#allocation39_spill] sm:$0xff] %v7484_v0  ;;  %v468_v54 = vld [vmem:[#allocation2 + $0x30] sm:$0x8] }
 0x13d   : > { %v1745_v28 = vor.u32 %v1744_v53, %v1741_v19  ;;  %v7482_v41 = vpop.f32.mrf.mxu0  ;;  %v2730_v55 = vrot.slane %v2728_v17, 3  ;;  %v2733_v44 = vrot.slane %v2731_v47, 4  ;;  %v2874_v32 = vshrl.u32 %v1247_v26, 16 }
 0x13e   : > { %8419 = vst [vmem:[#allocation38_spill] sm:$0xff] %v7482_v41  ;;  %v1736_v35 = vor.u32 %v1735_v27, %v1732_v16  ;;  %v2868_v6 = vrot.slane %v2866_v20, 3  ;;  %v2871_v56 = vrot.slane %v2869_v42, 4  ;;  %v2877_v49 = vshll.u32 %v1247_v26, 16 }
 0x13f   : > { %4934 = vmatprep.mubr.bf16.mxu1 %v1745_v28  ;;  %v7486_v25 = vcombine.low %v469_v36, %v470_v61  ;;  %v7488_v30 = vpop.f32.mrf.mxu0  ;;  %v2734_v19 = vor.u32 %v2733_v44, %v2730_v55  ;;  %v2876_v53 = vrot.slane %v2874_v32, 3  ;;  %v1115_v17 = vshrl.u32 %v7292_v15, 16  ;;  %v6727_v27 = vld [vmem:[#allocation2 + $0xbc] ss:$0 sps:$4 sm:$0x11]  }
 0x140   : > { %8421 = vst [vmem:[#allocation40_spill] sm:$0xff] %v7488_v30  ;;  %v1737_v13 = vsel %vm1634_vm0, %v1728_v5, %v1736_v35  ;;  %v2872_v16 = vor.u32 %v2871_v56, %v2868_v6  ;;  %v2879_v21 = vrot.slane %v2877_v49, 4  ;;  %v1118_v20 = vshll.u32 %v7292_v15, 16 }
 0x141   : > { %4935 = vmatmul.mubr.bf16.vlgmr.msra.gmra.mxu1 %v1737_v13  ;;  %v1419_v47 = vshrl.u32 %v7486_v25, 16  ;;  %v1422_v28 = vshll.u32 %v7486_v25, 16  ;;  %4838 = vmatmul.mubr.bf16.gmra.mxu0 %v2734_v19  ;;  %v1117_v26 = vrot.slane %v1115_v17, 4  ;;  %v5688_v42 = vcombine.low %v468_v54, %v469_v36  ;;  %v7497_v5 = vpop.f32.mrf.mxu0 }
 0x142   : > { %v5689_v33 = vcombine.low %v470_v61, %v470_v61  ;;  %v7495_v55 = vpop.f32.mrf.mxu1  ;;  %8423 = vst [vmem:[#allocation42_spill] sm:$0xff] %v7497_v5  ;;  %v2880_v44 = vor.u32 %v2879_v21, %v2876_v53  ;;  %v1248_v6 = vrot.slane %v7311_v1, 5  ;;  %v1120_v56 = vrot.slane %v1118_v20, 5 }
 0x143   : > { %8422 = vst [vmem:[#allocation41_spill] sm:$0xff] %v7495_v55  ;;  %v1421_v35 = vrot.slane %v1419_v47, 4  ;;  %v1424_v32 = vrot.slane %v1422_v28, 5  ;;  %v1851_v49 = vshrl.u32 %v5688_v42, 16  ;;  %v1854_v13 = vshll.u32 %v5688_v42, 16  ;;  %v7503_v21 = vpop.f32.mrf.mxu0 }
 0x144   : > { %v1859_v30 = vshrl.u32 %v5689_v33, 16  ;;  %v7500_v41 = vpop.f32.mrf.mxu1  ;;  %v2881_v19 = vsel %vm1634_vm0, %v2872_v16, %v2880_v44  ;;  %v1862_v36 = vshll.u32 %v5689_v33, 16  ;;  %v1249_v61 = vrot.slane %v6727_v27, 5  ;;  %8425 = vst [vmem:[#allocation44_spill] sm:$0xff] %v7503_v21  ;;  %v472_v33 = vld [vmem:[#allocation2 + $0x44] sm:$0xf] }
 0x145   : > { %8424 = vst [vmem:[#allocation43_spill] sm:$0xff] %v7500_v41  ;;  %v1425_v15 = vor.u32 %v1424_v32, %v1421_v35  ;;  %4845 = vmatprep.mubr.bf16.mxu0 %v2881_v19  ;;  %v1121_v54 = vor.u32 %v1120_v56, %v1117_v26  ;;  %v1853_v17 = vrot.slane %v1851_v49, 3  ;;  %v1856_v5 = vrot.slane %v1854_v13, 4  ;;  %v473_v56 = vld [vmem:[#allocation2 + $0x48] sm:$0xf] }
 0x146   : > { %v1861_v53 = vrot.slane %v1859_v30, 3  ;;  %v1864_v20 = vrot.slane %v1862_v36, 4  ;;  %v1250_v42 = vsel %vm849_vm1, %v1248_v6, %v1249_v61  ;;  %v7506_v60 = vpop.f32.mrf.mxu1  ;;  %v2995_v44 = vshrl.u32 %v1248_v6, 16 }
 0x147   : > { %v1868_v47 = vshrl.u32 %v1425_v15, 16  ;;  %v1871_v28 = vshll.u32 %v1425_v15, 16  ;;  %8426 = vst [vmem:[#allocation45_spill] sm:$0xff] %v7506_v60  ;;  %v2857_v37 = vshrl.u32 %v1121_v54, 16  ;;  %v2860_v4 = vshll.u32 %v1121_v54, 16 }
 0x148   : > { %v1857_v16 = vor.u32 %v1856_v5, %v1853_v17  ;;  %v1865_v26 = vor.u32 %v1864_v20, %v1861_v53  ;;  %v2998_v32 = vshll.u32 %v1248_v6, 16  ;;  %v2997_v13 = vrot.slane %v2995_v44, 3  ;;  %v471_v15 = vld [vmem:[#allocation2 + $0x40] sm:$0x8]  ;;  %v7511_v5 = vpop.f32.mrf.mxu1 }
 0x149   : > { %v1870_v27 = vrot.slane %v1868_v47, 3  ;;  %v1873_v35 = vrot.slane %v1871_v28, 4  ;;  %v2859_v30 = vrot.slane %v2857_v37, 3  ;;  %v2862_v49 = vrot.slane %v2860_v4, 4  ;;  %8428 = vst [vmem:[#allocation47_spill] sm:$0xff] %v7511_v5 }
 0x14a   : > { %v3003_v19 = vshrl.u32 %v1250_v42, 16  ;;  %v7508_v36 = vpop.f32.mrf.mxu0  ;;  %v1866_v21 = vsel %vm1634_vm0, %v1857_v16, %v1865_v26  ;;  %v3000_v0 = vrot.slane %v2998_v32, 4  ;;  %v3006_v54 = vshll.u32 %v1250_v42, 16  ;;  %v6783_v5 = vld [vmem:[#allocation2 + $0xdc] ss:$0 sps:$4 sm:$0x11]  }
 0x14b   : > { %8427 = vst [vmem:[#allocation46_spill] sm:$0xff] %v7508_v36  ;;  %v1874_v61 = vor.u32 %v1873_v35, %v1870_v27  ;;  %v2863_v17 = vor.u32 %v2862_v49, %v2859_v30  ;;  %v7513_v28 = vcombine.low %v472_v33, %v473_v56  ;;  %v1123_v6 = vshrl.u32 %v7311_v1, 16 }
 0x14c   : > { %v3005_v47 = vrot.slane %v3003_v19, 3  ;;  %v7516_v37 = vpop.f32.mrf.mxu0  ;;  %v3001_v4 = vor.u32 %v3000_v0, %v2997_v13  ;;  %v3008_v53 = vrot.slane %v3006_v54, 4  ;;  %v1126_v20 = vshll.u32 %v7311_v1, 16  ;;  %v6732_v19 = vld [vmem:[#allocation2 + $0xcc] ss:$0 sps:$4 sm:$0x11]  }
 0x14d   : > { %8429 = vst [vmem:[#allocation48_spill] sm:$0xff] %v7516_v37  ;;  %4942 = vmatprep.mubr.bf16.mxu1 %v1874_v61  ;;  %v5690_v44 = vcombine.low %v471_v15, %v472_v33  ;;  %4846 = vmatmul.mubr.bf16.gmra.mxu0 %v2863_v17  ;;  %v1427_v42 = vshrl.u32 %v7513_v28, 16  ;;  %v1430_v16 = vshll.u32 %v7513_v28, 16  ;;  %v1125_v27 = vrot.slane %v1123_v6, 4 }
 0x14e   : > { %4943 = vmatmul.mubr.bf16.gmra.mxu1 %v1866_v21  ;;  %v5691_v35 = vcombine.low %v473_v56, %v473_v56  ;;  %v3009_v26 = vor.u32 %v3008_v53, %v3005_v47  ;;  %v1128_v32 = vrot.slane %v1126_v20, 5  ;;  %v7521_v37 = vpop.f32.mrf.mxu1  ;;  %v7523_v0 = vpop.f32.mrf.mxu0  ;;  %v1251_v20 = vrot.slane %v7331_v23, 5 }
 0x14f   : > { %v1980_v30 = vshrl.u32 %v5690_v44, 16  ;;  %v1983_v49 = vshll.u32 %v5690_v44, 16  ;;  %8430 = vst [vmem:[#allocation49_spill] sm:$0xff] %v7521_v37  ;;  %8431 = vst [vmem:[#allocation50_spill] sm:$0xff] %v7523_v0  ;;  %v1429_v13 = vrot.slane %v1427_v42, 4  ;;  %v1432_v1 = vrot.slane %v1430_v16, 5 }
 0x150   : > { %v1988_v33 = vshrl.u32 %v5691_v35, 16  ;;  %v1991_v15 = vshll.u32 %v5691_v35, 16  ;;  %v3010_v21 = vsel %vm1634_vm0, %v3001_v4, %v3009_v26  ;;  %v1129_v61 = vor.u32 %v1128_v32, %v1125_v27  ;;  %v7526_v6 = vpop.f32.mrf.mxu1  ;;  %v7529_v16 = vpop.f32.mrf.mxu0  ;;  %v475_v26 = vld [vmem:[#allocation2 + $0x54] sm:$0xf] }
 0x151   : > { %v1982_v54 = vrot.slane %v1980_v30, 3  ;;  %v1985_v17 = vrot.slane %v1983_v49, 4  ;;  %8432 = vst [vmem:[#allocation51_spill] sm:$0xff] %v7526_v6  ;;  %4853 = vmatprep.mubr.bf16.mxu0 %v3010_v21  ;;  %v1433_v56 = vor.u32 %v1432_v1, %v1429_v13  ;;  %v1252_v42 = vrot.slane %v6732_v19, 5  ;;  %8433 = vst [vmem:[#allocation52_spill] sm:$0xff] %v7529_v16 }
 0x152   : > { %v1990_v47 = vrot.slane %v1988_v33, 3  ;;  %v1993_v53 = vrot.slane %v1991_v15, 4  ;;  %v2986_v44 = vshrl.u32 %v1129_v61, 16  ;;  %v2989_v36 = vshll.u32 %v1129_v61, 16  ;;  %v7531_v32 = vpop.f32.mrf.mxu1  ;;  %v476_v33 = vld [vmem:[#allocation2 + $0x58] sm:$0xf] }
 0x153   : > { %v1986_v0 = vor.u32 %v1985_v17, %v1982_v54  ;;  %v1997_v35 = vshrl.u32 %v1433_v56, 16  ;;  %v2000_v37 = vshll.u32 %v1433_v56, 16  ;;  %v3124_v27 = vshrl.u32 %v1251_v20, 16  ;;  %8434 = vst [vmem:[#allocation53_spill] sm:$0xff] %v7531_v32  ;;  %v474_v54 = vld [vmem:[#allocation2 + $0x50] sm:$0x8] }
 0x154   : > { %v1994_v4 = vor.u32 %v1993_v53, %v1990_v47  ;;  %v2988_v30 = vrot.slane %v2986_v44, 3  ;;  %v2991_v49 = vrot.slane %v2989_v36, 4  ;;  %v1253_v13 = vsel %vm849_vm1, %v1251_v20, %v1252_v42  ;;  %v7541_v44 = vpop.f32.mrf.mxu1 }
 0x155   : > { %v3127_v1 = vshll.u32 %v1251_v20, 16  ;;  %v1999_v15 = vrot.slane %v1997_v35, 3  ;;  %v2002_v21 = vrot.slane %v2000_v37, 4  ;;  %v3126_v19 = vrot.slane %v3124_v27, 3  ;;  %8436 = vst [vmem:[#allocation55_spill] sm:$0xff] %v7541_v44 }
 0x156   : > { %v1995_v61 = vsel %vm1634_vm0, %v1986_v0, %v1994_v4  ;;  %v2992_v17 = vor.u32 %v2991_v49, %v2988_v30  ;;  %v3132_v56 = vshrl.u32 %v1253_v13, 16  ;;  %v3135_v47 = vshll.u32 %v1253_v13, 16 }
 0x157   : > { %v3129_v16 = vrot.slane %v3127_v1, 4  ;;  %v7535_v53 = vpop.f32.mrf.mxu0  ;;  %v2003_v6 = vor.u32 %v2002_v21, %v1999_v15  ;;  %v7537_v32 = vcombine.low %v475_v26, %v476_v33  ;;  %v1131_v36 = vshrl.u32 %v7331_v23, 16 }
 0x158   : > { %8435 = vst [vmem:[#allocation54_spill] sm:$0xff] %v7535_v53  ;;  %v1134_v20 = vshll.u32 %v7331_v23, 16  ;;  %4854 = vmatmul.mubr.bf16.gmra.mxu0 %v2992_v17  ;;  %v3134_v0 = vrot.slane %v3132_v56, 3  ;;  %v3137_v42 = vrot.slane %v3135_v47, 4  ;;  %v5692_v35 = vcombine.low %v474_v54, %v475_v26 }
 0x159   : > { %v3130_v37 = vor.u32 %v3129_v16, %v3126_v19  ;;  %v7543_v4 = vpop.f32.mrf.mxu0  ;;  %4950 = vmatprep.mubr.bf16.mxu1 %v2003_v6  ;;  %v1435_v27 = vshrl.u32 %v7537_v32, 16  ;;  %v1438_v30 = vshll.u32 %v7537_v32, 16  ;;  %v1133_v49 = vrot.slane %v1131_v36, 4  ;;  %v6736_v53 = vld [vmem:[#allocation2 + $0xdc] ss:$0 sps:$4 sm:$0x11]  }
 0x15a   : > { %8437 = vst [vmem:[#allocation56_spill] sm:$0xff] %v7543_v4  ;;  %v1136_v13 = vrot.slane %v1134_v20, 5  ;;  %4951 = vmatmul.mubr.bf16.gmra.mxu1 %v1995_v61  ;;  %v3138_v1 = vor.u32 %v3137_v42, %v3134_v0  ;;  %v5693_v15 = vcombine.low %v476_v33, %v476_v33  ;;  %v2109_v23 = vshrl.u32 %v5692_v35, 16  ;;  %v478_v4 = vld [vmem:[#allocation2 + $0x64] sm:$0xf] }
 0x15b   : > { %v2112_v21 = vshll.u32 %v5692_v35, 16  ;;  %v1437_v17 = vrot.slane %v1435_v27, 4  ;;  %v1440_v16 = vrot.slane %v1438_v30, 5  ;;  %v1254_v26 = vrot.slane %v7345_v45, 5  ;;  %v7550_v6 = vpop.f32.mrf.mxu0 }
 0x15c   : > { %v1137_v19 = vor.u32 %v1136_v13, %v1133_v49  ;;  %v7548_v54 = vpop.f32.mrf.mxu1  ;;  %8439 = vst [vmem:[#allocation58_spill] sm:$0xff] %v7550_v6  ;;  %v3139_v56 = vsel %vm1634_vm0, %v3130_v37, %v3138_v1  ;;  %v2111_v47 = vrot.slane %v2109_v23, 3  ;;  %v2117_v20 = vshrl.u32 %v5693_v15, 16  ;;  %v479_v37 = vld [vmem:[#allocation2 + $0x68] sm:$0xf] }
 0x15d   : > { %8438 = vst [vmem:[#allocation57_spill] sm:$0xff] %v7548_v54  ;;  %v2114_v36 = vrot.slane %v2112_v21, 4  ;;  %4861 = vmatprep.mubr.bf16.mxu0 %v3139_v56  ;;  %v1441_v61 = vor.u32 %v1440_v16, %v1437_v17  ;;  %v2120_v42 = vshll.u32 %v5693_v15, 16  ;;  %v1255_v49 = vrot.slane %v6736_v53, 5  ;;  %v7555_v1 = vpop.f32.mrf.mxu0 }
 0x15e   : > { %v3115_v33 = vshrl.u32 %v1137_v19, 16  ;;  %v3118_v0 = vshll.u32 %v1137_v19, 16  ;;  %v7553_v35 = vpop.f32.mrf.mxu1  ;;  %v2119_v30 = vrot.slane %v2117_v20, 3  ;;  %v3253_v13 = vshrl.u32 %v1254_v26, 16  ;;  %8441 = vst [vmem:[#allocation60_spill] sm:$0xff] %v7555_v1 }
 0x15f   : > { %8440 = vst [vmem:[#allocation59_spill] sm:$0xff] %v7553_v35  ;;  %v2115_v27 = vor.u32 %v2114_v36, %v2111_v47  ;;  %v2126_v44 = vshrl.u32 %v1441_v61, 16  ;;  %v2129_v54 = vshll.u32 %v1441_v61, 16  ;;  %v2122_v23 = vrot.slane %v2120_v42, 4 }
 0x160   : > { %v3117_v6 = vrot.slane %v3115_v33, 3  ;;  %v3120_v11 = vrot.slane %v3118_v0, 4  ;;  %v1256_v21 = vsel %vm849_vm1, %v1254_v26, %v1255_v49  ;;  %v3255_v17 = vrot.slane %v3253_v13, 3  ;;  %v7558_v15 = vpop.f32.mrf.mxu1  ;;  %v477_v33 = vld [vmem:[#allocation2 + $0x60] sm:$0x8] }
 0x161   : > { %v3256_v16 = vshll.u32 %v1254_v26, 16  ;;  %8442 = vst [vmem:[#allocation61_spill] sm:$0xff] %v7558_v15  ;;  %v2128_v19 = vrot.slane %v2126_v44, 3  ;;  %v2131_v56 = vrot.slane %v2129_v54, 4  ;;  %v3261_v53 = vshrl.u32 %v1256_v21, 16 }
 0x162   : > { %v3121_v47 = vor.u32 %v3120_v11, %v3117_v6  ;;  %v2123_v36 = vor.u32 %v2122_v23, %v2119_v30  ;;  %v3264_v35 = vshll.u32 %v1256_v21, 16  ;;  %v7560_v61 = vcombine.low %v478_v4, %v479_v37  ;;  %v7568_v30 = vpop.f32.mrf.mxu1 }
 0x163   : > { %v3258_v20 = vrot.slane %v3256_v16, 4  ;;  %v2132_v0 = vor.u32 %v2131_v56, %v2128_v19  ;;  %v3263_v1 = vrot.slane %v3261_v53, 3  ;;  %v1139_v42 = vshrl.u32 %v7345_v45, 16  ;;  %8444 = vst [vmem:[#allocation63_spill] sm:$0xff] %v7568_v30 }
 0x164   : > { %4862 = vmatmul.mubr.bf16.gmra.mxu0 %v3121_v47  ;;  %v1142_v49 = vshll.u32 %v7345_v45, 16  ;;  %v7564_v26 = vpop.f32.mrf.mxu0  ;;  %v2124_v44 = vsel %vm1634_vm0, %v2115_v27, %v2123_v36  ;;  %v3266_v11 = vrot.slane %v3264_v35, 4  ;;  %v1443_v6 = vshrl.u32 %v7560_v61, 16 }
 0x165   : > { %8443 = vst [vmem:[#allocation62_spill] sm:$0xff] %v7564_v26  ;;  %v3259_v54 = vor.u32 %v3258_v20, %v3255_v17  ;;  %4958 = vmatprep.mubr.bf16.mxu1 %v2132_v0  ;;  %v1446_v13 = vshll.u32 %v7560_v61, 16  ;;  %v1141_v23 = vrot.slane %v1139_v42, 4  ;;  %v5694_v16 = vcombine.low %v477_v33, %v478_v4 }
 0x166   : > { %v1144_v21 = vrot.slane %v1142_v49, 5  ;;  %v7571_v19 = vpop.f32.mrf.mxu0  ;;  %4959 = vmatmul.mubr.bf16.gmra.mxu1 %v2124_v44  ;;  %v3267_v45 = vor.u32 %v3266_v11, %v3263_v1  ;;  %v1445_v56 = vrot.slane %v1443_v6, 4  ;;  %v5695_v47 = vcombine.low %v479_v37, %v479_v37  ;;  %v6741_v1 = vld [vmem:[#allocation2 + $0xec] ss:$0 sps:$4 sm:$0x11]  }
 0x167   : > { %8445 = vst [vmem:[#allocation64_spill] sm:$0xff] %v7571_v19  ;;  %v1448_v53 = vrot.slane %v1446_v13, 5  ;;  %v2238_v17 = vshrl.u32 %v5694_v16, 16  ;;  %v2241_v35 = vshll.u32 %v5694_v16, 16  ;;  %v481_v6 = vld [vmem:[#allocation2 + $0x74] sm:$0xf] }
 0x168   : > { %v1145_v27 = vor.u32 %v1144_v21, %v1141_v23  ;;  %v3268_v36 = vsel %vm1634_vm0, %v3259_v54, %v3267_v45  ;;  %v2246_v20 = vshrl.u32 %v5695_v47, 16  ;;  %v2249_v26 = vshll.u32 %v5695_v47, 16  ;;  %v7574_v0 = vpop.f32.mrf.mxu1  ;;  %v7576_v30 = vpop.f32.mrf.mxu0  ;;  %v482_v45 = vld [vmem:[#allocation2 + $0x78] sm:$0xf] }
 0x169   : > { %8446 = vst [vmem:[#allocation65_spill] sm:$0xff] %v7574_v0  ;;  %8447 = vst [vmem:[#allocation66_spill] sm:$0xff] %v7576_v30  ;;  %4869 = vmatprep.mubr.bf16.mxu0 %v3268_v36  ;;  %v1449_v4 = vor.u32 %v1448_v53, %v1445_v56  ;;  %v2240_v49 = vrot.slane %v2238_v17, 3  ;;  %v2243_v44 = vrot.slane %v2241_v35, 4  ;;  %v1257_v36 = vrot.slane %v7368_v40, 5 }
 0x16a   : > { %v3244_v33 = vshrl.u32 %v1145_v27, 16  ;;  %v3247_v42 = vshll.u32 %v1145_v27, 16  ;;  %v2248_v37 = vrot.slane %v2246_v20, 3  ;;  %v2251_v11 = vrot.slane %v2249_v26, 4  ;;  %v7578_v13 = vpop.f32.mrf.mxu1  ;;  %v7581_v56 = vpop.f32.mrf.mxu0 }
 0x16b   : > { %8448 = vst [vmem:[#allocation67_spill] sm:$0xff] %v7578_v13  ;;  %v2255_v23 = vshrl.u32 %v1449_v4, 16  ;;  %v2258_v54 = vshll.u32 %v1449_v4, 16  ;;  %v2244_v47 = vor.u32 %v2243_v44, %v2240_v49  ;;  %8449 = vst [vmem:[#allocation68_spill] sm:$0xff] %v7581_v56  ;;  %v1258_v35 = vrot.slane %v6741_v1, 5 }
 0x16c   : > { %v3246_v21 = vrot.slane %v3244_v33, 3  ;;  %v3249_v16 = vrot.slane %v3247_v42, 4  ;;  %v2252_v19 = vor.u32 %v2251_v11, %v2248_v37  ;;  %v7583_v20 = vpop.f32.mrf.mxu1  ;;  %v3382_v30 = vshrl.u32 %v1257_v36, 16  ;;  %v480_v37 = vld [vmem:[#allocation2 + $0x70] sm:$0x8] }
 0x16d   : > { %v2257_v53 = vrot.slane %v2255_v23, 3  ;;  %v2260_v27 = vrot.slane %v2258_v54, 4  ;;  %8450 = vst [vmem:[#allocation69_spill] sm:$0xff] %v7583_v20  ;;  %v3385_v13 = vshll.u32 %v1257_v36, 16  ;;  %v7586_v4 = vcombine.low %v481_v6, %v482_v45 }
 0x16e   : > { %v3250_v17 = vor.u32 %v3249_v16, %v3246_v21  ;;  %v2253_v26 = vsel %vm1634_vm0, %v2244_v47, %v2252_v19  ;;  %v1259_v42 = vsel %vm849_vm1, %v1257_v36, %v1258_v35  ;;  %v1147_v49 = vshrl.u32 %v7368_v40, 16 }
 0x16f   : > { %v2261_v33 = vor.u32 %v2260_v27, %v2257_v53  ;;  %v1150_v44 = vshll.u32 %v7368_v40, 16  ;;  %v3384_v11 = vrot.slane %v3382_v30, 3  ;;  %v3387_v23 = vrot.slane %v3385_v13, 4  ;;  %v7595_v27 = vpop.f32.mrf.mxu1 }
 0x170   : > { %4870 = vmatmul.mubr.bf16.gmra.mxu0 %v3250_v17  ;;  %v3390_v1 = vshrl.u32 %v1259_v42, 16  ;;  %v3393_v54 = vshll.u32 %v1259_v42, 16  ;;  %v1451_v19 = vshrl.u32 %v7586_v4, 16  ;;  %v1454_v16 = vshll.u32 %v7586_v4, 16  ;;  %8452 = vst [vmem:[#allocation71_spill] sm:$0xff] %v7595_v27 }
 0x171   : > { %v7591_v21 = vpop.f32.mrf.mxu0  ;;  %4966 = vmatprep.mubr.bf16.mxu1 %v2261_v33  ;;  %v1149_v47 = vrot.slane %v1147_v49, 4  ;;  %v1152_v53 = vrot.slane %v1150_v44, 5  ;;  %v3388_v36 = vor.u32 %v3387_v23, %v3384_v11  ;;  %v5696_v35 = vcombine.low %v480_v37, %v481_v6 }
 0x172   : > { %8451 = vst [vmem:[#allocation70_spill] sm:$0xff] %v7591_v21  ;;  %4967 = vmatmul.mubr.bf16.gmra.mxu1 %v2253_v26  ;;  %v3392_v17 = vrot.slane %v3390_v1, 3  ;;  %v3395_v40 = vrot.slane %v3393_v54, 4  ;;  %v1453_v13 = vrot.slane %v1451_v19, 4  ;;  %v1456_v42 = vrot.slane %v1454_v16, 5 }
 0x173   : > { %v7597_v30 = vpop.f32.mrf.mxu0  ;;  %v1153_v56 = vor.u32 %v1152_v53, %v1149_v47  ;;  %v5697_v21 = vcombine.low %v482_v45, %v482_v45  ;;  %v2367_v20 = vshrl.u32 %v5696_v35, 16  ;;  %v2370_v0 = vshll.u32 %v5696_v35, 16  ;;  %v6745_v1 = vld [vmem:[#allocation2 + $0xfc] ss:$0 sps:$4 sm:$0x11]  }
 0x174   : > { %8453 = vst [vmem:[#allocation72_spill] sm:$0xff] %v7597_v30  ;;  %v3396_v33 = vor.u32 %v3395_v40, %v3392_v17  ;;  %v1457_v15 = vor.u32 %v1456_v42, %v1453_v13  ;;  %v484_v40 = vld [vmem:[#allocation2 + $0x84] sm:$0xf]  ;;  %v485_v35 = vld [vmem:[#allocation2 + $0x88] sm:$0xf] }
 0x175   : > { %v3373_v48 = vshrl.u32 %v1153_v56, 16  ;;  %v3376_v49 = vshll.u32 %v1153_v56, 16  ;;  %v2375_v44 = vshrl.u32 %v5697_v21, 16  ;;  %v7601_v26 = vpop.f32.mrf.mxu0  ;;  %v2369_v6 = vrot.slane %v2367_v20, 3 }
 0x176   : > { %v7599_v51 = vpop.f32.mrf.mxu1  ;;  %8455 = vst [vmem:[#allocation74_spill] sm:$0xff] %v7601_v26  ;;  %v3397_v11 = vsel %vm1634_vm0, %v3388_v36, %v3396_v33  ;;  %v2372_v37 = vrot.slane %v2370_v0, 4  ;;  %v2378_v23 = vshll.u32 %v5697_v21, 16  ;;  %v2384_v54 = vshrl.u32 %v1457_v15, 16 }
 0x177   : > { %8454 = vst [vmem:[#allocation73_spill] sm:$0xff] %v7599_v51  ;;  %4877 = vmatprep.mubr.bf16.mxu0 %v3397_v11  ;;  %v2387_v45 = vshll.u32 %v1457_v15, 16  ;;  %v3375_v19 = vrot.slane %v3373_v48, 3  ;;  %v3378_v16 = vrot.slane %v3376_v49, 4  ;;  %v2377_v56 = vrot.slane %v2375_v44, 3  ;;  %v7606_v36 = vpop.f32.mrf.mxu0 }
 0x178   : > { %v7604_v47 = vpop.f32.mrf.mxu1  ;;  %v2373_v53 = vor.u32 %v2372_v37, %v2369_v6  ;;  %v2380_v17 = vrot.slane %v2378_v23, 4  ;;  %v2386_v13 = vrot.slane %v2384_v54, 3  ;;  %8457 = vst [vmem:[#allocation76_spill] sm:$0xff] %v7606_v36  ;;  %v1260_v20 = vrot.slane %v7400_v2, 5 }
 0x179   : > { %8456 = vst [vmem:[#allocation75_spill] sm:$0xff] %v7604_v47  ;;  %v2389_v42 = vrot.slane %v2387_v45, 4  ;;  %v3379_v26 = vor.u32 %v3378_v16, %v3375_v19  ;;  %v1261_v21 = vrot.slane %v6745_v1, 5  ;;  %v7611_v15 = vcombine.low %v484_v40, %v485_v35 }
 0x17a   : > { %v2381_v0 = vor.u32 %v2380_v17, %v2377_v56  ;;  %v7609_v33 = vpop.f32.mrf.mxu1  ;;  %v1155_v49 = vshrl.u32 %v7400_v2, 16  ;;  %v1158_v44 = vshll.u32 %v7400_v2, 16  ;;  %v3511_v37 = vshrl.u32 %v1260_v20, 16 }
 0x17b   : > { %8458 = vst [vmem:[#allocation77_spill] sm:$0xff] %v7609_v33  ;;  %v2390_v48 = vor.u32 %v2389_v42, %v2386_v13  ;;  %4878 = vmatmul.mubr.bf16.gmra.mxu0 %v3379_v26  ;;  %v1262_v6 = vsel %vm849_vm1, %v1260_v20, %v1261_v21  ;;  %v3514_v23 = vshll.u32 %v1260_v20, 16  ;;  %v1459_v1 = vshrl.u32 %v7611_v15, 16  ;;  %v483_v26 = vld [vmem:[#allocation2 + $0x80] sm:$0x8] }
 0x17c   : > { %v2382_v11 = vsel %vm1634_vm0, %v2373_v53, %v2381_v0  ;;  %v3519_v54 = vshrl.u32 %v1262_v6, 16  ;;  %v3522_v45 = vshll.u32 %v1262_v6, 16  ;;  %v1462_v19 = vshll.u32 %v7611_v15, 16  ;;  %v7621_v53 = vpop.f32.mrf.mxu1 }
 0x17d   : > { %4974 = vmatprep.mubr.bf16.mxu1 %v2390_v48  ;;  %v3513_v56 = vrot.slane %v3511_v37, 3  ;;  %v3516_v17 = vrot.slane %v3514_v23, 4  ;;  %v1157_v2 = vrot.slane %v1155_v49, 4  ;;  %v1160_v13 = vrot.slane %v1158_v44, 5  ;;  %8460 = vst [vmem:[#allocation79_spill] sm:$0xff] %v7621_v53 }
 0x17e   : > { %v7619_v16 = vpop.f32.mrf.mxu0  ;;  %4975 = vmatmul.mubr.bf16.gmra.mxu1 %v2382_v11  ;;  %v3521_v42 = vrot.slane %v3519_v54, 3  ;;  %v3524_v0 = vrot.slane %v3522_v45, 4  ;;  %v1461_v20 = vrot.slane %v1459_v1, 4  ;;  %v1464_v21 = vrot.slane %v1462_v19, 5  ;;  %v487_v53 = vld [vmem:[#allocation2 + $0x94] sm:$0xf] }
 0x17f   : > { %8459 = vst [vmem:[#allocation78_spill] sm:$0xff] %v7619_v16  ;;  %v3517_v6 = vor.u32 %v3516_v17, %v3513_v56  ;;  %v1161_v36 = vor.u32 %v1160_v13, %v1157_v2  ;;  %v5698_v30 = vcombine.low %v483_v26, %v484_v40  ;;  %v5699_v27 = vcombine.low %v485_v35, %v485_v35  ;;  %v6750_v19 = vld [vmem:[#allocation2 + $0x10c] ss:$0 sps:$4 sm:$0x11]   ;;  %v488_v17 = vld [vmem:[#allocation2 + $0x98] sm:$0xf] }
 0x180   : > { %v7623_v48 = vpop.f32.mrf.mxu0  ;;  %v3525_v33 = vor.u32 %v3524_v0, %v3521_v42  ;;  %v1465_v47 = vor.u32 %v1464_v21, %v1461_v20 }
 0x181   : > { %8461 = vst [vmem:[#allocation80_spill] sm:$0xff] %v7623_v48  ;;  %v3502_v16 = vshrl.u32 %v1161_v36, 16  ;;  %v3505_v11 = vshll.u32 %v1161_v36, 16  ;;  %v2496_v37 = vshrl.u32 %v5698_v30, 16  ;;  %v2499_v23 = vshll.u32 %v5698_v30, 16 }
 0x182   : > { %v7625_v49 = vpop.f32.mrf.mxu1  ;;  %v3526_v44 = vsel %vm1634_vm0, %v3517_v6, %v3525_v33  ;;  %v2513_v54 = vshrl.u32 %v1465_v47, 16  ;;  %v2516_v45 = vshll.u32 %v1465_v47, 16  ;;  %v2504_v1 = vshrl.u32 %v5699_v27, 16  ;;  %v7628_v48 = vpop.f32.mrf.mxu0  ;;  %v486_v33 = vld [vmem:[#allocation2 + $0x90] sm:$0x8] }
 0x183   : > { %8462 = vst [vmem:[#allocation81_spill] sm:$0xff] %v7625_v49  ;;  %8463 = vst [vmem:[#allocation82_spill] sm:$0xff] %v7628_v48  ;;  %4885 = vmatprep.mubr.bf16.mxu0 %v3526_v44  ;;  %v3504_v40 = vrot.slane %v3502_v16, 3  ;;  %v3507_v35 = vrot.slane %v3505_v11, 4  ;;  %v2498_v26 = vrot.slane %v2496_v37, 3  ;;  %v2501_v56 = vrot.slane %v2499_v23, 4 }
 0x184   : > { %v7630_v36 = vpop.f32.mrf.mxu1  ;;  %v2515_v30 = vrot.slane %v2513_v54, 3  ;;  %v2518_v2 = vrot.slane %v2516_v45, 4  ;;  %v2506_v13 = vrot.slane %v2504_v1, 3  ;;  %v2507_v42 = vshll.u32 %v5699_v27, 16  ;;  %v7635_v16 = vpop.f32.mrf.mxu0 }
 0x185   : > { %8464 = vst [vmem:[#allocation83_spill] sm:$0xff] %v7630_v36  ;;  %v3508_v0 = vor.u32 %v3507_v35, %v3504_v40  ;;  %v2502_v47 = vor.u32 %v2501_v56, %v2498_v26  ;;  %v1263_v6 = vrot.slane %v7427_v52, 5  ;;  %v1264_v48 = vrot.slane %v6750_v19, 5  ;;  %8466 = vst [vmem:[#allocation85_spill] sm:$0xff] %v7635_v16 }
 0x186   : > { %v2519_v20 = vor.u32 %v2518_v2, %v2515_v30  ;;  %v2509_v21 = vrot.slane %v2507_v42, 4  ;;  %v7633_v44 = vpop.f32.mrf.mxu1  ;;  %v7637_v11 = vcombine.low %v487_v53, %v488_v17  ;;  %v1163_v37 = vshrl.u32 %v7427_v52, 16 }
 0x187   : > { %8465 = vst [vmem:[#allocation84_spill] sm:$0xff] %v7633_v44  ;;  %4886 = vmatmul.mubr.bf16.gmra.mxu0 %v3508_v0  ;;  %v1166_v23 = vshll.u32 %v7427_v52, 16  ;;  %v5700_v27 = vcombine.low %v486_v33, %v487_v53  ;;  %v1265_v45 = vsel %vm849_vm1, %v1263_v6, %v1264_v48  ;;  %v3640_v1 = vshrl.u32 %v1263_v6, 16 }
 0x188   : > { %4982 = vmatprep.mubr.bf16.mxu1 %v2519_v20  ;;  %v2510_v54 = vor.u32 %v2509_v21, %v2506_v13  ;;  %v3643_v40 = vshll.u32 %v1263_v6, 16  ;;  %v3648_v35 = vshrl.u32 %v1265_v45, 16  ;;  %v3651_v19 = vshll.u32 %v1265_v45, 16  ;;  %v7645_v16 = vpop.f32.mrf.mxu1 }
 0x189   : > { %v1467_v26 = vshrl.u32 %v7637_v11, 16  ;;  %v1470_v56 = vshll.u32 %v7637_v11, 16  ;;  %v3642_v2 = vrot.slane %v3640_v1, 3  ;;  %v1165_v0 = vrot.slane %v1163_v37, 4  ;;  %8467 = vst [vmem:[#allocation86_spill] sm:$0xff] %v7645_v16 }
 0x18a   : > { %v2511_v30 = vsel %vm1634_vm0, %v2502_v47, %v2510_v54  ;;  %v3645_v42 = vrot.slane %v3643_v40, 4  ;;  %v3650_v53 = vrot.slane %v3648_v35, 3  ;;  %v3653_v48 = vrot.slane %v3651_v19, 4  ;;  %v490_v40 = vld [vmem:[#allocation2 + $0xa4] sm:$0xf] }
 0x18b   : > { %v7647_v52 = vpop.f32.mrf.mxu0  ;;  %4983 = vmatmul.mubr.bf16.gmra.mxu1 %v2511_v30  ;;  %v1469_v13 = vrot.slane %v1467_v26, 4  ;;  %v1472_v33 = vrot.slane %v1470_v56, 5  ;;  %v1168_v21 = vrot.slane %v1166_v23, 5  ;;  %v5701_v6 = vcombine.low %v488_v17, %v488_v17  ;;  %v6755_v23 = vld [vmem:[#allocation2 + $0x2c] ss:$0 sps:$4 sm:$0x11]  }
 0x18c   : > { %8468 = vst [vmem:[#allocation87_spill] sm:$0xff] %v7647_v52  ;;  %v3646_v20 = vor.u32 %v3645_v42, %v3642_v2  ;;  %v2625_v45 = vshrl.u32 %v5700_v27, 16  ;;  %v3654_v44 = vor.u32 %v3653_v48, %v3650_v53  ;;  %v2628_v49 = vshll.u32 %v5700_v27, 16  ;;  %v491_v42 = vld [vmem:[#allocation2 + $0xa8] sm:$0xf] }
 0x18d   : > { %v1473_v36 = vor.u32 %v1472_v33, %v1469_v13  ;;  %v1169_v47 = vor.u32 %v1168_v21, %v1165_v0  ;;  %v2633_v1 = vshrl.u32 %v5701_v6, 16  ;;  %v2636_v37 = vshll.u32 %v5701_v6, 16  ;;  %v7651_v52 = vpop.f32.mrf.mxu0  ;;  %v489_v33 = vld [vmem:[#allocation2 + $0xa0] sm:$0x8] }
 0x18e   : > { %v2627_v54 = vrot.slane %v2625_v45, 3  ;;  %8470 = vst [vmem:[#allocation89_spill] sm:$0xff] %v7651_v52  ;;  %v3655_v35 = vsel %vm1634_vm0, %v3646_v20, %v3654_v44  ;;  %v2630_v56 = vrot.slane %v2628_v49, 4  ;;  %v7660_v20 = vcombine.low %v490_v40, %v491_v42 }
 0x18f   : > { %v2642_v19 = vshrl.u32 %v1473_v36, 16  ;;  %v2645_v26 = vshll.u32 %v1473_v36, 16  ;;  %4893 = vmatprep.mubr.bf16.mxu0 %v3655_v35  ;;  %v3631_v17 = vshrl.u32 %v1169_v47, 16  ;;  %v3634_v30 = vshll.u32 %v1169_v47, 16  ;;  %v7656_v44 = vpop.f32.mrf.mxu0 }
 0x190   : > { %v7649_v16 = vpop.f32.mrf.mxu1  ;;  %v2635_v2 = vrot.slane %v2633_v1, 3  ;;  %v2638_v27 = vrot.slane %v2636_v37, 4  ;;  %v2631_v13 = vor.u32 %v2630_v56, %v2627_v54  ;;  %8472 = vst [vmem:[#allocation91_spill] sm:$0xff] %v7656_v44  ;;  %v1586_v47 = vrot.slane %v7456_v24, 5 }
 0x191   : > { %8469 = vst [vmem:[#allocation88_spill] sm:$0xff] %v7649_v16  ;;  %v2644_v53 = vrot.slane %v2642_v19, 3  ;;  %v2647_v48 = vrot.slane %v2645_v26, 4  ;;  %v3633_v21 = vrot.slane %v3631_v17, 3  ;;  %v3636_v6 = vrot.slane %v3634_v30, 4 }
 0x192   : > { %v7654_v0 = vpop.f32.mrf.mxu1  ;;  %v2639_v45 = vor.u32 %v2638_v27, %v2635_v2  ;;  %v1587_v35 = vrot.slane %v6755_v23, 5  ;;  %v5702_v19 = vcombine.low %v489_v33, %v490_v40  ;;  %v1475_v54 = vshrl.u32 %v7660_v20, 16 }
 0x193   : > { %8471 = vst [vmem:[#allocation90_spill] sm:$0xff] %v7654_v0  ;;  %v2648_v49 = vor.u32 %v2647_v48, %v2644_v53  ;;  %v3637_v1 = vor.u32 %v3636_v6, %v3633_v21  ;;  %v1478_v56 = vshll.u32 %v7660_v20, 16  ;;  %v1748_v17 = vshrl.u32 %v1586_v47, 16  ;;  %v6758_v48 = vld [vmem:[#allocation2 + $0x3c] ss:$0 sps:$4 sm:$0x11]  }
 0x194   : > { %v7658_v36 = vpop.f32.mrf.mxu1  ;;  %v2640_v37 = vsel %vm1634_vm0, %v2631_v13, %v2639_v45  ;;  %v1751_v30 = vshll.u32 %v1586_v47, 16  ;;  %v1588_v2 = vsel %vm849_vm1, %v1586_v47, %v1587_v35  ;;  %v5703_v27 = vcombine.low %v491_v42, %v491_v42  ;;  %v7669_v13 = vpop.f32.mrf.mxu0 }
 0x195   : > { %8473 = vst [vmem:[#allocation92_spill] sm:$0xff] %v7658_v36  ;;  %4990 = vmatprep.mubr.bf16.mxu1 %v2648_v49  ;;  %4894 = vmatmul.mubr.bf16.gmra.mxu0 %v3637_v1  ;;  %v2754_v24 = vshrl.u32 %v5702_v19, 16  ;;  %v2757_v53 = vshll.u32 %v5702_v19, 16  ;;  %8475 = vst [vmem:[#allocation94_spill] sm:$0xff] %v7669_v13  ;;  %v1477_v40 = vrot.slane %v1475_v54, 4  ;;  %v1480_v23 = vrot.slane %v1478_v56, 5 }
 0x196   : > { %v7664_v26 = vpop.f32.mrf.mxu1  ;;  %4991 = vmatmul.mubr.bf16.gmra.mxu1 %v2640_v37  ;;  %v1750_v33 = vrot.slane %v1748_v17, 3  ;;  %v1753_v21 = vrot.slane %v1751_v30, 4  ;;  %v1756_v6 = vshrl.u32 %v1588_v2, 16  ;;  %v1759_v45 = vshll.u32 %v1588_v2, 16 }
 0x197   : > { %8474 = vst [vmem:[#allocation93_spill] sm:$0xff] %v7664_v26  ;;  %v2756_v49 = vrot.slane %v2754_v24, 3  ;;  %v2759_v44 = vrot.slane %v2757_v53, 4  ;;  %v1481_v1 = vor.u32 %v1480_v23, %v1477_v40  ;;  %v2762_v26 = vshrl.u32 %v5703_v27, 16 }
 0x198   : > { %v1754_v37 = vor.u32 %v1753_v21, %v1750_v33  ;;  %v2765_v47 = vshll.u32 %v5703_v27, 16  ;;  %v1758_v42 = vrot.slane %v1756_v6, 3  ;;  %v1761_v35 = vrot.slane %v1759_v45, 4  ;;  %v494_v6 = vld [vmem:[#allocation2 + $0xb8] sm:$0xf] }
 0x199   : > { %v7671_v52 = vpop.f32.mrf.mxu1  ;;  %v2760_v19 = vor.u32 %v2759_v44, %v2756_v49  ;;  %v1589_v36 = vrot.slane %v7486_v25, 5  ;;  %v2771_v56 = vshrl.u32 %v1481_v1, 16  ;;  %v2774_v17 = vshll.u32 %v1481_v1, 16  ;;  %v493_v44 = vld [vmem:[#allocation2 + $0xb4] sm:$0xf] }
 0x19a   : > { %8476 = vst [vmem:[#allocation95_spill] sm:$0xff] %v7671_v52  ;;  %v2764_v30 = vrot.slane %v2762_v26, 3  ;;  %v2767_v2 = vrot.slane %v2765_v47, 4  ;;  %v1762_v24 = vor.u32 %v1761_v35, %v1758_v42  ;;  %v1590_v53 = vrot.slane %v6758_v48, 5 }
 0x19b   : > { %v7674_v13 = vpop.f32.mrf.mxu0  ;;  %v7676_v54 = vpop.f32.mrf.mxu1  ;;  %v1877_v52 = vshrl.u32 %v1589_v36, 16  ;;  %v1880_v40 = vshll.u32 %v1589_v36, 16  ;;  %v2773_v27 = vrot.slane %v2771_v56, 3  ;;  %v2776_v33 = vrot.slane %v2774_v17, 4  ;;  %v492_v56 = vld [vmem:[#allocation2 + $0xb0] sm:$0x8] }
 0x19c   : > { %8477 = vst [vmem:[#allocation96_spill] sm:$0xff] %v7674_v13  ;;  %8478 = vst [vmem:[#allocation97_spill] sm:$0xff] %v7676_v54  ;;  %v2768_v21 = vor.u32 %v2767_v2, %v2764_v30  ;;  %v1763_v25 = vsel %vm1634_vm0, %v1754_v37, %v1762_v24  ;;  %v1591_v45 = vsel %vm849_vm1, %v1589_v36, %v1590_v53  ;;  %v6760_v1 = vld [vmem:[#allocation2 + $0x4c] ss:$0 sps:$4 sm:$0x11]  }
 0x19d   : > { %v7678_v23 = vpop.f32.mrf.mxu1  ;;  %v1879_v49 = vrot.slane %v1877_v52, 3  ;;  %v1882_v54 = vrot.slane %v1880_v40, 4  ;;  %v7682_v26 = vpop.f32.mrf.mxu0  ;;  %v2777_v47 = vor.u32 %v2776_v33, %v2773_v27  ;;  %6475 = vmatprep.mubr.bf16.mxu0 %v1763_v25  ;;  %v1885_v42 = vshrl.u32 %v1591_v45, 16 }
 0x19e   : > { %8479 = vst [vmem:[#allocation98_spill] sm:$0xff] %v7678_v23  ;;  %8480 = vst [vmem:[#allocation99_spill] sm:$0xff] %v7682_v26  ;;  %v2769_v48 = vsel %vm1634_vm0, %v2760_v19, %v2768_v21  ;;  %v1888_v35 = vshll.u32 %v1591_v45, 16  ;;  %v7687_v24 = vcombine.low %v493_v44, %v494_v6  ;;  %v1592_v52 = vrot.slane %v7513_v28, 5 }
 0x19f   : > { %v1883_v17 = vor.u32 %v1882_v54, %v1879_v49  ;;  %v7685_v30 = vpop.f32.mrf.mxu1  ;;  %4998 = vmatprep.mubr.bf16.mxu1 %v2777_v47  ;;  %v1887_v2 = vrot.slane %v1885_v42, 3  ;;  %v1593_v36 = vrot.slane %v6760_v1, 5  ;;  %v5704_v53 = vcombine.low %v492_v56, %v493_v44  ;;  %v7690_v40 = vpop.f32.mrf.mxu0  ;;  %v6763_v42 = vld [vmem:[#allocation2 + $0x5c] ss:$0 sps:$4 sm:$0x11]  }
 0x1a0   : > { %8481 = vst [vmem:[#allocation100_spill] sm:$0xff] %v7685_v30  ;;  %v1890_v37 = vrot.slane %v1888_v35, 4  ;;  %4999 = vmatmul.mubr.bf16.gmra.mxu1 %v2769_v48  ;;  %8482 = vst [vmem:[#allocation101_spill] sm:$0xff] %v7690_v40  ;;  %v1483_v19 = vshrl.u32 %v7687_v24, 16  ;;  %v1486_v33 = vshll.u32 %v7687_v24, 16  ;;  %v2006_v54 = vshrl.u32 %v1592_v52, 16 }
 0x1a1   : > { %v1594_v21 = vsel %vm849_vm1, %v1592_v52, %v1593_v36  ;;  %v2009_v25 = vshll.u32 %v1592_v52, 16  ;;  %v5705_v45 = vcombine.low %v494_v6, %v494_v6  ;;  %v2883_v49 = vshrl.u32 %v5704_v53, 16  ;;  %v7698_v30 = vpop.f32.mrf.mxu0 }
 0x1a2   : > { %v1891_v27 = vor.u32 %v1890_v37, %v1887_v2  ;;  %v1485_v48 = vrot.slane %v1483_v19, 4  ;;  %v1488_v1 = vrot.slane %v1486_v33, 5  ;;  %v2008_v44 = vrot.slane %v2006_v54, 3  ;;  %8484 = vst [vmem:[#allocation103_spill] sm:$0xff] %v7698_v30 }
 0x1a3   : > { %v2011_v35 = vrot.slane %v2009_v25, 4  ;;  %v2014_v56 = vshrl.u32 %v1594_v21, 16  ;;  %v2017_v2 = vshll.u32 %v1594_v21, 16  ;;  %v2885_v37 = vrot.slane %v2883_v49, 3 }
 0x1a4   : > { %v1892_v28 = vsel %vm1634_vm0, %v1883_v17, %v1891_v27  ;;  %v1489_v52 = vor.u32 %v1488_v1, %v1485_v48  ;;  %v2886_v6 = vshll.u32 %v5704_v53, 16  ;;  %v2891_v36 = vshrl.u32 %v5705_v45, 16 }
 0x1a5   : > { %v7695_v47 = vpop.f32.mrf.mxu1  ;;  %6476 = vmatmul.mubr.bf16.vlgmr.msra.gmra.mxu0 %v1892_v28  ;;  %v2894_v0 = vshll.u32 %v5705_v45, 16  ;;  %v2016_v16 = vrot.slane %v2014_v56, 3  ;;  %v2019_v17 = vrot.slane %v2017_v2, 4  ;;  %v1595_v27 = vrot.slane %v7537_v32, 5  ;;  %v496_v2 = vld [vmem:[#allocation2 + $0xc4] sm:$0xf] }
 0x1a6   : > { %8483 = vst [vmem:[#allocation102_spill] sm:$0xff] %v7695_v47  ;;  %v2012_v47 = vor.u32 %v2011_v35, %v2008_v44  ;;  %v2900_v19 = vshrl.u32 %v1489_v52, 16  ;;  %v2903_v33 = vshll.u32 %v1489_v52, 16  ;;  %v2888_v54 = vrot.slane %v2886_v6, 4 }
 0x1a7   : > { %v7700_v23 = vpop.f32.mrf.mxu1  ;;  %v2893_v25 = vrot.slane %v2891_v36, 3  ;;  %v2020_v28 = vor.u32 %v2019_v17, %v2016_v16  ;;  %v2896_v21 = vrot.slane %v2894_v0, 4  ;;  %v1596_v49 = vrot.slane %v6763_v42, 5  ;;  %v6765_v52 = vld [vmem:[#allocation2 + $0x6c] ss:$0 sps:$4 sm:$0x11]  }
 0x1a8   : > { %8485 = vst [vmem:[#allocation104_spill] sm:$0xff] %v7700_v23  ;;  %v2135_v51 = vshrl.u32 %v1595_v27, 16  ;;  %v2902_v53 = vrot.slane %v2900_v19, 3  ;;  %v2905_v48 = vrot.slane %v2903_v33, 4  ;;  %v2889_v45 = vor.u32 %v2888_v54, %v2885_v37  ;;  %v497_v17 = vld [vmem:[#allocation2 + $0xc8] sm:$0xf] }
 0x1a9   : > { %v7705_v23 = vpop.f32.mrf.mxu1  ;;  %v2138_v1 = vshll.u32 %v1595_v27, 16  ;;  %v2021_v44 = vsel %vm1634_vm0, %v2012_v47, %v2020_v28  ;;  %v2897_v35 = vor.u32 %v2896_v21, %v2893_v25  ;;  %v1597_v32 = vsel %vm849_vm1, %v1595_v27, %v1596_v49  ;;  %v495_v37 = vld [vmem:[#allocation2 + $0xc0] sm:$0x8] }
 0x1aa   : > { %8487 = vst [vmem:[#allocation106_spill] sm:$0xff] %v7705_v23  ;;  %v2137_v56 = vrot.slane %v2135_v51, 3  ;;  %v2906_v0 = vor.u32 %v2905_v48, %v2902_v53  ;;  %6479 = vmatprep.mubr.bf16.mxu0 %v2021_v44  ;;  %v2143_v6 = vshrl.u32 %v1597_v32, 16  ;;  %v2146_v36 = vshll.u32 %v1597_v32, 16 }
 0x1ab   : > { %v7703_v30 = vpop.f32.mrf.mxu0  ;;  %v2140_v42 = vrot.slane %v2138_v1, 4  ;;  %v2898_v19 = vsel %vm1634_vm0, %v2889_v45, %v2897_v35  ;;  %v7714_v47 = vpop.f32.mrf.mxu1  ;;  %v7716_v25 = vcombine.low %v496_v2, %v497_v17  ;;  %v1598_v28 = vrot.slane %v7560_v61, 5 }
 0x1ac   : > { %8486 = vst [vmem:[#allocation105_spill] sm:$0xff] %v7703_v30  ;;  %8490 = vst [vmem:[#allocation109_spill] sm:$0xff] %v7714_v47  ;;  %5006 = vmatprep.mubr.bf16.mxu1 %v2906_v0  ;;  %v2145_v51 = vrot.slane %v2143_v6, 3  ;;  %v2148_v54 = vrot.slane %v2146_v36, 4  ;;  %v1599_v21 = vrot.slane %v6765_v52, 5  ;;  %v5706_v53 = vcombine.low %v495_v37, %v496_v2 }
 0x1ad   : > { %v7709_v16 = vpop.f32.mrf.mxu0  ;;  %v2141_v27 = vor.u32 %v2140_v42, %v2137_v56  ;;  %5007 = vmatmul.mubr.bf16.gmra.mxu1 %v2898_v19  ;;  %v5707_v48 = vcombine.low %v497_v17, %v497_v17  ;;  %v1491_v45 = vshrl.u32 %v7716_v25, 16  ;;  %v1494_v1 = vshll.u32 %v7716_v25, 16  ;;  %v6768_v52 = vld [vmem:[#allocation2 + $0x7c] ss:$0 sps:$4 sm:$0x11]  }
 0x1ae   : > { %8488 = vst [vmem:[#allocation107_spill] sm:$0xff] %v7709_v16  ;;  %v2149_v49 = vor.u32 %v2148_v54, %v2145_v51  ;;  %v1600_v44 = vsel %vm849_vm1, %v1598_v28, %v1599_v21  ;;  %v2264_v35 = vshrl.u32 %v1598_v28, 16  ;;  %v2267_v42 = vshll.u32 %v1598_v28, 16 }
 0x1af   : > { %v7712_v33 = vpop.f32.mrf.mxu0  ;;  %v2272_v6 = vshrl.u32 %v1600_v44, 16  ;;  %v2275_v61 = vshll.u32 %v1600_v44, 16  ;;  %v1493_v2 = vrot.slane %v1491_v45, 4  ;;  %v1496_v36 = vrot.slane %v1494_v1, 5 }
 0x1b0   : > { %8489 = vst [vmem:[#allocation108_spill] sm:$0xff] %v7712_v33  ;;  %v2150_v0 = vsel %vm1634_vm0, %v2141_v27, %v2149_v49  ;;  %v2266_v17 = vrot.slane %v2264_v35, 3  ;;  %v3012_v19 = vshrl.u32 %v5706_v53, 16  ;;  %v2269_v51 = vrot.slane %v2267_v42, 4 }
 0x1b1   : > { %v7722_v32 = vpop.f32.mrf.mxu0  ;;  %6480 = vmatmul.mubr.bf16.gmra.mxu0 %v2150_v0  ;;  %v2274_v54 = vrot.slane %v2272_v6, 3  ;;  %v2277_v21 = vrot.slane %v2275_v61, 4  ;;  %v3015_v47 = vshll.u32 %v5706_v53, 16  ;;  %v1497_v23 = vor.u32 %v1496_v36, %v1493_v2 }
 0x1b2   : > { %8491 = vst [vmem:[#allocation110_spill] sm:$0xff] %v7722_v32  ;;  %v3014_v40 = vrot.slane %v3012_v19, 3  ;;  %v3023_v32 = vshll.u32 %v5707_v48, 16  ;;  %v2270_v49 = vor.u32 %v2269_v51, %v2266_v17  ;;  %v1601_v1 = vrot.slane %v7586_v4, 5  ;;  %v499_v51 = vld [vmem:[#allocation2 + $0xd4] sm:$0xf] }
 0x1b3   : > { %v2278_v44 = vor.u32 %v2277_v21, %v2274_v54  ;;  %v3017_v45 = vrot.slane %v3015_v47, 4  ;;  %v3029_v35 = vshrl.u32 %v1497_v23, 16  ;;  %v3032_v0 = vshll.u32 %v1497_v23, 16 }
 0x1b4   : > { %v7724_v56 = vpop.f32.mrf.mxu1  ;;  %v3025_v42 = vrot.slane %v3023_v32, 4  ;;  %v1602_v2 = vrot.slane %v6768_v52, 5  ;;  %v2396_v17 = vshll.u32 %v1601_v1, 16  ;;  %v6770_v32 = vld [vmem:[#allocation2 + $0x8c] ss:$0 sps:$4 sm:$0x11]  }
 0x1b5   : > { %8492 = vst [vmem:[#allocation111_spill] sm:$0xff] %v7724_v56  ;;  %v3020_v56 = vshrl.u32 %v5707_v48, 16  ;;  %v2279_v53 = vsel %vm1634_vm0, %v2270_v49, %v2278_v44  ;;  %v3018_v61 = vor.u32 %v3017_v45, %v3014_v40  ;;  %v2393_v48 = vshrl.u32 %v1601_v1, 16  ;;  %v498_v52 = vld [vmem:[#allocation2 + $0xd0] sm:$0x8] }
 0x1b6   : > { %v7727_v37 = vpop.f32.mrf.mxu1  ;;  %v3031_v36 = vrot.slane %v3029_v35, 3  ;;  %v3034_v19 = vrot.slane %v3032_v0, 4  ;;  %6483 = vmatprep.mubr.bf16.mxu0 %v2279_v53  ;;  %v1603_v4 = vsel %vm849_vm1, %v1601_v1, %v1602_v2  ;;  %v2398_v49 = vrot.slane %v2396_v17, 4 }
 0x1b7   : > { %8493 = vst [vmem:[#allocation112_spill] sm:$0xff] %v7727_v37  ;;  %v7729_v27 = vpop.f32.mrf.mxu0  ;;  %v3022_v37 = vrot.slane %v3020_v56, 3  ;;  %v2395_v23 = vrot.slane %v2393_v48, 3  ;;  %v500_v56 = vld [vmem:[#allocation2 + $0xd8] sm:$0xf]  ;;  %v2401_v40 = vshrl.u32 %v1603_v4, 16  ;;  %v5708_v48 = vcombine.low %v498_v52, %v499_v51 }
 0x1b8   : > { %8494 = vst [vmem:[#allocation113_spill] sm:$0xff] %v7729_v27  ;;  %v7731_v28 = vpop.f32.mrf.mxu1  ;;  %v3035_v54 = vor.u32 %v3034_v19, %v3031_v36  ;;  %v2404_v45 = vshll.u32 %v1603_v4, 16  ;;  %v7743_v35 = vcombine.low %v499_v51, %v500_v56  ;;  %v1604_v0 = vrot.slane %v7611_v15, 5 }
 0x1b9   : > { %8495 = vst [vmem:[#allocation114_spill] sm:$0xff] %v7731_v28  ;;  %v7734_v6 = vpop.f32.mrf.mxu0  ;;  %v3026_v28 = vor.u32 %v3025_v42, %v3022_v37  ;;  %v2403_v37 = vrot.slane %v2401_v40, 3  ;;  %v2399_v1 = vor.u32 %v2398_v49, %v2395_v23  ;;  %v1605_v2 = vrot.slane %v6770_v32, 5 }
 0x1ba   : > { %8496 = vst [vmem:[#allocation115_spill] sm:$0xff] %v7734_v6  ;;  %v7737_v47 = vpop.f32.mrf.mxu1  ;;  %5014 = vmatprep.mubr.bf16.mxu1 %v3035_v54  ;;  %v2406_v53 = vrot.slane %v2404_v45, 4  ;;  %v2522_v36 = vshrl.u32 %v1604_v0, 16  ;;  %v2525_v19 = vshll.u32 %v1604_v0, 16  ;;  %v5709_v40 = vcombine.low %v500_v56, %v500_v56 }
 0x1bb   : > { %8497 = vst [vmem:[#allocation116_spill] sm:$0xff] %v7737_v47  ;;  %v3027_v21 = vsel %vm1634_vm0, %v3018_v61, %v3026_v28  ;;  %v7741_v44 = vpop.f32.mrf.mxu0  ;;  %v1499_v28 = vshrl.u32 %v7743_v35, 16  ;;  %v1502_v61 = vshll.u32 %v7743_v35, 16  ;;  %v1606_v15 = vsel %vm849_vm1, %v1604_v0, %v1605_v2 }
 0x1bc   : > { %8498 = vst [vmem:[#allocation117_spill] sm:$0xff] %v7741_v44  ;;  %5015 = vmatmul.mubr.bf16.gmra.mxu1 %v3027_v21  ;;  %v2407_v54 = vor.u32 %v2406_v53, %v2403_v37  ;;  %v3141_v47 = vshrl.u32 %v5708_v48, 16  ;;  %v2524_v49 = vrot.slane %v2522_v36, 3  ;;  %v2527_v32 = vrot.slane %v2525_v19, 4 }
 0x1bd   : > { %v7750_v17 = vpop.f32.mrf.mxu0  ;;  %v1501_v21 = vrot.slane %v1499_v28, 4  ;;  %v1504_v23 = vrot.slane %v1502_v61, 5  ;;  %v2530_v52 = vshrl.u32 %v1606_v15, 16  ;;  %v2533_v45 = vshll.u32 %v1606_v15, 16 }
 0x1be   : > { %8500 = vst [vmem:[#allocation119_spill] sm:$0xff] %v7750_v17  ;;  %v2408_v51 = vsel %vm1634_vm0, %v2399_v1, %v2407_v54  ;;  %v6773_v44 = vld [vmem:[#allocation2 + $0x9c] ss:$0 sps:$4 sm:$0x11]   ;;  %v2528_v17 = vor.u32 %v2527_v32, %v2524_v49  ;;  %v3144_v27 = vshll.u32 %v5708_v48, 16  ;;  %v3152_v2 = vshll.u32 %v5709_v40, 16 }
 0x1bf   : > { %v7746_v42 = vpop.f32.mrf.mxu1  ;;  %6484 = vmatmul.mubr.bf16.gmra.mxu0 %v2408_v51  ;;  %v1505_v6 = vor.u32 %v1504_v23, %v1501_v21  ;;  %v2532_v56 = vrot.slane %v2530_v52, 3  ;;  %v2535_v53 = vrot.slane %v2533_v45, 4  ;;  %v1607_v28 = vrot.slane %v7637_v11, 5  ;;  %v6775_v45 = vld [vmem:[#allocation2 + $0xac] ss:$0 sps:$4 sm:$0x11]  }
 0x1c0   : > { %8499 = vst [vmem:[#allocation118_spill] sm:$0xff] %v7746_v42  ;;  %v3143_v42 = vrot.slane %v3141_v47, 3  ;;  %v3146_v36 = vrot.slane %v3144_v27, 4  ;;  %v3154_v15 = vrot.slane %v3152_v2, 4  ;;  %v1608_v21 = vrot.slane %v6773_v44, 5 }
 0x1c1   : > { %v7752_v4 = vpop.f32.mrf.mxu1  ;;  %v3158_v61 = vshrl.u32 %v1505_v6, 16  ;;  %v3161_v1 = vshll.u32 %v1505_v6, 16  ;;  %v2536_v54 = vor.u32 %v2535_v53, %v2532_v56  ;;  %v2651_v48 = vshrl.u32 %v1607_v28, 16 }
 0x1c2   : > { %8501 = vst [vmem:[#allocation120_spill] sm:$0xff] %v7752_v4  ;;  %v3149_v4 = vshrl.u32 %v5709_v40, 16  ;;  %v3147_v32 = vor.u32 %v3146_v36, %v3143_v42  ;;  %v2654_v51 = vshll.u32 %v1607_v28, 16  ;;  %v1609_v27 = vsel %vm849_vm1, %v1607_v28, %v1608_v21 }
 0x1c3   : > { %v7758_v0 = vpop.f32.mrf.mxu1  ;;  %v3160_v23 = vrot.slane %v3158_v61, 3  ;;  %v3163_v49 = vrot.slane %v3161_v1, 4  ;;  %v2537_v11 = vsel %vm1634_vm0, %v2528_v17, %v2536_v54  ;;  %v2653_v6 = vrot.slane %v2651_v48, 3  ;;  %v503_v61 = vld [vmem:[#allocation2 + $0xe8] sm:$0xf] }
 0x1c4   : > { %8503 = vst [vmem:[#allocation122_spill] sm:$0xff] %v7758_v0  ;;  %v3151_v19 = vrot.slane %v3149_v4, 3  ;;  %v502_v4 = vld [vmem:[#allocation2 + $0xe4] sm:$0xf]  ;;  %6487 = vmatprep.mubr.bf16.mxu0 %v2537_v11  ;;  %v2656_v44 = vrot.slane %v2654_v51, 4  ;;  %v2659_v53 = vshrl.u32 %v1609_v27, 16 }
 0x1c5   : > { %v7756_v37 = vpop.f32.mrf.mxu0  ;;  %v7765_v52 = vpop.f32.mrf.mxu1  ;;  %v3164_v56 = vor.u32 %v3163_v49, %v3160_v23  ;;  %v2662_v2 = vshll.u32 %v1609_v27, 16  ;;  %v501_v1 = vld [vmem:[#allocation2 + $0xe0] sm:$0x8]  ;;  %v7774_v28 = vcombine.low %v502_v4, %v503_v61  ;;  %v1610_v54 = vrot.slane %v7660_v20, 5 }
 0x1c6   : > { %8502 = vst [vmem:[#allocation121_spill] sm:$0xff] %v7756_v37  ;;  %8506 = vst [vmem:[#allocation125_spill] sm:$0xff] %v7765_v52  ;;  %v3155_v40 = vor.u32 %v3154_v15, %v3151_v19  ;;  %v2657_v36 = vor.u32 %v2656_v44, %v2653_v6  ;;  %v2661_v52 = vrot.slane %v2659_v53, 3  ;;  %v1611_v15 = vrot.slane %v6775_v45, 5 }
 0x1c7   : > { %v7761_v47 = vpop.f32.mrf.mxu0  ;;  %5022 = vmatprep.mubr.bf16.mxu1 %v3164_v56  ;;  %v5710_v48 = vcombine.low %v501_v1, %v502_v4  ;;  %v5711_v23 = vcombine.low %v503_v61, %v503_v61  ;;  %v1510_v51 = vshll.u32 %v7774_v28, 16  ;;  %v2783_v6 = vshll.u32 %v1610_v54, 16  ;;  %v6778_v53 = vld [vmem:[#allocation2 + $0xbc] ss:$0 sps:$4 sm:$0x11]  }
 0x1c8   : > { %8504 = vst [vmem:[#allocation123_spill] sm:$0xff] %v7761_v47  ;;  %v3156_v42 = vsel %vm1634_vm0, %v3147_v32, %v3155_v40  ;;  %v1507_v32 = vshrl.u32 %v7774_v28, 16  ;;  %v1612_v11 = vsel %vm849_vm1, %v1610_v54, %v1611_v15  ;;  %v2780_v40 = vshrl.u32 %v1610_v54, 16 }
 0x1c9   : > { %v7763_v0 = vpop.f32.mrf.mxu0  ;;  %5023 = vmatmul.mubr.bf16.gmra.mxu1 %v3156_v42  ;;  %v2788_v56 = vshrl.u32 %v1612_v11, 16  ;;  %v2791_v44 = vshll.u32 %v1612_v11, 16  ;;  %v1512_v4 = vrot.slane %v1510_v51, 5  ;;  %v2785_v61 = vrot.slane %v2783_v6, 4 }
 0x1ca   : > { %8505 = vst [vmem:[#allocation124_spill] sm:$0xff] %v7763_v0  ;;  %v2664_v0 = vrot.slane %v2662_v2, 4  ;;  %v2782_v45 = vrot.slane %v2780_v40, 3  ;;  %v3270_v2 = vshrl.u32 %v5710_v48, 16  ;;  %v3273_v15 = vshll.u32 %v5710_v48, 16 }
 0x1cb   : > { %v7770_v17 = vpop.f32.mrf.mxu0  ;;  %v2790_v42 = vrot.slane %v2788_v56, 3  ;;  %v2793_v1 = vrot.slane %v2791_v44, 4  ;;  %v3281_v11 = vshll.u32 %v5711_v23, 16  ;;  %v1613_v26 = vrot.slane %v7687_v24, 5 }
 0x1cc   : > { %8507 = vst [vmem:[#allocation126_spill] sm:$0xff] %v7770_v17  ;;  %v2665_v21 = vor.u32 %v2664_v0, %v2661_v52  ;;  %v1509_v52 = vrot.slane %v1507_v32, 4  ;;  %v3272_v54 = vrot.slane %v3270_v2, 3  ;;  %v2786_v47 = vor.u32 %v2785_v61, %v2782_v45  ;;  %v505_v61 = vld [vmem:[#allocation2 + $0xf4] sm:$0xf] }
 0x1cd   : > { %v2794_v37 = vor.u32 %v2793_v1, %v2790_v42  ;;  %v3275_v33 = vrot.slane %v3273_v15, 4  ;;  %v3283_v6 = vrot.slane %v3281_v11, 4  ;;  %v1614_v44 = vrot.slane %v6778_v53, 5  ;;  %v506_v1 = vld [vmem:[#allocation2 + $0xf8] sm:$0xf] }
 0x1ce   : > { %v7772_v19 = vpop.f32.mrf.mxu1  ;;  %v2666_v27 = vsel %vm1634_vm0, %v2657_v36, %v2665_v21  ;;  %v1513_v36 = vor.u32 %v1512_v4, %v1509_v52  ;;  %v3278_v21 = vshrl.u32 %v5711_v23, 16  ;;  %v2909_v13 = vshrl.u32 %v1613_v26, 16  ;;  %v6780_v15 = vld [vmem:[#allocation2 + $0xcc] ss:$0 sps:$4 sm:$0x11]  }
 0x1cf   : > { %6488 = vmatmul.mubr.bf16.gmra.mxu0 %v2666_v27  ;;  %v2795_v56 = vsel %vm1634_vm0, %v2786_v47, %v2794_v37  ;;  %v3276_v48 = vor.u32 %v3275_v33, %v3272_v54  ;;  %v2912_v2 = vshll.u32 %v1613_v26, 16  ;;  %v1615_v24 = vsel %vm849_vm1, %v1613_v26, %v1614_v44  ;;  %v504_v53 = vld [vmem:[#allocation2 + $0xf0] sm:$0x8] }
 0x1d0   : > { %v7777_v49 = vpop.f32.mrf.mxu1  ;;  %v3287_v32 = vshrl.u32 %v1513_v36, 16  ;;  %v3290_v51 = vshll.u32 %v1513_v36, 16  ;;  %v3280_v40 = vrot.slane %v3278_v21, 3  ;;  %6491 = vmatprep.mubr.bf16.mxu0 %v2795_v56  ;;  %v2911_v42 = vrot.slane %v2909_v13, 3 }
 0x1d1   : > { %v7783_v20 = vpop.f32.mrf.mxu0  ;;  %v2914_v37 = vrot.slane %v2912_v2, 4  ;;  %v2917_v47 = vshrl.u32 %v1615_v24, 16  ;;  %v2920_v54 = vshll.u32 %v1615_v24, 16  ;;  %v1616_v13 = vrot.slane %v7716_v25, 5 }
 0x1d2   : > { %v7785_v0 = vpop.f32.mrf.mxu1  ;;  %v3289_v4 = vrot.slane %v3287_v32, 3  ;;  %v3292_v23 = vrot.slane %v3290_v51, 4  ;;  %v3284_v45 = vor.u32 %v3283_v6, %v3280_v40  ;;  %v7803_v40 = vcombine.low %v505_v61, %v506_v1 }
 0x1d3   : > { %v7787_v17 = vpop.f32.mrf.mxu0  ;;  %v2919_v51 = vrot.slane %v2917_v47, 3  ;;  %v2915_v26 = vor.u32 %v2914_v37, %v2911_v42  ;;  %v2922_v6 = vrot.slane %v2920_v54, 4  ;;  %v1617_v56 = vrot.slane %v6780_v15, 5 }
 0x1d4   : > { %v7790_v27 = vpop.f32.mrf.mxu1  ;;  %v3293_v21 = vor.u32 %v3292_v23, %v3289_v4  ;;  %v3285_v33 = vsel %vm1634_vm0, %v3276_v48, %v3284_v45  ;;  %v5712_v44 = vcombine.low %v504_v53, %v505_v61  ;;  %v1515_v48 = vshrl.u32 %v7803_v40, 16 }
 0x1d5   : > { %v7793_v52 = vpop.f32.mrf.mxu0  ;;  %v1518_v4 = vshll.u32 %v7803_v40, 16  ;;  %v3038_v23 = vshrl.u32 %v1616_v13, 16  ;;  %v3041_v45 = vshll.u32 %v1616_v13, 16  ;;  %v2923_v2 = vor.u32 %v2922_v6, %v2919_v51 }
 0x1d6   : > { %5030 = vmatprep.mubr.bf16.mxu1 %v3293_v21  ;;  %v1618_v24 = vsel %vm849_vm1, %v1616_v13, %v1617_v56  ;;  %v5713_v21 = vcombine.low %v506_v1, %v506_v1  ;;  %v3399_v47 = vshrl.u32 %v5712_v44, 16  ;;  %v1517_v25 = vrot.slane %v1515_v48, 4 }
 0x1d7   : > { %v7799_v11 = vpop.f32.mrf.mxu0  ;;  %5031 = vmatmul.mubr.bf16.gmra.mxu1 %v3285_v33  ;;  %v1520_v42 = vrot.slane %v1518_v4, 5  ;;  %v3040_v33 = vrot.slane %v3038_v23, 3  ;;  %v3043_v15 = vrot.slane %v3041_v45, 4  ;;  %v2924_v61 = vsel %vm1634_vm0, %v2915_v26, %v2923_v2 }
 0x1d8   : > { %v3046_v37 = vshrl.u32 %v1618_v24, 16  ;;  %v3049_v53 = vshll.u32 %v1618_v24, 16  ;;  %v3401_v54 = vrot.slane %v3399_v47, 3  ;;  %6492 = vmatmul.mubr.bf16.gmra.mxu0 %v2924_v61  ;;  %v3402_v13 = vshll.u32 %v5712_v44, 16 }
 0x1d9   : > { %v7796_v36 = vpop.f32.mrf.mxu1  ;;  %v1521_v51 = vor.u32 %v1520_v42, %v1517_v25  ;;  %v3044_v1 = vor.u32 %v3043_v15, %v3040_v33  ;;  %v3407_v6 = vshrl.u32 %v5713_v21, 16  ;;  %v3410_v30 = vshll.u32 %v5713_v21, 16 }
 0x1da   : > { %v3048_v56 = vrot.slane %v3046_v37, 3  ;;  %v3051_v16 = vrot.slane %v3049_v53, 4  ;;  %v1619_v48 = vrot.slane %v7743_v35, 5  ;;  %v3404_v2 = vrot.slane %v3402_v13, 4 }
 0x1db   : > { %v7801_v32 = vpop.f32.mrf.mxu1  ;;  %v3416_v26 = vshrl.u32 %v1521_v51, 16  ;;  %v3419_v45 = vshll.u32 %v1521_v51, 16  ;;  %v3409_v24 = vrot.slane %v3407_v6, 3  ;;  %v3412_v34 = vrot.slane %v3410_v30, 4  ;;  %v509_v6 = vld [vmem:[#allocation2 + $0x108] sm:$0xf] }
 0x1dc   : > { %v3052_v47 = vor.u32 %v3051_v16, %v3048_v56  ;;  %v1620_v61 = vrot.slane %v6783_v5, 5  ;;  %v3167_v25 = vshrl.u32 %v1619_v48, 16  ;;  %v3405_v33 = vor.u32 %v3404_v2, %v3401_v54  ;;  %v507_v56 = vld [vmem:[#allocation2 + $0x100] sm:$0x8] }
 0x1dd   : > { %v7811_v38 = vpop.f32.mrf.mxu1  ;;  %v3418_v42 = vrot.slane %v3416_v26, 3  ;;  %v3421_v44 = vrot.slane %v3419_v45, 4  ;;  %v3170_v15 = vshll.u32 %v1619_v48, 16  ;;  %v3413_v37 = vor.u32 %v3412_v34, %v3409_v24 }
 0x1de   : > { %v3053_v21 = vsel %vm1634_vm0, %v3044_v1, %v3052_v47  ;;  %v1621_v35 = vsel %vm849_vm1, %v1619_v48, %v1620_v61  ;;  %v3169_v53 = vrot.slane %v3167_v25, 3  ;;  %v7830_v45 = vcombine.low %v508_v14, %v509_v6 }
 0x1df   : > { %v7809_v63 = vpop.f32.mrf.mxu0  ;;  %v7819_v23 = vpop.f32.mrf.mxu1  ;;  %v3422_v16 = vor.u32 %v3421_v44, %v3418_v42  ;;  %6495 = vmatprep.mubr.bf16.mxu0 %v3053_v21  ;;  %v3172_v5 = vrot.slane %v3170_v15, 4  ;;  %v3175_v30 = vshrl.u32 %v1621_v35, 16  ;;  %v3178_v13 = vshll.u32 %v1621_v35, 16 }
 0x1e0   : > { %v3414_v54 = vsel %vm1634_vm0, %v3405_v33, %v3413_v37  ;;  %v1622_v2 = vrot.slane %v7774_v28, 5  ;;  %v1623_v24 = vrot.slane %v6785_v43, 5  ;;  %v5714_v42 = vcombine.low %v507_v56, %v508_v14 }
 0x1e1   : > { %v7814_v60 = vpop.f32.mrf.mxu0  ;;  %5038 = vmatprep.mubr.bf16.mxu1 %v3422_v16  ;;  %v3173_v34 = vor.u32 %v3172_v5, %v3169_v53  ;;  %v3177_v48 = vrot.slane %v3175_v30, 3  ;;  %v3180_v26 = vrot.slane %v3178_v13, 4  ;;  %v5715_v44 = vcombine.low %v509_v6, %v509_v6  ;;  %v6788_v5 = vld [vmem:[#allocation2 + $0xfc] ss:$0 sps:$4 sm:$0x11]  }
 0x1e2   : > { %5039 = vmatmul.mubr.bf16.gmra.mxu1 %v3414_v54  ;;  %v1523_v33 = vshrl.u32 %v7830_v45, 16  ;;  %v1526_v15 = vshll.u32 %v7830_v45, 16  ;;  %v1624_v21 = vsel %vm849_vm1, %v1622_v2, %v1623_v24  ;;  %v3296_v37 = vshrl.u32 %v1622_v2, 16 }
 0x1e3   : > { %v7817_v4 = vpop.f32.mrf.mxu0  ;;  %v3181_v25 = vor.u32 %v3180_v26, %v3177_v48  ;;  %v3299_v28 = vshll.u32 %v1622_v2, 16  ;;  %v3304_v43 = vshrl.u32 %v1624_v21, 16  ;;  %v3307_v16 = vshll.u32 %v1624_v21, 16 }
 0x1e4   : > { %v1525_v30 = vrot.slane %v1523_v33, 4  ;;  %v1528_v13 = vrot.slane %v1526_v15, 5  ;;  %v3298_v14 = vrot.slane %v3296_v37, 3  ;;  %v3528_v6 = vshrl.u32 %v5714_v42, 16 }
 0x1e5   : > { %v7823_v8 = vpop.f32.mrf.mxu0  ;;  %v3182_v53 = vsel %vm1634_vm0, %v3173_v34, %v3181_v25  ;;  %v3301_v56 = vrot.slane %v3299_v28, 4  ;;  %v3306_v48 = vrot.slane %v3304_v43, 3  ;;  %v3309_v26 = vrot.slane %v3307_v16, 4 }
 0x1e6   : > { %6496 = vmatmul.mubr.bf16.gmra.mxu0 %v3182_v53  ;;  %v3531_v24 = vshll.u32 %v5714_v42, 16  ;;  %v1529_v41 = vor.u32 %v1528_v13, %v1525_v30  ;;  %v3530_v55 = vrot.slane %v3528_v6, 3  ;;  %v3536_v50 = vshrl.u32 %v5715_v44, 16  ;;  %v511_v6 = vld [vmem:[#allocation2 + $0x114] sm:$0xf] }
 0x1e7   : > { %v3539_v18 = vshll.u32 %v5715_v44, 16  ;;  %v3302_v2 = vor.u32 %v3301_v56, %v3298_v14  ;;  %v3310_v25 = vor.u32 %v3309_v26, %v3306_v48  ;;  %v1625_v33 = vrot.slane %v7803_v40, 5  ;;  %v6790_v48 = vld [vmem:[#allocation2 + $0x10c] ss:$0 sps:$4 sm:$0x11]  }
 0x1e8   : > { %v7825_v51 = vpop.f32.mrf.mxu1  ;;  %v3533_v21 = vrot.slane %v3531_v24, 4  ;;  %v3545_v15 = vshrl.u32 %v1529_v41, 16  ;;  %v3548_v37 = vshll.u32 %v1529_v41, 16  ;;  %v3538_v53 = vrot.slane %v3536_v50, 3  ;;  %v512_v41 = vld [vmem:[#allocation2 + $0x118] sm:$0xf] }
 0x1e9   : > { %v3541_v39 = vrot.slane %v3539_v18, 4  ;;  %v3311_v28 = vsel %vm1634_vm0, %v3302_v2, %v3310_v25  ;;  %v1626_v43 = vrot.slane %v6788_v5, 5  ;;  %v3425_v16 = vshrl.u32 %v1625_v33, 16  ;;  %v510_v2 = vld [vmem:[#allocation2 + $0x110] sm:$0x8] }
 0x1ea   : > { %v7828_v1 = vpop.f32.mrf.mxu1  ;;  %v3534_v42 = vor.u32 %v3533_v21, %v3530_v55  ;;  %v3547_v30 = vrot.slane %v3545_v15, 3  ;;  %v3550_v44 = vrot.slane %v3548_v37, 4  ;;  %6499 = vmatprep.mubr.bf16.mxu0 %v3311_v28  ;;  %v3428_v14 = vshll.u32 %v1625_v33, 16 }
 0x1eb   : > { %v7833_v47 = vpop.f32.mrf.mxu0  ;;  %v3542_v13 = vor.u32 %v3541_v39, %v3538_v53  ;;  %v1627_v50 = vsel %vm849_vm1, %v1625_v33, %v1626_v43  ;;  %v3427_v18 = vrot.slane %v3425_v16, 3  ;;  %v5733_v15 = vcombine.low %v511_v6, %v512_v41 }
 0x1ec   : > { %v7835_v61 = vpop.f32.mrf.mxu1  ;;  %v3551_v26 = vor.u32 %v3550_v44, %v3547_v30  ;;  %v3430_v5 = vrot.slane %v3428_v14, 4  ;;  %v3433_v24 = vshrl.u32 %v1627_v50, 16  ;;  %v3436_v25 = vshll.u32 %v1627_v50, 16 }
 0x1ed   : > { %v7840_v35 = vpop.f32.mrf.mxu0  ;;  %v3543_v55 = vsel %vm1634_vm0, %v3534_v42, %v3542_v13  ;;  %v1628_v37 = vrot.slane %v7830_v45, 5  ;;  %v1629_v43 = vrot.slane %v6790_v48, 5  ;;  %v5716_v16 = vcombine.low %v510_v2, %v511_v6 }
 0x1ee   : > { %v7843_v54 = vpop.f32.mrf.mxu1  ;;  %5046 = vmatprep.mubr.bf16.mxu1 %v3551_v26  ;;  %v3435_v39 = vrot.slane %v3433_v24, 3  ;;  %v3431_v33 = vor.u32 %v3430_v5, %v3427_v18  ;;  %v3438_v28 = vrot.slane %v3436_v25, 4  ;;  %v1531_v30 = vshrl.u32 %v5733_v15, 16 }
 0x1ef   : > { %v7845_v34 = vpop.f32.mrf.mxu0  ;;  %5047 = vmatmul.mubr.bf16.gmra.mxu1 %v3543_v55  ;;  %v1534_v42 = vshll.u32 %v5733_v15, 16  ;;  %v3554_v44 = vshrl.u32 %v1628_v37, 16  ;;  %v3557_v13 = vshll.u32 %v1628_v37, 16  ;;  %v1630_v26 = vsel %vm849_vm1, %v1628_v37, %v1629_v43 }
 0x1f0   : > { %v3439_v50 = vor.u32 %v3438_v28, %v3435_v39  ;;  %v5717_v24 = vcombine.low %v512_v41, %v512_v41  ;;  %v3657_v7 = vshrl.u32 %v5716_v16, 16  ;;  %v1533_v45 = vrot.slane %v1531_v30, 4 }
 0x1f1   : > { %v7851_v56 = vpop.f32.mrf.mxu0  ;;  %v1536_v3 = vrot.slane %v1534_v42, 5  ;;  %v3556_v55 = vrot.slane %v3554_v44, 3  ;;  %v3559_v18 = vrot.slane %v3557_v13, 4  ;;  %v3562_v48 = vshrl.u32 %v1630_v26, 16 }
 0x1f2   : > { %v3440_v6 = vsel %vm1634_vm0, %v3431_v33, %v3439_v50  ;;  %v3565_v2 = vshll.u32 %v1630_v26, 16  ;;  %v3659_v25 = vrot.slane %v3657_v7, 3  ;;  %v3660_v37 = vshll.u32 %v5716_v16, 16 }
 0x1f3   : > { %v7848_v31 = vpop.f32.mrf.mxu1  ;;  %6500 = vmatmul.mubr.bf16.gmra.mxu0 %v3440_v6  ;;  %v1537_v39 = vor.u32 %v1536_v3, %v1533_v45  ;;  %v3560_v28 = vor.u32 %v3559_v18, %v3556_v55  ;;  %v3665_v41 = vshrl.u32 %v5717_v24, 16  ;;  %v3564_v29 = vrot.slane %v3562_v48, 3 }
 0x1f4   : > { %v3567_v30 = vrot.slane %v3565_v2, 4  ;;  %v3668_v42 = vshll.u32 %v5717_v24, 16  ;;  %v1631_v44 = vrot.slane %v5733_v15, 5  ;;  %v3662_v33 = vrot.slane %v3660_v37, 4 }
 0x1f5   : > { %v7853_v40 = vpop.f32.mrf.mxu1  ;;  %v3674_v62 = vshrl.u32 %v1537_v39, 16  ;;  %v3677_v58 = vshll.u32 %v1537_v39, 16  ;;  %v3667_v50 = vrot.slane %v3665_v41, 3  ;;  %v1632_v6 = vrot.slane %v6793_v22, 5 }
 0x1f6   : > { %v3568_v7 = vor.u32 %v3567_v30, %v3564_v29  ;;  %v3670_v57 = vrot.slane %v3668_v42, 4  ;;  %v3683_v3 = vshrl.u32 %v1631_v44, 16  ;;  %v3663_v18 = vor.u32 %v3662_v33, %v3659_v25 }
 0x1f7   : > { %v7857_v21 = vpop.f32.mrf.mxu1  ;;  %v3676_v16 = vrot.slane %v3674_v62, 3  ;;  %v3679_v55 = vrot.slane %v3677_v58, 4  ;;  %v3686_v48 = vshll.u32 %v1631_v44, 16 }
 0x1f8   : > { %v3569_v15 = vsel %vm1634_vm0, %v3560_v28, %v3568_v7  ;;  %v3671_v24 = vor.u32 %v3670_v57, %v3667_v50  ;;  %v3685_v39 = vrot.slane %v3683_v3, 3 }
 0x1f9   : > { %v7860_v53 = vpop.f32.mrf.mxu0  ;;  %v7865_v46 = vpop.f32.mrf.mxu1  ;;  %v3680_v37 = vor.u32 %v3679_v55, %v3676_v16  ;;  %6503 = vmatprep.mubr.bf16.mxu0 %v3569_v15  ;;  %v3688_v41 = vrot.slane %v3686_v48, 4  ;;  %v7890_v16 = vadd.f32 %v7787_v17, %v7783_v20  ;;  %v6192_v55 = vadd.f32 %v7790_v27, %v7785_v0 }
 0x1fa   : > { %v3672_v62 = vsel %vm1634_vm0, %v3663_v18, %v3671_v24  ;;  %v7896_v18 = vadd.f32 %v7799_v11, %v7793_v52  ;;  %v6195_v48 = vadd.f32 %v7801_v32, %v7796_v36  ;;  %v7902_v24 = vadd.f32 %v7814_v60, %v7809_v63 }
 0x1fb   : > { %v7862_v14 = vpop.f32.mrf.mxu0  ;;  %5054 = vmatprep.mubr.bf16.mxu1 %v3680_v37  ;;  %v3689_v58 = vor.u32 %v3688_v41, %v3685_v39  ;;  %v7908_v17 = vadd.f32 %v7819_v23, %v7811_v38  ;;  %v7912_v20 = vadd.f32 %v7823_v8, %v7817_v4  ;;  %v7916_v0 = vadd.f32 %v7828_v1, %v7825_v51 }
 0x1fc   : > { %5055 = vmatmul.mubr.bf16.gmra.mxu1 %v3672_v62  ;;  %v7920_v27 = vadd.f32 %v7840_v35, %v7833_v47  ;;  %v7924_v60 = vadd.f32 %v7843_v54, %v7835_v61  ;;  %v7928_v38 = vadd.f32 %v7851_v56, %v7845_v34  ;;  %v7932_v8 = vadd.f32 %v7853_v40, %v7848_v31 }
 0x1fd   : > { %v7867_v5 = vpop.f32.mrf.mxu0  ;;  %v7936_v52 = vadd.f32 %v7862_v14, %v7860_v53  ;;  %v7942_v11 = vadd.f32 %v7865_v46, %v7857_v21 }
 0x1ff   : > { %v7870_v43 = vpop.f32.mrf.mxu0 }
 0x200   : > { %v7946_v32 = vadd.f32 %v7870_v43, %v7867_v5 }
 0x201   : > { %v7872_v13 = vpop.f32.mrf.mxu1  ;;  %v6275_v26 = vpop.f32.mrf.mxu0 }
 0x202   : > { %8508 = vst [vmem:[#allocation127_spill] sm:$0xff] %v7872_v13  ;;  %v1633_v13 = vsel %vm849_vm1, %v1631_v44, %v1632_v6 }
 0x203   : > { %v7874_v45 = vpop.f32.mrf.mxu1  ;;  %v6276_v2 = vpop.f32.mrf.mxu0  ;;  %v3691_v29 = vshrl.u32 %v1633_v13, 16  ;;  %v3694_v30 = vshll.u32 %v1633_v13, 16 }
 0x204   : > { %v7948_v4 = vadd.f32 %v6276_v2, %v6275_v26 }
 0x205   : > { %v6278_v22 = vpop.f32.mrf.mxu0  ;;  %v7878_v42 = vpop.f32.mrf.mxu1  ;;  %v3693_v25 = vrot.slane %v3691_v29, 3  ;;  %v3696_v33 = vrot.slane %v3694_v30, 4  ;;  %v6189_v30 = vadd.f32 %v7777_v49, %v7772_v19 }
 0x206   : > { %8509 = vst [vmem:[#allocation128_spill] sm:$0xff] %v7948_v4  ;;  %v8553_v4 = vld [vmem:[#allocation37_spill] sm:$0xff] }
 0x207   : > { %v3697_v28 = vor.u32 %v3696_v33, %v3693_v25  ;;  %v6279_v57 = vpop.f32.mrf.mxu0  ;;  %v7881_v50 = vpop.f32.mrf.mxu1 }
 0x208   : > { %v7950_v51 = vadd.f32 %v6279_v57, %v6278_v22 }
 0x209   : > { %v3698_v44 = vsel %vm1634_vm0, %v3689_v58, %v3697_v28  ;;  %v6077_v58 = vadd.f32 %v7360_v59, %v7356_v9 }
 0x20a   : > { %6504 = vmatmul.mubr.bf16.gmra.mxu0 %v3698_v44  ;;  %8510 = vst [vmem:[#allocation129_spill] sm:$0xff] %v7950_v51  ;;  %v8543_v51 = vld [vmem:[#allocation107_spill] sm:$0xff] }
 0x20b   : > { %v4711_v33 = vadd.f32 %v6189_v30, %v6077_v58  ;;  %v8521_v30 = vld [vmem:[#allocation12_spill] sm:$0xff] }
 0x20d   : > { %v6281_v7 = vpop.f32.mrf.mxu0 }
 0x20e   : > { %v7884_v6 = vpop.f32.mrf.mxu1 }
 0x20f   : > { %v6282_v13 = vpop.f32.mrf.mxu0 }
 0x210   : > { %v7886_v3 = vpop.f32.mrf.mxu1  ;;  %v7952_v31 = vadd.f32 %v6282_v13, %v6281_v7  ;;  %v6080_v7 = vadd.f32 %v7372_v12, %v7365_v10 }
 0x211   : > { %v6284_v15 = vpop.f32.mrf.mxu0 }
 0x212   : > { %v7904_v39 = vpop.f32.mrf.mxu1  ;;  %8511 = vst [vmem:[#allocation130_spill] sm:$0xff] %v7952_v31  ;;  %v4714_v49 = vadd.f32 %v6192_v55, %v6080_v7  ;;  %v8561_v31 = vld [vmem:[#allocation103_spill] sm:$0xff] }
 0x213   : > { %v6285_v63 = vpop.f32.mrf.mxu0 }
 0x214   : > { %v7938_v36 = vpop.f32.mrf.mxu1  ;;  %v7954_v1 = vadd.f32 %v6285_v63, %v6284_v15 }
 0x216   : > { %8512 = vst [vmem:[#allocation131_spill] sm:$0xff] %v7954_v1 }
 0x218   : > { %v6287_v23 = vpop.f32.mrf.mxu0 }
 0x21a   : > { %v7956_v47 = vpop.f32.mrf.mxu1  ;;  %v6288_v61 = vpop.f32.mrf.mxu0 }
 0x21b   : > { %v7958_v35 = vadd.f32 %v6288_v61, %v6287_v23 }
 0x21c   : > { %v7960_v46 = vpop.f32.mrf.mxu1  ;;  %v6290_v54 = vpop.f32.mrf.mxu0 }
 0x21d   : > { %8513 = vst [vmem:[#allocation132_spill] sm:$0xff] %v7958_v35 }
 0x21e   : > { %v7962_v34 = vpop.f32.mrf.mxu1  ;;  %v6291_v56 = vpop.f32.mrf.mxu0 }
 0x21f   : > { %v7964_v40 = vadd.f32 %v6291_v56, %v6290_v54  ;;  %v8519_v54 = vld [vmem:[#allocation8_spill] sm:$0xff]  ;;  %v8520_v56 = vld [vmem:[#allocation10_spill] sm:$0xff] }
 0x220   : > { %v7966_v21 = vpop.f32.mrf.mxu1 }
 0x221   : > { %8514 = vst [vmem:[#allocation133_spill] sm:$0xff] %v7964_v40 }
 0x224   : > { %v6293_v53 = vpop.f32.mrf.mxu0 }
 0x226   : > { %v6294_v14 = vpop.f32.mrf.mxu0  ;;  %v7968_v5 = vpop.f32.mrf.mxu1 }
 0x227   : > { %v7970_v43 = vadd.f32 %v6294_v14, %v6293_v53  ;;  %v6083_v53 = vadd.f32 %v8520_v56, %v8519_v54 }
 0x228   : > { %v6296_v26 = vpop.f32.mrf.mxu0  ;;  %v7972_v2 = vpop.f32.mrf.mxu1 }
 0x229   : > { %8515 = vst [vmem:[#allocation134_spill] sm:$0xff] %v7970_v43  ;;  %v8542_v43 = vld [vmem:[#allocation105_spill] sm:$0xff] }
 0x22a   : > { %v6297_v37 = vpop.f32.mrf.mxu0  ;;  %v7974_v41 = vpop.f32.mrf.mxu1 }
 0x22b   : > { %v7976_v29 = vadd.f32 %v6297_v37, %v6296_v26  ;;  %v4719_v26 = vadd.f32 %v6195_v48, %v6083_v53 }
 0x22c   : > { %v7980_v22 = vpop.f32.mrf.mxu1 }
 0x22d   : > { %8516 = vst [vmem:[#allocation135_spill] sm:$0xff] %v7976_v29  ;;  %v8538_v29 = vld [vmem:[#allocation7_spill] sm:$0xff] }
 0x230   : > { %v6299_v62 = vpop.f32.mrf.mxu0 }
 0x232   : > { %v6300_v25 = vpop.f32.mrf.mxu0  ;;  %v7984_v28 = vpop.f32.mrf.mxu1 }
 0x233   : > { %v6301_v57 = vadd.f32 %v6300_v25, %v6299_v62  ;;  %v8522_v62 = vld [vmem:[#allocation14_spill] sm:$0xff] }
 0x234   : > { %v6302_v44 = vpop.f32.mrf.mxu0  ;;  %v7990_v15 = vpop.f32.mrf.mxu1  ;;  %v6086_v55 = vadd.f32 %v8522_v62, %v8521_v30  ;;  %v8527_v30 = vld [vmem:[#allocation20_spill] sm:$0xff] }
 0x235   : > { %v7988_v13 = vadd.f32 %v6301_v57, %v4711_v33 }
 0x236   : > { %v6303_v19 = vpop.f32.mrf.mxu0  ;;  %v7992_v63 = vpop.f32.mrf.mxu1  ;;  %v4722_v57 = vadd.f32 %v7908_v17, %v6086_v55  ;;  %v8528_v17 = vld [vmem:[#allocation22_spill] sm:$0xff] }
 0x237   : > { %8517 = vst [vmem:[#allocation136_spill] sm:$0xff] %v7988_v13  ;;  %v6304_v23 = vadd.f32 %v6303_v19, %v6302_v44  ;;  %v8537_v13 = vld [vmem:[#allocation43_spill] sm:$0xff] }
 0x238   : > { %v7996_v9 = vpop.f32.mrf.mxu1 }
 0x239   : > { %v7994_v61 = vadd.f32 %v6304_v23, %v4714_v49  ;;  %v8525_v23 = vld [vmem:[#allocation17_spill] sm:$0xff] }
 0x23b   : > { %8518 = vst [vmem:[#allocation137_spill] sm:$0xff] %v7994_v61  ;;  %v6305_v59 = vpop.f32.mrf.mxu0 }
 0x23d   : > { %v6306_v14 = vpop.f32.mrf.mxu0 }
 0x23e   : > { %v8000_v10 = vpop.f32.mrf.mxu1  ;;  %v6307_v12 = vadd.f32 %v6306_v14, %v6305_v59  ;;  %v8526_v59 = vld [vmem:[#allocation19_spill] sm:$0xff] }
 0x23f   : > { %v6308_v37 = vpop.f32.mrf.mxu0  ;;  %v6089_v54 = vadd.f32 %v8526_v59, %v8525_v23 }
 0x240   : > { %v8004_v58 = vadd.f32 %v6307_v12, %v4719_v26  ;;  %v8006_v25 = vpop.f32.mrf.mxu1 }
 0x241   : > { %v6309_v33 = vpop.f32.mrf.mxu0  ;;  %v4727_v53 = vadd.f32 %v7916_v0, %v6089_v54  ;;  %v8531_v54 = vld [vmem:[#allocation25_spill] sm:$0xff] }
 0x242   : > { %8523 = vst [vmem:[#allocation8_spill] sm:$0xff] %v8004_v58  ;;  %v6310_v44 = vadd.f32 %v6309_v33, %v6308_v37  ;;  %v8009_v7 = vpop.f32.mrf.mxu1  ;;  %v6092_v37 = vadd.f32 %v8528_v17, %v8527_v30 }
 0x244   : > { %v8011_v19 = vadd.f32 %v6310_v44, %v4722_v57  ;;  %v8013_v48 = vpop.f32.mrf.mxu1  ;;  %v4730_v57 = vadd.f32 %v7924_v60, %v6092_v37  ;;  %v8533_v37 = vld [vmem:[#allocation28_spill] sm:$0xff] }
 0x246   : > { %8524 = vst [vmem:[#allocation10_spill] sm:$0xff] %v8011_v19  ;;  %v8536_v19 = vld [vmem:[#allocation41_spill] sm:$0xff] }
 0x247   : > { %v6311_v49 = vpop.f32.mrf.mxu0  ;;  %v6123_v58 = vadd.f32 %v8537_v13, %v8536_v19  ;;  %v8547_v13 = vld [vmem:[#allocation3_spill] sm:$0xff]  ;;  %v8548_v19 = vld [vmem:[#allocation4_spill] sm:$0xff] }
 0x249   : > { %v6312_v56 = vpop.f32.mrf.mxu0 }
 0x24a   : > { %v6313_v14 = vadd.f32 %v6312_v56, %v6311_v49  ;;  %v8532_v56 = vld [vmem:[#allocation26_spill] sm:$0xff] }
 0x24b   : > { %v8018_v26 = vpop.f32.mrf.mxu1  ;;  %v6314_v12 = vpop.f32.mrf.mxu0  ;;  %v6095_v30 = vadd.f32 %v8532_v56, %v8531_v54 }
 0x24c   : > { %v8022_v62 = vadd.f32 %v6313_v14, %v4727_v53 }
 0x24d   : > { %v8024_v55 = vpop.f32.mrf.mxu1  ;;  %v6315_v33 = vpop.f32.mrf.mxu0  ;;  %v4735_v17 = vadd.f32 %v7932_v8, %v6095_v30  ;;  %v8539_v8 = vld [vmem:[#allocation9_spill] sm:$0xff] }
 0x24e   : > { %8529 = vst [vmem:[#allocation12_spill] sm:$0xff] %v8022_v62  ;;  %v6316_v44 = vadd.f32 %v6315_v33, %v6314_v12  ;;  %v8534_v33 = vld [vmem:[#allocation30_spill] sm:$0xff]  ;;  %v8540_v30 = vld [vmem:[#allocation33_spill] sm:$0xff] }
 0x24f   : > { %v8027_v61 = vpop.f32.mrf.mxu1 }
 0x250   : > { %v8029_v23 = vadd.f32 %v6316_v44, %v4730_v57  ;;  %v6098_v57 = vadd.f32 %v8534_v33, %v8533_v37  ;;  %v6235_v37 = vadd.f32 %v8543_v51, %v8542_v43  ;;  %v8546_v33 = vld [vmem:[#allocation47_spill] sm:$0xff] }
 0x251   : > { %v8031_v0 = vpop.f32.mrf.mxu1  ;;  %v8554_v51 = vld [vmem:[#allocation39_spill] sm:$0xff] }
 0x252   : > { %8530 = vst [vmem:[#allocation14_spill] sm:$0xff] %v8029_v23  ;;  %v4738_v54 = vadd.f32 %v7942_v11, %v6098_v57  ;;  %v6005_v11 = vadd.f32 %v8548_v19, %v8547_v13  ;;  %v8550_v57 = vld [vmem:[#allocation99_spill] sm:$0xff]  ;;  %v6120_v43 = vadd.f32 %v8554_v51, %v8553_v4  ;;  %v8558_v19 = vld [vmem:[#allocation5_spill] sm:$0xff] }
 0x255   : > { %v6317_v49 = vpop.f32.mrf.mxu0 }
 0x256   : > { %v8033_v59 = vpop.f32.mrf.mxu1 }
 0x257   : > { %v6318_v53 = vpop.f32.mrf.mxu0 }
 0x258   : > { %v8037_v14 = vpop.f32.mrf.mxu1  ;;  %v6319_v62 = vadd.f32 %v6318_v53, %v6317_v49  ;;  %v6011_v49 = vadd.f32 %v8539_v8, %v8538_v29  ;;  %v8541_v53 = vld [vmem:[#allocation35_spill] sm:$0xff]  ;;  %v6347_v29 = vadd.f32 %v7886_v3, %v7884_v6 }
 0x259   : > { %v6320_v60 = vpop.f32.mrf.mxu0  ;;  %v6117_v35 = vadd.f32 %v8541_v53, %v8540_v30  ;;  %v8551_v8 = vld [vmem:[#allocation11_spill] sm:$0xff]  ;;  %v8552_v30 = vld [vmem:[#allocation13_spill] sm:$0xff] }
 0x25a   : > { %v8040_v12 = vpop.f32.mrf.mxu1  ;;  %v8044_v44 = vadd.f32 %v6319_v62, %v4735_v17  ;;  %v8545_v17 = vld [vmem:[#allocation45_spill] sm:$0xff]  ;;  %v6014_v53 = vadd.f32 %v8552_v30, %v8551_v8 }
 0x25b   : > { %v6321_v23 = vpop.f32.mrf.mxu0  ;;  %v8560_v30 = vld [vmem:[#allocation101_spill] sm:$0xff] }
 0x25c   : > { %8535 = vst [vmem:[#allocation17_spill] sm:$0xff] %v8044_v44  ;;  %v6322_v56 = vadd.f32 %v6321_v23, %v6320_v60  ;;  %v8049_v40 = vpop.f32.mrf.mxu1  ;;  %v6126_v44 = vadd.f32 %v8546_v33, %v8545_v17  ;;  %v4623_v23 = vadd.f32 %v6123_v58, %v6011_v49  ;;  %v8549_v60 = vld [vmem:[#allocation96_spill] sm:$0xff]  ;;  %v8557_v58 = vld [vmem:[#allocation127_spill] sm:$0xff]  ;;  %v6232_v4 = vadd.f32 %v8561_v31, %v8560_v30 }
 0x25d   : > { %v6229_v1 = vadd.f32 %v8550_v57, %v8549_v60  ;;  %v8555_v33 = vld [vmem:[#allocation108_spill] sm:$0xff]  ;;  %v6341_v49 = vadd.f32 %v7874_v45, %v8557_v58  ;;  %v8559_v60 = vld [vmem:[#allocation6_spill] sm:$0xff]  ;;  %v8088_v45 = vld [vmem:[%s8381_s2] ss:$0 sm:$0xff] }
 0x25e   : > { %v8057_v62 = vadd.f32 %v6322_v56, %v4738_v54  ;;  %v4615_v56 = vadd.f32 %v6117_v35, %v6005_v11  ;;  %v4784_v17 = vadd.f32 %v6235_v37, %v4623_v23  ;;  %v6008_v57 = vadd.f32 %v8559_v60, %v8558_v19  ;;  %v8564_v19 = vld [vmem:[#allocation15_spill] sm:$0xff]  ;;  %v8565_v60 = vld [vmem:[#allocation16_spill] sm:$0xff] }
 0x25f   : > { %v4626_v6 = vadd.f32 %v6126_v44, %v6014_v53  ;;  %v6350_v35 = vadd.f32 %v7938_v36, %v7904_v39  ;;  %v6344_v44 = vadd.f32 %v7881_v50, %v7878_v42 }
 0x260   : > { %8544 = vst [vmem:[#allocation19_spill] sm:$0xff] %v8057_v62  ;;  %v8071_v54 = vpop.f32.mrf.mxu1  ;;  %v8556_v62 = vld [vmem:[#allocation110_spill] sm:$0xff]  ;;  %v4776_v8 = vadd.f32 %v6229_v1, %v4615_v56  ;;  %v4945_v37 = vadd.f32 %v6347_v29, %v4784_v17  ;;  %v4618_v11 = vadd.f32 %v6120_v43, %v6008_v57  ;;  %v8562_v43 = vld [vmem:[#allocation57_spill] sm:$0xff]  ;;  %v8563_v17 = vld [vmem:[#allocation59_spill] sm:$0xff]  ;;  %v6017_v57 = vadd.f32 %v8565_v60, %v8564_v19 }
 0x261   : > { %v6238_v13 = vadd.f32 %v8556_v62, %v8555_v33  ;;  %v6135_v33 = vadd.f32 %v8563_v17, %v8562_v43  ;;  %v8574_v43 = vld [vmem:[#allocation21_spill] sm:$0xff]  ;;  %v8576_v19 = vld [vmem:[#allocation63_spill] sm:$0xff] }
 0x262   : > { %v8079_v3 = vpop.f32.mrf.mxu1  ;;  %v4937_v1 = vadd.f32 %v6341_v49, %v4776_v8  ;;  %v4779_v31 = vadd.f32 %v6232_v4, %v4618_v11  ;;  %v8567_v8 = vld [vmem:[#allocation24_spill] sm:$0xff]  ;;  %v8568_v4 = vld [vmem:[#allocation49_spill] sm:$0xff] }
 0x263   : > { %v4787_v62 = vadd.f32 %v6238_v13, %v4626_v6  ;;  %v8100_v13 = vld [vmem:[%s8382_s3] ss:$0 sm:$0xff]  ;;  %v8570_v11 = vld [vmem:[#allocation121_spill] sm:$0xff] }
 0x264   : > { %v8092_v56 = vpop.f32.mrf.mxu1  ;;  %v4940_v49 = vadd.f32 %v6344_v44, %v4779_v31  ;;  %v8566_v6 = vld [vmem:[#allocation23_spill] sm:$0xff] }
 0x265   : > { %v6477_v23 = vpop.f32.mrf.mxu0  ;;  %v4948_v29 = vadd.f32 %v6350_v35, %v4787_v62  ;;  %v6023_v30 = vadd.f32 %v8567_v8, %v8566_v6  ;;  %v8569_v35 = vld [vmem:[#allocation51_spill] sm:$0xff]  ;;  %v8577_v6 = vld [vmem:[#allocation113_spill] sm:$0xff] }
 0x266   : > { %v5106_v53 = vadd.f32 %v6477_v23, %v4945_v37  ;;  %v6129_v37 = vadd.f32 %v8569_v35, %v8568_v4  ;;  %v8571_v23 = vld [vmem:[#allocation123_spill] sm:$0xff]  ;;  %v6359_v35 = vadd.f32 %v7972_v2, %v7968_v5  ;;  %v6353_v5 = vadd.f32 %v7960_v46, %v7956_v47 }
 0x267   : > { %v5097_v51 = vpop.f32.mrf.mxu0  ;;  %v6247_v62 = vadd.f32 %v8571_v23, %v8570_v11  ;;  %v4639_v17 = vadd.f32 %v6135_v33, %v6023_v30  ;;  %v8578_v8 = vld [vmem:[#allocation115_spill] sm:$0xff]  ;;  %v8580_v23 = vld [vmem:[#allocation29_spill] sm:$0xff]  ;;  %v6362_v47 = vadd.f32 %v7980_v22, %v7974_v41 }
 0x268   : > { %v5233_v39 = vmul.f32 %v8088_v45, %v5106_v53  ;;  %v5098_v36 = vadd.f32 %v5097_v51, %v4937_v1  ;;  %v8111_v53 = vpop.f32.mrf.mxu1  ;;  %v8573_v51 = vld [vmem:[#allocation18_spill] sm:$0xff]  ;;  %v6241_v4 = vadd.f32 %v8578_v8, %v8577_v6  ;;  %v8579_v11 = vld [vmem:[#allocation27_spill] sm:$0xff]  ;;  %v4631_v33 = vadd.f32 %v6129_v37, %v6017_v57 }
 0x269   : > { %v6478_v58 = vpop.f32.mrf.mxu0  ;;  %8572 = vst [vmem:[#allocation20_spill] sm:$0xff] %v8111_v53  ;;  %v6026_v53 = vadd.f32 %v8580_v23, %v8579_v11  ;;  %v8582_v30 = vld [vmem:[#allocation55_spill] sm:$0xff] }
 0x26a   : > { %v5231_v42 = vmul.f32 %v8088_v45, %v5098_v36  ;;  %v5109_v50 = vadd.f32 %v6478_v58, %v4948_v29  ;;  %v6020_v36 = vadd.f32 %v8574_v43, %v8573_v51  ;;  %v5272_v44 = vadd.f32 %v8100_v13, %v5233_v39  ;;  %v8575_v58 = vld [vmem:[#allocation61_spill] sm:$0xff]  ;;  %v8586_v57 = vld [vmem:[#allocation119_spill] sm:$0xff] }
 0x26b   : > { %v5100_v1 = vpop.f32.mrf.mxu0  ;;  %v6138_v60 = vadd.f32 %v8576_v19, %v8575_v58  ;;  %v4800_v43 = vadd.f32 %v6247_v62, %v4639_v17  ;;  %v8583_v58 = vld [vmem:[#allocation124_spill] sm:$0xff]  ;;  %v8584_v19 = vld [vmem:[#allocation126_spill] sm:$0xff]  ;;  %v4792_v23 = vadd.f32 %v6241_v4, %v4631_v33 }
 0x26c   : > { %v5234_v31 = vmul.f32 %v8088_v45, %v5109_v50  ;;  %v5101_v29 = vadd.f32 %v5100_v1, %v4940_v49  ;;  %v5270_v51 = vadd.f32 %v8100_v13, %v5231_v42  ;;  %v8581_v49 = vld [vmem:[#allocation53_spill] sm:$0xff]  ;;  %v6250_v6 = vadd.f32 %v8584_v19, %v8583_v58 }
 0x26d   : > { %v6132_v1 = vadd.f32 %v8582_v30, %v8581_v49  ;;  %v8132_v8 = vpop.f32.mrf.mxu1  ;;  %v5304_v2 = vmax.f32 %v5272_v44, 0.0  ;;  %v4961_v62 = vadd.f32 %v6359_v35, %v4800_v43  ;;  %v4953_v30 = vadd.f32 %v6353_v5, %v4792_v23 }
 0x26e   : > { %v5273_v39 = vadd.f32 %v8100_v13, %v5234_v31  ;;  %v5232_v50 = vmul.f32 %v8088_v45, %v5101_v29  ;;  %v4642_v31 = vadd.f32 %v6138_v60, %v6026_v53  ;;  %v8585_v29 = vld [vmem:[#allocation117_spill] sm:$0xff]  ;;  %v5302_v46 = vmax.f32 %v5270_v51, 0.0 }
 0x26f   : > { %v6244_v37 = vadd.f32 %v8586_v57, %v8585_v29  ;;  %v8148_v53 = vpop.f32.mrf.mxu1  ;;  %v4634_v60 = vadd.f32 %v6132_v1, %v6020_v36  ;;  %v8589_v29 = vld [vmem:[#allocation38_spill] sm:$0xff]  ;;  %v8590_v57 = vld [vmem:[#allocation40_spill] sm:$0xff] }
 0x270   : > { %v5305_v11 = vmax.f32 %v5273_v39, 0.0  ;;  %v5271_v42 = vadd.f32 %v8100_v13, %v5232_v50  ;;  %v4803_v4 = vadd.f32 %v6250_v6, %v4642_v31  ;;  %v6356_v50 = vadd.f32 %v7966_v21, %v7962_v34  ;;  %v8588_v34 = vld [vmem:[#allocation75_spill] sm:$0xff] }
 0x271   : > { %v6481_v39 = vpop.f32.mrf.mxu0  ;;  %v4795_v43 = vadd.f32 %v6244_v37, %v4634_v60  ;;  %v8155_v51 = vpop.f32.mrf.mxu1  ;;  %v6035_v37 = vadd.f32 %v8590_v57, %v8589_v29  ;;  %v8601_v57 = vld [vmem:[#allocation34_spill] sm:$0xff] }
 0x272   : > { %v5900_v44 = vpack.c.bf16 %v5305_v11, %v5304_v2  ;;  %v5303_v17 = vmax.f32 %v5271_v42, 0.0  ;;  %v5122_v49 = vadd.f32 %v6481_v39, %v4961_v62  ;;  %v4964_v58 = vadd.f32 %v6362_v47, %v4803_v4  ;;  %v8587_v2 = vld [vmem:[#allocation73_spill] sm:$0xff]  ;;  %v8592_v47 = vld [vmem:[#allocation67_spill] sm:$0xff]  ;;  %v8594_v39 = vld [vmem:[#allocation32_spill] sm:$0xff] }
 0x273   : > { %v5113_v35 = vpop.f32.mrf.mxu0  ;;  %v4956_v6 = vadd.f32 %v6356_v50, %v4795_v43  ;;  %v6147_v21 = vadd.f32 %v8588_v34, %v8587_v2  ;;  %v8162_v31 = vpop.f32.mrf.mxu1  ;;  %v8591_v62 = vld [vmem:[#allocation65_spill] sm:$0xff]  ;;  %v8593_v4 = vld [vmem:[#allocation31_spill] sm:$0xff]  ;;  %v6371_v43 = vadd.f32 %v8006_v25, %v8000_v10 }
 0x274   : > { %5972 = vst [vmem:[%s8144_s11 + $0x8] sm:$0xff] %v5900_v44   ;;  %v5895_v33 = vpack.c.bf16 %v5303_v17, %v5302_v46  ;;  %v5237_v41 = vmul.f32 %v8088_v45, %v5122_v49  ;;  %v5114_v22 = vadd.f32 %v5113_v35, %v4953_v30  ;;  %v6141_v46 = vadd.f32 %v8592_v47, %v8591_v62  ;;  %v8595_v49 = vld [vmem:[#allocation77_spill] sm:$0xff]  ;;  %v8596_v30 = vld [vmem:[#allocation79_spill] sm:$0xff] }
 0x275   : > { %v6482_v19 = vpop.f32.mrf.mxu0  ;;  %v6029_v50 = vadd.f32 %v8594_v39, %v8593_v4  ;;  %v6150_v35 = vadd.f32 %v8596_v30, %v8595_v49  ;;  %v8599_v34 = vld [vmem:[#allocation69_spill] sm:$0xff] }
 0x276   : > { %5896 = vst [vmem:[%s8144_s11] sm:$0xff] %v5895_v33   ;;  %v5235_v36 = vmul.f32 %v8088_v45, %v5114_v22  ;;  %v5125_v1 = vadd.f32 %v6482_v19, %v4964_v58  ;;  %v5276_v5 = vadd.f32 %v8100_v13, %v5237_v41  ;;  %v4655_v33 = vadd.f32 %v6147_v21, %v6035_v37  ;;  %v8602_v37 = vld [vmem:[#allocation36_spill] sm:$0xff] }
 0x277   : > { %v5116_v11 = vpop.f32.mrf.mxu0  ;;  %v4647_v2 = vadd.f32 %v6141_v46, %v6029_v50  ;;  %v6032_v62 = vadd.f32 %v8602_v37, %v8601_v57  ;;  %v8611_v37 = vld [vmem:[#allocation92_spill] sm:$0xff] }
 0x278   : > { %v5238_v42 = vmul.f32 %v8088_v45, %v5125_v1  ;;  %v5117_v23 = vadd.f32 %v5116_v11, %v4956_v6  ;;  %v5274_v44 = vadd.f32 %v8100_v13, %v5235_v36  ;;  %v5308_v41 = vmax.f32 %v5276_v5, 0.0  ;;  %v8597_v36 = vld [vmem:[#allocation42_spill] sm:$0xff]  ;;  %v8598_v1 = vld [vmem:[#allocation44_spill] sm:$0xff]  ;;  %v8600_v11 = vld [vmem:[#allocation71_spill] sm:$0xff] }
 0x279   : > { %v6038_v6 = vadd.f32 %v8598_v1, %v8597_v36  ;;  %v6144_v21 = vadd.f32 %v8600_v11, %v8599_v34  ;;  %v4808_v46 = vadd.f32 %v7890_v16, %v4647_v2  ;;  %v8605_v36 = vld [vmem:[#allocation54_spill] sm:$0xff]  ;;  %v8606_v1 = vld [vmem:[#allocation56_spill] sm:$0xff]  ;;  %v8607_v2 = vld [vmem:[#allocation81_spill] sm:$0xff] }
 0x27a   : > { %v5277_v17 = vadd.f32 %v8100_v13, %v5238_v42  ;;  %v5236_v60 = vmul.f32 %v8088_v45, %v5117_v23  ;;  %v4816_v42 = vadd.f32 %v7902_v24, %v4655_v33  ;;  %v6365_v23 = vadd.f32 %v7990_v15, %v7984_v28  ;;  %v8608_v34 = vld [vmem:[#allocation83_spill] sm:$0xff] }
 0x27b   : > { %v5306_v10 = vmax.f32 %v5274_v44, 0.0  ;;  %v4658_v47 = vadd.f32 %v6150_v35, %v6038_v6  ;;  %v4650_v4 = vadd.f32 %v6144_v21, %v6032_v62  ;;  %v6368_v44 = vadd.f32 %v7996_v9, %v7992_v63  ;;  %v8603_v35 = vld [vmem:[#allocation88_spill] sm:$0xff]  ;;  %v8612_v62 = vld [vmem:[#allocation93_spill] sm:$0xff] }
 0x27c   : > { %v5309_v22 = vmax.f32 %v5277_v17, 0.0  ;;  %v5275_v58 = vadd.f32 %v8100_v13, %v5236_v60  ;;  %v8178_v19 = vpop.f32.mrf.mxu1  ;;  %v6374_v17 = vadd.f32 %v8013_v48, %v8009_v7  ;;  %v4977_v60 = vadd.f32 %v6371_v43, %v4816_v42  ;;  %v8604_v43 = vld [vmem:[#allocation90_spill] sm:$0xff] }
 0x27d   : > { %v4819_v15 = vadd.f32 %v7912_v20, %v4658_v47  ;;  %v4969_v50 = vadd.f32 %v6365_v23, %v4808_v46  ;;  %v4811_v16 = vadd.f32 %v7896_v18, %v4650_v4  ;;  %v6047_v6 = vadd.f32 %v8606_v1, %v8605_v36 }
 0x27e   : > { %v5910_v25 = vpack.c.bf16 %v5309_v22, %v5308_v41  ;;  %v5307_v5 = vmax.f32 %v5275_v58, 0.0  ;;  %v8187_v29 = vpop.f32.mrf.mxu1  ;;  %v6159_v41 = vadd.f32 %v8604_v43, %v8603_v35  ;;  %v6153_v18 = vadd.f32 %v8608_v34, %v8607_v2 }
 0x27f   : > { %v6485_v28 = vpop.f32.mrf.mxu0  ;;  %v4980_v30 = vadd.f32 %v6374_v17, %v4819_v15  ;;  %v4972_v9 = vadd.f32 %v6368_v44, %v4811_v16  ;;  %v6162_v47 = vadd.f32 %v8612_v62, %v8611_v37  ;;  %v6383_v46 = vadd.f32 %v8037_v14, %v8033_v59  ;;  %v8613_v17 = vld [vmem:[#allocation84_spill] sm:$0xff]  ;;  %v8617_v14 = vld [vmem:[#allocation50_spill] sm:$0xff] }
 0x280   : > { %5974 = vst [vmem:[%s8144_s11 + $0x18] sm:$0xff] %v5910_v25   ;;  %v5905_v24 = vpack.c.bf16 %v5307_v5, %v5306_v10  ;;  %v5138_v39 = vadd.f32 %v6485_v28, %v4977_v60  ;;  %v8199_v33 = vpop.f32.mrf.mxu1  ;;  %v8609_v10 = vld [vmem:[#allocation46_spill] sm:$0xff]  ;;  %v8610_v25 = vld [vmem:[#allocation48_spill] sm:$0xff]  ;;  %v4671_v57 = vadd.f32 %v6159_v41, %v6047_v6  ;;  %v6377_v59 = vadd.f32 %v8024_v55, %v8018_v26 }
 0x281   : > { %v5129_v49 = vpop.f32.mrf.mxu0  ;;  %v6041_v5 = vadd.f32 %v8610_v25, %v8609_v10  ;;  %v6380_v34 = vadd.f32 %v8031_v0, %v8027_v61  ;;  %v8619_v61 = vld [vmem:[#allocation102_spill] sm:$0xff]  ;;  %v8620_v0 = vld [vmem:[#allocation104_spill] sm:$0xff] }
 0x282   : > { %5973 = vst [vmem:[%s8144_s11 + $0x10] sm:$0xff] %v5905_v24   ;;  %v5241_v7 = vmul.f32 %v8088_v45, %v5138_v39  ;;  %v5130_v48 = vadd.f32 %v5129_v49, %v4969_v50  ;;  %v8206_v63 = vpop.f32.mrf.mxu1  ;;  %v8614_v24 = vld [vmem:[#allocation86_spill] sm:$0xff]  ;;  %v8616_v50 = vld [vmem:[#allocation60_spill] sm:$0xff]  ;;  %v6171_v37 = vadd.f32 %v8620_v0, %v8619_v61 }
 0x283   : > { %v6486_v22 = vpop.f32.mrf.mxu0  ;;  %v6156_v60 = vadd.f32 %v8614_v24, %v8613_v17  ;;  %v8615_v39 = vld [vmem:[#allocation58_spill] sm:$0xff]  ;;  %v4663_v16 = vadd.f32 %v6153_v18, %v6041_v5 }
 0x284   : > { %v5239_v20 = vmul.f32 %v8088_v45, %v5130_v48  ;;  %v5141_v58 = vadd.f32 %v6486_v22, %v4980_v30  ;;  %v5280_v21 = vadd.f32 %v8100_v13, %v5241_v7  ;;  %v6050_v49 = vadd.f32 %v8616_v50, %v8615_v39  ;;  %v8618_v48 = vld [vmem:[#allocation52_spill] sm:$0xff]  ;;  %v8621_v24 = vld [vmem:[#allocation70_spill] sm:$0xff] }
 0x285   : > { %v5132_v11 = vpop.f32.mrf.mxu0  ;;  %v4832_v7 = vadd.f32 %v7936_v52, %v4671_v57  ;;  %v6044_v30 = vadd.f32 %v8618_v48, %v8617_v14 }
 0x286   : > { %v5242_v42 = vmul.f32 %v8088_v45, %v5141_v58  ;;  %v5133_v23 = vadd.f32 %v5132_v11, %v4972_v9  ;;  %v5278_v4 = vadd.f32 %v8100_v13, %v5239_v20  ;;  %v5312_v35 = vmax.f32 %v5280_v21, 0.0 }
 0x287   : > { %v4674_v22 = vadd.f32 %v6162_v47, %v6050_v49  ;;  %v4824_v20 = vadd.f32 %v7920_v27, %v4663_v16  ;;  %v6386_v58 = vadd.f32 %v8049_v40, %v8040_v12  ;;  %v4993_v9 = vadd.f32 %v6383_v46, %v4832_v7  ;;  %v8625_v7 = vld [vmem:[#allocation62_spill] sm:$0xff] }
 0x288   : > { %v5281_v28 = vadd.f32 %v8100_v13, %v5242_v42  ;;  %v5240_v15 = vmul.f32 %v8088_v45, %v5133_v23  ;;  %v4666_v52 = vadd.f32 %v6156_v60, %v6044_v30  ;;  %v5310_v1 = vmax.f32 %v5278_v4, 0.0  ;;  %v8622_v60 = vld [vmem:[#allocation72_spill] sm:$0xff]  ;;  %v8627_v30 = vld [vmem:[#allocation106_spill] sm:$0xff] }
 0x289   : > { %v8225_v44 = vpop.f32.mrf.mxu1  ;;  %v4835_v2 = vadd.f32 %v7946_v32, %v4674_v22  ;;  %v4985_v11 = vadd.f32 %v6377_v59, %v4824_v20  ;;  %v6059_v4 = vadd.f32 %v8622_v60, %v8621_v24  ;;  %v8626_v59 = vld [vmem:[#allocation64_spill] sm:$0xff] }
 0x28a   : > { %v5313_v43 = vmax.f32 %v5281_v28, 0.0  ;;  %v5279_v41 = vadd.f32 %v8100_v13, %v5240_v15  ;;  %v4827_v40 = vadd.f32 %v7928_v38, %v4666_v52  ;;  %v8623_v28 = vld [vmem:[#allocation95_spill] sm:$0xff]  ;;  %v8624_v15 = vld [vmem:[#allocation97_spill] sm:$0xff]  ;;  %v6053_v14 = vadd.f32 %v8626_v59, %v8625_v7  ;;  %v8629_v52 = vld [vmem:[#allocation74_spill] sm:$0xff] }
 0x28b   : > { %v8238_v36 = vpop.f32.mrf.mxu1  ;;  %v4996_v10 = vadd.f32 %v6386_v58, %v4835_v2  ;;  %v6165_v39 = vadd.f32 %v8624_v15, %v8623_v28  ;;  %v4687_v48 = vadd.f32 %v6171_v37, %v6059_v4  ;;  %v8632_v2 = vld [vmem:[#allocation100_spill] sm:$0xff]  ;;  %v8639_v28 = vld [vmem:[#allocation129_spill] sm:$0xff] }
 0x28c   : > { %v5920_v26 = vpack.c.bf16 %v5313_v43, %v5312_v35  ;;  %v5311_v55 = vmax.f32 %v5279_v41, 0.0  ;;  %v4988_v57 = vadd.f32 %v6380_v34, %v4827_v40  ;;  %v8628_v35 = vld [vmem:[#allocation109_spill] sm:$0xff]  ;;  %v6395_v41 = vadd.f32 %v8148_v53, %v8132_v8 }
 0x28d   : > { %v8246_v23 = vpop.f32.mrf.mxu1  ;;  %v6174_v43 = vadd.f32 %v8628_v35, %v8627_v30  ;;  %v8642_v30 = vld [vmem:[#allocation87_spill] sm:$0xff]  ;;  %v8643_v35 = vld [vmem:[#allocation89_spill] sm:$0xff] }
 0x28e   : > { %5976 = vst [vmem:[%s8144_s11 + $0x28] sm:$0xff] %v5920_v26   ;;  %v5915_v27 = vpack.c.bf16 %v5311_v55, %v5310_v1  ;;  %v8630_v1 = vld [vmem:[#allocation76_spill] sm:$0xff]  ;;  %v4679_v55 = vadd.f32 %v6165_v39, %v6053_v14 }
 0x28f   : > { %v6489_v6 = vpop.f32.mrf.mxu0  ;;  %v8254_v46 = vpop.f32.mrf.mxu1  ;;  %v6062_v26 = vadd.f32 %v8630_v1, %v8629_v52 }
 0x290   : > { %v5154_v18 = vadd.f32 %v6489_v6, %v4993_v9  ;;  %5975 = vst [vmem:[%s8144_s11 + $0x20] sm:$0xff] %v5915_v27   ;;  %v8631_v6 = vld [vmem:[#allocation98_spill] sm:$0xff]  ;;  %v6389_v27 = vadd.f32 %v8079_v3, %v8071_v54  ;;  %v8637_v3 = vld [vmem:[#allocation131_spill] sm:$0xff] }
 0x291   : > { %v5145_v21 = vpop.f32.mrf.mxu0  ;;  %v6168_v34 = vadd.f32 %v8632_v2, %v8631_v6  ;;  %v8647_v6 = vld [vmem:[#allocation80_spill] sm:$0xff] }
 0x292   : > { %v5245_v12 = vmul.f32 %v8088_v45, %v5154_v18  ;;  %v5146_v42 = vadd.f32 %v5145_v21, %v4985_v11  ;;  %v8633_v18 = vld [vmem:[#allocation130_spill] sm:$0xff] }
 0x293   : > { %v6490_v25 = vpop.f32.mrf.mxu0  ;;  %v4848_v11 = vadd.f32 %v8633_v18, %v4687_v48  ;;  %v8648_v18 = vld [vmem:[#allocation122_spill] sm:$0xff] }
 0x294   : > { %v5243_v32 = vmul.f32 %v8088_v45, %v5146_v42  ;;  %v5157_v5 = vadd.f32 %v6490_v25, %v4996_v10  ;;  %v5284_v47 = vadd.f32 %v8100_v13, %v5245_v12  ;;  %v8634_v12 = vld [vmem:[#allocation66_spill] sm:$0xff]  ;;  %v8635_v42 = vld [vmem:[#allocation68_spill] sm:$0xff]  ;;  %v4690_v25 = vadd.f32 %v6174_v43, %v6062_v26 }
 0x295   : > { %v5148_v62 = vpop.f32.mrf.mxu0  ;;  %v6056_v10 = vadd.f32 %v8635_v42, %v8634_v12  ;;  %v5009_v0 = vadd.f32 %v6395_v41, %v4848_v11  ;;  %v6071_v43 = vadd.f32 %v8643_v35, %v8642_v30  ;;  %v8644_v41 = vld [vmem:[#allocation111_spill] sm:$0xff]  ;;  %v8649_v11 = vld [vmem:[#allocation125_spill] sm:$0xff] }
 0x296   : > { %v5246_v38 = vmul.f32 %v8088_v45, %v5157_v5  ;;  %v5149_v17 = vadd.f32 %v5148_v62, %v4988_v57  ;;  %v5282_v50 = vadd.f32 %v8100_v13, %v5243_v32  ;;  %v5316_v22 = vmax.f32 %v5284_v47, 0.0  ;;  %v8636_v32 = vld [vmem:[#allocation128_spill] sm:$0xff] }
 0x297   : > { %v8270_v9 = vpop.f32.mrf.mxu1  ;;  %v4840_v5 = vadd.f32 %v8636_v32, %v4679_v55  ;;  %v6398_v57 = vadd.f32 %v8162_v31, %v8155_v51  ;;  %v4682_v37 = vadd.f32 %v6168_v34, %v6056_v10  ;;  %v4851_v62 = vadd.f32 %v8637_v3, %v4690_v25  ;;  %v8638_v47 = vld [vmem:[#allocation20_spill] sm:$0xff]  ;;  %v8646_v55 = vld [vmem:[#allocation78_spill] sm:$0xff] }
 0x298   : > { %v5285_v49 = vadd.f32 %v8100_v13, %v5246_v38  ;;  %v5244_v16 = vmul.f32 %v8088_v45, %v5149_v17  ;;  %v5314_v8 = vmax.f32 %v5282_v50, 0.0  ;;  %v6493_v54 = vpop.f32.mrf.mxu0  ;;  %v6392_v38 = vadd.f32 %v8638_v47, %v8092_v56  ;;  %v8640_v50 = vld [vmem:[#allocation118_spill] sm:$0xff] }
 0x299   : > { %v8279_v40 = vpop.f32.mrf.mxu1  ;;  %v5170_v17 = vadd.f32 %v6493_v54, %v5009_v0  ;;  %v5001_v24 = vadd.f32 %v6389_v27, %v4840_v5  ;;  %v4843_v15 = vadd.f32 %v8639_v28, %v4682_v37  ;;  %v5012_v39 = vadd.f32 %v6398_v57, %v4851_v62  ;;  %v8652_v5 = vld [vmem:[#allocation91_spill] sm:$0xff]  ;;  %v8653_v57 = vld [vmem:[#allocation94_spill] sm:$0xff] }
 0x29a   : > { %v5317_v20 = vmax.f32 %v5285_v49, 0.0  ;;  %v5283_v58 = vadd.f32 %v8100_v13, %v5244_v16  ;;  %v5161_v4 = vpop.f32.mrf.mxu0  ;;  %v8641_v49 = vld [vmem:[#allocation120_spill] sm:$0xff]  ;;  %v6065_v2 = vadd.f32 %v8647_v6, %v8646_v55  ;;  %v6186_v27 = vadd.f32 %v8649_v11, %v8648_v18  ;;  %v8654_v37 = vld [vmem:[#allocation134_spill] sm:$0xff] }
 0x29b   : > { %v8291_v60 = vpop.f32.mrf.mxu1  ;;  %v5249_v51 = vmul.f32 %v8088_v45, %v5170_v17  ;;  %v5162_v31 = vadd.f32 %v5161_v4, %v5001_v24  ;;  %v6183_v16 = vadd.f32 %v8641_v49, %v8640_v50  ;;  %v5004_v48 = vadd.f32 %v6392_v38, %v4843_v15  ;;  %v8657_v4 = vld [vmem:[#allocation132_spill] sm:$0xff] }
 0x29c   : > { %v5930_v53 = vpack.c.bf16 %v5317_v20, %v5316_v22  ;;  %v5315_v21 = vmax.f32 %v5283_v58, 0.0  ;;  %v6494_v7 = vpop.f32.mrf.mxu0  ;;  %v8645_v22 = vld [vmem:[#allocation112_spill] sm:$0xff]  ;;  %v6401_v3 = vadd.f32 %v8187_v29, %v8178_v19  ;;  %v6410_v15 = vadd.f32 %v8254_v46, %v8246_v23 }
 0x29d   : > { %v5247_v59 = vmul.f32 %v8088_v45, %v5162_v31  ;;  %v5173_v14 = vadd.f32 %v6494_v7, %v5012_v39  ;;  %v8298_v56 = vpop.f32.mrf.mxu1  ;;  %v6177_v20 = vadd.f32 %v8645_v22, %v8644_v41  ;;  %v5288_v52 = vadd.f32 %v8100_v13, %v5249_v51 }
 0x29e   : > { %5978 = vst [vmem:[%s8144_s11 + $0x38] sm:$0xff] %v5930_v53   ;;  %v5925_v61 = vpack.c.bf16 %v5315_v21, %v5314_v8  ;;  %v5164_v58 = vpop.f32.mrf.mxu0  ;;  %v4703_v34 = vadd.f32 %v6183_v16, %v6071_v43  ;;  %v6407_v8 = vadd.f32 %v8238_v36, %v8225_v44  ;;  %v8650_v53 = vld [vmem:[#allocation114_spill] sm:$0xff]  ;;  %v8651_v21 = vld [vmem:[#allocation116_spill] sm:$0xff]  ;;  %v8656_v36 = vld [vmem:[#allocation85_spill] sm:$0xff] }
 0x29f   : > { %v5250_v1 = vmul.f32 %v8088_v45, %v5173_v14  ;;  %v5165_v26 = vadd.f32 %v5164_v58, %v5004_v48  ;;  %v6180_v12 = vadd.f32 %v8651_v21, %v8650_v53  ;;  %v5286_v42 = vadd.f32 %v8100_v13, %v5247_v59  ;;  %v8655_v44 = vld [vmem:[#allocation82_spill] sm:$0xff]  ;;  %v8658_v16 = vld [vmem:[#allocation135_spill] sm:$0xff]  ;;  %v8659_v43 = vld [vmem:[#allocation133_spill] sm:$0xff] }
 0x2a0   : > { %5977 = vst [vmem:[%s8144_s11 + $0x30] sm:$0xff] %v5925_v61   ;;  %v6074_v61 = vadd.f32 %v8653_v57, %v8652_v5  ;;  %v4695_v0 = vadd.f32 %v6177_v20, %v6065_v2  ;;  %v4864_v54 = vadd.f32 %v8654_v37, %v4703_v34  ;;  %v6068_v62 = vadd.f32 %v8656_v36, %v8655_v44  ;;  %v8660_v37 = vld [vmem:[#allocation8_spill] sm:$0xff] }
 0x2a1   : > { %v5289_v10 = vadd.f32 %v8100_v13, %v5250_v1  ;;  %v5248_v25 = vmul.f32 %v8088_v45, %v5165_v26  ;;  %v5320_v47 = vmax.f32 %v5288_v52, 0.0  ;;  %v5318_v50 = vmax.f32 %v5286_v42, 0.0  ;;  %v8661_v36 = vld [vmem:[#allocation136_spill] sm:$0xff] }
 0x2a2   : > { %v6417_v32 = vpop.f32.mrf.mxu1  ;;  %v4706_v24 = vadd.f32 %v6186_v27, %v6074_v61  ;;  %v4856_v28 = vadd.f32 %v8657_v4, %v4695_v0  ;;  %v5025_v51 = vadd.f32 %v6407_v8, %v4864_v54  ;;  %v4698_v39 = vadd.f32 %v6180_v12, %v6068_v62 }
 0x2a3   : > { %v5321_v38 = vmax.f32 %v5289_v10, 0.0  ;;  %v5287_v17 = vadd.f32 %v8100_v13, %v5248_v25  ;;  %v6404_v59 = vadd.f32 %v8206_v63, %v8199_v33  ;;  %v6413_v42 = vadd.f32 %v8279_v40, %v8270_v9 }
 0x2a4   : > { %v6418_v31 = vpop.f32.mrf.mxu1  ;;  %v4867_v7 = vadd.f32 %v8658_v16, %v4706_v24  ;;  %v5017_v48 = vadd.f32 %v6401_v3, %v4856_v28  ;;  %v4859_v23 = vadd.f32 %v8659_v43, %v4698_v39 }
 0x2a5   : > { %v5940_v19 = vpack.c.bf16 %v5321_v38, %v5320_v47  ;;  %v5319_v29 = vmax.f32 %v5287_v17, 0.0  ;;  %v6419_v8 = vadd.f32 %v6418_v31, %v6417_v32  ;;  %v6416_v32 = vadd.f32 %v8298_v56, %v8291_v60  ;;  %v8662_v17 = vld [vmem:[#allocation10_spill] sm:$0xff]  ;;  %v8663_v31 = vld [vmem:[#allocation137_spill] sm:$0xff] }
 0x2a6   : > { %v6497_v49 = vpop.f32.mrf.mxu0  ;;  %v6420_v22 = vpop.f32.mrf.mxu1  ;;  %v5028_v20 = vadd.f32 %v6410_v15, %v4867_v7  ;;  %v5020_v26 = vadd.f32 %v6404_v59, %v4859_v23  ;;  %v5033_v62 = vadd.f32 %v6413_v42, %v8661_v36 }
 0x2a7   : > { %v5186_v14 = vadd.f32 %v6497_v49, %v5025_v51  ;;  %5980 = vst [vmem:[%s8144_s11 + $0x48] sm:$0xff] %v5940_v19   ;;  %v5935_v30 = vpack.c.bf16 %v5319_v29, %v5318_v50  ;;  %v5041_v54 = vadd.f32 %v6419_v8, %v8660_v37  ;;  %v5036_v39 = vadd.f32 %v6416_v32, %v8663_v31 }
 0x2a8   : > { %v5177_v35 = vpop.f32.mrf.mxu0  ;;  %v6421_v6 = vpop.f32.mrf.mxu1 }
 0x2a9   : > { %v5253_v46 = vmul.f32 %v8088_v45, %v5186_v14  ;;  %v5178_v41 = vadd.f32 %v5177_v35, %v5017_v48  ;;  %5979 = vst [vmem:[%s8144_s11 + $0x40] sm:$0xff] %v5935_v30   ;;  %v6422_v61 = vadd.f32 %v6421_v6, %v6420_v22 }
 0x2aa   : > { %v6498_v58 = vpop.f32.mrf.mxu0 }
 0x2ab   : > { %v5251_v52 = vmul.f32 %v8088_v45, %v5178_v41  ;;  %v5189_v1 = vadd.f32 %v6498_v58, %v5028_v20  ;;  %v5292_v33 = vadd.f32 %v8100_v13, %v5253_v46  ;;  %v5044_v24 = vadd.f32 %v6422_v61, %v8662_v17 }
 0x2ac   : > { %v5180_v55 = vpop.f32.mrf.mxu0 }
 0x2ad   : > { %v5254_v63 = vmul.f32 %v8088_v45, %v5189_v1  ;;  %v5181_v2 = vadd.f32 %v5180_v55, %v5020_v26  ;;  %v5290_v34 = vadd.f32 %v8100_v13, %v5251_v52  ;;  %v5324_v27 = vmax.f32 %v5292_v33, 0.0  ;;  %v8664_v52 = vld [vmem:[#allocation17_spill] sm:$0xff]  ;;  %v8665_v26 = vld [vmem:[#allocation12_spill] sm:$0xff] }
 0x2af   : > { %v5293_v18 = vadd.f32 %v8100_v13, %v5254_v63  ;;  %v5252_v11 = vmul.f32 %v8088_v45, %v5181_v2  ;;  %v6423_v12 = vpop.f32.mrf.mxu1  ;;  %v5322_v10 = vmax.f32 %v5290_v34, 0.0 }
 0x2b1   : > { %v5325_v53 = vmax.f32 %v5293_v18, 0.0  ;;  %v5291_v21 = vadd.f32 %v8100_v13, %v5252_v11  ;;  %v6424_v57 = vpop.f32.mrf.mxu1 }
 0x2b2   : > { %v6425_v59 = vadd.f32 %v6424_v57, %v6423_v12  ;;  %v8667_v12 = vld [vmem:[#allocation14_spill] sm:$0xff] }
 0x2b3   : > { %v5950_v25 = vpack.c.bf16 %v5325_v53, %v5324_v27  ;;  %v5323_v5 = vmax.f32 %v5291_v21, 0.0  ;;  %v6501_v3 = vpop.f32.mrf.mxu0  ;;  %v6426_v47 = vpop.f32.mrf.mxu1  ;;  %v8666_v53 = vld [vmem:[#allocation19_spill] sm:$0xff] }
 0x2b4   : > { %v5202_v44 = vadd.f32 %v6501_v3, %v5041_v54  ;;  %v5049_v55 = vadd.f32 %v6425_v59, %v8665_v26 }
 0x2b5   : > { %5982 = vst [vmem:[%s8144_s11 + $0x58] sm:$0xff] %v5950_v25   ;;  %v5945_v0 = vpack.c.bf16 %v5323_v5, %v5322_v10  ;;  %v5193_v38 = vpop.f32.mrf.mxu0  ;;  %v6427_v51 = vpop.f32.mrf.mxu1 }
 0x2b6   : > { %v5257_v9 = vmul.f32 %v8088_v45, %v5202_v44  ;;  %v5194_v40 = vadd.f32 %v5193_v38, %v5033_v62  ;;  %v6428_v58 = vadd.f32 %v6427_v51, %v6426_v47 }
 0x2b7   : > { %5981 = vst [vmem:[%s8144_s11 + $0x50] sm:$0xff] %v5945_v0   ;;  %v6502_v4 = vpop.f32.mrf.mxu0 }
 0x2b8   : > { %v5255_v28 = vmul.f32 %v8088_v45, %v5194_v40  ;;  %v5205_v15 = vadd.f32 %v6502_v4, %v5044_v24  ;;  %v5296_v60 = vadd.f32 %v8100_v13, %v5257_v9  ;;  %v5052_v42 = vadd.f32 %v6428_v58, %v8667_v12 }
 0x2b9   : > { %v5196_v50 = vpop.f32.mrf.mxu0 }
 0x2ba   : > { %v5258_v56 = vmul.f32 %v8088_v45, %v5205_v15  ;;  %v5197_v19 = vadd.f32 %v5196_v50, %v5036_v39  ;;  %v5294_v29 = vadd.f32 %v8100_v13, %v5255_v28  ;;  %v5328_v14 = vmax.f32 %v5296_v60, 0.0 }
 0x2bc   : > { %v5297_v49 = vadd.f32 %v8100_v13, %v5258_v56  ;;  %v5256_v16 = vmul.f32 %v8088_v45, %v5197_v19  ;;  %v6429_v7 = vpop.f32.mrf.mxu1  ;;  %v5326_v23 = vmax.f32 %v5294_v29, 0.0 }
 0x2be   : > { %v5329_v48 = vmax.f32 %v5297_v49, 0.0  ;;  %v5295_v30 = vadd.f32 %v8100_v13, %v5256_v16  ;;  %v6430_v35 = vpop.f32.mrf.mxu1 }
 0x2bf   : > { %v6431_v43 = vadd.f32 %v6430_v35, %v6429_v7 }
 0x2c0   : > { %v5960_v46 = vpack.c.bf16 %v5329_v48, %v5328_v14  ;;  %v5327_v41 = vmax.f32 %v5295_v30, 0.0  ;;  %v6432_v20 = vpop.f32.mrf.mxu1 }
 0x2c1   : > { %v5057_v1 = vadd.f32 %v6431_v43, %v8664_v52 }
 0x2c2   : > { %5984 = vst [vmem:[%s8144_s11 + $0x68] sm:$0xff] %v5960_v46   ;;  %v5955_v33 = vpack.c.bf16 %v5327_v41, %v5326_v23  ;;  %v6433_v6 = vpop.f32.mrf.mxu1 }
 0x2c3   : > { %v6434_v18 = vadd.f32 %v6433_v6, %v6432_v20 }
 0x2c4   : > { %5983 = vst [vmem:[%s8144_s11 + $0x60] sm:$0xff] %v5955_v33  }
 0x2c5   : > { %v5060_v21 = vadd.f32 %v6434_v18, %v8666_v53 }
 0x2ca   : > { %v6505_v22 = vpop.f32.mrf.mxu0 }
 0x2cb   : > { %v5218_v2 = vadd.f32 %v6505_v22, %v5057_v1 }
 0x2cc   : > { %v5209_v63 = vpop.f32.mrf.mxu0 }
 0x2cd   : > { %v5210_v34 = vadd.f32 %v5209_v63, %v5049_v55  ;;  %v5261_v27 = vmul.f32 %v8088_v45, %v5218_v2 }
 0x2ce   : > { %v6506_v11 = vpop.f32.mrf.mxu0 }
 0x2cf   : > { %v5259_v8 = vmul.f32 %v8088_v45, %v5210_v34  ;;  %v5221_v25 = vadd.f32 %v6506_v11, %v5060_v21  ;;  %v5300_v57 = vadd.f32 %v8100_v13, %v5261_v27 }
 0x2d0   : > { %v5212_v10 = vpop.f32.mrf.mxu0 }
 0x2d1   : > { %v5213_v5 = vadd.f32 %v5212_v10, %v5052_v42  ;;  %v5298_v61 = vadd.f32 %v8100_v13, %v5259_v8  ;;  %v5262_v0 = vmul.f32 %v8088_v45, %v5221_v25  ;;  %v5332_v32 = vmax.f32 %v5300_v57, 0.0 }
 0x2d3   : > { %v5260_v37 = vmul.f32 %v8088_v45, %v5213_v5  ;;  %v5301_v54 = vadd.f32 %v8100_v13, %v5262_v0  ;;  %v5330_v44 = vmax.f32 %v5298_v61, 0.0 }
 0x2d5   : > { %v5299_v3 = vadd.f32 %v8100_v13, %v5260_v37  ;;  %v5333_v36 = vmax.f32 %v5301_v54, 0.0 }
 0x2d7   : > { %v5331_v62 = vmax.f32 %v5299_v3, 0.0  ;;  %v5970_v47 = vpack.c.bf16 %v5333_v36, %v5332_v32 }
 0x2d9   : > { %v5965_v38 = vpack.c.bf16 %v5331_v62, %v5330_v44  ;;  %5986 = vst [vmem:[%s8144_s11 + $0x78] sm:$0xff] %v5970_v47  }
 0x2db   : > { %5985 = vst [vmem:[%s8144_s11 + $0x70] sm:$0xff] %v5965_v38  }
 0x2dc PF: > { %s14_s15 = sadd.s32 1, %s6800_s15  }
 0x2dd   : > { %p11_p4 = scmp.ge.s32.totalorder %s14_s15, 4  }
 0x2df   :  { %13 = sbr.rel (!%p11_p4) target bundleno = 1 (0x1), region = 68 }

</bundles_post_ra>
